<compile_context>
chip_gen: v5e
topology: v5e:2x2
jax: 0.10.0
libtpu: 0.0.40
codegen_flags: <defaults>
</compile_context>

<pallas_src>
import numpy as np
import jax
import jax.numpy as jnp
from jax.experimental import pallas as pl
from jax.experimental.pallas import tpu as pltpu

# ------------------------------ configuration ------------------------------
LAYERS = 2
CHANNELS = 32
VOICES = 2
SAMPLES_PER_FRAME = 16
TOTAL_FRAMES = 8
TIME = TOTAL_FRAMES
MAX_ITER = TOTAL_FRAMES                       # an instrument never runs more than `time` iters
N_OSC = 64
N_ROOMS = 8
N_COEFFS = SAMPLES_PER_FRAME * 2 // 2 + 1     # = samples_per_frame + 1 = 17
TOTAL_SAMPLES = SAMPLES_PER_FRAME * TOTAL_FRAMES   # 128
INIT_SCALE = 0.05
N_STACKS = 4                                  # stacks grouped per fused kernel

_VMEM = pl.BlockSpec(memory_space=pltpu.MemorySpace.VMEM)


# ---------------- precomputed constant matrices (trace-time numpy) ----------------
def _interp_matrix():
    """F.interpolate(mode='linear', align_corners=False) frames(MAX_ITER) -> samples, as a matmul."""
    pos = (np.arange(TOTAL_SAMPLES, dtype=np.float64) + 0.5) / SAMPLES_PER_FRAME - 0.5
    pos = np.clip(pos, 0.0, MAX_ITER - 1)
    lo = np.floor(pos).astype(np.int64)
    hi = np.minimum(lo + 1, MAX_ITER - 1)
    w = (pos - lo).astype(np.float32)
    m = np.zeros((MAX_ITER, TOTAL_SAMPLES), np.float32)
    cols = np.arange(TOTAL_SAMPLES)
    m[lo, cols] += 1.0 - w
    m[hi, cols] += w
    return m


_W_INTERP = _interp_matrix()                                     # (MAX_ITER, 128)
_CAUSAL = np.triu(np.ones((TOTAL_SAMPLES, TOTAL_SAMPLES), np.float32))  # inclusive cumsum


def _leaky(h):
    return jnp.where(h >= 0.0, h, 0.2 * h)


# ================================ Pallas kernels ================================
def _head_kernel(x_ref, wh_ref, bh_ref,
                 net_wo_ref, net_bo_ref, rt_wo_ref, rt_bo_ref,
                 rm_wo_ref, rm_bo_ref, mx_wo_ref, mx_bo_ref,
                 x2_ref, routes_ref, rooms_ref, mix_ref):
    """Fused conductor front-end: net -> (router, to_rooms, to_mix)."""

    def stack(h, s, wo_ref, bo_ref):
        for l in range(LAYERS):
            w = wh_ref[s * LAYERS + l]                      # (C, C)
            b = bh_ref[s * LAYERS + l]                      # (1, C)
            h = _leaky(jnp.dot(h, w, preferred_element_type=jnp.float32) + b)
        return jnp.dot(h, wo_ref[...], preferred_element_type=jnp.float32) + bo_ref[...]

    x2 = stack(x_ref[...], 0, net_wo_ref, net_bo_ref)       # (T, C)
    x2_ref[...] = x2
    routes_ref[...] = stack(x2, 1, rt_wo_ref, rt_bo_ref)    # (T, VOICES)
    z = jnp.mean(x2, axis=0, keepdims=True)                 # (1, C)
    rooms_ref[...] = stack(z, 2, rm_wo_ref, rm_bo_ref)      # (1, N_ROOMS)
    mix_ref[...] = stack(z, 3, mx_wo_ref, mx_bo_ref)        # (1, 1)


def _recurrent_synth_kernel(vidx_ref, x_ref, wh_ref, bh_ref,
                            net_wo_ref, net_bo_ref, gate_wo_ref, gate_bo_ref,
                            noi_wo_ref, noi_bo_ref, osc_wo_ref, osc_bo_ref,
                            gates_ref, noise_ref, oscp_ref,
                            res_s, g_s):
    """One grid step == one conductor frame.  The voice's weights were selected by the
    scalar-prefetched routing index (the index_maps pick that voice's (1, ...) blocks)."""
    del vidx_ref  # consumed only by the index_maps

    def stack(h, s, wo_ref, bo_ref):
        for l in range(LAYERS):
            w = wh_ref[0, s * LAYERS + l]                   # (C, C)
            b = bh_ref[0, s * LAYERS + l]                   # (1, C)
            h = _leaky(jnp.dot(h, w, preferred_element_type=jnp.float32) + b)
        return jnp.dot(h, wo_ref[0], preferred_element_type=jnp.float32) + bo_ref[0]

    def unit_norm(v):
        n = jnp.sqrt(jnp.sum(v * v, axis=-1, keepdims=True))
        return v / (n + 1e-8)

    x = unit_norm(x_ref[0])                                 # (1, C)
    for k in range(MAX_ITER):                               # fixed-iteration recurrence; the
        x = unit_norm(stack(x, 0, net_wo_ref, net_bo_ref))  # data-dependent break is applied
        glog = stack(x, 1, gate_wo_ref, gate_bo_ref)        # outside via the gate outputs.
        m = jnp.max(glog, axis=-1, keepdims=True)
        e = jnp.exp(glog - m)
        g = e / jnp.sum(e, axis=-1, keepdims=True)          # softmax, (1, 2)
        x = x * g[:, 0:1]                                   # == x * (g @ mask), mask=[[1..1],[0..0]]
        res_s[pl.ds(k, 1), :] = x
        g_s[pl.ds(k, 1), :] = g

    res = res_s[...]                                        # (MAX_ITER, C)
    gates_ref[0] = g_s[...]
    noise_ref[0] = stack(res, 2, noi_wo_ref, noi_bo_ref)    # (MAX_ITER, N_COEFFS)
    oscp_ref[0] = stack(res, 3, osc_wo_ref, osc_bo_ref)     # (MAX_ITER, 2*N_OSC)


def _osc_tail_kernel(amp_ref, freq_ref, w_ref, tri_ref, out_ref):
    """Fused oscillator bank: frame->sample interpolation, phase = cumsum(freq*pi) as a
    causal matmul, sin, amp modulation, and the oscillator reduction as ones @ osc."""
    w = w_ref[...]                                                      # (MAX_ITER, S)
    amp = jnp.dot(amp_ref[0], w, preferred_element_type=jnp.float32)    # (N_OSC, S)
    freq = jnp.dot(freq_ref[0], w, preferred_element_type=jnp.float32)  # (N_OSC, S)
    phase = jnp.dot(freq * jnp.float32(np.pi), tri_ref[...],
                    preferred_element_type=jnp.float32)                 # inclusive cumsum
    osc = jnp.sin(phase) * amp
    ones = jnp.full((1, N_OSC), 1.0, dtype=jnp.float32)
    out_ref[0] = jnp.dot(ones, osc, preferred_element_type=jnp.float32)  # (1, S)


# =========================== deterministic parameters ===========================
def _uniform(key, shape, scale=INIT_SCALE):
    return jax.random.uniform(key, shape, jnp.float32, -scale, scale)


def make_stack_params(key, channels, layers, out_channels=None):
    """LinearOutputStack: `layers` x (Linear(C,C)+leaky_relu(0.2)) then Linear(C,out)."""
    out_channels = out_channels or channels
    k = jax.random.split(key, 4)
    return dict(
        wh=_uniform(k[0], (layers, channels, channels)),
        bh=_uniform(k[1], (layers, 1, channels)),
        wo=_uniform(k[2], (channels, out_channels)),
        bo=_uniform(k[3], (1, out_channels)),
    )


def _group_hidden(stacks):
    wh = jnp.concatenate([s["wh"] for s in stacks], axis=0)   # (4*L, C, C)
    bh = jnp.concatenate([s["bh"] for s in stacks], axis=0)   # (4*L, 1, C)
    return wh, bh


def make_conductor_params(key):
    keys = jax.random.split(key, VOICES + 6)

    # Per-voice instrument params, stacked on a leading (VOICES, ...) axis so the
    # recurrence kernel can select them with the scalar-prefetched routing index.
    per_voice = []
    for v in range(VOICES):
        ik = jax.random.split(keys[v], 4)
        net = make_stack_params(ik[0], CHANNELS, LAYERS)
        gate = make_stack_params(ik[1], CHANNELS, LAYERS, 2)
        to_noise = make_stack_params(ik[2], CHANNELS, LAYERS, N_COEFFS)
        to_osc = make_stack_params(ik[3], CHANNELS, LAYERS, 2 * N_OSC)
        wh, bh = _group_hidden([net, gate, to_noise, to_osc])
        per_voice.append(dict(
            wh=wh, bh=bh,
            net_wo=net["wo"], net_bo=net["bo"],
            gate_wo=gate["wo"], gate_bo=gate["bo"],
            noise_wo=to_noise["wo"], noise_bo=to_noise["bo"],
            osc_wo=to_osc["wo"], osc_bo=to_osc["bo"],
        ))
    inst = {k: jnp.stack([pv[k] for pv in per_voice]) for k in per_voice[0]}

    net = make_stack_params(keys[VOICES], CHANNELS, LAYERS)
    router = make_stack_params(keys[VOICES + 1], CHANNELS, LAYERS, VOICES)
    to_rooms = make_stack_params(keys[VOICES + 2], CHANNELS, LAYERS, N_ROOMS)
    to_mix = make_stack_params(keys[VOICES + 3], CHANNELS, LAYERS, 1)
    cwh, cbh = _group_hidden([net, router, to_rooms, to_mix])
    cond = dict(
        wh=cwh, bh=cbh,
        net_wo=net["wo"], net_bo=net["bo"],
        router_wo=router["wo"], router_bo=router["bo"],
        rooms_wo=to_rooms["wo"], rooms_bo=to_rooms["bo"],
        mix_wo=to_mix["wo"], mix_bo=to_mix["bo"],
    )
    verb_rooms = jax.random.uniform(keys[VOICES + 4], (N_ROOMS, TOTAL_SAMPLES),
                                    jnp.float32, -0.01, 0.01)
    return dict(inst=inst, cond=cond, verb_rooms=verb_rooms, noise_key=keys[VOICES + 5])


# ================================ kernel wrappers ================================
def _head_apply(cond, x2d):
    return pl.pallas_call(
        _head_kernel,
        out_shape=(jax.ShapeDtypeStruct((TIME, CHANNELS), jnp.float32),
                   jax.ShapeDtypeStruct((TIME, VOICES), jnp.float32),
                   jax.ShapeDtypeStruct((1, N_ROOMS), jnp.float32),
                   jax.ShapeDtypeStruct((1, 1), jnp.float32)),
        in_specs=[_VMEM] * 11,
        out_specs=(_VMEM, _VMEM, _VMEM, _VMEM),
    )(x2d, cond["wh"], cond["bh"],
      cond["net_wo"], cond["net_bo"], cond["router_wo"], cond["router_bo"],
      cond["rooms_wo"], cond["rooms_bo"], cond["mix_wo"], cond["mix_bo"])


def _recurrence_apply(inst, x2, voice_idx):
    grid_spec = pltpu.PrefetchScalarGridSpec(
        num_scalar_prefetch=1,
        grid=(TIME,),
        in_specs=[
            pl.BlockSpec((1, 1, CHANNELS), lambda i, v: (i, 0, 0)),
            pl.BlockSpec((1, N_STACKS * LAYERS, CHANNELS, CHANNELS),
                         lambda i, v: (v[i], 0, 0, 0)),
            pl.BlockSpec((1, N_STACKS * LAYERS, 1, CHANNELS),
                         lambda i, v: (v[i], 0, 0, 0)),
            pl.BlockSpec((1, CHANNELS, CHANNELS), lambda i, v: (v[i], 0, 0)),
            pl.BlockSpec((1, 1, CHANNELS), lambda i, v: (v[i], 0, 0)),
            pl.BlockSpec((1, CHANNELS, 2), lambda i, v: (v[i], 0, 0)),
            pl.BlockSpec((1, 1, 2), lambda i, v: (v[i], 0, 0)),
            pl.BlockSpec((1, CHANNELS, N_COEFFS), lambda i, v: (v[i], 0, 0)),
            pl.BlockSpec((1, 1, N_COEFFS), lambda i, v: (v[i], 0, 0)),
            pl.BlockSpec((1, CHANNELS, 2 * N_OSC), lambda i, v: (v[i], 0, 0)),
            pl.BlockSpec((1, 1, 2 * N_OSC), lambda i, v: (v[i], 0, 0)),
        ],
        out_specs=(
            pl.BlockSpec((1, MAX_ITER, 2), lambda i, v: (i, 0, 0)),
            pl.BlockSpec((1, MAX_ITER, N_COEFFS), lambda i, v: (i, 0, 0)),
            pl.BlockSpec((1, MAX_ITER, 2 * N_OSC), lambda i, v: (i, 0, 0)),
        ),
        scratch_shapes=[pltpu.VMEM((MAX_ITER, CHANNELS), jnp.float32),
                        pltpu.VMEM((MAX_ITER, 2), jnp.float32)],
    )
    return pl.pallas_call(
        _recurrent_synth_kernel,
        out_shape=(jax.ShapeDtypeStruct((TIME, MAX_ITER, 2), jnp.float32),
                   jax.ShapeDtypeStruct((TIME, MAX_ITER, N_COEFFS), jnp.float32),
                   jax.ShapeDtypeStruct((TIME, MAX_ITER, 2 * N_OSC), jnp.float32)),
        grid_spec=grid_spec,
        compiler_params=pltpu.CompilerParams(dimension_semantics=("arbitrary",)),
    )(voice_idx, x2[:, None, :], inst["wh"], inst["bh"],
      inst["net_wo"], inst["net_bo"], inst["gate_wo"], inst["gate_bo"],
      inst["noise_wo"], inst["noise_bo"], inst["osc_wo"], inst["osc_bo"])


def _osc_bank_apply(amp, freq):
    w = jnp.asarray(_W_INTERP)
    tri = jnp.asarray(_CAUSAL)
    out = pl.pallas_call(
        _osc_tail_kernel,
        out_shape=jax.ShapeDtypeStruct((TIME, 1, TOTAL_SAMPLES), jnp.float32),
        grid=(TIME,),
        in_specs=[pl.BlockSpec((1, N_OSC, MAX_ITER), lambda i: (i, 0, 0)),
                  pl.BlockSpec((1, N_OSC, MAX_ITER), lambda i: (i, 0, 0)),
                  pl.BlockSpec((MAX_ITER, TOTAL_SAMPLES), lambda i: (0, 0)),
                  pl.BlockSpec((TOTAL_SAMPLES, TOTAL_SAMPLES), lambda i: (0, 0))],
        out_specs=pl.BlockSpec((1, 1, TOTAL_SAMPLES), lambda i: (i, 0, 0)),
        compiler_params=pltpu.CompilerParams(dimension_semantics=("arbitrary",)),
    )(amp, freq, w, tri)
    return out[:, 0, :]


# ================================ plain-JAX glue ================================
def noise_bank2(noise_mags, key):
    # TODO(synk): noise_bank2 source not provided; reconstructed as per-frame rFFT-filtered
    # white noise with hop = window/2 overlap-add (FFT stays in XLA, vectorized overlap-add).
    window = 2 * SAMPLES_PER_FRAME
    hop = SAMPLES_PER_FRAME
    t, f, _ = noise_mags.shape                                  # (TIME, MAX_ITER, N_COEFFS)
    noise = jax.random.uniform(key, (t, f, window), jnp.float32, -1.0, 1.0)
    spec = jnp.fft.rfft(noise, axis=-1, norm="ortho")
    frames = jnp.fft.irfft(spec * noise_mags, n=window, axis=-1, norm="ortho")
    first, second = frames[..., :hop], frames[..., hop:]
    second = jnp.concatenate([jnp.zeros_like(second[:, :1]), second[:, :-1]], axis=1)
    return (first + second).reshape(t, f * hop)                 # (TIME, TOTAL_SAMPLES)


def neural_reverb(room_irs, signal, room_mix):
    # TODO(synk): NeuralReverb source not provided; reconstructed as FFT convolution of the
    # dry signal with the softmax-mixed room impulse response.
    ir = room_mix @ room_irs                                    # (1, total)
    n = signal.shape[0]
    fft_len = 2 * n
    s = jnp.fft.rfft(signal, n=fft_len)
    i = jnp.fft.rfft(ir, n=fft_len, axis=-1)
    return jnp.fft.irfft(s[None, :] * i, n=fft_len, axis=-1)[..., :n]   # (1, total)


@jax.jit
def conductor_forward(params, x):
    batch, time, channels = x.shape
    assert batch == 1 and time == TOTAL_FRAMES and channels == CHANNELS

    # ---- conductor front-end (one fused Pallas call) ----
    x2, routes_logits, rooms_logits, mix_logit = _head_apply(
        params["cond"], x.reshape(time, channels))
    routes = jax.nn.softmax(routes_logits, axis=-1)                  # (T, VOICES)
    voice_idx = jnp.argmax(routes_logits, axis=-1).astype(jnp.int32)
    route_w = jnp.max(routes, axis=-1)                               # routes[i, argmax]
    rooms = jax.nn.softmax(rooms_logits, axis=-1)                    # (1, N_ROOMS)
    mix = jax.nn.sigmoid(mix_logit)                                  # (1, 1)

    # ---- per-frame recurrent instruments + synth heads (one gridded Pallas call) ----
    gates, noise_mags, osc_params = _recurrence_apply(params["inst"], x2, voice_idx)

    # number of active iterations per frame (reproduces the data-dependent early exit)
    stop = gates[..., 1] > gates[..., 0]                             # argmax(g) == 1
    k = jnp.arange(MAX_ITER)[None, :]
    max_iters = TIME - jnp.arange(TIME)                              # max_iter = time - i
    valid = stop & (k < max_iters[:, None])
    n_iter = jnp.where(jnp.any(valid, axis=1),
                       jnp.argmax(valid, axis=1) + 1, max_iters)     # (T,)

    # ---- oscillator parameters (magnitude / angle) ----
    oscp = osc_params.reshape(TIME, MAX_ITER, N_OSC, 2)
    amp = jnp.sqrt(jnp.sum(oscp * oscp, axis=-1))                    # torch.norm(dim=-1)
    freq = jnp.arctan2(oscp[..., 1], oscp[..., 0]) / np.pi
    amp = jnp.transpose(amp, (0, 2, 1))                              # (T, N_OSC, MAX_ITER)
    freq = jnp.transpose(freq, (0, 2, 1)) * 0.98 + 0.0036
    # Clamp frames past the stop to the last active frame: identical to interpolating over
    # only n_iter frames (F.interpolate's position grid is n_iter-independent here).
    clamp = jnp.minimum(k, (n_iter - 1)[:, None])                    # (T, MAX_ITER)
    clamp = jnp.broadcast_to(clamp[:, None, :], amp.shape)
    amp = jnp.take_along_axis(amp, clamp, axis=2)
    freq = jnp.take_along_axis(freq, clamp, axis=2)

    # ---- fused oscillator bank (interp -> cumsum matmul -> sin -> mix) ----
    osc_sig = _osc_bank_apply(amp, freq)                             # (T, TOTAL_SAMPLES)

    # ---- filtered-noise branch ----
    noise_sig = noise_bank2(noise_mags, params["noise_key"])         # (T, TOTAL_SAMPLES)

    # samples past spf*n_iter do not exist in the variable-length reference output
    sample_idx = jnp.arange(TOTAL_SAMPLES)[None, :]
    active = (sample_idx < (n_iter * SAMPLES_PER_FRAME)[:, None]).astype(jnp.float32)
    sig = (osc_sig + noise_sig) * active * route_w[:, None]          # (T, TOTAL_SAMPLES)

    # add each frame's signal at its start sample
    out = jnp.zeros((TOTAL_SAMPLES,), jnp.float32)
    for i in range(TIME):
        seg = sig[i, :TOTAL_SAMPLES - i * SAMPLES_PER_FRAME]
        out = out + jnp.pad(seg, (i * SAMPLES_PER_FRAME, 0))

    wet = neural_reverb(params["verb_rooms"], out, rooms)            # (1, TOTAL_SAMPLES)
    dry = out[None, :]
    return dry * mix + wet * (1.0 - mix)                             # (1, TOTAL_SAMPLES)


if __name__ == "__main__":
    key = jax.random.PRNGKey(0)
    pkey, xkey = jax.random.split(key)
    params = make_conductor_params(pkey)
    x = jax.random.normal(xkey, (1, TIME, CHANNELS), jnp.float32)

    out = conductor_forward(params, x)
    out = jax.block_until_ready(out)

    assert out.shape == (1, SAMPLES_PER_FRAME * TOTAL_FRAMES), out.shape
    assert bool(jnp.all(jnp.isfinite(out)))
    print("KERNEL_OK")
</pallas_src>

<mosaic_0001>
module attributes {stable_mosaic.version = 11 : i64} {
  func.func @_head_kernel(%arg0: memref<8x32xf32, #tpu.memory_space<vmem>>, %arg1: memref<8x32x32xf32, #tpu.memory_space<vmem>>, %arg2: memref<8x1x32xf32, #tpu.memory_space<vmem>>, %arg3: memref<32x32xf32, #tpu.memory_space<vmem>>, %arg4: memref<1x32xf32, #tpu.memory_space<vmem>>, %arg5: memref<32x2xf32, #tpu.memory_space<vmem>>, %arg6: memref<1x2xf32, #tpu.memory_space<vmem>>, %arg7: memref<32x8xf32, #tpu.memory_space<vmem>>, %arg8: memref<1x8xf32, #tpu.memory_space<vmem>>, %arg9: memref<32x1xf32, #tpu.memory_space<vmem>>, %arg10: memref<1x1xf32, #tpu.memory_space<vmem>>, %arg11: memref<8x32xf32, #tpu.memory_space<vmem>>, %arg12: memref<8x2xf32, #tpu.memory_space<vmem>>, %arg13: memref<1x8xf32, #tpu.memory_space<vmem>>, %arg14: memref<1x1xf32, #tpu.memory_space<vmem>>) attributes {dimension_semantics = [], scalar_prefetch = 0 : i64, scratch_operands = 0 : i64, tpu.core_type = #tpu.core_type<tc>} {
    %c0 = arith.constant 0 : index
    %c0_0 = arith.constant 0 : index
    %0 = vector.load %arg0[%c0, %c0_0] : memref<8x32xf32, #tpu.memory_space<vmem>>, vector<8x32xf32>
    %c0_1 = arith.constant 0 : index
    %c0_2 = arith.constant 0 : index
    %c0_3 = arith.constant 0 : index
    %1 = vector.load %arg1[%c0_1, %c0_2, %c0_3] : memref<8x32x32xf32, #tpu.memory_space<vmem>>, vector<1x32x32xf32>
    %2 = vector.shape_cast %1 : vector<1x32x32xf32> to vector<32x32xf32>
    %c0_4 = arith.constant 0 : index
    %c0_5 = arith.constant 0 : index
    %c0_6 = arith.constant 0 : index
    %3 = vector.load %arg2[%c0_4, %c0_5, %c0_6] : memref<8x1x32xf32, #tpu.memory_space<vmem>>, vector<1x1x32xf32>
    %4 = vector.shape_cast %3 : vector<1x1x32xf32> to vector<1x32xf32>
    %cst = arith.constant dense<0.000000e+00> : vector<8x32xf32>
    %5 = tpu.matmul %0, %2, %cst {dimension_numbers = #tpu.dot_dimension_numbers<[1], [0], [0], [1], [0, 0, 1, 1], [], []>} : vector<8x32xf32>, vector<32x32xf32>, vector<8x32xf32> -> vector<8x32xf32>
    %6 = vector.broadcast %4 : vector<1x32xf32> to vector<8x32xf32>
    %7 = arith.addf %5, %6 : vector<8x32xf32>
    %cst_7 = arith.constant 0.000000e+00 : f32
    %8 = vector.broadcast %cst_7 : f32 to vector<8x32xf32>
    %9 = arith.cmpf oge, %7, %8 : vector<8x32xf32>
    %cst_8 = arith.constant 2.000000e-01 : f32
    %10 = vector.broadcast %cst_8 : f32 to vector<8x32xf32>
    %11 = arith.mulf %10, %7 : vector<8x32xf32>
    %12 = arith.select %9, %7, %11 : vector<8x32xi1>, vector<8x32xf32>
    %c1 = arith.constant 1 : index
    %c0_9 = arith.constant 0 : index
    %c0_10 = arith.constant 0 : index
    %13 = vector.load %arg1[%c1, %c0_9, %c0_10] : memref<8x32x32xf32, #tpu.memory_space<vmem>>, vector<1x32x32xf32>
    %14 = vector.shape_cast %13 : vector<1x32x32xf32> to vector<32x32xf32>
    %c1_11 = arith.constant 1 : index
    %c0_12 = arith.constant 0 : index
    %c0_13 = arith.constant 0 : index
    %15 = vector.load %arg2[%c1_11, %c0_12, %c0_13] : memref<8x1x32xf32, #tpu.memory_space<vmem>>, vector<1x1x32xf32>
    %16 = vector.shape_cast %15 : vector<1x1x32xf32> to vector<1x32xf32>
    %cst_14 = arith.constant dense<0.000000e+00> : vector<8x32xf32>
    %17 = tpu.matmul %12, %14, %cst_14 {dimension_numbers = #tpu.dot_dimension_numbers<[1], [0], [0], [1], [0, 0, 1, 1], [], []>} : vector<8x32xf32>, vector<32x32xf32>, vector<8x32xf32> -> vector<8x32xf32>
    %18 = vector.broadcast %16 : vector<1x32xf32> to vector<8x32xf32>
    %19 = arith.addf %17, %18 : vector<8x32xf32>
    %cst_15 = arith.constant 0.000000e+00 : f32
    %20 = vector.broadcast %cst_15 : f32 to vector<8x32xf32>
    %21 = arith.cmpf oge, %19, %20 : vector<8x32xf32>
    %cst_16 = arith.constant 2.000000e-01 : f32
    %22 = vector.broadcast %cst_16 : f32 to vector<8x32xf32>
    %23 = arith.mulf %22, %19 : vector<8x32xf32>
    %24 = arith.select %21, %19, %23 : vector<8x32xi1>, vector<8x32xf32>
    %c0_17 = arith.constant 0 : index
    %c0_18 = arith.constant 0 : index
    %25 = vector.load %arg3[%c0_17, %c0_18] : memref<32x32xf32, #tpu.memory_space<vmem>>, vector<32x32xf32>
    %cst_19 = arith.constant dense<0.000000e+00> : vector<8x32xf32>
    %26 = tpu.matmul %24, %25, %cst_19 {dimension_numbers = #tpu.dot_dimension_numbers<[1], [0], [0], [1], [0, 0, 1, 1], [], []>} : vector<8x32xf32>, vector<32x32xf32>, vector<8x32xf32> -> vector<8x32xf32>
    %c0_20 = arith.constant 0 : index
    %c0_21 = arith.constant 0 : index
    %27 = vector.load %arg4[%c0_20, %c0_21] : memref<1x32xf32, #tpu.memory_space<vmem>>, vector<1x32xf32>
    %28 = vector.broadcast %27 : vector<1x32xf32> to vector<8x32xf32>
    %29 = arith.addf %26, %28 : vector<8x32xf32>
    %c0_22 = arith.constant 0 : index
    %c0_23 = arith.constant 0 : index
    %30 = vector.load %arg11[%c0_22, %c0_23] : memref<8x32xf32, #tpu.memory_space<vmem>>, vector<8x32xf32>
    tpu.vector_store %arg11[%c0_22, %c0_23], %29 {strides = array<i32>} : memref<8x32xf32, #tpu.memory_space<vmem>>, vector<8x32xf32>,
    %c2 = arith.constant 2 : index
    %c0_24 = arith.constant 0 : index
    %c0_25 = arith.constant 0 : index
    %31 = vector.load %arg1[%c2, %c0_24, %c0_25] : memref<8x32x32xf32, #tpu.memory_space<vmem>>, vector<1x32x32xf32>
    %32 = vector.shape_cast %31 : vector<1x32x32xf32> to vector<32x32xf32>
    %c2_26 = arith.constant 2 : index
    %c0_27 = arith.constant 0 : index
    %c0_28 = arith.constant 0 : index
    %33 = vector.load %arg2[%c2_26, %c0_27, %c0_28] : memref<8x1x32xf32, #tpu.memory_space<vmem>>, vector<1x1x32xf32>
    %34 = vector.shape_cast %33 : vector<1x1x32xf32> to vector<1x32xf32>
    %cst_29 = arith.constant dense<0.000000e+00> : vector<8x32xf32>
    %35 = tpu.matmul %29, %32, %cst_29 {dimension_numbers = #tpu.dot_dimension_numbers<[1], [0], [0], [1], [0, 0, 1, 1], [], []>} : vector<8x32xf32>, vector<32x32xf32>, vector<8x32xf32> -> vector<8x32xf32>
    %36 = vector.broadcast %34 : vector<1x32xf32> to vector<8x32xf32>
    %37 = arith.addf %35, %36 : vector<8x32xf32>
    %cst_30 = arith.constant 0.000000e+00 : f32
    %38 = vector.broadcast %cst_30 : f32 to vector<8x32xf32>
    %39 = arith.cmpf oge, %37, %38 : vector<8x32xf32>
    %cst_31 = arith.constant 2.000000e-01 : f32
    %40 = vector.broadcast %cst_31 : f32 to vector<8x32xf32>
    %41 = arith.mulf %40, %37 : vector<8x32xf32>
    %42 = arith.select %39, %37, %41 : vector<8x32xi1>, vector<8x32xf32>
    %c3 = arith.constant 3 : index
    %c0_32 = arith.constant 0 : index
    %c0_33 = arith.constant 0 : index
    %43 = vector.load %arg1[%c3, %c0_32, %c0_33] : memref<8x32x32xf32, #tpu.memory_space<vmem>>, vector<1x32x32xf32>
    %44 = vector.shape_cast %43 : vector<1x32x32xf32> to vector<32x32xf32>
    %c3_34 = arith.constant 3 : index
    %c0_35 = arith.constant 0 : index
    %c0_36 = arith.constant 0 : index
    %45 = vector.load %arg2[%c3_34, %c0_35, %c0_36] : memref<8x1x32xf32, #tpu.memory_space<vmem>>, vector<1x1x32xf32>
    %46 = vector.shape_cast %45 : vector<1x1x32xf32> to vector<1x32xf32>
    %cst_37 = arith.constant dense<0.000000e+00> : vector<8x32xf32>
    %47 = tpu.matmul %42, %44, %cst_37 {dimension_numbers = #tpu.dot_dimension_numbers<[1], [0], [0], [1], [0, 0, 1, 1], [], []>} : vector<8x32xf32>, vector<32x32xf32>, vector<8x32xf32> -> vector<8x32xf32>
    %48 = vector.broadcast %46 : vector<1x32xf32> to vector<8x32xf32>
    %49 = arith.addf %47, %48 : vector<8x32xf32>
    %cst_38 = arith.constant 0.000000e+00 : f32
    %50 = vector.broadcast %cst_38 : f32 to vector<8x32xf32>
    %51 = arith.cmpf oge, %49, %50 : vector<8x32xf32>
    %cst_39 = arith.constant 2.000000e-01 : f32
    %52 = vector.broadcast %cst_39 : f32 to vector<8x32xf32>
    %53 = arith.mulf %52, %49 : vector<8x32xf32>
    %54 = arith.select %51, %49, %53 : vector<8x32xi1>, vector<8x32xf32>
    %c0_40 = arith.constant 0 : index
    %c0_41 = arith.constant 0 : index
    %55 = vector.load %arg5[%c0_40, %c0_41] : memref<32x2xf32, #tpu.memory_space<vmem>>, vector<32x2xf32>
    %cst_42 = arith.constant dense<0.000000e+00> : vector<8x2xf32>
    %56 = tpu.matmul %54, %55, %cst_42 {dimension_numbers = #tpu.dot_dimension_numbers<[1], [0], [0], [1], [0, 0, 1, 1], [], []>} : vector<8x32xf32>, vector<32x2xf32>, vector<8x2xf32> -> vector<8x2xf32>
    %c0_43 = arith.constant 0 : index
    %c0_44 = arith.constant 0 : index
    %57 = vector.load %arg6[%c0_43, %c0_44] : memref<1x2xf32, #tpu.memory_space<vmem>>, vector<1x2xf32>
    %58 = vector.broadcast %57 : vector<1x2xf32> to vector<8x2xf32>
    %59 = arith.addf %56, %58 : vector<8x2xf32>
    %c0_45 = arith.constant 0 : index
    %c0_46 = arith.constant 0 : index
    %60 = vector.load %arg12[%c0_45, %c0_46] : memref<8x2xf32, #tpu.memory_space<vmem>>, vector<8x2xf32>
    tpu.vector_store %arg12[%c0_45, %c0_46], %59 {strides = array<i32>} : memref<8x2xf32, #tpu.memory_space<vmem>>, vector<8x2xf32>,
    %cst_47 = arith.constant dense<0.000000e+00> : vector<32xf32>
    %61 = vector.multi_reduction <add>, %29, %cst_47 [0] : vector<8x32xf32> to vector<32xf32>
    %62 = vector.shape_cast %61 : vector<32xf32> to vector<1x32xf32>
    %cst_48 = arith.constant 8.000000e+00 : f32
    %63 = vector.broadcast %cst_48 : f32 to vector<1x32xf32>
    %64 = arith.divf %62, %63 : vector<1x32xf32>
    %c4 = arith.constant 4 : index
    %c0_49 = arith.constant 0 : index
    %c0_50 = arith.constant 0 : index
    %65 = vector.load %arg1[%c4, %c0_49, %c0_50] : memref<8x32x32xf32, #tpu.memory_space<vmem>>, vector<1x32x32xf32>
    %66 = vector.shape_cast %65 : vector<1x32x32xf32> to vector<32x32xf32>
    %c4_51 = arith.constant 4 : index
    %c0_52 = arith.constant 0 : index
    %c0_53 = arith.constant 0 : index
    %67 = vector.load %arg2[%c4_51, %c0_52, %c0_53] : memref<8x1x32xf32, #tpu.memory_space<vmem>>, vector<1x1x32xf32>
    %68 = vector.shape_cast %67 : vector<1x1x32xf32> to vector<1x32xf32>
    %cst_54 = arith.constant dense<0.000000e+00> : vector<1x32xf32>
    %69 = tpu.matmul %64, %66, %cst_54 {dimension_numbers = #tpu.dot_dimension_numbers<[1], [0], [0], [1], [0, 0, 1, 1], [], []>} : vector<1x32xf32>, vector<32x32xf32>, vector<1x32xf32> -> vector<1x32xf32>
    %70 = arith.addf %69, %68 : vector<1x32xf32>
    %cst_55 = arith.constant 0.000000e+00 : f32
    %71 = vector.broadcast %cst_55 : f32 to vector<1x32xf32>
    %72 = arith.cmpf oge, %70, %71 : vector<1x32xf32>
    %cst_56 = arith.constant 2.000000e-01 : f32
    %73 = vector.broadcast %cst_56 : f32 to vector<1x32xf32>
    %74 = arith.mulf %73, %70 : vector<1x32xf32>
    %75 = arith.select %72, %70, %74 : vector<1x32xi1>, vector<1x32xf32>
    %c5 = arith.constant 5 : index
    %c0_57 = arith.constant 0 : index
    %c0_58 = arith.constant 0 : index
    %76 = vector.load %arg1[%c5, %c0_57, %c0_58] : memref<8x32x32xf32, #tpu.memory_space<vmem>>, vector<1x32x32xf32>
    %77 = vector.shape_cast %76 : vector<1x32x32xf32> to vector<32x32xf32>
    %c5_59 = arith.constant 5 : index
    %c0_60 = arith.constant 0 : index
    %c0_61 = arith.constant 0 : index
    %78 = vector.load %arg2[%c5_59, %c0_60, %c0_61] : memref<8x1x32xf32, #tpu.memory_space<vmem>>, vector<1x1x32xf32>
    %79 = vector.shape_cast %78 : vector<1x1x32xf32> to vector<1x32xf32>
    %cst_62 = arith.constant dense<0.000000e+00> : vector<1x32xf32>
    %80 = tpu.matmul %75, %77, %cst_62 {dimension_numbers = #tpu.dot_dimension_numbers<[1], [0], [0], [1], [0, 0, 1, 1], [], []>} : vector<1x32xf32>, vector<32x32xf32>, vector<1x32xf32> -> vector<1x32xf32>
    %81 = arith.addf %80, %79 : vector<1x32xf32>
    %cst_63 = arith.constant 0.000000e+00 : f32
    %82 = vector.broadcast %cst_63 : f32 to vector<1x32xf32>
    %83 = arith.cmpf oge, %81, %82 : vector<1x32xf32>
    %cst_64 = arith.constant 2.000000e-01 : f32
    %84 = vector.broadcast %cst_64 : f32 to vector<1x32xf32>
    %85 = arith.mulf %84, %81 : vector<1x32xf32>
    %86 = arith.select %83, %81, %85 : vector<1x32xi1>, vector<1x32xf32>
    %c0_65 = arith.constant 0 : index
    %c0_66 = arith.constant 0 : index
    %87 = vector.load %arg7[%c0_65, %c0_66] : memref<32x8xf32, #tpu.memory_space<vmem>>, vector<32x8xf32>
    %cst_67 = arith.constant dense<0.000000e+00> : vector<1x8xf32>
    %88 = tpu.matmul %86, %87, %cst_67 {dimension_numbers = #tpu.dot_dimension_numbers<[1], [0], [0], [1], [0, 0, 1, 1], [], []>} : vector<1x32xf32>, vector<32x8xf32>, vector<1x8xf32> -> vector<1x8xf32>
    %c0_68 = arith.constant 0 : index
    %c0_69 = arith.constant 0 : index
    %89 = vector.load %arg8[%c0_68, %c0_69] : memref<1x8xf32, #tpu.memory_space<vmem>>, vector<1x8xf32>
    %90 = arith.addf %88, %89 : vector<1x8xf32>
    %c0_70 = arith.constant 0 : index
    %c0_71 = arith.constant 0 : index
    %91 = vector.load %arg13[%c0_70, %c0_71] : memref<1x8xf32, #tpu.memory_space<vmem>>, vector<1x8xf32>
    tpu.vector_store %arg13[%c0_70, %c0_71], %90 {strides = array<i32>} : memref<1x8xf32, #tpu.memory_space<vmem>>, vector<1x8xf32>,
    %c6 = arith.constant 6 : index
    %c0_72 = arith.constant 0 : index
    %c0_73 = arith.constant 0 : index
    %92 = vector.load %arg1[%c6, %c0_72, %c0_73] : memref<8x32x32xf32, #tpu.memory_space<vmem>>, vector<1x32x32xf32>
    %93 = vector.shape_cast %92 : vector<1x32x32xf32> to vector<32x32xf32>
    %c6_74 = arith.constant 6 : index
    %c0_75 = arith.constant 0 : index
    %c0_76 = arith.constant 0 : index
    %94 = vector.load %arg2[%c6_74, %c0_75, %c0_76] : memref<8x1x32xf32, #tpu.memory_space<vmem>>, vector<1x1x32xf32>
    %95 = vector.shape_cast %94 : vector<1x1x32xf32> to vector<1x32xf32>
    %cst_77 = arith.constant dense<0.000000e+00> : vector<1x32xf32>
    %96 = tpu.matmul %64, %93, %cst_77 {dimension_numbers = #tpu.dot_dimension_numbers<[1], [0], [0], [1], [0, 0, 1, 1], [], []>} : vector<1x32xf32>, vector<32x32xf32>, vector<1x32xf32> -> vector<1x32xf32>
    %97 = arith.addf %96, %95 : vector<1x32xf32>
    %cst_78 = arith.constant 0.000000e+00 : f32
    %98 = vector.broadcast %cst_78 : f32 to vector<1x32xf32>
    %99 = arith.cmpf oge, %97, %98 : vector<1x32xf32>
    %cst_79 = arith.constant 2.000000e-01 : f32
    %100 = vector.broadcast %cst_79 : f32 to vector<1x32xf32>
    %101 = arith.mulf %100, %97 : vector<1x32xf32>
    %102 = arith.select %99, %97, %101 : vector<1x32xi1>, vector<1x32xf32>
    %c7 = arith.constant 7 : index
    %c0_80 = arith.constant 0 : index
    %c0_81 = arith.constant 0 : index
    %103 = vector.load %arg1[%c7, %c0_80, %c0_81] : memref<8x32x32xf32, #tpu.memory_space<vmem>>, vector<1x32x32xf32>
    %104 = vector.shape_cast %103 : vector<1x32x32xf32> to vector<32x32xf32>
    %c7_82 = arith.constant 7 : index
    %c0_83 = arith.constant 0 : index
    %c0_84 = arith.constant 0 : index
    %105 = vector.load %arg2[%c7_82, %c0_83, %c0_84] : memref<8x1x32xf32, #tpu.memory_space<vmem>>, vector<1x1x32xf32>
    %106 = vector.shape_cast %105 : vector<1x1x32xf32> to vector<1x32xf32>
    %cst_85 = arith.constant dense<0.000000e+00> : vector<1x32xf32>
    %107 = tpu.matmul %102, %104, %cst_85 {dimension_numbers = #tpu.dot_dimension_numbers<[1], [0], [0], [1], [0, 0, 1, 1], [], []>} : vector<1x32xf32>, vector<32x32xf32>, vector<1x32xf32> -> vector<1x32xf32>
    %108 = arith.addf %107, %106 : vector<1x32xf32>
    %cst_86 = arith.constant 0.000000e+00 : f32
    %109 = vector.broadcast %cst_86 : f32 to vector<1x32xf32>
    %110 = arith.cmpf oge, %108, %109 : vector<1x32xf32>
    %cst_87 = arith.constant 2.000000e-01 : f32
    %111 = vector.broadcast %cst_87 : f32 to vector<1x32xf32>
    %112 = arith.mulf %111, %108 : vector<1x32xf32>
    %113 = arith.select %110, %108, %112 : vector<1x32xi1>, vector<1x32xf32>
    %c0_88 = arith.constant 0 : index
    %c0_89 = arith.constant 0 : index
    %114 = vector.load %arg9[%c0_88, %c0_89] : memref<32x1xf32, #tpu.memory_space<vmem>>, vector<32x1xf32>
    %cst_90 = arith.constant dense<0.000000e+00> : vector<1x1xf32>
    %115 = tpu.matmul %113, %114, %cst_90 {dimension_numbers = #tpu.dot_dimension_numbers<[1], [0], [0], [1], [0, 0, 1, 1], [], []>} : vector<1x32xf32>, vector<32x1xf32>, vector<1x1xf32> -> vector<1x1xf32>
    %c0_91 = arith.constant 0 : index
    %c0_92 = arith.constant 0 : index
    %116 = vector.load %arg10[%c0_91, %c0_92] : memref<1x1xf32, #tpu.memory_space<vmem>>, vector<1x1xf32>
    %117 = arith.addf %115, %116 : vector<1x1xf32>
    %c0_93 = arith.constant 0 : index
    %c0_94 = arith.constant 0 : index
    %118 = vector.load %arg14[%c0_93, %c0_94] : memref<1x1xf32, #tpu.memory_space<vmem>>, vector<1x1xf32>
    tpu.vector_store %arg14[%c0_93, %c0_94], %117 {strides = array<i32>} : memref<1x1xf32, #tpu.memory_space<vmem>>, vector<1x1xf32>,
    return
  }
}

module attributes {stable_mosaic.version = 11 : i64} {
  func.func @_recurrent_synth_kernel(%arg0: i32, %arg1: memref<8xi32, #tpu.memory_space<smem>>, %arg2: memref<1x1x32xf32, #tpu.memory_space<vmem>>, %arg3: memref<1x8x32x32xf32, #tpu.memory_space<vmem>>, %arg4: memref<1x8x1x32xf32, #tpu.memory_space<vmem>>, %arg5: memref<1x32x32xf32, #tpu.memory_space<vmem>>, %arg6: memref<1x1x32xf32, #tpu.memory_space<vmem>>, %arg7: memref<1x32x2xf32, #tpu.memory_space<vmem>>, %arg8: memref<1x1x2xf32, #tpu.memory_space<vmem>>, %arg9: memref<1x32x17xf32, #tpu.memory_space<vmem>>, %arg10: memref<1x1x17xf32, #tpu.memory_space<vmem>>, %arg11: memref<1x32x128xf32, #tpu.memory_space<vmem>>, %arg12: memref<1x1x128xf32, #tpu.memory_space<vmem>>, %arg13: memref<1x8x2xf32, #tpu.memory_space<vmem>>, %arg14: memref<1x8x17xf32, #tpu.memory_space<vmem>>, %arg15: memref<1x8x128xf32, #tpu.memory_space<vmem>>, %arg16: memref<8x32xf32, #tpu.memory_space<vmem>>, %arg17: memref<8x2xf32, #tpu.memory_space<vmem>>) attributes {dimension_semantics = [#tpu.dimension_semantics<arbitrary>], iteration_bounds = array<i64: 8>, scalar_prefetch = 1 : i64, scratch_operands = 2 : i64, tpu.core_type = #tpu.core_type<tc>, window_params = [{transform_indices = @transform_0, window_bounds = array<i64: 1, 1, 32>}, {transform_indices = @transform_1, window_bounds = array<i64: 1, 8, 32, 32>}, {transform_indices = @transform_2, window_bounds = array<i64: 1, 8, 1, 32>}, {transform_indices = @transform_3, window_bounds = array<i64: 1, 32, 32>}, {transform_indices = @transform_4, window_bounds = array<i64: 1, 1, 32>}, {transform_indices = @transform_5, window_bounds = array<i64: 1, 32, 2>}, {transform_indices = @transform_6, window_bounds = array<i64: 1, 1, 2>}, {transform_indices = @transform_7, window_bounds = array<i64: 1, 32, 17>}, {transform_indices = @transform_8, window_bounds = array<i64: 1, 1, 17>}, {transform_indices = @transform_9, window_bounds = array<i64: 1, 32, 128>}, {transform_indices = @transform_10, window_bounds = array<i64: 1, 1, 128>}, {transform_indices = @transform_11, window_bounds = array<i64: 1, 8, 2>}, {transform_indices = @transform_12, window_bounds = array<i64: 1, 8, 17>}, {transform_indices = @transform_13, window_bounds = array<i64: 1, 8, 128>}]} {
    %c0 = arith.constant 0 : index
    %c0_0 = arith.constant 0 : index
    %c0_1 = arith.constant 0 : index
    %0 = vector.load %arg2[%c0, %c0_0, %c0_1] : memref<1x1x32xf32, #tpu.memory_space<vmem>>, vector<1x1x32xf32>
    %1 = vector.shape_cast %0 : vector<1x1x32xf32> to vector<1x32xf32>
    %2 = arith.mulf %1, %1 : vector<1x32xf32>
    %cst = arith.constant dense<0.000000e+00> : vector<1xf32>
    %3 = vector.multi_reduction <add>, %2, %cst [1] : vector<1x32xf32> to vector<1xf32>
    %4 = vector.shape_cast %3 : vector<1xf32> to vector<1x1xf32>
    %5 = math.sqrt %4 : vector<1x1xf32>
    %cst_2 = arith.constant 9.99999993E-9 : f32
    %6 = vector.broadcast %cst_2 : f32 to vector<1x1xf32>
    %7 = arith.addf %5, %6 : vector<1x1xf32>
    %8 = vector.broadcast %7 : vector<1x1xf32> to vector<1x32xf32>
    %9 = arith.divf %1, %8 : vector<1x32xf32>
    %c0_3 = arith.constant 0 : index
    %c0_4 = arith.constant 0 : index
    %c0_5 = arith.constant 0 : index
    %c0_6 = arith.constant 0 : index
    %10 = vector.load %arg3[%c0_3, %c0_4, %c0_5, %c0_6] : memref<1x8x32x32xf32, #tpu.memory_space<vmem>>, vector<1x1x32x32xf32>
    %11 = vector.shape_cast %10 : vector<1x1x32x32xf32> to vector<32x32xf32>
    %c0_7 = arith.constant 0 : index
    %c0_8 = arith.constant 0 : index
    %c0_9 = arith.constant 0 : index
    %c0_10 = arith.constant 0 : index
    %12 = vector.load %arg4[%c0_7, %c0_8, %c0_9, %c0_10] : memref<1x8x1x32xf32, #tpu.memory_space<vmem>>, vector<1x1x1x32xf32>
    %13 = vector.shape_cast %12 : vector<1x1x1x32xf32> to vector<1x32xf32>
    %cst_11 = arith.constant dense<0.000000e+00> : vector<1x32xf32>
    %14 = tpu.matmul %9, %11, %cst_11 {dimension_numbers = #tpu.dot_dimension_numbers<[1], [0], [0], [1], [0, 0, 1, 1], [], []>} : vector<1x32xf32>, vector<32x32xf32>, vector<1x32xf32> -> vector<1x32xf32>
    %15 = arith.addf %14, %13 : vector<1x32xf32>
    %cst_12 = arith.constant 0.000000e+00 : f32
    %16 = vector.broadcast %cst_12 : f32 to vector<1x32xf32>
    %17 = arith.cmpf oge, %15, %16 : vector<1x32xf32>
    %cst_13 = arith.constant 2.000000e-01 : f32
    %18 = vector.broadcast %cst_13 : f32 to vector<1x32xf32>
    %19 = arith.mulf %18, %15 : vector<1x32xf32>
    %20 = arith.select %17, %15, %19 : vector<1x32xi1>, vector<1x32xf32>
    %c0_14 = arith.constant 0 : index
    %c1 = arith.constant 1 : index
    %c0_15 = arith.constant 0 : index
    %c0_16 = arith.constant 0 : index
    %21 = vector.load %arg3[%c0_14, %c1, %c0_15, %c0_16] : memref<1x8x32x32xf32, #tpu.memory_space<vmem>>, vector<1x1x32x32xf32>
    %22 = vector.shape_cast %21 : vector<1x1x32x32xf32> to vector<32x32xf32>
    %c0_17 = arith.constant 0 : index
    %c1_18 = arith.constant 1 : index
    %c0_19 = arith.constant 0 : index
    %c0_20 = arith.constant 0 : index
    %23 = vector.load %arg4[%c0_17, %c1_18, %c0_19, %c0_20] : memref<1x8x1x32xf32, #tpu.memory_space<vmem>>, vector<1x1x1x32xf32>
    %24 = vector.shape_cast %23 : vector<1x1x1x32xf32> to vector<1x32xf32>
    %cst_21 = arith.constant dense<0.000000e+00> : vector<1x32xf32>
    %25 = tpu.matmul %20, %22, %cst_21 {dimension_numbers = #tpu.dot_dimension_numbers<[1], [0], [0], [1], [0, 0, 1, 1], [], []>} : vector<1x32xf32>, vector<32x32xf32>, vector<1x32xf32> -> vector<1x32xf32>
    %26 = arith.addf %25, %24 : vector<1x32xf32>
    %cst_22 = arith.constant 0.000000e+00 : f32
    %27 = vector.broadcast %cst_22 : f32 to vector<1x32xf32>
    %28 = arith.cmpf oge, %26, %27 : vector<1x32xf32>
    %cst_23 = arith.constant 2.000000e-01 : f32
    %29 = vector.broadcast %cst_23 : f32 to vector<1x32xf32>
    %30 = arith.mulf %29, %26 : vector<1x32xf32>
    %31 = arith.select %28, %26, %30 : vector<1x32xi1>, vector<1x32xf32>
    %c0_24 = arith.constant 0 : index
    %c0_25 = arith.constant 0 : index
    %c0_26 = arith.constant 0 : index
    %32 = vector.load %arg5[%c0_24, %c0_25, %c0_26] : memref<1x32x32xf32, #tpu.memory_space<vmem>>, vector<1x32x32xf32>
    %33 = vector.shape_cast %32 : vector<1x32x32xf32> to vector<32x32xf32>
    %cst_27 = arith.constant dense<0.000000e+00> : vector<1x32xf32>
    %34 = tpu.matmul %31, %33, %cst_27 {dimension_numbers = #tpu.dot_dimension_numbers<[1], [0], [0], [1], [0, 0, 1, 1], [], []>} : vector<1x32xf32>, vector<32x32xf32>, vector<1x32xf32> -> vector<1x32xf32>
    %c0_28 = arith.constant 0 : index
    %c0_29 = arith.constant 0 : index
    %c0_30 = arith.constant 0 : index
    %35 = vector.load %arg6[%c0_28, %c0_29, %c0_30] : memref<1x1x32xf32, #tpu.memory_space<vmem>>, vector<1x1x32xf32>
    %36 = vector.shape_cast %35 : vector<1x1x32xf32> to vector<1x32xf32>
    %37 = arith.addf %34, %36 : vector<1x32xf32>
    %38 = arith.mulf %37, %37 : vector<1x32xf32>
    %cst_31 = arith.constant dense<0.000000e+00> : vector<1xf32>
    %39 = vector.multi_reduction <add>, %38, %cst_31 [1] : vector<1x32xf32> to vector<1xf32>
    %40 = vector.shape_cast %39 : vector<1xf32> to vector<1x1xf32>
    %41 = math.sqrt %40 : vector<1x1xf32>
    %cst_32 = arith.constant 9.99999993E-9 : f32
    %42 = vector.broadcast %cst_32 : f32 to vector<1x1xf32>
    %43 = arith.addf %41, %42 : vector<1x1xf32>
    %44 = vector.broadcast %43 : vector<1x1xf32> to vector<1x32xf32>
    %45 = arith.divf %37, %44 : vector<1x32xf32>
    %c0_33 = arith.constant 0 : index
    %c2 = arith.constant 2 : index
    %c0_34 = arith.constant 0 : index
    %c0_35 = arith.constant 0 : index
    %46 = vector.load %arg3[%c0_33, %c2, %c0_34, %c0_35] : memref<1x8x32x32xf32, #tpu.memory_space<vmem>>, vector<1x1x32x32xf32>
    %47 = vector.shape_cast %46 : vector<1x1x32x32xf32> to vector<32x32xf32>
    %c0_36 = arith.constant 0 : index
    %c2_37 = arith.constant 2 : index
    %c0_38 = arith.constant 0 : index
    %c0_39 = arith.constant 0 : index
    %48 = vector.load %arg4[%c0_36, %c2_37, %c0_38, %c0_39] : memref<1x8x1x32xf32, #tpu.memory_space<vmem>>, vector<1x1x1x32xf32>
    %49 = vector.shape_cast %48 : vector<1x1x1x32xf32> to vector<1x32xf32>
    %cst_40 = arith.constant dense<0.000000e+00> : vector<1x32xf32>
    %50 = tpu.matmul %45, %47, %cst_40 {dimension_numbers = #tpu.dot_dimension_numbers<[1], [0], [0], [1], [0, 0, 1, 1], [], []>} : vector<1x32xf32>, vector<32x32xf32>, vector<1x32xf32> -> vector<1x32xf32>
    %51 = arith.addf %50, %49 : vector<1x32xf32>
    %cst_41 = arith.constant 0.000000e+00 : f32
    %52 = vector.broadcast %cst_41 : f32 to vector<1x32xf32>
    %53 = arith.cmpf oge, %51, %52 : vector<1x32xf32>
    %cst_42 = arith.constant 2.000000e-01 : f32
    %54 = vector.broadcast %cst_42 : f32 to vector<1x32xf32>
    %55 = arith.mulf %54, %51 : vector<1x32xf32>
    %56 = arith.select %53, %51, %55 : vector<1x32xi1>, vector<1x32xf32>
    %c0_43 = arith.constant 0 : index
    %c3 = arith.constant 3 : index
    %c0_44 = arith.constant 0 : index
    %c0_45 = arith.constant 0 : index
    %57 = vector.load %arg3[%c0_43, %c3, %c0_44, %c0_45] : memref<1x8x32x32xf32, #tpu.memory_space<vmem>>, vector<1x1x32x32xf32>
    %58 = vector.shape_cast %57 : vector<1x1x32x32xf32> to vector<32x32xf32>
    %c0_46 = arith.constant 0 : index
    %c3_47 = arith.constant 3 : index
    %c0_48 = arith.constant 0 : index
    %c0_49 = arith.constant 0 : index
    %59 = vector.load %arg4[%c0_46, %c3_47, %c0_48, %c0_49] : memref<1x8x1x32xf32, #tpu.memory_space<vmem>>, vector<1x1x1x32xf32>
    %60 = vector.shape_cast %59 : vector<1x1x1x32xf32> to vector<1x32xf32>
    %cst_50 = arith.constant dense<0.000000e+00> : vector<1x32xf32>
    %61 = tpu.matmul %56, %58, %cst_50 {dimension_numbers = #tpu.dot_dimension_numbers<[1], [0], [0], [1], [0, 0, 1, 1], [], []>} : vector<1x32xf32>, vector<32x32xf32>, vector<1x32xf32> -> vector<1x32xf32>
    %62 = arith.addf %61, %60 : vector<1x32xf32>
    %cst_51 = arith.constant 0.000000e+00 : f32
    %63 = vector.broadcast %cst_51 : f32 to vector<1x32xf32>
    %64 = arith.cmpf oge, %62, %63 : vector<1x32xf32>
    %cst_52 = arith.constant 2.000000e-01 : f32
    %65 = vector.broadcast %cst_52 : f32 to vector<1x32xf32>
    %66 = arith.mulf %65, %62 : vector<1x32xf32>
    %67 = arith.select %64, %62, %66 : vector<1x32xi1>, vector<1x32xf32>
    %c0_53 = arith.constant 0 : index
    %c0_54 = arith.constant 0 : index
    %c0_55 = arith.constant 0 : index
    %68 = vector.load %arg7[%c0_53, %c0_54, %c0_55] : memref<1x32x2xf32, #tpu.memory_space<vmem>>, vector<1x32x2xf32>
    %69 = vector.shape_cast %68 : vector<1x32x2xf32> to vector<32x2xf32>
    %cst_56 = arith.constant dense<0.000000e+00> : vector<1x2xf32>
    %70 = tpu.matmul %67, %69, %cst_56 {dimension_numbers = #tpu.dot_dimension_numbers<[1], [0], [0], [1], [0, 0, 1, 1], [], []>} : vector<1x32xf32>, vector<32x2xf32>, vector<1x2xf32> -> vector<1x2xf32>
    %c0_57 = arith.constant 0 : index
    %c0_58 = arith.constant 0 : index
    %c0_59 = arith.constant 0 : index
    %71 = vector.load %arg8[%c0_57, %c0_58, %c0_59] : memref<1x1x2xf32, #tpu.memory_space<vmem>>, vector<1x1x2xf32>
    %72 = vector.shape_cast %71 : vector<1x1x2xf32> to vector<1x2xf32>
    %73 = arith.addf %70, %72 : vector<1x2xf32>
    %cst_60 = arith.constant dense<0xFF800000> : vector<1xf32>
    %74 = vector.multi_reduction <maximumf>, %73, %cst_60 [1] : vector<1x2xf32> to vector<1xf32>
    %75 = vector.shape_cast %74 : vector<1xf32> to vector<1x1xf32>
    %76 = vector.broadcast %75 : vector<1x1xf32> to vector<1x2xf32>
    %77 = arith.subf %73, %76 : vector<1x2xf32>
    %78 = math.exp %77 : vector<1x2xf32>
    %cst_61 = arith.constant dense<0.000000e+00> : vector<1xf32>
    %79 = vector.multi_reduction <add>, %78, %cst_61 [1] : vector<1x2xf32> to vector<1xf32>
    %80 = vector.shape_cast %79 : vector<1xf32> to vector<1x1xf32>
    %81 = vector.broadcast %80 : vector<1x1xf32> to vector<1x2xf32>
    %82 = arith.divf %78, %81 : vector<1x2xf32>
    %83 = vector.extract_strided_slice %82 {offsets = [0, 0], sizes = [1, 1], strides = [1, 1]} : vector<1x2xf32> to vector<1x1xf32>
    %84 = vector.broadcast %83 : vector<1x1xf32> to vector<1x32xf32>
    %85 = arith.mulf %45, %84 : vector<1x32xf32>
    %c0_62 = arith.constant 0 : index
    %c0_63 = arith.constant 0 : index
    %86 = vector.load %arg16[%c0_62, %c0_63] : memref<8x32xf32, #tpu.memory_space<vmem>>, vector<1x32xf32>
    tpu.vector_store %arg16[%c0_62, %c0_63], %85 {strides = array<i32>} : memref<8x32xf32, #tpu.memory_space<vmem>>, vector<1x32xf32>,
    %c0_64 = arith.constant 0 : index
    %c0_65 = arith.constant 0 : index
    %87 = vector.load %arg17[%c0_64, %c0_65] : memref<8x2xf32, #tpu.memory_space<vmem>>, vector<1x2xf32>
    tpu.vector_store %arg17[%c0_64, %c0_65], %82 {strides = array<i32>} : memref<8x2xf32, #tpu.memory_space<vmem>>, vector<1x2xf32>,
    %c0_66 = arith.constant 0 : index
    %c0_67 = arith.constant 0 : index
    %c0_68 = arith.constant 0 : index
    %c0_69 = arith.constant 0 : index
    %88 = vector.load %arg3[%c0_66, %c0_67, %c0_68, %c0_69] : memref<1x8x32x32xf32, #tpu.memory_space<vmem>>, vector<1x1x32x32xf32>
    %89 = vector.shape_cast %88 : vector<1x1x32x32xf32> to vector<32x32xf32>
    %c0_70 = arith.constant 0 : index
    %c0_71 = arith.constant 0 : index
    %c0_72 = arith.constant 0 : index
    %c0_73 = arith.constant 0 : index
    %90 = vector.load %arg4[%c0_70, %c0_71, %c0_72, %c0_73] : memref<1x8x1x32xf32, #tpu.memory_space<vmem>>, vector<1x1x1x32xf32>
    %91 = vector.shape_cast %90 : vector<1x1x1x32xf32> to vector<1x32xf32>
    %cst_74 = arith.constant dense<0.000000e+00> : vector<1x32xf32>
    %92 = tpu.matmul %85, %89, %cst_74 {dimension_numbers = #tpu.dot_dimension_numbers<[1], [0], [0], [1], [0, 0, 1, 1], [], []>} : vector<1x32xf32>, vector<32x32xf32>, vector<1x32xf32> -> vector<1x32xf32>
    %93 = arith.addf %92, %91 : vector<1x32xf32>
    %cst_75 = arith.constant 0.000000e+00 : f32
    %94 = vector.broadcast %cst_75 : f32 to vector<1x32xf32>
    %95 = arith.cmpf oge, %93, %94 : vector<1x32xf32>
    %cst_76 = arith.constant 2.000000e-01 : f32
    %96 = vector.broadcast %cst_76 : f32 to vector<1x32xf32>
    %97 = arith.mulf %96, %93 : vector<1x32xf32>
    %98 = arith.select %95, %93, %97 : vector<1x32xi1>, vector<1x32xf32>
    %c0_77 = arith.constant 0 : index
    %c1_78 = arith.constant 1 : index
    %c0_79 = arith.constant 0 : index
    %c0_80 = arith.constant 0 : index
    %99 = vector.load %arg3[%c0_77, %c1_78, %c0_79, %c0_80] : memref<1x8x32x32xf32, #tpu.memory_space<vmem>>, vector<1x1x32x32xf32>
    %100 = vector.shape_cast %99 : vector<1x1x32x32xf32> to vector<32x32xf32>
    %c0_81 = arith.constant 0 : index
    %c1_82 = arith.constant 1 : index
    %c0_83 = arith.constant 0 : index
    %c0_84 = arith.constant 0 : index
    %101 = vector.load %arg4[%c0_81, %c1_82, %c0_83, %c0_84] : memref<1x8x1x32xf32, #tpu.memory_space<vmem>>, vector<1x1x1x32xf32>
    %102 = vector.shape_cast %101 : vector<1x1x1x32xf32> to vector<1x32xf32>
    %cst_85 = arith.constant dense<0.000000e+00> : vector<1x32xf32>
    %103 = tpu.matmul %98, %100, %cst_85 {dimension_numbers = #tpu.dot_dimension_numbers<[1], [0], [0], [1], [0, 0, 1, 1], [], []>} : vector<1x32xf32>, vector<32x32xf32>, vector<1x32xf32> -> vector<1x32xf32>
    %104 = arith.addf %103, %102 : vector<1x32xf32>
    %cst_86 = arith.constant 0.000000e+00 : f32
    %105 = vector.broadcast %cst_86 : f32 to vector<1x32xf32>
    %106 = arith.cmpf oge, %104, %105 : vector<1x32xf32>
    %cst_87 = arith.constant 2.000000e-01 : f32
    %107 = vector.broadcast %cst_87 : f32 to vector<1x32xf32>
    %108 = arith.mulf %107, %104 : vector<1x32xf32>
    %109 = arith.select %106, %104, %108 : vector<1x32xi1>, vector<1x32xf32>
    %c0_88 = arith.constant 0 : index
    %c0_89 = arith.constant 0 : index
    %c0_90 = arith.constant 0 : index
    %110 = vector.load %arg5[%c0_88, %c0_89, %c0_90] : memref<1x32x32xf32, #tpu.memory_space<vmem>>, vector<1x32x32xf32>
    %111 = vector.shape_cast %110 : vector<1x32x32xf32> to vector<32x32xf32>
    %cst_91 = arith.constant dense<0.000000e+00> : vector<1x32xf32>
    %112 = tpu.matmul %109, %111, %cst_91 {dimension_numbers = #tpu.dot_dimension_numbers<[1], [0], [0], [1], [0, 0, 1, 1], [], []>} : vector<1x32xf32>, vector<32x32xf32>, vector<1x32xf32> -> vector<1x32xf32>
    %c0_92 = arith.constant 0 : index
    %c0_93 = arith.constant 0 : index
    %c0_94 = arith.constant 0 : index
    %113 = vector.load %arg6[%c0_92, %c0_93, %c0_94] : memref<1x1x32xf32, #tpu.memory_space<vmem>>, vector<1x1x32xf32>
    %114 = vector.shape_cast %113 : vector<1x1x32xf32> to vector<1x32xf32>
    %115 = arith.addf %112, %114 : vector<1x32xf32>
    %116 = arith.mulf %115, %115 : vector<1x32xf32>
    %cst_95 = arith.constant dense<0.000000e+00> : vector<1xf32>
    %117 = vector.multi_reduction <add>, %116, %cst_95 [1] : vector<1x32xf32> to vector<1xf32>
    %118 = vector.shape_cast %117 : vector<1xf32> to vector<1x1xf32>
    %119 = math.sqrt %118 : vector<1x1xf32>
    %cst_96 = arith.constant 9.99999993E-9 : f32
    %120 = vector.broadcast %cst_96 : f32 to vector<1x1xf32>
    %121 = arith.addf %119, %120 : vector<1x1xf32>
    %122 = vector.broadcast %121 : vector<1x1xf32> to vector<1x32xf32>
    %123 = arith.divf %115, %122 : vector<1x32xf32>
    %c0_97 = arith.constant 0 : index
    %c2_98 = arith.constant 2 : index
    %c0_99 = arith.constant 0 : index
    %c0_100 = arith.constant 0 : index
    %124 = vector.load %arg3[%c0_97, %c2_98, %c0_99, %c0_100] : memref<1x8x32x32xf32, #tpu.memory_space<vmem>>, vector<1x1x32x32xf32>
    %125 = vector.shape_cast %124 : vector<1x1x32x32xf32> to vector<32x32xf32>
    %c0_101 = arith.constant 0 : index
    %c2_102 = arith.constant 2 : index
    %c0_103 = arith.constant 0 : index
    %c0_104 = arith.constant 0 : index
    %126 = vector.load %arg4[%c0_101, %c2_102, %c0_103, %c0_104] : memref<1x8x1x32xf32, #tpu.memory_space<vmem>>, vector<1x1x1x32xf32>
    %127 = vector.shape_cast %126 : vector<1x1x1x32xf32> to vector<1x32xf32>
    %cst_105 = arith.constant dense<0.000000e+00> : vector<1x32xf32>
    %128 = tpu.matmul %123, %125, %cst_105 {dimension_numbers = #tpu.dot_dimension_numbers<[1], [0], [0], [1], [0, 0, 1, 1], [], []>} : vector<1x32xf32>, vector<32x32xf32>, vector<1x32xf32> -> vector<1x32xf32>
    %129 = arith.addf %128, %127 : vector<1x32xf32>
    %cst_106 = arith.constant 0.000000e+00 : f32
    %130 = vector.broadcast %cst_106 : f32 to vector<1x32xf32>
    %131 = arith.cmpf oge, %129, %130 : vector<1x32xf32>
    %cst_107 = arith.constant 2.000000e-01 : f32
    %132 = vector.broadcast %cst_107 : f32 to vector<1x32xf32>
    %133 = arith.mulf %132, %129 : vector<1x32xf32>
    %134 = arith.select %131, %129, %133 : vector<1x32xi1>, vector<1x32xf32>
    %c0_108 = arith.constant 0 : index
    %c3_109 = arith.constant 3 : index
    %c0_110 = arith.constant 0 : index
    %c0_111 = arith.constant 0 : index
    %135 = vector.load %arg3[%c0_108, %c3_109, %c0_110, %c0_111] : memref<1x8x32x32xf32, #tpu.memory_space<vmem>>, vector<1x1x32x32xf32>
    %136 = vector.shape_cast %135 : vector<1x1x32x32xf32> to vector<32x32xf32>
    %c0_112 = arith.constant 0 : index
    %c3_113 = arith.constant 3 : index
    %c0_114 = arith.constant 0 : index
    %c0_115 = arith.constant 0 : index
    %137 = vector.load %arg4[%c0_112, %c3_113, %c0_114, %c0_115] : memref<1x8x1x32xf32, #tpu.memory_space<vmem>>, vector<1x1x1x32xf32>
    %138 = vector.shape_cast %137 : vector<1x1x1x32xf32> to vector<1x32xf32>
    %cst_116 = arith.constant dense<0.000000e+00> : vector<1x32xf32>
    %139 = tpu.matmul %134, %136, %cst_116 {dimension_numbers = #tpu.dot_dimension_numbers<[1], [0], [0], [1], [0, 0, 1, 1], [], []>} : vector<1x32xf32>, vector<32x32xf32>, vector<1x32xf32> -> vector<1x32xf32>
    %140 = arith.addf %139, %138 : vector<1x32xf32>
    %cst_117 = arith.constant 0.000000e+00 : f32
    %141 = vector.broadcast %cst_117 : f32 to vector<1x32xf32>
    %142 = arith.cmpf oge, %140, %141 : vector<1x32xf32>
    %cst_118 = arith.constant 2.000000e-01 : f32
    %143 = vector.broadcast %cst_118 : f32 to vector<1x32xf32>
    %144 = arith.mulf %143, %140 : vector<1x32xf32>
    %145 = arith.select %142, %140, %144 : vector<1x32xi1>, vector<1x32xf32>
    %c0_119 = arith.constant 0 : index
    %c0_120 = arith.constant 0 : index
    %c0_121 = arith.constant 0 : index
    %146 = vector.load %arg7[%c0_119, %c0_120, %c0_121] : memref<1x32x2xf32, #tpu.memory_space<vmem>>, vector<1x32x2xf32>
    %147 = vector.shape_cast %146 : vector<1x32x2xf32> to vector<32x2xf32>
    %cst_122 = arith.constant dense<0.000000e+00> : vector<1x2xf32>
    %148 = tpu.matmul %145, %147, %cst_122 {dimension_numbers = #tpu.dot_dimension_numbers<[1], [0], [0], [1], [0, 0, 1, 1], [], []>} : vector<1x32xf32>, vector<32x2xf32>, vector<1x2xf32> -> vector<1x2xf32>
    %c0_123 = arith.constant 0 : index
    %c0_124 = arith.constant 0 : index
    %c0_125 = arith.constant 0 : index
    %149 = vector.load %arg8[%c0_123, %c0_124, %c0_125] : memref<1x1x2xf32, #tpu.memory_space<vmem>>, vector<1x1x2xf32>
    %150 = vector.shape_cast %149 : vector<1x1x2xf32> to vector<1x2xf32>
    %151 = arith.addf %148, %150 : vector<1x2xf32>
    %cst_126 = arith.constant dense<0xFF800000> : vector<1xf32>
    %152 = vector.multi_reduction <maximumf>, %151, %cst_126 [1] : vector<1x2xf32> to vector<1xf32>
    %153 = vector.shape_cast %152 : vector<1xf32> to vector<1x1xf32>
    %154 = vector.broadcast %153 : vector<1x1xf32> to vector<1x2xf32>
    %155 = arith.subf %151, %154 : vector<1x2xf32>
    %156 = math.exp %155 : vector<1x2xf32>
    %cst_127 = arith.constant dense<0.000000e+00> : vector<1xf32>
    %157 = vector.multi_reduction <add>, %156, %cst_127 [1] : vector<1x2xf32> to vector<1xf32>
    %158 = vector.shape_cast %157 : vector<1xf32> to vector<1x1xf32>
    %159 = vector.broadcast %158 : vector<1x1xf32> to vector<1x2xf32>
    %160 = arith.divf %156, %159 : vector<1x2xf32>
    %161 = vector.extract_strided_slice %160 {offsets = [0, 0], sizes = [1, 1], strides = [1, 1]} : vector<1x2xf32> to vector<1x1xf32>
    %162 = vector.broadcast %161 : vector<1x1xf32> to vector<1x32xf32>
    %163 = arith.mulf %123, %162 : vector<1x32xf32>
    %c1_128 = arith.constant 1 : index
    %c0_129 = arith.constant 0 : index
    %164 = vector.load %arg16[%c1_128, %c0_129] : memref<8x32xf32, #tpu.memory_space<vmem>>, vector<1x32xf32>
    tpu.vector_store %arg16[%c1_128, %c0_129], %163 {strides = array<i32>} : memref<8x32xf32, #tpu.memory_space<vmem>>, vector<1x32xf32>,
    %c1_130 = arith.constant 1 : index
    %c0_131 = arith.constant 0 : index
    %165 = vector.load %arg17[%c1_130, %c0_131] : memref<8x2xf32, #tpu.memory_space<vmem>>, vector<1x2xf32>
    tpu.vector_store %arg17[%c1_130, %c0_131], %160 {strides = array<i32>} : memref<8x2xf32, #tpu.memory_space<vmem>>, vector<1x2xf32>,
    %c0_132 = arith.constant 0 : index
    %c0_133 = arith.constant 0 : index
    %c0_134 = arith.constant 0 : index
    %c0_135 = arith.constant 0 : index
    %166 = vector.load %arg3[%c0_132, %c0_133, %c0_134, %c0_135] : memref<1x8x32x32xf32, #tpu.memory_space<vmem>>, vector<1x1x32x32xf32>
    %167 = vector.shape_cast %166 : vector<1x1x32x32xf32> to vector<32x32xf32>
    %c0_136 = arith.constant 0 : index
    %c0_137 = arith.constant 0 : index
    %c0_138 = arith.constant 0 : index
    %c0_139 = arith.constant 0 : index
    %168 = vector.load %arg4[%c0_136, %c0_137, %c0_138, %c0_139] : memref<1x8x1x32xf32, #tpu.memory_space<vmem>>, vector<1x1x1x32xf32>
    %169 = vector.shape_cast %168 : vector<1x1x1x32xf32> to vector<1x32xf32>
    %cst_140 = arith.constant dense<0.000000e+00> : vector<1x32xf32>
    %170 = tpu.matmul %163, %167, %cst_140 {dimension_numbers = #tpu.dot_dimension_numbers<[1], [0], [0], [1], [0, 0, 1, 1], [], []>} : vector<1x32xf32>, vector<32x32xf32>, vector<1x32xf32> -> vector<1x32xf32>
    %171 = arith.addf %170, %169 : vector<1x32xf32>
    %cst_141 = arith.constant 0.000000e+00 : f32
    %172 = vector.broadcast %cst_141 : f32 to vector<1x32xf32>
    %173 = arith.cmpf oge, %171, %172 : vector<1x32xf32>
    %cst_142 = arith.constant 2.000000e-01 : f32
    %174 = vector.broadcast %cst_142 : f32 to vector<1x32xf32>
    %175 = arith.mulf %174, %171 : vector<1x32xf32>
    %176 = arith.select %173, %171, %175 : vector<1x32xi1>, vector<1x32xf32>
    %c0_143 = arith.constant 0 : index
    %c1_144 = arith.constant 1 : index
    %c0_145 = arith.constant 0 : index
    %c0_146 = arith.constant 0 : index
    %177 = vector.load %arg3[%c0_143, %c1_144, %c0_145, %c0_146] : memref<1x8x32x32xf32, #tpu.memory_space<vmem>>, vector<1x1x32x32xf32>
    %178 = vector.shape_cast %177 : vector<1x1x32x32xf32> to vector<32x32xf32>
    %c0_147 = arith.constant 0 : index
    %c1_148 = arith.constant 1 : index
    %c0_149 = arith.constant 0 : index
    %c0_150 = arith.constant 0 : index
    %179 = vector.load %arg4[%c0_147, %c1_148, %c0_149, %c0_150] : memref<1x8x1x32xf32, #tpu.memory_space<vmem>>, vector<1x1x1x32xf32>
    %180 = vector.shape_cast %179 : vector<1x1x1x32xf32> to vector<1x32xf32>
    %cst_151 = arith.constant dense<0.000000e+00> : vector<1x32xf32>
    %181 = tpu.matmul %176, %178, %cst_151 {dimension_numbers = #tpu.dot_dimension_numbers<[1], [0], [0], [1], [0, 0, 1, 1], [], []>} : vector<1x32xf32>, vector<32x32xf32>, vector<1x32xf32> -> vector<1x32xf32>
    %182 = arith.addf %181, %180 : vector<1x32xf32>
    %cst_152 = arith.constant 0.000000e+00 : f32
    %183 = vector.broadcast %cst_152 : f32 to vector<1x32xf32>
    %184 = arith.cmpf oge, %182, %183 : vector<1x32xf32>
    %cst_153 = arith.constant 2.000000e-01 : f32
    %185 = vector.broadcast %cst_153 : f32 to vector<1x32xf32>
    %186 = arith.mulf %185, %182 : vector<1x32xf32>
    %187 = arith.select %184, %182, %186 : vector<1x32xi1>, vector<1x32xf32>
    %c0_154 = arith.constant 0 : index
    %c0_155 = arith.constant 0 : index
    %c0_156 = arith.constant 0 : index
    %188 = vector.load %arg5[%c0_154, %c0_155, %c0_156] : memref<1x32x32xf32, #tpu.memory_space<vmem>>, vector<1x32x32xf32>
    %189 = vector.shape_cast %188 : vector<1x32x32xf32> to vector<32x32xf32>
    %cst_157 = arith.constant dense<0.000000e+00> : vector<1x32xf32>
    %190 = tpu.matmul %187, %189, %cst_157 {dimension_numbers = #tpu.dot_dimension_numbers<[1], [0], [0], [1], [0, 0, 1, 1], [], []>} : vector<1x32xf32>, vector<32x32xf32>, vector<1x32xf32> -> vector<1x32xf32>
    %c0_158 = arith.constant 0 : index
    %c0_159 = arith.constant 0 : index
    %c0_160 = arith.constant 0 : index
    %191 = vector.load %arg6[%c0_158, %c0_159, %c0_160] : memref<1x1x32xf32, #tpu.memory_space<vmem>>, vector<1x1x32xf32>
    %192 = vector.shape_cast %191 : vector<1x1x32xf32> to vector<1x32xf32>
    %193 = arith.addf %190, %192 : vector<1x32xf32>
    %194 = arith.mulf %193, %193 : vector<1x32xf32>
    %cst_161 = arith.constant dense<0.000000e+00> : vector<1xf32>
    %195 = vector.multi_reduction <add>, %194, %cst_161 [1] : vector<1x32xf32> to vector<1xf32>
    %196 = vector.shape_cast %195 : vector<1xf32> to vector<1x1xf32>
    %197 = math.sqrt %196 : vector<1x1xf32>
    %cst_162 = arith.constant 9.99999993E-9 : f32
    %198 = vector.broadcast %cst_162 : f32 to vector<1x1xf32>
    %199 = arith.addf %197, %198 : vector<1x1xf32>
    %200 = vector.broadcast %199 : vector<1x1xf32> to vector<1x32xf32>
    %201 = arith.divf %193, %200 : vector<1x32xf32>
    %c0_163 = arith.constant 0 : index
    %c2_164 = arith.constant 2 : index
    %c0_165 = arith.constant 0 : index
    %c0_166 = arith.constant 0 : index
    %202 = vector.load %arg3[%c0_163, %c2_164, %c0_165, %c0_166] : memref<1x8x32x32xf32, #tpu.memory_space<vmem>>, vector<1x1x32x32xf32>
    %203 = vector.shape_cast %202 : vector<1x1x32x32xf32> to vector<32x32xf32>
    %c0_167 = arith.constant 0 : index
    %c2_168 = arith.constant 2 : index
    %c0_169 = arith.constant 0 : index
    %c0_170 = arith.constant 0 : index
    %204 = vector.load %arg4[%c0_167, %c2_168, %c0_169, %c0_170] : memref<1x8x1x32xf32, #tpu.memory_space<vmem>>, vector<1x1x1x32xf32>
    %205 = vector.shape_cast %204 : vector<1x1x1x32xf32> to vector<1x32xf32>
    %cst_171 = arith.constant dense<0.000000e+00> : vector<1x32xf32>
    %206 = tpu.matmul %201, %203, %cst_171 {dimension_numbers = #tpu.dot_dimension_numbers<[1], [0], [0], [1], [0, 0, 1, 1], [], []>} : vector<1x32xf32>, vector<32x32xf32>, vector<1x32xf32> -> vector<1x32xf32>
    %207 = arith.addf %206, %205 : vector<1x32xf32>
    %cst_172 = arith.constant 0.000000e+00 : f32
    %208 = vector.broadcast %cst_172 : f32 to vector<1x32xf32>
    %209 = arith.cmpf oge, %207, %208 : vector<1x32xf32>
    %cst_173 = arith.constant 2.000000e-01 : f32
    %210 = vector.broadcast %cst_173 : f32 to vector<1x32xf32>
    %211 = arith.mulf %210, %207 : vector<1x32xf32>
    %212 = arith.select %209, %207, %211 : vector<1x32xi1>, vector<1x32xf32>
    %c0_174 = arith.constant 0 : index
    %c3_175 = arith.constant 3 : index
    %c0_176 = arith.constant 0 : index
    %c0_177 = arith.constant 0 : index
    %213 = vector.load %arg3[%c0_174, %c3_175, %c0_176, %c0_177] : memref<1x8x32x32xf32, #tpu.memory_space<vmem>>, vector<1x1x32x32xf32>
    %214 = vector.shape_cast %213 : vector<1x1x32x32xf32> to vector<32x32xf32>
    %c0_178 = arith.constant 0 : index
    %c3_179 = arith.constant 3 : index
    %c0_180 = arith.constant 0 : index
    %c0_181 = arith.constant 0 : index
    %215 = vector.load %arg4[%c0_178, %c3_179, %c0_180, %c0_181] : memref<1x8x1x32xf32, #tpu.memory_space<vmem>>, vector<1x1x1x32xf32>
    %216 = vector.shape_cast %215 : vector<1x1x1x32xf32> to vector<1x32xf32>
    %cst_182 = arith.constant dense<0.000000e+00> : vector<1x32xf32>
    %217 = tpu.matmul %212, %214, %cst_182 {dimension_numbers = #tpu.dot_dimension_numbers<[1], [0], [0], [1], [0, 0, 1, 1], [], []>} : vector<1x32xf32>, vector<32x32xf32>, vector<1x32xf32> -> vector<1x32xf32>
    %218 = arith.addf %217, %216 : vector<1x32xf32>
    %cst_183 = arith.constant 0.000000e+00 : f32
    %219 = vector.broadcast %cst_183 : f32 to vector<1x32xf32>
    %220 = arith.cmpf oge, %218, %219 : vector<1x32xf32>
    %cst_184 = arith.constant 2.000000e-01 : f32
    %221 = vector.broadcast %cst_184 : f32 to vector<1x32xf32>
    %222 = arith.mulf %221, %218 : vector<1x32xf32>
    %223 = arith.select %220, %218, %222 : vector<1x32xi1>, vector<1x32xf32>
    %c0_185 = arith.constant 0 : index
    %c0_186 = arith.constant 0 : index
    %c0_187 = arith.constant 0 : index
    %224 = vector.load %arg7[%c0_185, %c0_186, %c0_187] : memref<1x32x2xf32, #tpu.memory_space<vmem>>, vector<1x32x2xf32>
    %225 = vector.shape_cast %224 : vector<1x32x2xf32> to vector<32x2xf32>
    %cst_188 = arith.constant dense<0.000000e+00> : vector<1x2xf32>
    %226 = tpu.matmul %223, %225, %cst_188 {dimension_numbers = #tpu.dot_dimension_numbers<[1], [0], [0], [1], [0, 0, 1, 1], [], []>} : vector<1x32xf32>, vector<32x2xf32>, vector<1x2xf32> -> vector<1x2xf32>
    %c0_189 = arith.constant 0 : index
    %c0_190 = arith.constant 0 : index
    %c0_191 = arith.constant 0 : index
    %227 = vector.load %arg8[%c0_189, %c0_190, %c0_191] : memref<1x1x2xf32, #tpu.memory_space<vmem>>, vector<1x1x2xf32>
    %228 = vector.shape_cast %227 : vector<1x1x2xf32> to vector<1x2xf32>
    %229 = arith.addf %226, %228 : vector<1x2xf32>
    %cst_192 = arith.constant dense<0xFF800000> : vector<1xf32>
    %230 = vector.multi_reduction <maximumf>, %229, %cst_192 [1] : vector<1x2xf32> to vector<1xf32>
    %231 = vector.shape_cast %230 : vector<1xf32> to vector<1x1xf32>
    %232 = vector.broadcast %231 : vector<1x1xf32> to vector<1x2xf32>
    %233 = arith.subf %229, %232 : vector<1x2xf32>
    %234 = math.exp %233 : vector<1x2xf32>
    %cst_193 = arith.constant dense<0.000000e+00> : vector<1xf32>
    %235 = vector.multi_reduction <add>, %234, %cst_193 [1] : vector<1x2xf32> to vector<1xf32>
    %236 = vector.shape_cast %235 : vector<1xf32> to vector<1x1xf32>
    %237 = vector.broadcast %236 : vector<1x1xf32> to vector<1x2xf32>
    %238 = arith.divf %234, %237 : vector<1x2xf32>
    %239 = vector.extract_strided_slice %238 {offsets = [0, 0], sizes = [1, 1], strides = [1, 1]} : vector<1x2xf32> to vector<1x1xf32>
    %240 = vector.broadcast %239 : vector<1x1xf32> to vector<1x32xf32>
    %241 = arith.mulf %201, %240 : vector<1x32xf32>
    %c2_194 = arith.constant 2 : index
    %c0_195 = arith.constant 0 : index
    %242 = vector.load %arg16[%c2_194, %c0_195] : memref<8x32xf32, #tpu.memory_space<vmem>>, vector<1x32xf32>
    tpu.vector_store %arg16[%c2_194, %c0_195], %241 {strides = array<i32>} : memref<8x32xf32, #tpu.memory_space<vmem>>, vector<1x32xf32>,
    %c2_196 = arith.constant 2 : index
    %c0_197 = arith.constant 0 : index
    %243 = vector.load %arg17[%c2_196, %c0_197] : memref<8x2xf32, #tpu.memory_space<vmem>>, vector<1x2xf32>
    tpu.vector_store %arg17[%c2_196, %c0_197], %238 {strides = array<i32>} : memref<8x2xf32, #tpu.memory_space<vmem>>, vector<1x2xf32>,
    %c0_198 = arith.constant 0 : index
    %c0_199 = arith.constant 0 : index
    %c0_200 = arith.constant 0 : index
    %c0_201 = arith.constant 0 : index
    %244 = vector.load %arg3[%c0_198, %c0_199, %c0_200, %c0_201] : memref<1x8x32x32xf32, #tpu.memory_space<vmem>>, vector<1x1x32x32xf32>
    %245 = vector.shape_cast %244 : vector<1x1x32x32xf32> to vector<32x32xf32>
    %c0_202 = arith.constant 0 : index
    %c0_203 = arith.constant 0 : index
    %c0_204 = arith.constant 0 : index
    %c0_205 = arith.constant 0 : index
    %246 = vector.load %arg4[%c0_202, %c0_203, %c0_204, %c0_205] : memref<1x8x1x32xf32, #tpu.memory_space<vmem>>, vector<1x1x1x32xf32>
    %247 = vector.shape_cast %246 : vector<1x1x1x32xf32> to vector<1x32xf32>
    %cst_206 = arith.constant dense<0.000000e+00> : vector<1x32xf32>
    %248 = tpu.matmul %241, %245, %cst_206 {dimension_numbers = #tpu.dot_dimension_numbers<[1], [0], [0], [1], [0, 0, 1, 1], [], []>} : vector<1x32xf32>, vector<32x32xf32>, vector<1x32xf32> -> vector<1x32xf32>
    %249 = arith.addf %248, %247 : vector<1x32xf32>
    %cst_207 = arith.constant 0.000000e+00 : f32
    %250 = vector.broadcast %cst_207 : f32 to vector<1x32xf32>
    %251 = arith.cmpf oge, %249, %250 : vector<1x32xf32>
    %cst_208 = arith.constant 2.000000e-01 : f32
    %252 = vector.broadcast %cst_208 : f32 to vector<1x32xf32>
    %253 = arith.mulf %252, %249 : vector<1x32xf32>
    %254 = arith.select %251, %249, %253 : vector<1x32xi1>, vector<1x32xf32>
    %c0_209 = arith.constant 0 : index
    %c1_210 = arith.constant 1 : index
    %c0_211 = arith.constant 0 : index
    %c0_212 = arith.constant 0 : index
    %255 = vector.load %arg3[%c0_209, %c1_210, %c0_211, %c0_212] : memref<1x8x32x32xf32, #tpu.memory_space<vmem>>, vector<1x1x32x32xf32>
    %256 = vector.shape_cast %255 : vector<1x1x32x32xf32> to vector<32x32xf32>
    %c0_213 = arith.constant 0 : index
    %c1_214 = arith.constant 1 : index
    %c0_215 = arith.constant 0 : index
    %c0_216 = arith.constant 0 : index
    %257 = vector.load %arg4[%c0_213, %c1_214, %c0_215, %c0_216] : memref<1x8x1x32xf32, #tpu.memory_space<vmem>>, vector<1x1x1x32xf32>
    %258 = vector.shape_cast %257 : vector<1x1x1x32xf32> to vector<1x32xf32>
    %cst_217 = arith.constant dense<0.000000e+00> : vector<1x32xf32>
    %259 = tpu.matmul %254, %256, %cst_217 {dimension_numbers = #tpu.dot_dimension_numbers<[1], [0], [0], [1], [0, 0, 1, 1], [], []>} : vector<1x32xf32>, vector<32x32xf32>, vector<1x32xf32> -> vector<1x32xf32>
    %260 = arith.addf %259, %258 : vector<1x32xf32>
    %cst_218 = arith.constant 0.000000e+00 : f32
    %261 = vector.broadcast %cst_218 : f32 to vector<1x32xf32>
    %262 = arith.cmpf oge, %260, %261 : vector<1x32xf32>
    %cst_219 = arith.constant 2.000000e-01 : f32
    %263 = vector.broadcast %cst_219 : f32 to vector<1x32xf32>
    %264 = arith.mulf %263, %260 : vector<1x32xf32>
    %265 = arith.select %262, %260, %264 : vector<1x32xi1>, vector<1x32xf32>
    %c0_220 = arith.constant 0 : index
    %c0_221 = arith.constant 0 : index
    %c0_222 = arith.constant 0 : index
    %266 = vector.load %arg5[%c0_220, %c0_221, %c0_222] : memref<1x32x32xf32, #tpu.memory_space<vmem>>, vector<1x32x32xf32>
    %267 = vector.shape_cast %266 : vector<1x32x32xf32> to vector<32x32xf32>
    %cst_223 = arith.constant dense<0.000000e+00> : vector<1x32xf32>
    %268 = tpu.matmul %265, %267, %cst_223 {dimension_numbers = #tpu.dot_dimension_numbers<[1], [0], [0], [1], [0, 0, 1, 1], [], []>} : vector<1x32xf32>, vector<32x32xf32>, vector<1x32xf32> -> vector<1x32xf32>
    %c0_224 = arith.constant 0 : index
    %c0_225 = arith.constant 0 : index
    %c0_226 = arith.constant 0 : index
    %269 = vector.load %arg6[%c0_224, %c0_225, %c0_226] : memref<1x1x32xf32, #tpu.memory_space<vmem>>, vector<1x1x32xf32>
    %270 = vector.shape_cast %269 : vector<1x1x32xf32> to vector<1x32xf32>
    %271 = arith.addf %268, %270 : vector<1x32xf32>
    %272 = arith.mulf %271, %271 : vector<1x32xf32>
    %cst_227 = arith.constant dense<0.000000e+00> : vector<1xf32>
    %273 = vector.multi_reduction <add>, %272, %cst_227 [1] : vector<1x32xf32> to vector<1xf32>
    %274 = vector.shape_cast %273 : vector<1xf32> to vector<1x1xf32>
    %275 = math.sqrt %274 : vector<1x1xf32>
    %cst_228 = arith.constant 9.99999993E-9 : f32
    %276 = vector.broadcast %cst_228 : f32 to vector<1x1xf32>
    %277 = arith.addf %275, %276 : vector<1x1xf32>
    %278 = vector.broadcast %277 : vector<1x1xf32> to vector<1x32xf32>
    %279 = arith.divf %271, %278 : vector<1x32xf32>
    %c0_229 = arith.constant 0 : index
    %c2_230 = arith.constant 2 : index
    %c0_231 = arith.constant 0 : index
    %c0_232 = arith.constant 0 : index
    %280 = vector.load %arg3[%c0_229, %c2_230, %c0_231, %c0_232] : memref<1x8x32x32xf32, #tpu.memory_space<vmem>>, vector<1x1x32x32xf32>
    %281 = vector.shape_cast %280 : vector<1x1x32x32xf32> to vector<32x32xf32>
    %c0_233 = arith.constant 0 : index
    %c2_234 = arith.constant 2 : index
    %c0_235 = arith.constant 0 : index
    %c0_236 = arith.constant 0 : index
    %282 = vector.load %arg4[%c0_233, %c2_234, %c0_235, %c0_236] : memref<1x8x1x32xf32, #tpu.memory_space<vmem>>, vector<1x1x1x32xf32>
    %283 = vector.shape_cast %282 : vector<1x1x1x32xf32> to vector<1x32xf32>
    %cst_237 = arith.constant dense<0.000000e+00> : vector<1x32xf32>
    %284 = tpu.matmul %279, %281, %cst_237 {dimension_numbers = #tpu.dot_dimension_numbers<[1], [0], [0], [1], [0, 0, 1, 1], [], []>} : vector<1x32xf32>, vector<32x32xf32>, vector<1x32xf32> -> vector<1x32xf32>
    %285 = arith.addf %284, %283 : vector<1x32xf32>
    %cst_238 = arith.constant 0.000000e+00 : f32
    %286 = vector.broadcast %cst_238 : f32 to vector<1x32xf32>
    %287 = arith.cmpf oge, %285, %286 : vector<1x32xf32>
    %cst_239 = arith.constant 2.000000e-01 : f32
    %288 = vector.broadcast %cst_239 : f32 to vector<1x32xf32>
    %289 = arith.mulf %288, %285 : vector<1x32xf32>
    %290 = arith.select %287, %285, %289 : vector<1x32xi1>, vector<1x32xf32>
    %c0_240 = arith.constant 0 : index
    %c3_241 = arith.constant 3 : index
    %c0_242 = arith.constant 0 : index
    %c0_243 = arith.constant 0 : index
    %291 = vector.load %arg3[%c0_240, %c3_241, %c0_242, %c0_243] : memref<1x8x32x32xf32, #tpu.memory_space<vmem>>, vector<1x1x32x32xf32>
    %292 = vector.shape_cast %291 : vector<1x1x32x32xf32> to vector<32x32xf32>
    %c0_244 = arith.constant 0 : index
    %c3_245 = arith.constant 3 : index
    %c0_246 = arith.constant 0 : index
    %c0_247 = arith.constant 0 : index
    %293 = vector.load %arg4[%c0_244, %c3_245, %c0_246, %c0_247] : memref<1x8x1x32xf32, #tpu.memory_space<vmem>>, vector<1x1x1x32xf32>
    %294 = vector.shape_cast %293 : vector<1x1x1x32xf32> to vector<1x32xf32>
    %cst_248 = arith.constant dense<0.000000e+00> : vector<1x32xf32>
    %295 = tpu.matmul %290, %292, %cst_248 {dimension_numbers = #tpu.dot_dimension_numbers<[1], [0], [0], [1], [0, 0, 1, 1], [], []>} : vector<1x32xf32>, vector<32x32xf32>, vector<1x32xf32> -> vector<1x32xf32>
    %296 = arith.addf %295, %294 : vector<1x32xf32>
    %cst_249 = arith.constant 0.000000e+00 : f32
    %297 = vector.broadcast %cst_249 : f32 to vector<1x32xf32>
    %298 = arith.cmpf oge, %296, %297 : vector<1x32xf32>
    %cst_250 = arith.constant 2.000000e-01 : f32
    %299 = vector.broadcast %cst_250 : f32 to vector<1x32xf32>
    %300 = arith.mulf %299, %296 : vector<1x32xf32>
    %301 = arith.select %298, %296, %300 : vector<1x32xi1>, vector<1x32xf32>
    %c0_251 = arith.constant 0 : index
    %c0_252 = arith.constant 0 : index
    %c0_253 = arith.constant 0 : index
    %302 = vector.load %arg7[%c0_251, %c0_252, %c0_253] : memref<1x32x2xf32, #tpu.memory_space<vmem>>, vector<1x32x2xf32>
    %303 = vector.shape_cast %302 : vector<1x32x2xf32> to vector<32x2xf32>
    %cst_254 = arith.constant dense<0.000000e+00> : vector<1x2xf32>
    %304 = tpu.matmul %301, %303, %cst_254 {dimension_numbers = #tpu.dot_dimension_numbers<[1], [0], [0], [1], [0, 0, 1, 1], [], []>} : vector<1x32xf32>, vector<32x2xf32>, vector<1x2xf32> -> vector<1x2xf32>
    %c0_255 = arith.constant 0 : index
    %c0_256 = arith.constant 0 : index
    %c0_257 = arith.constant 0 : index
    %305 = vector.load %arg8[%c0_255, %c0_256, %c0_257] : memref<1x1x2xf32, #tpu.memory_space<vmem>>, vector<1x1x2xf32>
    %306 = vector.shape_cast %305 : vector<1x1x2xf32> to vector<1x2xf32>
    %307 = arith.addf %304, %306 : vector<1x2xf32>
    %cst_258 = arith.constant dense<0xFF800000> : vector<1xf32>
    %308 = vector.multi_reduction <maximumf>, %307, %cst_258 [1] : vector<1x2xf32> to vector<1xf32>
    %309 = vector.shape_cast %308 : vector<1xf32> to vector<1x1xf32>
    %310 = vector.broadcast %309 : vector<1x1xf32> to vector<1x2xf32>
    %311 = arith.subf %307, %310 : vector<1x2xf32>
    %312 = math.exp %311 : vector<1x2xf32>
    %cst_259 = arith.constant dense<0.000000e+00> : vector<1xf32>
    %313 = vector.multi_reduction <add>, %312, %cst_259 [1] : vector<1x2xf32> to vector<1xf32>
    %314 = vector.shape_cast %313 : vector<1xf32> to vector<1x1xf32>
    %315 = vector.broadcast %314 : vector<1x1xf32> to vector<1x2xf32>
    %316 = arith.divf %312, %315 : vector<1x2xf32>
    %317 = vector.extract_strided_slice %316 {offsets = [0, 0], sizes = [1, 1], strides = [1, 1]} : vector<1x2xf32> to vector<1x1xf32>
    %318 = vector.broadcast %317 : vector<1x1xf32> to vector<1x32xf32>
    %319 = arith.mulf %279, %318 : vector<1x32xf32>
    %c3_260 = arith.constant 3 : index
    %c0_261 = arith.constant 0 : index
    %320 = vector.load %arg16[%c3_260, %c0_261] : memref<8x32xf32, #tpu.memory_space<vmem>>, vector<1x32xf32>
    tpu.vector_store %arg16[%c3_260, %c0_261], %319 {strides = array<i32>} : memref<8x32xf32, #tpu.memory_space<vmem>>, vector<1x32xf32>,
    %c3_262 = arith.constant 3 : index
    %c0_263 = arith.constant 0 : index
    %321 = vector.load %arg17[%c3_262, %c0_263] : memref<8x2xf32, #tpu.memory_space<vmem>>, vector<1x2xf32>
    tpu.vector_store %arg17[%c3_262, %c0_263], %316 {strides = array<i32>} : memref<8x2xf32, #tpu.memory_space<vmem>>, vector<1x2xf32>,
    %c0_264 = arith.constant 0 : index
    %c0_265 = arith.constant 0 : index
    %c0_266 = arith.constant 0 : index
    %c0_267 = arith.constant 0 : index
    %322 = vector.load %arg3[%c0_264, %c0_265, %c0_266, %c0_267] : memref<1x8x32x32xf32, #tpu.memory_space<vmem>>, vector<1x1x32x32xf32>
    %323 = vector.shape_cast %322 : vector<1x1x32x32xf32> to vector<32x32xf32>
    %c0_268 = arith.constant 0 : index
    %c0_269 = arith.constant 0 : index
    %c0_270 = arith.constant 0 : index
    %c0_271 = arith.constant 0 : index
    %324 = vector.load %arg4[%c0_268, %c0_269, %c0_270, %c0_271] : memref<1x8x1x32xf32, #tpu.memory_space<vmem>>, vector<1x1x1x32xf32>
    %325 = vector.shape_cast %324 : vector<1x1x1x32xf32> to vector<1x32xf32>
    %cst_272 = arith.constant dense<0.000000e+00> : vector<1x32xf32>
    %326 = tpu.matmul %319, %323, %cst_272 {dimension_numbers = #tpu.dot_dimension_numbers<[1], [0], [0], [1], [0, 0, 1, 1], [], []>} : vector<1x32xf32>, vector<32x32xf32>, vector<1x32xf32> -> vector<1x32xf32>
    %327 = arith.addf %326, %325 : vector<1x32xf32>
    %cst_273 = arith.constant 0.000000e+00 : f32
    %328 = vector.broadcast %cst_273 : f32 to vector<1x32xf32>
    %329 = arith.cmpf oge, %327, %328 : vector<1x32xf32>
    %cst_274 = arith.constant 2.000000e-01 : f32
    %330 = vector.broadcast %cst_274 : f32 to vector<1x32xf32>
    %331 = arith.mulf %330, %327 : vector<1x32xf32>
    %332 = arith.select %329, %327, %331 : vector<1x32xi1>, vector<1x32xf32>
    %c0_275 = arith.constant 0 : index
    %c1_276 = arith.constant 1 : index
    %c0_277 = arith.constant 0 : index
    %c0_278 = arith.constant 0 : index
    %333 = vector.load %arg3[%c0_275, %c1_276, %c0_277, %c0_278] : memref<1x8x32x32xf32, #tpu.memory_space<vmem>>, vector<1x1x32x32xf32>
    %334 = vector.shape_cast %333 : vector<1x1x32x32xf32> to vector<32x32xf32>
    %c0_279 = arith.constant 0 : index
    %c1_280 = arith.constant 1 : index
    %c0_281 = arith.constant 0 : index
    %c0_282 = arith.constant 0 : index
    %335 = vector.load %arg4[%c0_279, %c1_280, %c0_281, %c0_282] : memref<1x8x1x32xf32, #tpu.memory_space<vmem>>, vector<1x1x1x32xf32>
    %336 = vector.shape_cast %335 : vector<1x1x1x32xf32> to vector<1x32xf32>
    %cst_283 = arith.constant dense<0.000000e+00> : vector<1x32xf32>
    %337 = tpu.matmul %332, %334, %cst_283 {dimension_numbers = #tpu.dot_dimension_numbers<[1], [0], [0], [1], [0, 0, 1, 1], [], []>} : vector<1x32xf32>, vector<32x32xf32>, vector<1x32xf32> -> vector<1x32xf32>
    %338 = arith.addf %337, %336 : vector<1x32xf32>
    %cst_284 = arith.constant 0.000000e+00 : f32
    %339 = vector.broadcast %cst_284 : f32 to vector<1x32xf32>
    %340 = arith.cmpf oge, %338, %339 : vector<1x32xf32>
    %cst_285 = arith.constant 2.000000e-01 : f32
    %341 = vector.broadcast %cst_285 : f32 to vector<1x32xf32>
    %342 = arith.mulf %341, %338 : vector<1x32xf32>
    %343 = arith.select %340, %338, %342 : vector<1x32xi1>, vector<1x32xf32>
    %c0_286 = arith.constant 0 : index
    %c0_287 = arith.constant 0 : index
    %c0_288 = arith.constant 0 : index
    %344 = vector.load %arg5[%c0_286, %c0_287, %c0_288] : memref<1x32x32xf32, #tpu.memory_space<vmem>>, vector<1x32x32xf32>
    %345 = vector.shape_cast %344 : vector<1x32x32xf32> to vector<32x32xf32>
    %cst_289 = arith.constant dense<0.000000e+00> : vector<1x32xf32>
    %346 = tpu.matmul %343, %345, %cst_289 {dimension_numbers = #tpu.dot_dimension_numbers<[1], [0], [0], [1], [0, 0, 1, 1], [], []>} : vector<1x32xf32>, vector<32x32xf32>, vector<1x32xf32> -> vector<1x32xf32>
    %c0_290 = arith.constant 0 : index
    %c0_291 = arith.constant 0 : index
    %c0_292 = arith.constant 0 : index
    %347 = vector.load %arg6[%c0_290, %c0_291, %c0_292] : memref<1x1x32xf32, #tpu.memory_space<vmem>>, vector<1x1x32xf32>
    %348 = vector.shape_cast %347 : vector<1x1x32xf32> to vector<1x32xf32>
    %349 = arith.addf %346, %348 : vector<1x32xf32>
    %350 = arith.mulf %349, %349 : vector<1x32xf32>
    %cst_293 = arith.constant dense<0.000000e+00> : vector<1xf32>
    %351 = vector.multi_reduction <add>, %350, %cst_293 [1] : vector<1x32xf32> to vector<1xf32>
    %352 = vector.shape_cast %351 : vector<1xf32> to vector<1x1xf32>
    %353 = math.sqrt %352 : vector<1x1xf32>
    %cst_294 = arith.constant 9.99999993E-9 : f32
    %354 = vector.broadcast %cst_294 : f32 to vector<1x1xf32>
    %355 = arith.addf %353, %354 : vector<1x1xf32>
    %356 = vector.broadcast %355 : vector<1x1xf32> to vector<1x32xf32>
    %357 = arith.divf %349, %356 : vector<1x32xf32>
    %c0_295 = arith.constant 0 : index
    %c2_296 = arith.constant 2 : index
    %c0_297 = arith.constant 0 : index
    %c0_298 = arith.constant 0 : index
    %358 = vector.load %arg3[%c0_295, %c2_296, %c0_297, %c0_298] : memref<1x8x32x32xf32, #tpu.memory_space<vmem>>, vector<1x1x32x32xf32>
    %359 = vector.shape_cast %358 : vector<1x1x32x32xf32> to vector<32x32xf32>
    %c0_299 = arith.constant 0 : index
    %c2_300 = arith.constant 2 : index
    %c0_301 = arith.constant 0 : index
    %c0_302 = arith.constant 0 : index
    %360 = vector.load %arg4[%c0_299, %c2_300, %c0_301, %c0_302] : memref<1x8x1x32xf32, #tpu.memory_space<vmem>>, vector<1x1x1x32xf32>
    %361 = vector.shape_cast %360 : vector<1x1x1x32xf32> to vector<1x32xf32>
    %cst_303 = arith.constant dense<0.000000e+00> : vector<1x32xf32>
    %362 = tpu.matmul %357, %359, %cst_303 {dimension_numbers = #tpu.dot_dimension_numbers<[1], [0], [0], [1], [0, 0, 1, 1], [], []>} : vector<1x32xf32>, vector<32x32xf32>, vector<1x32xf32> -> vector<1x32xf32>
    %363 = arith.addf %362, %361 : vector<1x32xf32>
    %cst_304 = arith.constant 0.000000e+00 : f32
    %364 = vector.broadcast %cst_304 : f32 to vector<1x32xf32>
    %365 = arith.cmpf oge, %363, %364 : vector<1x32xf32>
    %cst_305 = arith.constant 2.000000e-01 : f32
    %366 = vector.broadcast %cst_305 : f32 to vector<1x32xf32>
    %367 = arith.mulf %366, %363 : vector<1x32xf32>
    %368 = arith.select %365, %363, %367 : vector<1x32xi1>, vector<1x32xf32>
    %c0_306 = arith.constant 0 : index
    %c3_307 = arith.constant 3 : index
    %c0_308 = arith.constant 0 : index
    %c0_309 = arith.constant 0 : index
    %369 = vector.load %arg3[%c0_306, %c3_307, %c0_308, %c0_309] : memref<1x8x32x32xf32, #tpu.memory_space<vmem>>, vector<1x1x32x32xf32>
    %370 = vector.shape_cast %369 : vector<1x1x32x32xf32> to vector<32x32xf32>
    %c0_310 = arith.constant 0 : index
    %c3_311 = arith.constant 3 : index
    %c0_312 = arith.constant 0 : index
    %c0_313 = arith.constant 0 : index
    %371 = vector.load %arg4[%c0_310, %c3_311, %c0_312, %c0_313] : memref<1x8x1x32xf32, #tpu.memory_space<vmem>>, vector<1x1x1x32xf32>
    %372 = vector.shape_cast %371 : vector<1x1x1x32xf32> to vector<1x32xf32>
    %cst_314 = arith.constant dense<0.000000e+00> : vector<1x32xf32>
    %373 = tpu.matmul %368, %370, %cst_314 {dimension_numbers = #tpu.dot_dimension_numbers<[1], [0], [0], [1], [0, 0, 1, 1], [], []>} : vector<1x32xf32>, vector<32x32xf32>, vector<1x32xf32> -> vector<1x32xf32>
    %374 = arith.addf %373, %372 : vector<1x32xf32>
    %cst_315 = arith.constant 0.000000e+00 : f32
    %375 = vector.broadcast %cst_315 : f32 to vector<1x32xf32>
    %376 = arith.cmpf oge, %374, %375 : vector<1x32xf32>
    %cst_316 = arith.constant 2.000000e-01 : f32
    %377 = vector.broadcast %cst_316 : f32 to vector<1x32xf32>
    %378 = arith.mulf %377, %374 : vector<1x32xf32>
    %379 = arith.select %376, %374, %378 : vector<1x32xi1>, vector<1x32xf32>
    %c0_317 = arith.constant 0 : index
    %c0_318 = arith.constant 0 : index
    %c0_319 = arith.constant 0 : index
    %380 = vector.load %arg7[%c0_317, %c0_318, %c0_319] : memref<1x32x2xf32, #tpu.memory_space<vmem>>, vector<1x32x2xf32>
    %381 = vector.shape_cast %380 : vector<1x32x2xf32> to vector<32x2xf32>
    %cst_320 = arith.constant dense<0.000000e+00> : vector<1x2xf32>
    %382 = tpu.matmul %379, %381, %cst_320 {dimension_numbers = #tpu.dot_dimension_numbers<[1], [0], [0], [1], [0, 0, 1, 1], [], []>} : vector<1x32xf32>, vector<32x2xf32>, vector<1x2xf32> -> vector<1x2xf32>
    %c0_321 = arith.constant 0 : index
    %c0_322 = arith.constant 0 : index
    %c0_323 = arith.constant 0 : index
    %383 = vector.load %arg8[%c0_321, %c0_322, %c0_323] : memref<1x1x2xf32, #tpu.memory_space<vmem>>, vector<1x1x2xf32>
    %384 = vector.shape_cast %383 : vector<1x1x2xf32> to vector<1x2xf32>
    %385 = arith.addf %382, %384 : vector<1x2xf32>
    %cst_324 = arith.constant dense<0xFF800000> : vector<1xf32>
    %386 = vector.multi_reduction <maximumf>, %385, %cst_324 [1] : vector<1x2xf32> to vector<1xf32>
    %387 = vector.shape_cast %386 : vector<1xf32> to vector<1x1xf32>
    %388 = vector.broadcast %387 : vector<1x1xf32> to vector<1x2xf32>
    %389 = arith.subf %385, %388 : vector<1x2xf32>
    %390 = math.exp %389 : vector<1x2xf32>
    %cst_325 = arith.constant dense<0.000000e+00> : vector<1xf32>
    %391 = vector.multi_reduction <add>, %390, %cst_325 [1] : vector<1x2xf32> to vector<1xf32>
    %392 = vector.shape_cast %391 : vector<1xf32> to vector<1x1xf32>
    %393 = vector.broadcast %392 : vector<1x1xf32> to vector<1x2xf32>
    %394 = arith.divf %390, %393 : vector<1x2xf32>
    %395 = vector.extract_strided_slice %394 {offsets = [0, 0], sizes = [1, 1], strides = [1, 1]} : vector<1x2xf32> to vector<1x1xf32>
    %396 = vector.broadcast %395 : vector<1x1xf32> to vector<1x32xf32>
    %397 = arith.mulf %357, %396 : vector<1x32xf32>
    %c4 = arith.constant 4 : index
    %c0_326 = arith.constant 0 : index
    %398 = vector.load %arg16[%c4, %c0_326] : memref<8x32xf32, #tpu.memory_space<vmem>>, vector<1x32xf32>
    tpu.vector_store %arg16[%c4, %c0_326], %397 {strides = array<i32>} : memref<8x32xf32, #tpu.memory_space<vmem>>, vector<1x32xf32>,
    %c4_327 = arith.constant 4 : index
    %c0_328 = arith.constant 0 : index
    %399 = vector.load %arg17[%c4_327, %c0_328] : memref<8x2xf32, #tpu.memory_space<vmem>>, vector<1x2xf32>
    tpu.vector_store %arg17[%c4_327, %c0_328], %394 {strides = array<i32>} : memref<8x2xf32, #tpu.memory_space<vmem>>, vector<1x2xf32>,
    %c0_329 = arith.constant 0 : index
    %c0_330 = arith.constant 0 : index
    %c0_331 = arith.constant 0 : index
    %c0_332 = arith.constant 0 : index
    %400 = vector.load %arg3[%c0_329, %c0_330, %c0_331, %c0_332] : memref<1x8x32x32xf32, #tpu.memory_space<vmem>>, vector<1x1x32x32xf32>
    %401 = vector.shape_cast %400 : vector<1x1x32x32xf32> to vector<32x32xf32>
    %c0_333 = arith.constant 0 : index
    %c0_334 = arith.constant 0 : index
    %c0_335 = arith.constant 0 : index
    %c0_336 = arith.constant 0 : index
    %402 = vector.load %arg4[%c0_333, %c0_334, %c0_335, %c0_336] : memref<1x8x1x32xf32, #tpu.memory_space<vmem>>, vector<1x1x1x32xf32>
    %403 = vector.shape_cast %402 : vector<1x1x1x32xf32> to vector<1x32xf32>
    %cst_337 = arith.constant dense<0.000000e+00> : vector<1x32xf32>
    %404 = tpu.matmul %397, %401, %cst_337 {dimension_numbers = #tpu.dot_dimension_numbers<[1], [0], [0], [1], [0, 0, 1, 1], [], []>} : vector<1x32xf32>, vector<32x32xf32>, vector<1x32xf32> -> vector<1x32xf32>
    %405 = arith.addf %404, %403 : vector<1x32xf32>
    %cst_338 = arith.constant 0.000000e+00 : f32
    %406 = vector.broadcast %cst_338 : f32 to vector<1x32xf32>
    %407 = arith.cmpf oge, %405, %406 : vector<1x32xf32>
    %cst_339 = arith.constant 2.000000e-01 : f32
    %408 = vector.broadcast %cst_339 : f32 to vector<1x32xf32>
    %409 = arith.mulf %408, %405 : vector<1x32xf32>
    %410 = arith.select %407, %405, %409 : vector<1x32xi1>, vector<1x32xf32>
    %c0_340 = arith.constant 0 : index
    %c1_341 = arith.constant 1 : index
    %c0_342 = arith.constant 0 : index
    %c0_343 = arith.constant 0 : index
    %411 = vector.load %arg3[%c0_340, %c1_341, %c0_342, %c0_343] : memref<1x8x32x32xf32, #tpu.memory_space<vmem>>, vector<1x1x32x32xf32>
    %412 = vector.shape_cast %411 : vector<1x1x32x32xf32> to vector<32x32xf32>
    %c0_344 = arith.constant 0 : index
    %c1_345 = arith.constant 1 : index
    %c0_346 = arith.constant 0 : index
    %c0_347 = arith.constant 0 : index
    %413 = vector.load %arg4[%c0_344, %c1_345, %c0_346, %c0_347] : memref<1x8x1x32xf32, #tpu.memory_space<vmem>>, vector<1x1x1x32xf32>
    %414 = vector.shape_cast %413 : vector<1x1x1x32xf32> to vector<1x32xf32>
    %cst_348 = arith.constant dense<0.000000e+00> : vector<1x32xf32>
    %415 = tpu.matmul %410, %412, %cst_348 {dimension_numbers = #tpu.dot_dimension_numbers<[1], [0], [0], [1], [0, 0, 1, 1], [], []>} : vector<1x32xf32>, vector<32x32xf32>, vector<1x32xf32> -> vector<1x32xf32>
    %416 = arith.addf %415, %414 : vector<1x32xf32>
    %cst_349 = arith.constant 0.000000e+00 : f32
    %417 = vector.broadcast %cst_349 : f32 to vector<1x32xf32>
    %418 = arith.cmpf oge, %416, %417 : vector<1x32xf32>
    %cst_350 = arith.constant 2.000000e-01 : f32
    %419 = vector.broadcast %cst_350 : f32 to vector<1x32xf32>
    %420 = arith.mulf %419, %416 : vector<1x32xf32>
    %421 = arith.select %418, %416, %420 : vector<1x32xi1>, vector<1x32xf32>
    %c0_351 = arith.constant 0 : index
    %c0_352 = arith.constant 0 : index
    %c0_353 = arith.constant 0 : index
    %422 = vector.load %arg5[%c0_351, %c0_352, %c0_353] : memref<1x32x32xf32, #tpu.memory_space<vmem>>, vector<1x32x32xf32>
    %423 = vector.shape_cast %422 : vector<1x32x32xf32> to vector<32x32xf32>
    %cst_354 = arith.constant dense<0.000000e+00> : vector<1x32xf32>
    %424 = tpu.matmul %421, %423, %cst_354 {dimension_numbers = #tpu.dot_dimension_numbers<[1], [0], [0], [1], [0, 0, 1, 1], [], []>} : vector<1x32xf32>, vector<32x32xf32>, vector<1x32xf32> -> vector<1x32xf32>
    %c0_355 = arith.constant 0 : index
    %c0_356 = arith.constant 0 : index
    %c0_357 = arith.constant 0 : index
    %425 = vector.load %arg6[%c0_355, %c0_356, %c0_357] : memref<1x1x32xf32, #tpu.memory_space<vmem>>, vector<1x1x32xf32>
    %426 = vector.shape_cast %425 : vector<1x1x32xf32> to vector<1x32xf32>
    %427 = arith.addf %424, %426 : vector<1x32xf32>
    %428 = arith.mulf %427, %427 : vector<1x32xf32>
    %cst_358 = arith.constant dense<0.000000e+00> : vector<1xf32>
    %429 = vector.multi_reduction <add>, %428, %cst_358 [1] : vector<1x32xf32> to vector<1xf32>
    %430 = vector.shape_cast %429 : vector<1xf32> to vector<1x1xf32>
    %431 = math.sqrt %430 : vector<1x1xf32>
    %cst_359 = arith.constant 9.99999993E-9 : f32
    %432 = vector.broadcast %cst_359 : f32 to vector<1x1xf32>
    %433 = arith.addf %431, %432 : vector<1x1xf32>
    %434 = vector.broadcast %433 : vector<1x1xf32> to vector<1x32xf32>
    %435 = arith.divf %427, %434 : vector<1x32xf32>
    %c0_360 = arith.constant 0 : index
    %c2_361 = arith.constant 2 : index
    %c0_362 = arith.constant 0 : index
    %c0_363 = arith.constant 0 : index
    %436 = vector.load %arg3[%c0_360, %c2_361, %c0_362, %c0_363] : memref<1x8x32x32xf32, #tpu.memory_space<vmem>>, vector<1x1x32x32xf32>
    %437 = vector.shape_cast %436 : vector<1x1x32x32xf32> to vector<32x32xf32>
    %c0_364 = arith.constant 0 : index
    %c2_365 = arith.constant 2 : index
    %c0_366 = arith.constant 0 : index
    %c0_367 = arith.constant 0 : index
    %438 = vector.load %arg4[%c0_364, %c2_365, %c0_366, %c0_367] : memref<1x8x1x32xf32, #tpu.memory_space<vmem>>, vector<1x1x1x32xf32>
    %439 = vector.shape_cast %438 : vector<1x1x1x32xf32> to vector<1x32xf32>
    %cst_368 = arith.constant dense<0.000000e+00> : vector<1x32xf32>
    %440 = tpu.matmul %435, %437, %cst_368 {dimension_numbers = #tpu.dot_dimension_numbers<[1], [0], [0], [1], [0, 0, 1, 1], [], []>} : vector<1x32xf32>, vector<32x32xf32>, vector<1x32xf32> -> vector<1x32xf32>
    %441 = arith.addf %440, %439 : vector<1x32xf32>
    %cst_369 = arith.constant 0.000000e+00 : f32
    %442 = vector.broadcast %cst_369 : f32 to vector<1x32xf32>
    %443 = arith.cmpf oge, %441, %442 : vector<1x32xf32>
    %cst_370 = arith.constant 2.000000e-01 : f32
    %444 = vector.broadcast %cst_370 : f32 to vector<1x32xf32>
    %445 = arith.mulf %444, %441 : vector<1x32xf32>
    %446 = arith.select %443, %441, %445 : vector<1x32xi1>, vector<1x32xf32>
    %c0_371 = arith.constant 0 : index
    %c3_372 = arith.constant 3 : index
    %c0_373 = arith.constant 0 : index
    %c0_374 = arith.constant 0 : index
    %447 = vector.load %arg3[%c0_371, %c3_372, %c0_373, %c0_374] : memref<1x8x32x32xf32, #tpu.memory_space<vmem>>, vector<1x1x32x32xf32>
    %448 = vector.shape_cast %447 : vector<1x1x32x32xf32> to vector<32x32xf32>
    %c0_375 = arith.constant 0 : index
    %c3_376 = arith.constant 3 : index
    %c0_377 = arith.constant 0 : index
    %c0_378 = arith.constant 0 : index
    %449 = vector.load %arg4[%c0_375, %c3_376, %c0_377, %c0_378] : memref<1x8x1x32xf32, #tpu.memory_space<vmem>>, vector<1x1x1x32xf32>
    %450 = vector.shape_cast %449 : vector<1x1x1x32xf32> to vector<1x32xf32>
    %cst_379 = arith.constant dense<0.000000e+00> : vector<1x32xf32>
    %451 = tpu.matmul %446, %448, %cst_379 {dimension_numbers = #tpu.dot_dimension_numbers<[1], [0], [0], [1], [0, 0, 1, 1], [], []>} : vector<1x32xf32>, vector<32x32xf32>, vector<1x32xf32> -> vector<1x32xf32>
    %452 = arith.addf %451, %450 : vector<1x32xf32>
    %cst_380 = arith.constant 0.000000e+00 : f32
    %453 = vector.broadcast %cst_380 : f32 to vector<1x32xf32>
    %454 = arith.cmpf oge, %452, %453 : vector<1x32xf32>
    %cst_381 = arith.constant 2.000000e-01 : f32
    %455 = vector.broadcast %cst_381 : f32 to vector<1x32xf32>
    %456 = arith.mulf %455, %452 : vector<1x32xf32>
    %457 = arith.select %454, %452, %456 : vector<1x32xi1>, vector<1x32xf32>
    %c0_382 = arith.constant 0 : index
    %c0_383 = arith.constant 0 : index
    %c0_384 = arith.constant 0 : index
    %458 = vector.load %arg7[%c0_382, %c0_383, %c0_384] : memref<1x32x2xf32, #tpu.memory_space<vmem>>, vector<1x32x2xf32>
    %459 = vector.shape_cast %458 : vector<1x32x2xf32> to vector<32x2xf32>
    %cst_385 = arith.constant dense<0.000000e+00> : vector<1x2xf32>
    %460 = tpu.matmul %457, %459, %cst_385 {dimension_numbers = #tpu.dot_dimension_numbers<[1], [0], [0], [1], [0, 0, 1, 1], [], []>} : vector<1x32xf32>, vector<32x2xf32>, vector<1x2xf32> -> vector<1x2xf32>
    %c0_386 = arith.constant 0 : index
    %c0_387 = arith.constant 0 : index
    %c0_388 = arith.constant 0 : index
    %461 = vector.load %arg8[%c0_386, %c0_387, %c0_388] : memref<1x1x2xf32, #tpu.memory_space<vmem>>, vector<1x1x2xf32>
    %462 = vector.shape_cast %461 : vector<1x1x2xf32> to vector<1x2xf32>
    %463 = arith.addf %460, %462 : vector<1x2xf32>
    %cst_389 = arith.constant dense<0xFF800000> : vector<1xf32>
    %464 = vector.multi_reduction <maximumf>, %463, %cst_389 [1] : vector<1x2xf32> to vector<1xf32>
    %465 = vector.shape_cast %464 : vector<1xf32> to vector<1x1xf32>
    %466 = vector.broadcast %465 : vector<1x1xf32> to vector<1x2xf32>
    %467 = arith.subf %463, %466 : vector<1x2xf32>
    %468 = math.exp %467 : vector<1x2xf32>
    %cst_390 = arith.constant dense<0.000000e+00> : vector<1xf32>
    %469 = vector.multi_reduction <add>, %468, %cst_390 [1] : vector<1x2xf32> to vector<1xf32>
    %470 = vector.shape_cast %469 : vector<1xf32> to vector<1x1xf32>
    %471 = vector.broadcast %470 : vector<1x1xf32> to vector<1x2xf32>
    %472 = arith.divf %468, %471 : vector<1x2xf32>
    %473 = vector.extract_strided_slice %472 {offsets = [0, 0], sizes = [1, 1], strides = [1, 1]} : vector<1x2xf32> to vector<1x1xf32>
    %474 = vector.broadcast %473 : vector<1x1xf32> to vector<1x32xf32>
    %475 = arith.mulf %435, %474 : vector<1x32xf32>
    %c5 = arith.constant 5 : index
    %c0_391 = arith.constant 0 : index
    %476 = vector.load %arg16[%c5, %c0_391] : memref<8x32xf32, #tpu.memory_space<vmem>>, vector<1x32xf32>
    tpu.vector_store %arg16[%c5, %c0_391], %475 {strides = array<i32>} : memref<8x32xf32, #tpu.memory_space<vmem>>, vector<1x32xf32>,
    %c5_392 = arith.constant 5 : index
    %c0_393 = arith.constant 0 : index
    %477 = vector.load %arg17[%c5_392, %c0_393] : memref<8x2xf32, #tpu.memory_space<vmem>>, vector<1x2xf32>
    tpu.vector_store %arg17[%c5_392, %c0_393], %472 {strides = array<i32>} : memref<8x2xf32, #tpu.memory_space<vmem>>, vector<1x2xf32>,
    %c0_394 = arith.constant 0 : index
    %c0_395 = arith.constant 0 : index
    %c0_396 = arith.constant 0 : index
    %c0_397 = arith.constant 0 : index
    %478 = vector.load %arg3[%c0_394, %c0_395, %c0_396, %c0_397] : memref<1x8x32x32xf32, #tpu.memory_space<vmem>>, vector<1x1x32x32xf32>
    %479 = vector.shape_cast %478 : vector<1x1x32x32xf32> to vector<32x32xf32>
    %c0_398 = arith.constant 0 : index
    %c0_399 = arith.constant 0 : index
    %c0_400 = arith.constant 0 : index
    %c0_401 = arith.constant 0 : index
    %480 = vector.load %arg4[%c0_398, %c0_399, %c0_400, %c0_401] : memref<1x8x1x32xf32, #tpu.memory_space<vmem>>, vector<1x1x1x32xf32>
    %481 = vector.shape_cast %480 : vector<1x1x1x32xf32> to vector<1x32xf32>
    %cst_402 = arith.constant dense<0.000000e+00> : vector<1x32xf32>
    %482 = tpu.matmul %475, %479, %cst_402 {dimension_numbers = #tpu.dot_dimension_numbers<[1], [0], [0], [1], [0, 0, 1, 1], [], []>} : vector<1x32xf32>, vector<32x32xf32>, vector<1x32xf32> -> vector<1x32xf32>
    %483 = arith.addf %482, %481 : vector<1x32xf32>
    %cst_403 = arith.constant 0.000000e+00 : f32
    %484 = vector.broadcast %cst_403 : f32 to vector<1x32xf32>
    %485 = arith.cmpf oge, %483, %484 : vector<1x32xf32>
    %cst_404 = arith.constant 2.000000e-01 : f32
    %486 = vector.broadcast %cst_404 : f32 to vector<1x32xf32>
    %487 = arith.mulf %486, %483 : vector<1x32xf32>
    %488 = arith.select %485, %483, %487 : vector<1x32xi1>, vector<1x32xf32>
    %c0_405 = arith.constant 0 : index
    %c1_406 = arith.constant 1 : index
    %c0_407 = arith.constant 0 : index
    %c0_408 = arith.constant 0 : index
    %489 = vector.load %arg3[%c0_405, %c1_406, %c0_407, %c0_408] : memref<1x8x32x32xf32, #tpu.memory_space<vmem>>, vector<1x1x32x32xf32>
    %490 = vector.shape_cast %489 : vector<1x1x32x32xf32> to vector<32x32xf32>
    %c0_409 = arith.constant 0 : index
    %c1_410 = arith.constant 1 : index
    %c0_411 = arith.constant 0 : index
    %c0_412 = arith.constant 0 : index
    %491 = vector.load %arg4[%c0_409, %c1_410, %c0_411, %c0_412] : memref<1x8x1x32xf32, #tpu.memory_space<vmem>>, vector<1x1x1x32xf32>
    %492 = vector.shape_cast %491 : vector<1x1x1x32xf32> to vector<1x32xf32>
    %cst_413 = arith.constant dense<0.000000e+00> : vector<1x32xf32>
    %493 = tpu.matmul %488, %490, %cst_413 {dimension_numbers = #tpu.dot_dimension_numbers<[1], [0], [0], [1], [0, 0, 1, 1], [], []>} : vector<1x32xf32>, vector<32x32xf32>, vector<1x32xf32> -> vector<1x32xf32>
    %494 = arith.addf %493, %492 : vector<1x32xf32>
    %cst_414 = arith.constant 0.000000e+00 : f32
    %495 = vector.broadcast %cst_414 : f32 to vector<1x32xf32>
    %496 = arith.cmpf oge, %494, %495 : vector<1x32xf32>
    %cst_415 = arith.constant 2.000000e-01 : f32
    %497 = vector.broadcast %cst_415 : f32 to vector<1x32xf32>
    %498 = arith.mulf %497, %494 : vector<1x32xf32>
    %499 = arith.select %496, %494, %498 : vector<1x32xi1>, vector<1x32xf32>
    %c0_416 = arith.constant 0 : index
    %c0_417 = arith.constant 0 : index
    %c0_418 = arith.constant 0 : index
    %500 = vector.load %arg5[%c0_416, %c0_417, %c0_418] : memref<1x32x32xf32, #tpu.memory_space<vmem>>, vector<1x32x32xf32>
    %501 = vector.shape_cast %500 : vector<1x32x32xf32> to vector<32x32xf32>
    %cst_419 = arith.constant dense<0.000000e+00> : vector<1x32xf32>
    %502 = tpu.matmul %499, %501, %cst_419 {dimension_numbers = #tpu.dot_dimension_numbers<[1], [0], [0], [1], [0, 0, 1, 1], [], []>} : vector<1x32xf32>, vector<32x32xf32>, vector<1x32xf32> -> vector<1x32xf32>
    %c0_420 = arith.constant 0 : index
    %c0_421 = arith.constant 0 : index
    %c0_422 = arith.constant 0 : index
    %503 = vector.load %arg6[%c0_420, %c0_421, %c0_422] : memref<1x1x32xf32, #tpu.memory_space<vmem>>, vector<1x1x32xf32>
    %504 = vector.shape_cast %503 : vector<1x1x32xf32> to vector<1x32xf32>
    %505 = arith.addf %502, %504 : vector<1x32xf32>
    %506 = arith.mulf %505, %505 : vector<1x32xf32>
    %cst_423 = arith.constant dense<0.000000e+00> : vector<1xf32>
    %507 = vector.multi_reduction <add>, %506, %cst_423 [1] : vector<1x32xf32> to vector<1xf32>
    %508 = vector.shape_cast %507 : vector<1xf32> to vector<1x1xf32>
    %509 = math.sqrt %508 : vector<1x1xf32>
    %cst_424 = arith.constant 9.99999993E-9 : f32
    %510 = vector.broadcast %cst_424 : f32 to vector<1x1xf32>
    %511 = arith.addf %509, %510 : vector<1x1xf32>
    %512 = vector.broadcast %511 : vector<1x1xf32> to vector<1x32xf32>
    %513 = arith.divf %505, %512 : vector<1x32xf32>
    %c0_425 = arith.constant 0 : index
    %c2_426 = arith.constant 2 : index
    %c0_427 = arith.constant 0 : index
    %c0_428 = arith.constant 0 : index
    %514 = vector.load %arg3[%c0_425, %c2_426, %c0_427, %c0_428] : memref<1x8x32x32xf32, #tpu.memory_space<vmem>>, vector<1x1x32x32xf32>
    %515 = vector.shape_cast %514 : vector<1x1x32x32xf32> to vector<32x32xf32>
    %c0_429 = arith.constant 0 : index
    %c2_430 = arith.constant 2 : index
    %c0_431 = arith.constant 0 : index
    %c0_432 = arith.constant 0 : index
    %516 = vector.load %arg4[%c0_429, %c2_430, %c0_431, %c0_432] : memref<1x8x1x32xf32, #tpu.memory_space<vmem>>, vector<1x1x1x32xf32>
    %517 = vector.shape_cast %516 : vector<1x1x1x32xf32> to vector<1x32xf32>
    %cst_433 = arith.constant dense<0.000000e+00> : vector<1x32xf32>
    %518 = tpu.matmul %513, %515, %cst_433 {dimension_numbers = #tpu.dot_dimension_numbers<[1], [0], [0], [1], [0, 0, 1, 1], [], []>} : vector<1x32xf32>, vector<32x32xf32>, vector<1x32xf32> -> vector<1x32xf32>
    %519 = arith.addf %518, %517 : vector<1x32xf32>
    %cst_434 = arith.constant 0.000000e+00 : f32
    %520 = vector.broadcast %cst_434 : f32 to vector<1x32xf32>
    %521 = arith.cmpf oge, %519, %520 : vector<1x32xf32>
    %cst_435 = arith.constant 2.000000e-01 : f32
    %522 = vector.broadcast %cst_435 : f32 to vector<1x32xf32>
    %523 = arith.mulf %522, %519 : vector<1x32xf32>
    %524 = arith.select %521, %519, %523 : vector<1x32xi1>, vector<1x32xf32>
    %c0_436 = arith.constant 0 : index
    %c3_437 = arith.constant 3 : index
    %c0_438 = arith.constant 0 : index
    %c0_439 = arith.constant 0 : index
    %525 = vector.load %arg3[%c0_436, %c3_437, %c0_438, %c0_439] : memref<1x8x32x32xf32, #tpu.memory_space<vmem>>, vector<1x1x32x32xf32>
    %526 = vector.shape_cast %525 : vector<1x1x32x32xf32> to vector<32x32xf32>
    %c0_440 = arith.constant 0 : index
    %c3_441 = arith.constant 3 : index
    %c0_442 = arith.constant 0 : index
    %c0_443 = arith.constant 0 : index
    %527 = vector.load %arg4[%c0_440, %c3_441, %c0_442, %c0_443] : memref<1x8x1x32xf32, #tpu.memory_space<vmem>>, vector<1x1x1x32xf32>
    %528 = vector.shape_cast %527 : vector<1x1x1x32xf32> to vector<1x32xf32>
    %cst_444 = arith.constant dense<0.000000e+00> : vector<1x32xf32>
    %529 = tpu.matmul %524, %526, %cst_444 {dimension_numbers = #tpu.dot_dimension_numbers<[1], [0], [0], [1], [0, 0, 1, 1], [], []>} : vector<1x32xf32>, vector<32x32xf32>, vector<1x32xf32> -> vector<1x32xf32>
    %530 = arith.addf %529, %528 : vector<1x32xf32>
    %cst_445 = arith.constant 0.000000e+00 : f32
    %531 = vector.broadcast %cst_445 : f32 to vector<1x32xf32>
    %532 = arith.cmpf oge, %530, %531 : vector<1x32xf32>
    %cst_446 = arith.constant 2.000000e-01 : f32
    %533 = vector.broadcast %cst_446 : f32 to vector<1x32xf32>
    %534 = arith.mulf %533, %530 : vector<1x32xf32>
    %535 = arith.select %532, %530, %534 : vector<1x32xi1>, vector<1x32xf32>
    %c0_447 = arith.constant 0 : index
    %c0_448 = arith.constant 0 : index
    %c0_449 = arith.constant 0 : index
    %536 = vector.load %arg7[%c0_447, %c0_448, %c0_449] : memref<1x32x2xf32, #tpu.memory_space<vmem>>, vector<1x32x2xf32>
    %537 = vector.shape_cast %536 : vector<1x32x2xf32> to vector<32x2xf32>
    %cst_450 = arith.constant dense<0.000000e+00> : vector<1x2xf32>
    %538 = tpu.matmul %535, %537, %cst_450 {dimension_numbers = #tpu.dot_dimension_numbers<[1], [0], [0], [1], [0, 0, 1, 1], [], []>} : vector<1x32xf32>, vector<32x2xf32>, vector<1x2xf32> -> vector<1x2xf32>
    %c0_451 = arith.constant 0 : index
    %c0_452 = arith.constant 0 : index
    %c0_453 = arith.constant 0 : index
    %539 = vector.load %arg8[%c0_451, %c0_452, %c0_453] : memref<1x1x2xf32, #tpu.memory_space<vmem>>, vector<1x1x2xf32>
    %540 = vector.shape_cast %539 : vector<1x1x2xf32> to vector<1x2xf32>
    %541 = arith.addf %538, %540 : vector<1x2xf32>
    %cst_454 = arith.constant dense<0xFF800000> : vector<1xf32>
    %542 = vector.multi_reduction <maximumf>, %541, %cst_454 [1] : vector<1x2xf32> to vector<1xf32>
    %543 = vector.shape_cast %542 : vector<1xf32> to vector<1x1xf32>
    %544 = vector.broadcast %543 : vector<1x1xf32> to vector<1x2xf32>
    %545 = arith.subf %541, %544 : vector<1x2xf32>
    %546 = math.exp %545 : vector<1x2xf32>
    %cst_455 = arith.constant dense<0.000000e+00> : vector<1xf32>
    %547 = vector.multi_reduction <add>, %546, %cst_455 [1] : vector<1x2xf32> to vector<1xf32>
    %548 = vector.shape_cast %547 : vector<1xf32> to vector<1x1xf32>
    %549 = vector.broadcast %548 : vector<1x1xf32> to vector<1x2xf32>
    %550 = arith.divf %546, %549 : vector<1x2xf32>
    %551 = vector.extract_strided_slice %550 {offsets = [0, 0], sizes = [1, 1], strides = [1, 1]} : vector<1x2xf32> to vector<1x1xf32>
    %552 = vector.broadcast %551 : vector<1x1xf32> to vector<1x32xf32>
    %553 = arith.mulf %513, %552 : vector<1x32xf32>
    %c6 = arith.constant 6 : index
    %c0_456 = arith.constant 0 : index
    %554 = vector.load %arg16[%c6, %c0_456] : memref<8x32xf32, #tpu.memory_space<vmem>>, vector<1x32xf32>
    tpu.vector_store %arg16[%c6, %c0_456], %553 {strides = array<i32>} : memref<8x32xf32, #tpu.memory_space<vmem>>, vector<1x32xf32>,
    %c6_457 = arith.constant 6 : index
    %c0_458 = arith.constant 0 : index
    %555 = vector.load %arg17[%c6_457, %c0_458] : memref<8x2xf32, #tpu.memory_space<vmem>>, vector<1x2xf32>
    tpu.vector_store %arg17[%c6_457, %c0_458], %550 {strides = array<i32>} : memref<8x2xf32, #tpu.memory_space<vmem>>, vector<1x2xf32>,
    %c0_459 = arith.constant 0 : index
    %c0_460 = arith.constant 0 : index
    %c0_461 = arith.constant 0 : index
    %c0_462 = arith.constant 0 : index
    %556 = vector.load %arg3[%c0_459, %c0_460, %c0_461, %c0_462] : memref<1x8x32x32xf32, #tpu.memory_space<vmem>>, vector<1x1x32x32xf32>
    %557 = vector.shape_cast %556 : vector<1x1x32x32xf32> to vector<32x32xf32>
    %c0_463 = arith.constant 0 : index
    %c0_464 = arith.constant 0 : index
    %c0_465 = arith.constant 0 : index
    %c0_466 = arith.constant 0 : index
    %558 = vector.load %arg4[%c0_463, %c0_464, %c0_465, %c0_466] : memref<1x8x1x32xf32, #tpu.memory_space<vmem>>, vector<1x1x1x32xf32>
    %559 = vector.shape_cast %558 : vector<1x1x1x32xf32> to vector<1x32xf32>
    %cst_467 = arith.constant dense<0.000000e+00> : vector<1x32xf32>
    %560 = tpu.matmul %553, %557, %cst_467 {dimension_numbers = #tpu.dot_dimension_numbers<[1], [0], [0], [1], [0, 0, 1, 1], [], []>} : vector<1x32xf32>, vector<32x32xf32>, vector<1x32xf32> -> vector<1x32xf32>
    %561 = arith.addf %560, %559 : vector<1x32xf32>
    %cst_468 = arith.constant 0.000000e+00 : f32
    %562 = vector.broadcast %cst_468 : f32 to vector<1x32xf32>
    %563 = arith.cmpf oge, %561, %562 : vector<1x32xf32>
    %cst_469 = arith.constant 2.000000e-01 : f32
    %564 = vector.broadcast %cst_469 : f32 to vector<1x32xf32>
    %565 = arith.mulf %564, %561 : vector<1x32xf32>
    %566 = arith.select %563, %561, %565 : vector<1x32xi1>, vector<1x32xf32>
    %c0_470 = arith.constant 0 : index
    %c1_471 = arith.constant 1 : index
    %c0_472 = arith.constant 0 : index
    %c0_473 = arith.constant 0 : index
    %567 = vector.load %arg3[%c0_470, %c1_471, %c0_472, %c0_473] : memref<1x8x32x32xf32, #tpu.memory_space<vmem>>, vector<1x1x32x32xf32>
    %568 = vector.shape_cast %567 : vector<1x1x32x32xf32> to vector<32x32xf32>
    %c0_474 = arith.constant 0 : index
    %c1_475 = arith.constant 1 : index
    %c0_476 = arith.constant 0 : index
    %c0_477 = arith.constant 0 : index
    %569 = vector.load %arg4[%c0_474, %c1_475, %c0_476, %c0_477] : memref<1x8x1x32xf32, #tpu.memory_space<vmem>>, vector<1x1x1x32xf32>
    %570 = vector.shape_cast %569 : vector<1x1x1x32xf32> to vector<1x32xf32>
    %cst_478 = arith.constant dense<0.000000e+00> : vector<1x32xf32>
    %571 = tpu.matmul %566, %568, %cst_478 {dimension_numbers = #tpu.dot_dimension_numbers<[1], [0], [0], [1], [0, 0, 1, 1], [], []>} : vector<1x32xf32>, vector<32x32xf32>, vector<1x32xf32> -> vector<1x32xf32>
    %572 = arith.addf %571, %570 : vector<1x32xf32>
    %cst_479 = arith.constant 0.000000e+00 : f32
    %573 = vector.broadcast %cst_479 : f32 to vector<1x32xf32>
    %574 = arith.cmpf oge, %572, %573 : vector<1x32xf32>
    %cst_480 = arith.constant 2.000000e-01 : f32
    %575 = vector.broadcast %cst_480 : f32 to vector<1x32xf32>
    %576 = arith.mulf %575, %572 : vector<1x32xf32>
    %577 = arith.select %574, %572, %576 : vector<1x32xi1>, vector<1x32xf32>
    %c0_481 = arith.constant 0 : index
    %c0_482 = arith.constant 0 : index
    %c0_483 = arith.constant 0 : index
    %578 = vector.load %arg5[%c0_481, %c0_482, %c0_483] : memref<1x32x32xf32, #tpu.memory_space<vmem>>, vector<1x32x32xf32>
    %579 = vector.shape_cast %578 : vector<1x32x32xf32> to vector<32x32xf32>
    %cst_484 = arith.constant dense<0.000000e+00> : vector<1x32xf32>
    %580 = tpu.matmul %577, %579, %cst_484 {dimension_numbers = #tpu.dot_dimension_numbers<[1], [0], [0], [1], [0, 0, 1, 1], [], []>} : vector<1x32xf32>, vector<32x32xf32>, vector<1x32xf32> -> vector<1x32xf32>
    %c0_485 = arith.constant 0 : index
    %c0_486 = arith.constant 0 : index
    %c0_487 = arith.constant 0 : index
    %581 = vector.load %arg6[%c0_485, %c0_486, %c0_487] : memref<1x1x32xf32, #tpu.memory_space<vmem>>, vector<1x1x32xf32>
    %582 = vector.shape_cast %581 : vector<1x1x32xf32> to vector<1x32xf32>
    %583 = arith.addf %580, %582 : vector<1x32xf32>
    %584 = arith.mulf %583, %583 : vector<1x32xf32>
    %cst_488 = arith.constant dense<0.000000e+00> : vector<1xf32>
    %585 = vector.multi_reduction <add>, %584, %cst_488 [1] : vector<1x32xf32> to vector<1xf32>
    %586 = vector.shape_cast %585 : vector<1xf32> to vector<1x1xf32>
    %587 = math.sqrt %586 : vector<1x1xf32>
    %cst_489 = arith.constant 9.99999993E-9 : f32
    %588 = vector.broadcast %cst_489 : f32 to vector<1x1xf32>
    %589 = arith.addf %587, %588 : vector<1x1xf32>
    %590 = vector.broadcast %589 : vector<1x1xf32> to vector<1x32xf32>
    %591 = arith.divf %583, %590 : vector<1x32xf32>
    %c0_490 = arith.constant 0 : index
    %c2_491 = arith.constant 2 : index
    %c0_492 = arith.constant 0 : index
    %c0_493 = arith.constant 0 : index
    %592 = vector.load %arg3[%c0_490, %c2_491, %c0_492, %c0_493] : memref<1x8x32x32xf32, #tpu.memory_space<vmem>>, vector<1x1x32x32xf32>
    %593 = vector.shape_cast %592 : vector<1x1x32x32xf32> to vector<32x32xf32>
    %c0_494 = arith.constant 0 : index
    %c2_495 = arith.constant 2 : index
    %c0_496 = arith.constant 0 : index
    %c0_497 = arith.constant 0 : index
    %594 = vector.load %arg4[%c0_494, %c2_495, %c0_496, %c0_497] : memref<1x8x1x32xf32, #tpu.memory_space<vmem>>, vector<1x1x1x32xf32>
    %595 = vector.shape_cast %594 : vector<1x1x1x32xf32> to vector<1x32xf32>
    %cst_498 = arith.constant dense<0.000000e+00> : vector<1x32xf32>
    %596 = tpu.matmul %591, %593, %cst_498 {dimension_numbers = #tpu.dot_dimension_numbers<[1], [0], [0], [1], [0, 0, 1, 1], [], []>} : vector<1x32xf32>, vector<32x32xf32>, vector<1x32xf32> -> vector<1x32xf32>
    %597 = arith.addf %596, %595 : vector<1x32xf32>
    %cst_499 = arith.constant 0.000000e+00 : f32
    %598 = vector.broadcast %cst_499 : f32 to vector<1x32xf32>
    %599 = arith.cmpf oge, %597, %598 : vector<1x32xf32>
    %cst_500 = arith.constant 2.000000e-01 : f32
    %600 = vector.broadcast %cst_500 : f32 to vector<1x32xf32>
    %601 = arith.mulf %600, %597 : vector<1x32xf32>
    %602 = arith.select %599, %597, %601 : vector<1x32xi1>, vector<1x32xf32>
    %c0_501 = arith.constant 0 : index
    %c3_502 = arith.constant 3 : index
    %c0_503 = arith.constant 0 : index
    %c0_504 = arith.constant 0 : index
    %603 = vector.load %arg3[%c0_501, %c3_502, %c0_503, %c0_504] : memref<1x8x32x32xf32, #tpu.memory_space<vmem>>, vector<1x1x32x32xf32>
    %604 = vector.shape_cast %603 : vector<1x1x32x32xf32> to vector<32x32xf32>
    %c0_505 = arith.constant 0 : index
    %c3_506 = arith.constant 3 : index
    %c0_507 = arith.constant 0 : index
    %c0_508 = arith.constant 0 : index
    %605 = vector.load %arg4[%c0_505, %c3_506, %c0_507, %c0_508] : memref<1x8x1x32xf32, #tpu.memory_space<vmem>>, vector<1x1x1x32xf32>
    %606 = vector.shape_cast %605 : vector<1x1x1x32xf32> to vector<1x32xf32>
    %cst_509 = arith.constant dense<0.000000e+00> : vector<1x32xf32>
    %607 = tpu.matmul %602, %604, %cst_509 {dimension_numbers = #tpu.dot_dimension_numbers<[1], [0], [0], [1], [0, 0, 1, 1], [], []>} : vector<1x32xf32>, vector<32x32xf32>, vector<1x32xf32> -> vector<1x32xf32>
    %608 = arith.addf %607, %606 : vector<1x32xf32>
    %cst_510 = arith.constant 0.000000e+00 : f32
    %609 = vector.broadcast %cst_510 : f32 to vector<1x32xf32>
    %610 = arith.cmpf oge, %608, %609 : vector<1x32xf32>
    %cst_511 = arith.constant 2.000000e-01 : f32
    %611 = vector.broadcast %cst_511 : f32 to vector<1x32xf32>
    %612 = arith.mulf %611, %608 : vector<1x32xf32>
    %613 = arith.select %610, %608, %612 : vector<1x32xi1>, vector<1x32xf32>
    %c0_512 = arith.constant 0 : index
    %c0_513 = arith.constant 0 : index
    %c0_514 = arith.constant 0 : index
    %614 = vector.load %arg7[%c0_512, %c0_513, %c0_514] : memref<1x32x2xf32, #tpu.memory_space<vmem>>, vector<1x32x2xf32>
    %615 = vector.shape_cast %614 : vector<1x32x2xf32> to vector<32x2xf32>
    %cst_515 = arith.constant dense<0.000000e+00> : vector<1x2xf32>
    %616 = tpu.matmul %613, %615, %cst_515 {dimension_numbers = #tpu.dot_dimension_numbers<[1], [0], [0], [1], [0, 0, 1, 1], [], []>} : vector<1x32xf32>, vector<32x2xf32>, vector<1x2xf32> -> vector<1x2xf32>
    %c0_516 = arith.constant 0 : index
    %c0_517 = arith.constant 0 : index
    %c0_518 = arith.constant 0 : index
    %617 = vector.load %arg8[%c0_516, %c0_517, %c0_518] : memref<1x1x2xf32, #tpu.memory_space<vmem>>, vector<1x1x2xf32>
    %618 = vector.shape_cast %617 : vector<1x1x2xf32> to vector<1x2xf32>
    %619 = arith.addf %616, %618 : vector<1x2xf32>
    %cst_519 = arith.constant dense<0xFF800000> : vector<1xf32>
    %620 = vector.multi_reduction <maximumf>, %619, %cst_519 [1] : vector<1x2xf32> to vector<1xf32>
    %621 = vector.shape_cast %620 : vector<1xf32> to vector<1x1xf32>
    %622 = vector.broadcast %621 : vector<1x1xf32> to vector<1x2xf32>
    %623 = arith.subf %619, %622 : vector<1x2xf32>
    %624 = math.exp %623 : vector<1x2xf32>
    %cst_520 = arith.constant dense<0.000000e+00> : vector<1xf32>
    %625 = vector.multi_reduction <add>, %624, %cst_520 [1] : vector<1x2xf32> to vector<1xf32>
    %626 = vector.shape_cast %625 : vector<1xf32> to vector<1x1xf32>
    %627 = vector.broadcast %626 : vector<1x1xf32> to vector<1x2xf32>
    %628 = arith.divf %624, %627 : vector<1x2xf32>
    %629 = vector.extract_strided_slice %628 {offsets = [0, 0], sizes = [1, 1], strides = [1, 1]} : vector<1x2xf32> to vector<1x1xf32>
    %630 = vector.broadcast %629 : vector<1x1xf32> to vector<1x32xf32>
    %631 = arith.mulf %591, %630 : vector<1x32xf32>
    %c7 = arith.constant 7 : index
    %c0_521 = arith.constant 0 : index
    %632 = vector.load %arg16[%c7, %c0_521] : memref<8x32xf32, #tpu.memory_space<vmem>>, vector<1x32xf32>
    tpu.vector_store %arg16[%c7, %c0_521], %631 {strides = array<i32>} : memref<8x32xf32, #tpu.memory_space<vmem>>, vector<1x32xf32>,
    %c7_522 = arith.constant 7 : index
    %c0_523 = arith.constant 0 : index
    %633 = vector.load %arg17[%c7_522, %c0_523] : memref<8x2xf32, #tpu.memory_space<vmem>>, vector<1x2xf32>
    tpu.vector_store %arg17[%c7_522, %c0_523], %628 {strides = array<i32>} : memref<8x2xf32, #tpu.memory_space<vmem>>, vector<1x2xf32>,
    %c0_524 = arith.constant 0 : index
    %c0_525 = arith.constant 0 : index
    %634 = vector.load %arg16[%c0_524, %c0_525] : memref<8x32xf32, #tpu.memory_space<vmem>>, vector<8x32xf32>
    %c0_526 = arith.constant 0 : index
    %c0_527 = arith.constant 0 : index
    %635 = vector.load %arg17[%c0_526, %c0_527] : memref<8x2xf32, #tpu.memory_space<vmem>>, vector<8x2xf32>
    %c0_528 = arith.constant 0 : index
    %c0_529 = arith.constant 0 : index
    %c0_530 = arith.constant 0 : index
    %636 = vector.load %arg13[%c0_528, %c0_529, %c0_530] : memref<1x8x2xf32, #tpu.memory_space<vmem>>, vector<1x8x2xf32>
    %637 = vector.shape_cast %636 : vector<1x8x2xf32> to vector<8x2xf32>
    %638 = vector.shape_cast %635 : vector<8x2xf32> to vector<1x8x2xf32>
    tpu.vector_store %arg13[%c0_528, %c0_529, %c0_530], %638 {strides = array<i32>} : memref<1x8x2xf32, #tpu.memory_space<vmem>>, vector<1x8x2xf32>,
    %c0_531 = arith.constant 0 : index
    %c4_532 = arith.constant 4 : index
    %c0_533 = arith.constant 0 : index
    %c0_534 = arith.constant 0 : index
    %639 = vector.load %arg3[%c0_531, %c4_532, %c0_533, %c0_534] : memref<1x8x32x32xf32, #tpu.memory_space<vmem>>, vector<1x1x32x32xf32>
    %640 = vector.shape_cast %639 : vector<1x1x32x32xf32> to vector<32x32xf32>
    %c0_535 = arith.constant 0 : index
    %c4_536 = arith.constant 4 : index
    %c0_537 = arith.constant 0 : index
    %c0_538 = arith.constant 0 : index
    %641 = vector.load %arg4[%c0_535, %c4_536, %c0_537, %c0_538] : memref<1x8x1x32xf32, #tpu.memory_space<vmem>>, vector<1x1x1x32xf32>
    %642 = vector.shape_cast %641 : vector<1x1x1x32xf32> to vector<1x32xf32>
    %cst_539 = arith.constant dense<0.000000e+00> : vector<8x32xf32>
    %643 = tpu.matmul %634, %640, %cst_539 {dimension_numbers = #tpu.dot_dimension_numbers<[1], [0], [0], [1], [0, 0, 1, 1], [], []>} : vector<8x32xf32>, vector<32x32xf32>, vector<8x32xf32> -> vector<8x32xf32>
    %644 = vector.broadcast %642 : vector<1x32xf32> to vector<8x32xf32>
    %645 = arith.addf %643, %644 : vector<8x32xf32>
    %cst_540 = arith.constant 0.000000e+00 : f32
    %646 = vector.broadcast %cst_540 : f32 to vector<8x32xf32>
    %647 = arith.cmpf oge, %645, %646 : vector<8x32xf32>
    %cst_541 = arith.constant 2.000000e-01 : f32
    %648 = vector.broadcast %cst_541 : f32 to vector<8x32xf32>
    %649 = arith.mulf %648, %645 : vector<8x32xf32>
    %650 = arith.select %647, %645, %649 : vector<8x32xi1>, vector<8x32xf32>
    %c0_542 = arith.constant 0 : index
    %c5_543 = arith.constant 5 : index
    %c0_544 = arith.constant 0 : index
    %c0_545 = arith.constant 0 : index
    %651 = vector.load %arg3[%c0_542, %c5_543, %c0_544, %c0_545] : memref<1x8x32x32xf32, #tpu.memory_space<vmem>>, vector<1x1x32x32xf32>
    %652 = vector.shape_cast %651 : vector<1x1x32x32xf32> to vector<32x32xf32>
    %c0_546 = arith.constant 0 : index
    %c5_547 = arith.constant 5 : index
    %c0_548 = arith.constant 0 : index
    %c0_549 = arith.constant 0 : index
    %653 = vector.load %arg4[%c0_546, %c5_547, %c0_548, %c0_549] : memref<1x8x1x32xf32, #tpu.memory_space<vmem>>, vector<1x1x1x32xf32>
    %654 = vector.shape_cast %653 : vector<1x1x1x32xf32> to vector<1x32xf32>
    %cst_550 = arith.constant dense<0.000000e+00> : vector<8x32xf32>
    %655 = tpu.matmul %650, %652, %cst_550 {dimension_numbers = #tpu.dot_dimension_numbers<[1], [0], [0], [1], [0, 0, 1, 1], [], []>} : vector<8x32xf32>, vector<32x32xf32>, vector<8x32xf32> -> vector<8x32xf32>
    %656 = vector.broadcast %654 : vector<1x32xf32> to vector<8x32xf32>
    %657 = arith.addf %655, %656 : vector<8x32xf32>
    %cst_551 = arith.constant 0.000000e+00 : f32
    %658 = vector.broadcast %cst_551 : f32 to vector<8x32xf32>
    %659 = arith.cmpf oge, %657, %658 : vector<8x32xf32>
    %cst_552 = arith.constant 2.000000e-01 : f32
    %660 = vector.broadcast %cst_552 : f32 to vector<8x32xf32>
    %661 = arith.mulf %660, %657 : vector<8x32xf32>
    %662 = arith.select %659, %657, %661 : vector<8x32xi1>, vector<8x32xf32>
    %c0_553 = arith.constant 0 : index
    %c0_554 = arith.constant 0 : index
    %c0_555 = arith.constant 0 : index
    %663 = vector.load %arg9[%c0_553, %c0_554, %c0_555] : memref<1x32x17xf32, #tpu.memory_space<vmem>>, vector<1x32x17xf32>
    %664 = vector.shape_cast %663 : vector<1x32x17xf32> to vector<32x17xf32>
    %cst_556 = arith.constant dense<0.000000e+00> : vector<8x17xf32>
    %665 = tpu.matmul %662, %664, %cst_556 {dimension_numbers = #tpu.dot_dimension_numbers<[1], [0], [0], [1], [0, 0, 1, 1], [], []>} : vector<8x32xf32>, vector<32x17xf32>, vector<8x17xf32> -> vector<8x17xf32>
    %c0_557 = arith.constant 0 : index
    %c0_558 = arith.constant 0 : index
    %c0_559 = arith.constant 0 : index
    %666 = vector.load %arg10[%c0_557, %c0_558, %c0_559] : memref<1x1x17xf32, #tpu.memory_space<vmem>>, vector<1x1x17xf32>
    %667 = vector.shape_cast %666 : vector<1x1x17xf32> to vector<1x17xf32>
    %668 = vector.broadcast %667 : vector<1x17xf32> to vector<8x17xf32>
    %669 = arith.addf %665, %668 : vector<8x17xf32>
    %c0_560 = arith.constant 0 : index
    %c0_561 = arith.constant 0 : index
    %c0_562 = arith.constant 0 : index
    %670 = vector.load %arg14[%c0_560, %c0_561, %c0_562] : memref<1x8x17xf32, #tpu.memory_space<vmem>>, vector<1x8x17xf32>
    %671 = vector.shape_cast %670 : vector<1x8x17xf32> to vector<8x17xf32>
    %672 = vector.shape_cast %669 : vector<8x17xf32> to vector<1x8x17xf32>
    tpu.vector_store %arg14[%c0_560, %c0_561, %c0_562], %672 {strides = array<i32>} : memref<1x8x17xf32, #tpu.memory_space<vmem>>, vector<1x8x17xf32>,
    %c0_563 = arith.constant 0 : index
    %c6_564 = arith.constant 6 : index
    %c0_565 = arith.constant 0 : index
    %c0_566 = arith.constant 0 : index
    %673 = vector.load %arg3[%c0_563, %c6_564, %c0_565, %c0_566] : memref<1x8x32x32xf32, #tpu.memory_space<vmem>>, vector<1x1x32x32xf32>
    %674 = vector.shape_cast %673 : vector<1x1x32x32xf32> to vector<32x32xf32>
    %c0_567 = arith.constant 0 : index
    %c6_568 = arith.constant 6 : index
    %c0_569 = arith.constant 0 : index
    %c0_570 = arith.constant 0 : index
    %675 = vector.load %arg4[%c0_567, %c6_568, %c0_569, %c0_570] : memref<1x8x1x32xf32, #tpu.memory_space<vmem>>, vector<1x1x1x32xf32>
    %676 = vector.shape_cast %675 : vector<1x1x1x32xf32> to vector<1x32xf32>
    %cst_571 = arith.constant dense<0.000000e+00> : vector<8x32xf32>
    %677 = tpu.matmul %634, %674, %cst_571 {dimension_numbers = #tpu.dot_dimension_numbers<[1], [0], [0], [1], [0, 0, 1, 1], [], []>} : vector<8x32xf32>, vector<32x32xf32>, vector<8x32xf32> -> vector<8x32xf32>
    %678 = vector.broadcast %676 : vector<1x32xf32> to vector<8x32xf32>
    %679 = arith.addf %677, %678 : vector<8x32xf32>
    %cst_572 = arith.constant 0.000000e+00 : f32
    %680 = vector.broadcast %cst_572 : f32 to vector<8x32xf32>
    %681 = arith.cmpf oge, %679, %680 : vector<8x32xf32>
    %cst_573 = arith.constant 2.000000e-01 : f32
    %682 = vector.broadcast %cst_573 : f32 to vector<8x32xf32>
    %683 = arith.mulf %682, %679 : vector<8x32xf32>
    %684 = arith.select %681, %679, %683 : vector<8x32xi1>, vector<8x32xf32>
    %c0_574 = arith.constant 0 : index
    %c7_575 = arith.constant 7 : index
    %c0_576 = arith.constant 0 : index
    %c0_577 = arith.constant 0 : index
    %685 = vector.load %arg3[%c0_574, %c7_575, %c0_576, %c0_577] : memref<1x8x32x32xf32, #tpu.memory_space<vmem>>, vector<1x1x32x32xf32>
    %686 = vector.shape_cast %685 : vector<1x1x32x32xf32> to vector<32x32xf32>
    %c0_578 = arith.constant 0 : index
    %c7_579 = arith.constant 7 : index
    %c0_580 = arith.constant 0 : index
    %c0_581 = arith.constant 0 : index
    %687 = vector.load %arg4[%c0_578, %c7_579, %c0_580, %c0_581] : memref<1x8x1x32xf32, #tpu.memory_space<vmem>>, vector<1x1x1x32xf32>
    %688 = vector.shape_cast %687 : vector<1x1x1x32xf32> to vector<1x32xf32>
    %cst_582 = arith.constant dense<0.000000e+00> : vector<8x32xf32>
    %689 = tpu.matmul %684, %686, %cst_582 {dimension_numbers = #tpu.dot_dimension_numbers<[1], [0], [0], [1], [0, 0, 1, 1], [], []>} : vector<8x32xf32>, vector<32x32xf32>, vector<8x32xf32> -> vector<8x32xf32>
    %690 = vector.broadcast %688 : vector<1x32xf32> to vector<8x32xf32>
    %691 = arith.addf %689, %690 : vector<8x32xf32>
    %cst_583 = arith.constant 0.000000e+00 : f32
    %692 = vector.broadcast %cst_583 : f32 to vector<8x32xf32>
    %693 = arith.cmpf oge, %691, %692 : vector<8x32xf32>
    %cst_584 = arith.constant 2.000000e-01 : f32
    %694 = vector.broadcast %cst_584 : f32 to vector<8x32xf32>
    %695 = arith.mulf %694, %691 : vector<8x32xf32>
    %696 = arith.select %693, %691, %695 : vector<8x32xi1>, vector<8x32xf32>
    %c0_585 = arith.constant 0 : index
    %c0_586 = arith.constant 0 : index
    %c0_587 = arith.constant 0 : index
    %697 = vector.load %arg11[%c0_585, %c0_586, %c0_587] : memref<1x32x128xf32, #tpu.memory_space<vmem>>, vector<1x32x128xf32>
    %698 = vector.shape_cast %697 : vector<1x32x128xf32> to vector<32x128xf32>
    %cst_588 = arith.constant dense<0.000000e+00> : vector<8x128xf32>
    %699 = tpu.matmul %696, %698, %cst_588 {dimension_numbers = #tpu.dot_dimension_numbers<[1], [0], [0], [1], [0, 0, 1, 1], [], []>} : vector<8x32xf32>, vector<32x128xf32>, vector<8x128xf32> -> vector<8x128xf32>
    %c0_589 = arith.constant 0 : index
    %c0_590 = arith.constant 0 : index
    %c0_591 = arith.constant 0 : index
    %700 = vector.load %arg12[%c0_589, %c0_590, %c0_591] : memref<1x1x128xf32, #tpu.memory_space<vmem>>, vector<1x1x128xf32>
    %701 = vector.shape_cast %700 : vector<1x1x128xf32> to vector<1x128xf32>
    %702 = vector.broadcast %701 : vector<1x128xf32> to vector<8x128xf32>
    %703 = arith.addf %699, %702 : vector<8x128xf32>
    %c0_592 = arith.constant 0 : index
    %c0_593 = arith.constant 0 : index
    %c0_594 = arith.constant 0 : index
    %704 = vector.load %arg15[%c0_592, %c0_593, %c0_594] : memref<1x8x128xf32, #tpu.memory_space<vmem>>, vector<1x8x128xf32>
    %705 = vector.shape_cast %704 : vector<1x8x128xf32> to vector<8x128xf32>
    %706 = vector.shape_cast %703 : vector<8x128xf32> to vector<1x8x128xf32>
    tpu.vector_store %arg15[%c0_592, %c0_593, %c0_594], %706 {strides = array<i32>} : memref<1x8x128xf32, #tpu.memory_space<vmem>>, vector<1x8x128xf32>,
    return
  }
  func.func @transform_0(%arg0: i32, %arg1: memref<8xi32, #tpu.memory_space<smem>>) -> (i32, i32, i32) {
    %c0_i32 = arith.constant 0 : i32
    %c0_i32_0 = arith.constant 0 : i32
    %c0_i32_1 = arith.constant 0 : i32
    return %arg0, %c0_i32, %c0_i32_0 : i32, i32, i32
  }
  func.func @transform_1(%arg0: i32, %arg1: memref<8xi32, #tpu.memory_space<smem>>) -> (i32, i32, i32, i32) {
    %0 = arith.index_cast %arg0 : i32 to index
    %1 = memref.load %arg1[%0] : memref<8xi32, #tpu.memory_space<smem>>
    %c0_i32 = arith.constant 0 : i32
    %c0_i32_0 = arith.constant 0 : i32
    %c0_i32_1 = arith.constant 0 : i32
    %c0_i32_2 = arith.constant 0 : i32
    return %1, %c0_i32, %c0_i32_0, %c0_i32_1 : i32, i32, i32, i32
  }
  func.func @transform_2(%arg0: i32, %arg1: memref<8xi32, #tpu.memory_space<smem>>) -> (i32, i32, i32, i32) {
    %0 = arith.index_cast %arg0 : i32 to index
    %1 = memref.load %arg1[%0] : memref<8xi32, #tpu.memory_space<smem>>
    %c0_i32 = arith.constant 0 : i32
    %c0_i32_0 = arith.constant 0 : i32
    %c0_i32_1 = arith.constant 0 : i32
    %c0_i32_2 = arith.constant 0 : i32
    return %1, %c0_i32, %c0_i32_0, %c0_i32_1 : i32, i32, i32, i32
  }
  func.func @transform_3(%arg0: i32, %arg1: memref<8xi32, #tpu.memory_space<smem>>) -> (i32, i32, i32) {
    %0 = arith.index_cast %arg0 : i32 to index
    %1 = memref.load %arg1[%0] : memref<8xi32, #tpu.memory_space<smem>>
    %c0_i32 = arith.constant 0 : i32
    %c0_i32_0 = arith.constant 0 : i32
    %c0_i32_1 = arith.constant 0 : i32
    return %1, %c0_i32, %c0_i32_0 : i32, i32, i32
  }
  func.func @transform_4(%arg0: i32, %arg1: memref<8xi32, #tpu.memory_space<smem>>) -> (i32, i32, i32) {
    %0 = arith.index_cast %arg0 : i32 to index
    %1 = memref.load %arg1[%0] : memref<8xi32, #tpu.memory_space<smem>>
    %c0_i32 = arith.constant 0 : i32
    %c0_i32_0 = arith.constant 0 : i32
    %c0_i32_1 = arith.constant 0 : i32
    return %1, %c0_i32, %c0_i32_0 : i32, i32, i32
  }
  func.func @transform_5(%arg0: i32, %arg1: memref<8xi32, #tpu.memory_space<smem>>) -> (i32, i32, i32) {
    %0 = arith.index_cast %arg0 : i32 to index
    %1 = memref.load %arg1[%0] : memref<8xi32, #tpu.memory_space<smem>>
    %c0_i32 = arith.constant 0 : i32
    %c0_i32_0 = arith.constant 0 : i32
    %c0_i32_1 = arith.constant 0 : i32
    return %1, %c0_i32, %c0_i32_0 : i32, i32, i32
  }
  func.func @transform_6(%arg0: i32, %arg1: memref<8xi32, #tpu.memory_space<smem>>) -> (i32, i32, i32) {
    %0 = arith.index_cast %arg0 : i32 to index
    %1 = memref.load %arg1[%0] : memref<8xi32, #tpu.memory_space<smem>>
    %c0_i32 = arith.constant 0 : i32
    %c0_i32_0 = arith.constant 0 : i32
    %c0_i32_1 = arith.constant 0 : i32
    return %1, %c0_i32, %c0_i32_0 : i32, i32, i32
  }
  func.func @transform_7(%arg0: i32, %arg1: memref<8xi32, #tpu.memory_space<smem>>) -> (i32, i32, i32) {
    %0 = arith.index_cast %arg0 : i32 to index
    %1 = memref.load %arg1[%0] : memref<8xi32, #tpu.memory_space<smem>>
    %c0_i32 = arith.constant 0 : i32
    %c0_i32_0 = arith.constant 0 : i32
    %c0_i32_1 = arith.constant 0 : i32
    return %1, %c0_i32, %c0_i32_0 : i32, i32, i32
  }
  func.func @transform_8(%arg0: i32, %arg1: memref<8xi32, #tpu.memory_space<smem>>) -> (i32, i32, i32) {
    %0 = arith.index_cast %arg0 : i32 to index
    %1 = memref.load %arg1[%0] : memref<8xi32, #tpu.memory_space<smem>>
    %c0_i32 = arith.constant 0 : i32
    %c0_i32_0 = arith.constant 0 : i32
    %c0_i32_1 = arith.constant 0 : i32
    return %1, %c0_i32, %c0_i32_0 : i32, i32, i32
  }
  func.func @transform_9(%arg0: i32, %arg1: memref<8xi32, #tpu.memory_space<smem>>) -> (i32, i32, i32) {
    %0 = arith.index_cast %arg0 : i32 to index
    %1 = memref.load %arg1[%0] : memref<8xi32, #tpu.memory_space<smem>>
    %c0_i32 = arith.constant 0 : i32
    %c0_i32_0 = arith.constant 0 : i32
    %c0_i32_1 = arith.constant 0 : i32
    return %1, %c0_i32, %c0_i32_0 : i32, i32, i32
  }
  func.func @transform_10(%arg0: i32, %arg1: memref<8xi32, #tpu.memory_space<smem>>) -> (i32, i32, i32) {
    %0 = arith.index_cast %arg0 : i32 to index
    %1 = memref.load %arg1[%0] : memref<8xi32, #tpu.memory_space<smem>>
    %c0_i32 = arith.constant 0 : i32
    %c0_i32_0 = arith.constant 0 : i32
    %c0_i32_1 = arith.constant 0 : i32
    return %1, %c0_i32, %c0_i32_0 : i32, i32, i32
  }
  func.func @transform_11(%arg0: i32, %arg1: memref<8xi32, #tpu.memory_space<smem>>) -> (i32, i32, i32) {
    %c0_i32 = arith.constant 0 : i32
    %c0_i32_0 = arith.constant 0 : i32
    %c0_i32_1 = arith.constant 0 : i32
    return %arg0, %c0_i32, %c0_i32_0 : i32, i32, i32
  }
  func.func @transform_12(%arg0: i32, %arg1: memref<8xi32, #tpu.memory_space<smem>>) -> (i32, i32, i32) {
    %c0_i32 = arith.constant 0 : i32
    %c0_i32_0 = arith.constant 0 : i32
    %c0_i32_1 = arith.constant 0 : i32
    return %arg0, %c0_i32, %c0_i32_0 : i32, i32, i32
  }
  func.func @transform_13(%arg0: i32, %arg1: memref<8xi32, #tpu.memory_space<smem>>) -> (i32, i32, i32) {
    %c0_i32 = arith.constant 0 : i32
    %c0_i32_0 = arith.constant 0 : i32
    %c0_i32_1 = arith.constant 0 : i32
    return %arg0, %c0_i32, %c0_i32_0 : i32, i32, i32
  }
}

module attributes {stable_mosaic.version = 11 : i64} {
  func.func @_osc_tail_kernel(%arg0: i32, %arg1: memref<1x64x8xf32, #tpu.memory_space<vmem>>, %arg2: memref<1x64x8xf32, #tpu.memory_space<vmem>>, %arg3: memref<8x128xf32, #tpu.memory_space<vmem>>, %arg4: memref<128x128xf32, #tpu.memory_space<vmem>>, %arg5: memref<1x1x128xf32, #tpu.memory_space<vmem>>) attributes {dimension_semantics = [#tpu.dimension_semantics<arbitrary>], iteration_bounds = array<i64: 8>, scalar_prefetch = 0 : i64, scratch_operands = 0 : i64, tpu.core_type = #tpu.core_type<tc>, window_params = [{transform_indices = @transform_0, window_bounds = array<i64: 1, 64, 8>}, {transform_indices = @transform_1, window_bounds = array<i64: 1, 64, 8>}, {pipeline_mode = #tpu.pipeline_mode<synchronous>, transform_indices = @transform_2, window_bounds = array<i64: 8, 128>}, {pipeline_mode = #tpu.pipeline_mode<synchronous>, transform_indices = @transform_3, window_bounds = array<i64: 128, 128>}, {transform_indices = @transform_4, window_bounds = array<i64: 1, 1, 128>}]} {
    %c0 = arith.constant 0 : index
    %c0_0 = arith.constant 0 : index
    %0 = vector.load %arg3[%c0, %c0_0] : memref<8x128xf32, #tpu.memory_space<vmem>>, vector<8x128xf32>
    %c0_1 = arith.constant 0 : index
    %c0_2 = arith.constant 0 : index
    %c0_3 = arith.constant 0 : index
    %1 = vector.load %arg1[%c0_1, %c0_2, %c0_3] : memref<1x64x8xf32, #tpu.memory_space<vmem>>, vector<1x64x8xf32>
    %2 = vector.shape_cast %1 : vector<1x64x8xf32> to vector<64x8xf32>
    %cst = arith.constant dense<0.000000e+00> : vector<64x128xf32>
    %3 = tpu.matmul %2, %0, %cst {dimension_numbers = #tpu.dot_dimension_numbers<[1], [0], [0], [1], [0, 0, 1, 1], [], []>} : vector<64x8xf32>, vector<8x128xf32>, vector<64x128xf32> -> vector<64x128xf32>
    %c0_4 = arith.constant 0 : index
    %c0_5 = arith.constant 0 : index
    %c0_6 = arith.constant 0 : index
    %4 = vector.load %arg2[%c0_4, %c0_5, %c0_6] : memref<1x64x8xf32, #tpu.memory_space<vmem>>, vector<1x64x8xf32>
    %5 = vector.shape_cast %4 : vector<1x64x8xf32> to vector<64x8xf32>
    %cst_7 = arith.constant dense<0.000000e+00> : vector<64x128xf32>
    %6 = tpu.matmul %5, %0, %cst_7 {dimension_numbers = #tpu.dot_dimension_numbers<[1], [0], [0], [1], [0, 0, 1, 1], [], []>} : vector<64x8xf32>, vector<8x128xf32>, vector<64x128xf32> -> vector<64x128xf32>
    %cst_8 = arith.constant 3.14159274 : f32
    %7 = vector.broadcast %cst_8 : f32 to vector<64x128xf32>
    %8 = arith.mulf %6, %7 : vector<64x128xf32>
    %c0_9 = arith.constant 0 : index
    %c0_10 = arith.constant 0 : index
    %9 = vector.load %arg4[%c0_9, %c0_10] : memref<128x128xf32, #tpu.memory_space<vmem>>, vector<128x128xf32>
    %cst_11 = arith.constant dense<0.000000e+00> : vector<64x128xf32>
    %10 = tpu.matmul %8, %9, %cst_11 {dimension_numbers = #tpu.dot_dimension_numbers<[1], [0], [0], [1], [0, 0, 1, 1], [], []>} : vector<64x128xf32>, vector<128x128xf32>, vector<64x128xf32> -> vector<64x128xf32>
    %11 = math.sin %10 : vector<64x128xf32>
    %12 = arith.mulf %11, %3 : vector<64x128xf32>
    %cst_12 = arith.constant 1.000000e+00 : f32
    %13 = vector.broadcast %cst_12 : f32 to vector<1x64xf32>
    %cst_13 = arith.constant dense<0.000000e+00> : vector<1x128xf32>
    %14 = tpu.matmul %13, %12, %cst_13 {dimension_numbers = #tpu.dot_dimension_numbers<[1], [0], [0], [1], [0, 0, 1, 1], [], []>} : vector<1x64xf32>, vector<64x128xf32>, vector<1x128xf32> -> vector<1x128xf32>
    %c0_14 = arith.constant 0 : index
    %c0_15 = arith.constant 0 : index
    %c0_16 = arith.constant 0 : index
    %15 = vector.load %arg5[%c0_14, %c0_15, %c0_16] : memref<1x1x128xf32, #tpu.memory_space<vmem>>, vector<1x1x128xf32>
    %16 = vector.shape_cast %15 : vector<1x1x128xf32> to vector<1x128xf32>
    %17 = vector.shape_cast %14 : vector<1x128xf32> to vector<1x1x128xf32>
    tpu.vector_store %arg5[%c0_14, %c0_15, %c0_16], %17 {strides = array<i32>} : memref<1x1x128xf32, #tpu.memory_space<vmem>>, vector<1x1x128xf32>,
    return
  }
  func.func @transform_0(%arg0: i32) -> (i32, i32, i32) {
    %c0_i32 = arith.constant 0 : i32
    %c0_i32_0 = arith.constant 0 : i32
    %c0_i32_1 = arith.constant 0 : i32
    return %arg0, %c0_i32, %c0_i32_0 : i32, i32, i32
  }
  func.func @transform_1(%arg0: i32) -> (i32, i32, i32) {
    %c0_i32 = arith.constant 0 : i32
    %c0_i32_0 = arith.constant 0 : i32
    %c0_i32_1 = arith.constant 0 : i32
    return %arg0, %c0_i32, %c0_i32_0 : i32, i32, i32
  }
  func.func @transform_2(%arg0: i32) -> (i32, i32) {
    %c0_i32 = arith.constant 0 : i32
    %c0_i32_0 = arith.constant 0 : i32
    %c0_i32_1 = arith.constant 0 : i32
    return %c0_i32, %c0_i32_0 : i32, i32
  }
  func.func @transform_3(%arg0: i32) -> (i32, i32) {
    %c0_i32 = arith.constant 0 : i32
    %c0_i32_0 = arith.constant 0 : i32
    %c0_i32_1 = arith.constant 0 : i32
    return %c0_i32, %c0_i32_0 : i32, i32
  }
  func.func @transform_4(%arg0: i32) -> (i32, i32, i32) {
    %c0_i32 = arith.constant 0 : i32
    %c0_i32_0 = arith.constant 0 : i32
    %c0_i32_1 = arith.constant 0 : i32
    return %arg0, %c0_i32, %c0_i32_0 : i32, i32, i32
  }
}

</mosaic_0001>

<bundles_post_ra>
// kernel: conductor_forward.3
= control target key start
LH: loop header
LB: loop body
LE: loop exit
PB: predicated region body
PF: predicated region fallthrough
CT: control target
= control target key end

     0   :  { %s1000_s0 = inlined_call_operand.hbm [shape: f32[8,32], index: 0, kind: input, shape index: {}]   ;;  %s1001_s1 = inlined_call_operand.hbm [shape: f32[8,32,32], index: 1, kind: input, shape index: {}]   ;;  %s1002_s2 = inlined_call_operand.hbm [shape: f32[8,1,32], index: 2, kind: input, shape index: {}]   ;;  %s1003_s3 = inlined_call_operand.hbm [shape: f32[32,32], index: 3, kind: input, shape index: {}]   ;;  %s1004_s4 = inlined_call_operand.hbm [shape: f32[1,32], index: 4, kind: input, shape index: {}]   ;;  %s1005_s5 = inlined_call_operand.vmem [shape: f32[32,2], index: 5, kind: input, shape index: {}]   ;;  %s1006_s6 = inlined_call_operand.hbm [shape: f32[1,2], index: 6, kind: input, shape index: {}]   ;;  %s1007_s7 = inlined_call_operand.vmem [shape: f32[32,8], index: 7, kind: input, shape index: {}]   ;;  %s1008_s8 = inlined_call_operand.hbm [shape: f32[1,8], index: 8, kind: input, shape index: {}]   ;;  %s1009_s9 = inlined_call_operand.vmem [shape: f32[32,1], index: 9, kind: input, shape index: {}]   ;;  %s1010_s10 = inlined_call_operand.<no memory space> [shape: f32[1,1], index: 10, kind: input, shape index: {}]   ;;  %s1011_s11 = inlined_call_operand.vmem [shape: f32[8,32], index: 11, kind: output, shape index: {0}]   ;;  %s1012_s12 = inlined_call_operand.vmem [shape: f32[8,2], index: 12, kind: output, shape index: {1}]   ;;  %s1013_s13 = inlined_call_operand.vmem [shape: f32[1,8], index: 13, kind: output, shape index: {2}]   ;;  %s1014_s14 = inlined_call_operand.hbm [shape: f32[1,1], index: 14, kind: output, shape index: {3}]  }
   0x1   :  { %v20_v0 = vstv %s1010_s10 }
   0x2   :  { %21 = vst [vmem:[#allocation2] sm:$0x1] %v20_v0 }
   0x3   :  { %22 = vsyncpa [#allocation4], 0 }
   0x4   :  { %23 = vsyncpa [#allocation7], 0 }
   0x5   :  { %24 = vsyncpa [#allocation10], 0 }
   0x6   :  { %25 = vsyncpa [#allocation13], 0  ;;  %s42_s17 = sshll.u32 %s1001_s1, 4  ;;  %s43_s17 = int_to_ptr.hbm [resolvable:$true] %s42_s17 }
   0x7   :  { %26 = vsyncpa [#allocation5], 0  ;;  %s826_s18 = smov [#allocation6]   ;;  %s68_s22 = sshll.u32 %s1003_s3, 4  ;;  %s69_s22 = int_to_ptr.hbm [resolvable:$true] %s68_s22 }
   0x8   :  { %s44_s19 = sshll.u32 %s826_s18, 4  ;;  %s827_s23 = smov 128   ;;  %s45_s19 = int_to_ptr.vmem [resolvable:$true] %s44_s19 }
   0x9   :  { %s828_s10 = smov 8   ;;  %s829_s24 = smov [#allocation9]  }
   0xa   :  { %50 = dma.hbm_to_vmem [thread:$0]  %s43_s17, 4096, %s45_s19, [#allocation7], %s827_s23, %s827_s23, %s828_s10  }
   0xb   :  { %s70_s25 = sshll.u32 %s829_s24, 4  ;;  %s95_s28 = sshll.u32 %s1006_s6, 4  ;;  %s71_s25 = int_to_ptr.vmem [resolvable:$true] %s70_s25  ;;  %s96_s28 = int_to_ptr.hbm [resolvable:$true] %s95_s28 }
   0xc   :  { %76 = dma.hbm_to_vmem [thread:$0]  %s69_s22, 512, %s71_s25, [#allocation10], %s827_s23, %s827_s23, %s828_s10  }
   0xd   :  { %s32_s30 = sshll.u32 %s1000_s0, 4  ;;  %s830_s15 = smov [#allocation12]   ;;  %s33_s30 = int_to_ptr.hbm [resolvable:$true] %s32_s30 }
   0xe   :  { %s97_s16 = sshll.u32 %s830_s15, 4  ;;  %s831_s3 = smov [#allocation3]   ;;  %s98_s16 = int_to_ptr.vmem [resolvable:$true] %s97_s16 }
   0xf   :  { %100 = dma.hbm_to_vmem [thread:$0]  %s96_s28, 16, %s98_s16, [#allocation13]  }
  0x10   :  { %s34_s17 = sshll.u32 %s831_s3, 4  ;;  %s55_s20 = sshll.u32 %s1002_s2, 4  ;;  %s35_s17 = int_to_ptr.vmem [resolvable:$true] %s34_s17  ;;  %s56_s20 = int_to_ptr.hbm [resolvable:$true] %s55_s20 }
  0x11   :  { %37 = dma.hbm_to_vmem [thread:$0]  %s33_s30, 128, %s35_s17, [#allocation4]  }
  0x12   :  { %s832_s6 = smov [#allocation8]   ;;  %s82_s0 = sshll.u32 %s1004_s4, 4  ;;  %s83_s0 = int_to_ptr.hbm [resolvable:$true] %s82_s0 }
  0x13   :  { %s57_s21 = sshll.u32 %s832_s6, 4  ;;  %s833_s10 = smov 16   ;;  %s58_s21 = int_to_ptr.vmem [resolvable:$true] %s57_s21 }
  0x14   :  { %s834_s24 = smov 1   ;;  %s835_s25 = smov [#allocation11]  }
  0x15   :  { %63 = dma.hbm_to_vmem [thread:$0]  %s56_s20, 128, %s58_s21, [#allocation7], %s833_s10, %s833_s10, %s834_s24  }
  0x16   :  { %s84_s26 = sshll.u32 %s835_s25, 4  ;;  %s108_s2 = sshll.u32 %s1008_s8, 4  ;;  %s85_s26 = int_to_ptr.vmem [resolvable:$true] %s84_s26  ;;  %s109_s2 = int_to_ptr.hbm [resolvable:$true] %s108_s2 }
  0x17   :  { %87 = dma.hbm_to_vmem [thread:$0]  %s83_s0, 16, %s85_s26, [#allocation10]  }
  0x18   :  { %s836_s1 = smov [#allocation14]  }
  0x19   :  { %s110_s29 = sshll.u32 %s836_s1, 4  ;;  %s111_s29 = int_to_ptr.vmem [resolvable:$true] %s110_s29 }
  0x1a   :  { %113 = dma.hbm_to_vmem [thread:$0]  %s109_s2, 16, %s111_s29, [#allocation13]  }
  0x1b   :  { %816 = dma.done.wait [#allocation4], 128  }
  0x1c   :  { %817 = vsyncadd [#allocation4], 4294967168 }
  0x1d   :  { %818 = dma.done.wait [#allocation7], 4224  }
  0x1e   :  { %819 = vsyncadd [#allocation7], 4294963072 }
  0x1f   :  { %820 = dma.done.wait [#allocation10], 528  }
  0x20   :  { %821 = vsyncadd [#allocation10], 4294966768 }
  0x21   :  { %822 = dma.done.wait [#allocation13], 32  }
  0x22   :  { %823 = vsyncadd [#allocation13], 4294967264  ;;  %v150_v1 = vld [vmem:[#allocation6 + $0x18] sm:$0xff]  ;;  %v149_v2 = vld [vmem:[#allocation6 + $0x10] sm:$0xff]  ;;  %vm155_vm0 = vcmask 261120   ;;  %v837_v33 = vmov 8.0  }
  0x23   :  { %171 = vmatpush.msra.mxu0 %v150_v1  ;;  %v186_v3 = vld [vmem:[#allocation6 + $0x38] sm:$0xff]  ;;  %v148_v4 = vld [vmem:[#allocation6 + $0x8] sm:$0xff]  ;;  %v147_v5 = vld [vmem:[#allocation6] sm:$0xff]  ;;  %622 = vrcp.f32 %v837_v33  ;;  %vm353_vm8 = vcmask 15360   ;;  %vm464_vm10 = vcmask 57344   ;;  %s572_s16 = sshll.u32 %s1014_s14, 4  ;;  %s573_s16 = int_to_ptr.hbm [resolvable:$true] %s572_s16 }
  0x24   :  { %207 = vmatpush.msra.mxu1 %v186_v3  ;;  %v146_v6 = vld [vmem:[#allocation3] sm:$0xff]  ;;  %v185_v7 = vld [vmem:[#allocation6 + $0x30] sm:$0xff]  ;;  %v184_v8 = vld [vmem:[#allocation6 + $0x28] sm:$0xff]  ;;  %vm557_vm12 = vcmask 0  }
  0x25   :  { %172 = vmatpush.msra.mxu0 %v149_v2  ;;  %v183_v9 = vld [vmem:[#allocation6 + $0x20] sm:$0xff]  ;;  %v220_v16 = vld [vmem:[#allocation9 + $0x10] sm:$0xff]  ;;  %v219_v17 = vld [vmem:[#allocation9 + $0x8] sm:$0xff] }
  0x26   :  { %208 = vmatpush.msra.mxu1 %v185_v7  ;;  %v221_v10 = vld [vmem:[#allocation9 + $0x18] sm:$0xff]  ;;  %v218_v18 = vld [vmem:[#allocation9] sm:$0xff]  ;;  %v254_v19 = vld [vmem:[#allocation6 + $0x58] sm:$0xff] }
  0x27   :  { %173 = vmatpush.msra.mxu0 %v148_v4  ;;  %241 = vmatpush.msra.mxu2 %v221_v10  ;;  %v616_v11 = vld [vmem:[#allocation8] ss:$0 sm:$0xff]  ;;  %v253_v20 = vld [vmem:[#allocation6 + $0x50] sm:$0xff]  ;;  %v617_v21 = vld [vmem:[#allocation8 + $0x1] ss:$0 sm:$0xff] }
  0x28   :  { %209 = vmatpush.msra.mxu1 %v184_v8  ;;  %275 = vmatpush.msra.mxu3 %v254_v19  ;;  %v252_v26 = vld [vmem:[#allocation6 + $0x48] sm:$0xff]  ;;  %v251_v27 = vld [vmem:[#allocation6 + $0x40] sm:$0xff]  ;;  %v374_v28 = vld [vmem:[#allocation6 + $0x98] sm:$0xff] }
  0x29   :  { %174 = vmatpush.msra.mxu0 %v147_v5  ;;  %242 = vmatpush.msra.mxu2 %v220_v16  ;;  %v373_v29 = vld [vmem:[#allocation6 + $0x90] sm:$0xff]  ;;  %v372_v30 = vld [vmem:[#allocation6 + $0x88] sm:$0xff]  ;;  %v371_v31 = vld [vmem:[#allocation6 + $0x80] sm:$0xff]  ;;  %v623_v34 = vpop.eup %622 }
  0x2a   :  { %591 = vmatmul.msk.f32.vlgmr.msra.gmra.mxu0 %vm155_vm0, %v146_v6  ;;  %210 = vmatpush.msra.mxu1 %v183_v9  ;;  %v290_v32 = vld [vmem:[#allocation6 + $0x78] sm:$0xff]  ;;  %v618_v35 = vld [vmem:[#allocation11] ss:$0 sm:$0xff]  ;;  %v363_v36 = vmul.f32 8.0, %v623_v34  ;;  %vm367_vm3 = vweird.f32 %v623_v34  ;;  %v289_v51 = vld [vmem:[#allocation6 + $0x70] sm:$0xff] }
  0x2b   :  { %243 = vmatpush.msra.mxu2 %v219_v17  ;;  %276 = vmatpush.msra.mxu3 %v253_v20  ;;  %v288_v52 = vld [vmem:[#allocation6 + $0x68] sm:$0xff]  ;;  %v287_v53 = vld [vmem:[#allocation6 + $0x60] sm:$0xff]  ;;  %v407_v54 = vld [vmem:[#allocation6 + $0xb8] sm:$0xff] }
  0x2c   :  { %311 = vmatpush.msrb.mxu0 %v290_v32  ;;  %v364_v39 = vsub.f32 1.0, %v363_v36  ;;  %v406_v55 = vld [vmem:[#allocation6 + $0xb0] sm:$0xff]  ;;  %v405_v56 = vld [vmem:[#allocation6 + $0xa8] sm:$0xff]  ;;  %v404_v57 = vld [vmem:[#allocation6 + $0xa0] sm:$0xff] }
  0x2d   :  { %244 = vmatpush.msra.mxu2 %v218_v18  ;;  %277 = vmatpush.msra.mxu3 %v252_v26  ;;  %v325_v58 = vld [vmem:[%s1005_s5 + $0x18] sm:$0xff]  ;;  %v619_v59 = vld [vmem:[#allocation8 + $0x2] ss:$0 sm:$0xff]  ;;  %v376_v0 = vld [vmem:[#allocation8 + $0x4] sm:$0x1] }
  0x2e   :  { %v365_v42 = vmul.f32 %v623_v34, %v364_v39  ;;  %312 = vmatpush.msrb.mxu0 %v289_v51  ;;  %345 = vmatpush.msrb.mxu1 %v325_v58  ;;  %v324_v5 = vld [vmem:[%s1005_s5 + $0x10] sm:$0xff]  ;;  %v323_v6 = vld [vmem:[%s1005_s5 + $0x8] sm:$0xff]  ;;  %v322_v7 = vld [vmem:[%s1005_s5] sm:$0xff] }
  0x2f   :  { %278 = vmatpush.msra.mxu3 %v251_v27  ;;  %392 = vmatpush.msrb.mxu2 %v374_v28  ;;  %v470_v8 = vld [vmem:[#allocation6 + $0xd8] sm:$0xff]  ;;  %v469_v9 = vld [vmem:[#allocation6 + $0xd0] sm:$0xff]  ;;  %v468_v10 = vld [vmem:[#allocation6 + $0xc8] sm:$0xff] }
  0x30   :  { %v366_v45 = vadd.f32 %v623_v34, %v365_v42  ;;  %313 = vmatpush.msrb.mxu0 %v288_v52  ;;  %346 = vmatpush.msrb.mxu1 %v324_v5  ;;  %v620_v16 = vld [vmem:[#allocation8 + $0x3] ss:$0 sm:$0xff]  ;;  %v500_v26 = vld [vmem:[#allocation6 + $0xf8] sm:$0xff]  ;;  %v499_v27 = vld [vmem:[#allocation6 + $0xf0] sm:$0xff] }
  0x31   :  { %393 = vmatpush.msrb.mxu2 %v373_v29  ;;  %425 = vmatpush.msrb.mxu3 %v407_v54  ;;  %v498_v28 = vld [vmem:[#allocation6 + $0xe8] sm:$0xff]  ;;  %v497_v29 = vld [vmem:[#allocation6 + $0xe0] sm:$0xff] }
  0x32   :  { %v368_v48 = vsel %vm367_vm3, %v623_v34, %v366_v45  ;;  %314 = vmatpush.msrb.mxu0 %v287_v53  ;;  %347 = vmatpush.msrb.mxu1 %v323_v6  ;;  %v472_v34 = vld [vmem:[#allocation8 + $0x6] sm:$0x1]  ;;  %v440_v39 = vld [vmem:[#allocation14] sm:$0x1]  ;;  %v502_v45 = vld [vmem:[#allocation8 + $0x7] sm:$0x1] }
  0x33   :  { %394 = vmatpush.msrb.mxu2 %v372_v30  ;;  %426 = vmatpush.msrb.mxu3 %v406_v55  ;;  %v532_v30 = vld [vmem:[%s1009_s9 + $0x18] sm:$0xff]  ;;  %v531_v42 = vld [vmem:[%s1009_s9 + $0x10] sm:$0xff] }
  0x34   :  { %348 = vmatpush.msrb.mxu1 %v322_v7 }
  0x35   :  { %395 = vmatpush.msrb.mxu2 %v371_v31  ;;  %427 = vmatpush.msrb.mxu3 %v405_v56  ;;  %v621_v31 = vld [vmem:[#allocation12] ss:$0 sm:$0xff] }
  0x37   :  { %428 = vmatpush.msrb.mxu3 %v404_v57 }
  0xa7   :  { %v176_v12 = vpop.f32.mrf.mxu0 }
  0xa8   :  { %v177_v13 = vadd.f32 %v616_v11, %v176_v12  ;;  %v467_v11 = vld [vmem:[#allocation6 + $0xc0] sm:$0xff]  ;;  %v439_v12 = vld [vmem:[%s1007_s7 + $0x18] sm:$0xff] }
  0xa9   :  { %456 = vmatpush.msra.mxu0 %v439_v12 }
  0xaa   :  { %v180_v14 = vmul.f32 0.2, %v177_v13  ;;  %vm179_vm1 = vcmp.ge.f32.partialorder %v177_v13, 0.0 }
  0xac   :  { %v181_v15 = vsel %vm179_vm1, %v177_v13, %v180_v14  ;;  %v438_v13 = vld [vmem:[%s1007_s7 + $0x10] sm:$0xff]  ;;  %v437_v14 = vld [vmem:[%s1007_s7 + $0x8] sm:$0xff] }
  0xad   :  { %592 = vmatmul.msk.f32.vlgmr.msra.gmra.mxu1 %vm155_vm0, %v181_v15  ;;  %457 = vmatpush.msra.mxu0 %v438_v13  ;;  %v436_v15 = vld [vmem:[%s1007_s7] sm:$0xff] }
  0xae   :  { %485 = vmatpush.msra.mxu1 %v470_v8 }
  0xaf   :  { %458 = vmatpush.msra.mxu0 %v437_v14 }
  0xb0   :  { %486 = vmatpush.msra.mxu1 %v469_v9 }
  0xb1   :  { %459 = vmatpush.msra.mxu0 %v436_v15 }
  0xb2   :  { %487 = vmatpush.msra.mxu1 %v468_v10 }
  0xb4   :  { %488 = vmatpush.msra.mxu1 %v467_v11 }
 0x12a   :  { %v212_v22 = vpop.f32.mrf.mxu1 }
 0x12b   :  { %v213_v23 = vadd.f32 %v617_v21, %v212_v22  ;;  %v409_v21 = vld [vmem:[#allocation8 + $0x5] sm:$0x1] }
 0x12d   :  { %v216_v24 = vmul.f32 0.2, %v213_v23  ;;  %vm215_vm2 = vcmp.ge.f32.partialorder %v213_v23, 0.0 }
 0x12f   :  { %v217_v25 = vsel %vm215_vm2, %v213_v23, %v216_v24 }
 0x130   :  { %593 = vmatmul.msk.f32.vlgmr.msra.gmra.mxu2 %vm155_vm0, %v217_v25 }
 0x131   :  { %518 = vmatpush.msra.mxu2 %v500_v26 }
 0x133   :  { %519 = vmatpush.msra.mxu2 %v499_v27 }
 0x135   :  { %520 = vmatpush.msra.mxu2 %v498_v28 }
 0x137   :  { %521 = vmatpush.msra.mxu2 %v497_v29 }
 0x1b3   :  { %v246_v37 = vpop.f32.mrf.mxu2 }
 0x1b4   :  { %v247_v38 = vadd.f32 %v618_v35, %v246_v37 }
 0x1b6   :  { %249 = vst.msk [vmem:[%s1011_s11] sm:$0xff] %vm155_vm0, %v247_v38  ;;  %v355_v40 = vsel %vm155_vm0, %v247_v38, 0.0  ;;  %594 = vmatmul.msk.f32.vlgmr.msra.gmra.mxu3 %vm155_vm0, %v247_v38 }
 0x1b7   :  { %v356_v41 = vrot.slane %v355_v40, 4  ;;  %549 = vmatpush.msra.mxu3 %v532_v30 }
 0x1b9   :  { %v357_v43 = vadd.f32 %v356_v41, %v355_v40  ;;  %550 = vmatpush.msra.mxu3 %v531_v42 }
 0x1bb   :  { %v358_v44 = vrot.slane %v357_v43, 2 }
 0x1bd   :  { %v359_v46 = vadd.f32 %v358_v44, %v357_v43  ;;  %v530_v43 = vld [vmem:[%s1009_s9 + $0x8] sm:$0xff]  ;;  %v529_v44 = vld [vmem:[%s1009_s9] sm:$0xff] }
 0x1be   :  { %551 = vmatpush.msra.mxu3 %v530_v43 }
 0x1bf   :  { %v360_v47 = vrot.slane %v359_v46, 1 }
 0x1c0   :  { %552 = vmatpush.msra.mxu3 %v529_v44 }
 0x1c1   :  { %v361_v49 = vadd.f32 %v360_v47, %v359_v46 }
 0x1c3   :  { %v369_v50 = vmul.f32 %v368_v48, %v361_v49 }
 0x1c5   :  { %597 = vmatmul.msk.f32.vlgmr.msrb.gmra.mxu2 %vm155_vm0, %v369_v50 }
 0x239   :  { %v280_v60 = vpop.f32.mrf.mxu3 }
 0x23a   :  { %v281_v61 = vadd.f32 %v619_v59, %v280_v60 }
 0x23c   :  { %vm283_vm4 = vcmp.ge.f32.partialorder %v281_v61, 0.0  ;;  %v284_v62 = vmul.f32 0.2, %v281_v61 }
 0x23e   :  { %v285_v63 = vsel %vm283_vm4, %v281_v61, %v284_v62 }
 0x23f   :  { %595 = vmatmul.msk.f32.vlgmr.msrb.gmra.mxu0 %vm155_vm0, %v285_v63 }
 0x248   :  { %v397_v1 = vpop.f32.mrf.mxu2 }
 0x249   :  { %v398_v2 = vadd.f32 %v397_v1, %v376_v0 }
 0x24b   :  { %vm400_vm5 = vcmp.ge.f32.partialorder %v398_v2, 0.0  ;;  %v401_v3 = vmul.f32 0.2, %v398_v2 }
 0x24d   :  { %v402_v4 = vsel %vm400_vm5, %v398_v2, %v401_v3 }
 0x24e   :  { %598 = vmatmul.msk.f32.vlgmr.msrb.gmra.mxu3 %vm155_vm0, %v402_v4 }
 0x2bc   :  { %v316_v17 = vpop.f32.mrf.mxu0 }
 0x2bd   :  { %v317_v18 = vadd.f32 %v620_v16, %v316_v17 }
 0x2bf   :  { %vm319_vm6 = vcmp.ge.f32.partialorder %v317_v18, 0.0  ;;  %v320_v19 = vmul.f32 0.2, %v317_v18 }
 0x2c1   :  { %v321_v20 = vsel %vm319_vm6, %v317_v18, %v320_v19 }
 0x2c2   :  { %596 = vmatmul.msk.f32.vlgmr.msrb.gmra.mxu1 %vm155_vm0, %v321_v20 }
 0x2ca   :  { %600 = vmatmul.msk.f32.vlgmr.msra.gmra.mxu1 %vm155_vm0, %v369_v50  ;;  %v533_v50 = vld [vmem:[#allocation2] sm:$0x1] }
 0x2d1   :  { %v430_v22 = vpop.f32.mrf.mxu3 }
 0x2d2   :  { %v431_v23 = vadd.f32 %v430_v22, %v409_v21 }
 0x2d4   :  { %vm433_vm7 = vcmp.ge.f32.partialorder %v431_v23, 0.0  ;;  %v434_v24 = vmul.f32 0.2, %v431_v23 }
 0x2d6   :  { %v435_v25 = vsel %vm433_vm7, %v431_v23, %v434_v24 }
 0x2d7   :  { %599 = vmatmul.msk.f32.vlgmr.msra.gmra.mxu0 %vm155_vm0, %v435_v25 }
 0x33f   :  { %v350_v32 = vpop.f32.mrf.mxu1 }
 0x340   :  { %v351_v33 = vadd.f32 %v621_v31, %v350_v32 }
 0x342   :  { %354 = vst.msk [vmem:[%s1012_s12] sm:$0xff] %vm353_vm8, %v351_v33 }
 0x347   :  { %v490_v35 = vpop.f32.mrf.mxu1 }
 0x348   :  { %v491_v36 = vadd.f32 %v490_v35, %v472_v34 }
 0x34a   :  { %vm493_vm9 = vcmp.ge.f32.partialorder %v491_v36, 0.0  ;;  %v494_v37 = vmul.f32 0.2, %v491_v36 }
 0x34c   :  { %v495_v38 = vsel %vm493_vm9, %v491_v36, %v494_v37 }
 0x34d   :  { %601 = vmatmul.msk.f32.vlgmr.msra.gmra.mxu2 %vm155_vm0, %v495_v38 }
 0x354   :  { %v461_v40 = vpop.f32.mrf.mxu0 }
 0x355   :  { %v462_v41 = vadd.f32 %v461_v40, %v440_v39 }
 0x357   :  { %465 = vst.msk [vmem:[%s1013_s13] sm:$0x1] %vm464_vm10, %v462_v41  ;;  %s838_s13 = smov [#allocation15]  }
 0x358   :  { %s570_s11 = sshll.u32 %s838_s13, 4  ;;  %s571_s11 = int_to_ptr.vmem [resolvable:$true] %s570_s11 }
 0x3d0   :  { %v523_v46 = vpop.f32.mrf.mxu2 }
 0x3d1   :  { %v524_v47 = vadd.f32 %v523_v46, %v502_v45 }
 0x3d3   :  { %vm526_vm11 = vcmp.ge.f32.partialorder %v524_v47, 0.0  ;;  %v527_v48 = vmul.f32 0.2, %v524_v47 }
 0x3d5   :  { %v528_v49 = vsel %vm526_vm11, %v524_v47, %v527_v48 }
 0x3d6   :  { %602 = vmatmul.msk.f32.vlgmr.msra.gmra.mxu3 %vm155_vm0, %v528_v49 }
 0x459   :  { %v554_v51 = vpop.f32.mrf.mxu3 }
 0x45a   :  { %v555_v52 = vadd.f32 %v554_v51, %v533_v50 }
 0x45c   :  { %558 = vst.msk [vmem:[#allocation15] sm:$0x1] %vm557_vm12, %v555_v52 }
 0x45d   :  { %575 = dma.vmem_to_hbm [thread:$0]  %s571_s11, 16, %s573_s16, [#allocation5]  }
 0x45e   :  { %824 = dma.done.wait [#allocation5], 16  }
 0x45f   :  { %825 = vsyncadd [#allocation5], 4294967280 }
 0x460   :  { %586 = vsyncpa [#allocation4], 1 }
 0x461   :  { %587 = vsyncpa [#allocation7], 1 }
 0x462   :  { %588 = vsyncpa [#allocation10], 1 }
 0x463   :  { %589 = vsyncpa [#allocation13], 1 }
 0x464   :  { %590 = vsyncpa [#allocation5], 1 }

// kernel: reverse.2
= control target key start
LH: loop header
LB: loop body
LE: loop exit
PB: predicated region body
PF: predicated region fallthrough
CT: control target
= control target key end

     0   :  { %v2_v0 = vlaneseq  ;;  %s241_s0 = inlined_call_operand.vmem [shape: f32[8,8,15], index: 0, kind: input, shape index: {}]   ;;  %s242_s1 = inlined_call_operand.vmem [shape: f32[8,8,15], index: 1, kind: output, shape index: {}]  }
   0x1   :  { %v51_v2 = vld [vmem:[%s241_s0 + $0x10] sm:$0xff]  ;;  %v47_v3 = vld [vmem:[%s241_s0] sm:$0xff]  ;;  %v53_v5 = vld [vmem:[%s241_s0 + $0x18] sm:$0xff] }
   0x2   :  { %v3_v1 = vsub.s32 14, %v2_v0  ;;  %v55_v4 = vld [vmem:[%s241_s0 + $0x20] sm:$0xff]  ;;  %v49_v6 = vld [vmem:[%s241_s0 + $0x8] sm:$0xff]  ;;  %v61_v8 = vld [vmem:[%s241_s0 + $0x38] sm:$0xff] }
   0x3   :  { %v57_v7 = vld [vmem:[%s241_s0 + $0x28] sm:$0xff]  ;;  %v59_v9 = vld [vmem:[%s241_s0 + $0x30] sm:$0xff] }
   0x4   :  { %4 = vset.pattern.permute.xlu0 %v3_v1  ;;  %181 = vset.pattern.permute.xlu1 %v3_v1 }
   0x5   :  { %182 = vset.pattern.permute.xlu2 %v3_v1  ;;  %79 = vperm.xlu1 %181, %v51_v2  }
   0x6   :  { %67 = vperm.xlu0 %4, %v47_v3   ;;  %91 = vperm.xlu2 %182, %v55_v4  }
   0xd   :  { %85 = vperm.xlu1 %181, %v53_v5  }
   0xe   :  { %73 = vperm.xlu0 %4, %v49_v6   ;;  %97 = vperm.xlu2 %182, %v57_v7  }
  0x15   :  { %109 = vperm.xlu1 %181, %v61_v8  }
  0x16   :  { %103 = vperm.xlu0 %4, %v59_v9  }
  0x60   :  { %v92_v10 = vpop.permute.xlu2 %91 }
  0x61   :  { %163 = vst [vmem:[%s242_s1 + $0x20] sm:$0xff] %v92_v10 }
  0x68   :  { %v98_v11 = vpop.permute.xlu2 %97 }
  0x69   :  { %165 = vst [vmem:[%s242_s1 + $0x28] sm:$0xff] %v98_v11 }
  0x77   :  { %v80_v12 = vpop.permute.xlu1 %79 }
  0x78   :  { %v68_v13 = vpop.permute.xlu0 %67  ;;  %159 = vst [vmem:[%s242_s1 + $0x10] sm:$0xff] %v80_v12 }
  0x79   :  { %155 = vst [vmem:[%s242_s1] sm:$0xff] %v68_v13 }
  0x7f   :  { %v86_v14 = vpop.permute.xlu1 %85 }
  0x80   :  { %v74_v15 = vpop.permute.xlu0 %73  ;;  %161 = vst [vmem:[%s242_s1 + $0x18] sm:$0xff] %v86_v14 }
  0x81   :  { %157 = vst [vmem:[%s242_s1 + $0x8] sm:$0xff] %v74_v15 }
  0x87   :  { %v110_v16 = vpop.permute.xlu1 %109 }
  0x88   :  { %v104_v17 = vpop.permute.xlu0 %103  ;;  %169 = vst [vmem:[%s242_s1 + $0x38] sm:$0xff] %v110_v16 }
  0x89   :  { %167 = vst [vmem:[%s242_s1 + $0x30] sm:$0xff] %v104_v17 }

// kernel: conductor_forward.4
= control target key start
LH: loop header
LB: loop body
LE: loop exit
PB: predicated region body
PF: predicated region fallthrough
CT: control target
= control target key end

     0   :  { %s4417_s16 = smov [#allocation5]   ;;  %s5816_s0 = inlined_call_operand.vmem [shape: s32[8], index: 0, kind: input, shape index: {}]   ;;  %s5817_s1 = inlined_call_operand.vmem [shape: f32[8,1,32], index: 1, kind: input, shape index: {}]   ;;  %s5818_s2 = inlined_call_operand.hbm [shape: f32[2,8,32,32], index: 2, kind: input, shape index: {}]   ;;  %s5819_s3 = inlined_call_operand.hbm [shape: f32[2,8,1,32], index: 3, kind: input, shape index: {}]   ;;  %s5820_s4 = inlined_call_operand.hbm [shape: f32[2,32,32], index: 4, kind: input, shape index: {}]   ;;  %s5821_s5 = inlined_call_operand.hbm [shape: f32[2,1,32], index: 5, kind: input, shape index: {}]   ;;  %s5822_s6 = inlined_call_operand.vmem [shape: f32[2,32,2], index: 6, kind: input, shape index: {}]   ;;  %s5823_s7 = inlined_call_operand.hbm [shape: f32[2,1,2], index: 7, kind: input, shape index: {}]   ;;  %s5824_s8 = inlined_call_operand.vmem [shape: f32[2,32,17], index: 8, kind: input, shape index: {}]   ;;  %s5825_s9 = inlined_call_operand.hbm [shape: f32[2,1,17], index: 9, kind: input, shape index: {}]   ;;  %s5826_s10 = inlined_call_operand.hbm [shape: f32[2,32,128], index: 10, kind: input, shape index: {}]   ;;  %s5827_s11 = inlined_call_operand.hbm [shape: f32[2,1,128], index: 11, kind: input, shape index: {}]   ;;  %s5828_s12 = inlined_call_operand.vmem [shape: f32[8,8,2], index: 12, kind: output, shape index: {0}]   ;;  %s5829_s13 = inlined_call_operand.vmem [shape: f32[8,8,17], index: 13, kind: output, shape index: {1}]   ;;  %s5830_s14 = inlined_call_operand.vmem [shape: f32[8,8,128], index: 14, kind: output, shape index: {2}]  }
   0x1   :  { %5880 = sst [smem:[#allocation73_spill]] %s5817_s1  ;;  %s21_s15 = sshll.u32 %s5816_s0, 4  ;;  %s22_s15 = int_to_ptr.vmem [resolvable:$true] %s21_s15 }
   0x2   :  { %5881 = sst [smem:[#allocation74_spill]] %s5818_s2 }
   0x3   :  { %5882 = sst [smem:[#allocation75_spill]] %s5819_s3 }
   0x4   :  { %5883 = sst [smem:[#allocation76_spill]] %s5820_s4 }
   0x5   :  { %5884 = sst [smem:[#allocation77_spill]] %s5821_s5 }
   0x6   :  { %5885 = sst [smem:[#allocation78_spill]] %s5822_s6 }
   0x7   :  { %5886 = sst [smem:[#allocation79_spill]] %s5823_s7 }
   0x8   :  { %5887 = sst [smem:[#allocation80_spill]] %s5824_s8 }
   0x9   :  { %5888 = sst [smem:[#allocation81_spill]] %s5825_s9 }
   0xa   :  { %5889 = sst [smem:[#allocation82_spill]] %s5826_s10 }
   0xb   :  { %5890 = sst [smem:[#allocation83_spill]] %s5827_s11 }
   0xc   :  { %5891 = sst [smem:[#allocation84_spill]] %s5828_s12 }
   0xd   :  { %5892 = sst [smem:[#allocation85_spill]] %s5829_s13 }
   0xe   :  { %5893 = sst [smem:[#allocation86_spill]] %s5830_s14 }
   0xf   :  { %24 = dma.vmem_to_smem %s22_s15, 16, %s4417_s16, [#allocation4] }
  0x10   :  { %4283 = dma.done.wait [#allocation4], 16 }
  0x11   :  { %4284 = vsyncadd [#allocation4], 4294967280 }
  0x12   :  { %27 = sfence }
  0x13   :  { %28 = vsyncpa [#allocation7], 0 }
  0x14   :  { %30 = vsyncpa [#allocation7 + $0x1], 0 }
  0x15   :  { %31 = vsyncpa [#allocation9], 0 }
  0x16   :  { %33 = vsyncpa [#allocation9 + $0x1], 0 }
  0x17   :  { %34 = vsyncpa [#allocation12], 0 }
  0x18   :  { %36 = vsyncpa [#allocation12 + $0x1], 0 }
  0x19   :  { %37 = vsyncpa [#allocation15], 0 }
  0x1a   :  { %39 = vsyncpa [#allocation15 + $0x1], 0 }
  0x1b   :  { %40 = vsyncpa [#allocation18], 0 }
  0x1c   :  { %42 = vsyncpa [#allocation18 + $0x1], 0  ;;  %s4501_s17 = smov 0   ;;  %s4503_s18 = smov 0  }
  0x1d   :  { %s4505_s0 = smov 0   ;;  %s4507_s19 = smov 0  }
  0x1e   :  { %s4509_s20 = smov 0   ;;  %s4511_s21 = smov 0  }
  0x1f   :  { %s4513_s22 = smov 0   ;;  %s4515_s23 = smov 0  }
  0x20   :  { %s4517_s24 = smov 0   ;;  %s4519_s25 = smov 0  }
  0x21   :  { %s4521_s26 = smov 0   ;;  %s4523_s27 = smov 0  }
  0x22   :  { %s4525_s28 = smov 0   ;;  %s4527_s29 = smov 0  }
  0x23   :  { %s4529_s30 = smov 0   ;;  %s4531_s15 = smov 0  }
  0x24   :  { %s4533_s16 = smov 0   ;;  %s4535_s14 = smov 0  }
  0x25   :  { %s4537_s13 = smov 0   ;;  %s4539_s8 = smov 0  }
  0x26   :  { %s4541_s12 = smov 0   ;;  %s4543_s6 = smov 0  }
  0x27   :  { %s4545_s1 = smov 0   ;;  %s4547_s11 = smov 0  }
  0x28   :  { %s4549_s10 = smov 0  }
  0x29 LB: > { %5894 = sst [smem:[#allocation44_spill]] %s4319_s17  ;;  %s4625_s17 = sadd.s32 4294967295, %s4415_s10   ;;  %s4415_s10 = sphi %s4549_s10, %s6068_s10   ;;  %s4411_s11 = sphi %s4547_s11, %s6061_s11   ;;  %s4407_s1 = sphi %s4545_s1, %s6067_s1   ;;  %s4403_s6 = sphi %s4543_s6, %s6066_s6   ;;  %s4399_s12 = sphi %s4541_s12, %s6059_s12   ;;  %s4395_s8 = sphi %s4539_s8, %s6058_s8   ;;  %s4391_s13 = sphi %s4537_s13, %s6065_s13   ;;  %s4387_s14 = sphi %s4535_s14, %s6054_s14   ;;  %s4383_s16 = sphi %s4533_s16, %s6053_s16   ;;  %s4379_s15 = sphi %s4531_s15, %s6052_s15   ;;  %s4375_s30 = sphi %s4529_s30, %s6051_s30   ;;  %s4371_s29 = sphi %s4527_s29, %s6064_s29   ;;  %s4367_s28 = sphi %s4525_s28, %s6063_s28   ;;  %s4363_s27 = sphi %s4523_s27, %s6062_s27   ;;  %s4359_s26 = sphi %s4521_s26, %s6048_s26   ;;  %s4355_s25 = sphi %s4519_s25, %s6047_s25   ;;  %s4351_s24 = sphi %s4517_s24, %s6046_s24   ;;  %s4347_s23 = sphi %s4515_s23, %s6045_s23   ;;  %s4343_s22 = sphi %s4513_s22, %s6044_s22   ;;  %s4339_s21 = sphi %s4511_s21, %s6043_s21   ;;  %s4335_s20 = sphi %s4509_s20, %s6042_s20   ;;  %s4331_s19 = sphi %s4507_s19, %s6057_s19   ;;  %s4327_s0 = sphi %s4505_s0, %s6055_s0   ;;  %s4323_s18 = sphi %s4503_s18, %s6040_s18   ;;  %s4319_s17 = sphi %s4501_s17, %s6039_s17  }
  0x2a   : > { %5895 = sst [smem:[#allocation45_spill]] %s4323_s18  ;;  %p5854_p0 = scmp.eq.s32.totalorder %s4415_s10, 0 }
  0x2b   : > { %5896 = sst [smem:[#allocation46_spill]] %s4327_s0  ;;  %s4628_s0 = sadd.s32 1, %s4415_s10  }
  0x2c   : > { %5897 = sst [smem:[#allocation47_spill]] %s4331_s19  ;;  %s5912_s7 = smov %s4628_s0 }
  0x2d   : > { %5898 = sst [smem:[#allocation48_spill]] %s4335_s20  ;;  %p5856_p1 = scmp.eq.s32.totalorder %s4625_s17, 0 }
  0x2e   : > { %5899 = sst [smem:[#allocation49_spill]] %s4339_s21  ;;  %s111_s19 = sadd.s32 1, %s4399_s12 }
  0x2f   : > { %5900 = sst [smem:[#allocation50_spill]] %s4347_s23  ;;  %p118_p2 = scmp.ne.s32.totalorder %s4399_s12, %s4395_s8 }
  0x30   : > { %5901 = sst [smem:[#allocation51_spill]] %s4351_s24  ;;  %p124_p3 = scmp.ne.s32.totalorder %s4395_s8, %s4391_s13 }
  0x31   : > { %5902 = sst [smem:[#allocation52_spill]] %s4355_s25  ;;  %p4640_p4 = por %p118_p2, %p5854_p0 }
  0x32   : > { %5903 = sst [smem:[#allocation53_spill]] %s4359_s26  ;;  %p5852_p5 = scmp.lt.s32.totalorder %s4415_s10, 8 }
  0x33   : > { %5904 = sst [smem:[#allocation54_spill]] %s4363_s27  ;;  %p4647_p6 = por %p124_p3, %p5856_p1 }
  0x34   : > { %5905 = sst [smem:[#allocation55_spill]] %s4375_s30  ;;  %s4652_s4 = sand.u32 1, %s4415_s10  }
  0x35   : > { %5906 = sst [smem:[#allocation56_spill]] %s4379_s15  ;;  %s481_s13 = sand.u32 1, %s4399_s12  }
  0x36   : > { %5907 = sst [smem:[#allocation57_spill]] %s4383_s16  ;;  %p4659_p7 = pnand %p5852_p5, %p4640_p4 }
  0x37   : > { %5908 = sst [smem:[#allocation58_spill]] %s4387_s14  ;;  %p3361_p9 = scmp.ge.s32.totalorder %s4415_s10, 1 }
  0x38   : > { %5909 = sst [smem:[#allocation59_spill]] %s4395_s8  ;;  %s3353_s8 = sshll.u32 %s481_s13, 3 }
  0x39   : > { %5910 = sst [smem:[#allocation60_spill]] %s4399_s12  ;;  %s483_s27 = scalar_lea.vmem [#allocation8], %s3353_s8 }
  0x3a   : > { %5911 = sst [smem:[#allocation61_spill]] %s4411_s11  ;;  %s4663_s2 = sshll.u32 %s483_s27, 4 }
  0x3b   : > { %s106_s18 = sld [smem:[#allocation5 + %s4415_s10]]  ;;  %p637_p10 = scmp.lt.s32.totalorder %s4415_s10, 9 }
  0x3c   : > { %s107_s20 = sld [smem:[#allocation5 + %s5912_s7]]  ;;  %s167_s16 = sadd.s32 1, %s4375_s30 }
  0x3d   : > { %s5914_s0 = scalar_select %p4647_p6, 1, 0 }
  0x3e   : > { %5916 = sst [smem:[#allocation63_spill]] %s4652_s4  ;;  %p4680_p11 = pnand %p3361_p9, %p637_p10 }
  0x3f   : > { %5915 = sst [smem:[#allocation62_spill]] %s5914_s0  ;;  %p174_p12 = scmp.ne.s32.totalorder %s4375_s30, %s4371_s29 }
  0x40   : > { %5918 = sst [smem:[#allocation64_spill]] %s4663_s2  ;;  %p3947_p2 = pneg %p4659_p7 }
  0x41   : > { %s3577_s0 = scalar_select %p4640_p4, [#allocation5], [#allocation20] }
  0x42   : > { %s108_s26 = ssub.s32 %s106_s18, %s107_s20  ;;  %s4685_s20 = sld [smem:[#allocation5 + %s4415_s10]] }
  0x43   : > { %p109_p8 = scmp.eq.s32.totalorder %s108_s26, 0  ;;  %s6070_s0 = smov (!%p5852_p5, %s3577_s0), [#allocation28] }
  0x44   : > { %s3578_s13 = scalar_select %p4640_p4, %s4415_s10, 0 }
  0x45   : > { %s4668_s15 = scalar_select %p109_p8, %s4399_s12, %s111_s19  }
  0x46   : > { %s6072_s13 = smov (!%p5852_p5, %s3578_s13), 0  ;;  %s5922_s3 = sld [smem:[#allocation75_spill]] }
  0x47   : > { %5919 = sst [smem:[#allocation65_spill]] %s4668_s15 }
  0x48   : > { %s484_s18 = sld [smem:[%s6070_s0 + %s6072_s13]]  ;;  %s5853_s0 = scalar_lea.sflag [#allocation9], %s4652_s4 }
  0x49   : > { %s5920_s8 = scalar_select %p4680_p11, 1, 0 }
  0x4a   : > { %s163_s15 = sld [smem:[#allocation5 + %s5912_s7]] }
  0x4b   : > { %5921 = sst [smem:[#allocation66_spill]] %s5920_s8 }
  0x4c   : > { %s3950_s14 = scalar_lea.hbm %s5922_s3, 16 }
  0x4e   : > { %s3354_s19 = sshll.u32 %s484_s18, 3 }
  0x4f   : > { %s488_s27 = scalar_lea.hbm %s5922_s3, %s3354_s19 }
  0x50   : > { %s489_s12 = sshll.u32 %s488_s27, 4  ;;  %s490_s12 = int_to_ptr.hbm [resolvable:$true] %s489_s12 }
  0x51   : > { %s3943_s13 = sshra.s32 %s490_s12, 4  ;;  %s3944_s13 = int_to_ptr.hbm [resolvable:$true] %s3943_s13 }
  0x52   : > { %s3945_s2 = scalar_lea.hbm %s3944_s13, 8  ;;  %p3951_p8 = scmp.lt.s32.totalorder %s3944_s13, %s5922_s3 }
  0x53   : > { %p3946_p13 = scmp.ne.s32.totalorder %s3944_s13, %s3945_s2  ;;  %p3952_p9 = scmp.lt.s32.totalorder %s3950_s14, %s3945_s2 }
  0x55   : > { %p3948_p3 = pnand %p3947_p2, %p3946_p13  ;;  %p3953_p10 = por %p3952_p9, %p3951_p8 }
  0x57   : > { %p3949_p4 = pneg %p3948_p3 }
  0x59   : > { %p3954_p5 = pnand %p3953_p10, %p3949_p4 }
  0x5b   : > { %3957 = shalt.err (!%p3954_p5)
}
  0x5c   : > { %s4418_s26 = smov 16   ;;  %s5923_s27 = sld [smem:[#allocation64_spill]] }
  0x5d   : > { %s4419_s2 = smov 1   ;;  %p4714_p5 = por %p174_p12, %p5854_p0 }
  0x5e   : > { %p180_p13 = scmp.ne.s32.totalorder %s4371_s29, %s4367_s28  ;;  %s526_s13 = sand.u32 1, %s4375_s30  }
  0x5f   : > { %s164_s18 = ssub.s32 %s4685_s20, %s163_s15  ;;  %p5928_p12 = scmp.lt.s32.totalorder %s4415_s10, 8 }
  0x60   : > { %p4724_p2 = por %p180_p13, %p5856_p1  ;;  %s527_s15 = scalar_lea.vmem [#allocation11], %s526_s13 }
  0x61   : > { %s3584_s28 = scalar_select %p4714_p5, %s4415_s10, 0 }
  0x62   : > { %s5924_s14 = int_to_ptr.vmem [resolvable:$true] %s5923_s27  ;;  %p5929_p3 = pmov %p5928_p12 }
  0x63   : > { %3616 = dma.hbm_to_vmem [thread:$0]  (!%p4659_p7), %s490_s12, 128, %s5924_s14, %s5853_s0, %s4418_s26, %s4418_s26, %s4419_s2  }
  0x64   : > { %s5926_s25 = scalar_select %p4724_p2, 1, 0 }
  0x65   : > { %p165_p7 = scmp.eq.s32.totalorder %s164_s18, 0  ;;  %s6076_s28 = smov (!%p5929_p3, %s3584_s28), 0 }
  0x66   : > { %s3583_s12 = scalar_select %p4714_p5, [#allocation5], [#allocation22] }
  0x67   : > { %s4731_s21 = scalar_select %p165_p7, %s4375_s30, %s167_s16  }
  0x68   : > { %s6074_s12 = smov (!%p5928_p12, %s3583_s12), [#allocation30]  ;;  %s535_s20 = sshll.u32 %s527_s15, 4  ;;  %s536_s20 = int_to_ptr.vmem [resolvable:$true] %s535_s20 }
  0x69   : > { %5927 = sst [smem:[#allocation67_spill]] %s4731_s21  ;;  %p5930_p4 = pmov %p5929_p3 }
  0x6a   : > { %s528_s26 = sld [smem:[%s6074_s12 + %s6076_s28]]  ;;  %s279_s2 = sadd.s32 1, %s4351_s24 }
  0x6b   : > { %p4744_p8 = pnand %p5930_p4, %p4714_p5  ;;  %s274_s16 = sld [smem:[#allocation5 + %s4415_s10]] }
  0x6c   : > { %s275_s27 = sld [smem:[#allocation5 + %s5912_s7]]  ;;  %p286_p9 = scmp.ne.s32.totalorder %s4351_s24, %s4347_s23 }
  0x6d   : > { %s5932_s5 = sld [smem:[#allocation77_spill]]  ;;  %s5855_s13 = scalar_lea.sflag [#allocation12], %s4652_s4 }
  0x6e   : > { %p4760_p13 = por %p286_p9, %p5854_p0  ;;  %p3977_p7 = pneg %p4744_p8 }
  0x73   : > { %s531_s0 = scalar_lea.hbm %s5932_s5, %s528_s26 }
  0x74   : > { %s533_s3 = sshll.u32 %s531_s0, 4  ;;  %s3980_s0 = scalar_lea.hbm %s5932_s5, 2  ;;  %s534_s3 = int_to_ptr.hbm [resolvable:$true] %s533_s3 }
  0x75   : > { %s3973_s12 = sshra.s32 %s534_s3, 4  ;;  %s3974_s12 = int_to_ptr.hbm [resolvable:$true] %s3973_s12 }
  0x76   : > { %s3975_s28 = scalar_lea.hbm %s3974_s12, 1  ;;  %p3981_p4 = scmp.lt.s32.totalorder %s3974_s12, %s5932_s5 }
  0x77   : > { %p3976_p5 = scmp.ne.s32.totalorder %s3974_s12, %s3975_s28  ;;  %p3982_p9 = scmp.lt.s32.totalorder %s3980_s0, %s3975_s28 }
  0x79   : > { %p3978_p12 = pnand %p3977_p7, %p3976_p5  ;;  %p3983_p0 = por %p3982_p9, %p3981_p4 }
  0x7b   : > { %p3979_p3 = pneg %p3978_p12 }
  0x7d   : > { %p3984_p10 = pnand %p3983_p0, %p3979_p3 }
  0x7f   : > { %3987 = shalt.err (!%p3984_p10)
}
  0x80   : > { %3626 = dma.hbm_to_vmem [thread:$0]  (!%p4744_p8), %s534_s3, 16, %s536_s20, %s5855_s13  }
  0x81   : > { %p5934_p0 = scmp.ne.s32.totalorder %s4347_s23, %s4343_s22  ;;  %s276_s12 = ssub.s32 %s274_s16, %s275_s27 }
  0x82   : > { %s582_s28 = sand.u32 1, %s4351_s24   ;;  %p277_p5 = scmp.eq.s32.totalorder %s276_s12, 0 }
  0x83   : > { %p4782_p10 = por %p5934_p0, %p5856_p1  ;;  %p5938_p8 = scmp.lt.s32.totalorder %s4415_s10, 8 }
  0x84   : > { %s3589_s15 = scalar_select %p4760_p13, [#allocation5], [#allocation24] }
  0x85   : > { %s5935_s19 = scalar_select %p4782_p10, 1, 0 }
  0x86   : > { %s4790_s26 = scalar_select %p277_p5, %s4351_s24, %s279_s2  }
  0x87   : > { %5936 = sst [smem:[#allocation64_spill]] %s5935_s19  ;;  %s6078_s15 = smov (!%p5938_p8, %s3589_s15), [#allocation32] }
  0x88   : > { %5937 = sst [smem:[#allocation68_spill]] %s4790_s26  ;;  %p5939_p7 = pmov %p5938_p8 }
  0x89   : > { %s3590_s3 = scalar_select %p4760_p13, %s4415_s10, 0 }
  0x8a   : > { %s583_s22 = scalar_lea.vmem [#allocation14], %s582_s28  ;;  %p5940_p12 = pmov %p5939_p7 }
  0x8b   : > { %s6080_s3 = smov (!%p5939_p7, %s3590_s3), 0  ;;  %s591_s20 = sshll.u32 %s583_s22, 4  ;;  %s592_s20 = int_to_ptr.vmem [resolvable:$true] %s591_s20 }
  0x8c   : > { %p4803_p3 = pnand %p5940_p12, %p4760_p13  ;;  %s584_s27 = sld [smem:[%s6078_s15 + %s6080_s3]] }
  0x8d   : > { %s78_s2 = sld [smem:[#allocation5 + %s4415_s10]]  ;;  %s83_s14 = sadd.s32 1, %s4411_s11 }
  0x8e   : > { %s79_s0 = sld [smem:[#allocation5 + %s5912_s7]]  ;;  %p90_p4 = scmp.ne.s32.totalorder %s4411_s11, %s4407_s1 }
  0x8f   : > { %s5942_s9 = sld [smem:[#allocation81_spill]]  ;;  %p5943_p0 = scmp.eq.s32.totalorder %s4415_s10, 0 }
  0x90   : > { %s5857_s28 = scalar_lea.sflag [#allocation15], %s4652_s4  ;;  %p4007_p8 = pneg %p4803_p3 }
  0x91   : > { %p4819_p5 = por %p5943_p0, %p90_p4 }
  0x95   : > { %s587_s13 = scalar_lea.hbm %s5942_s9, %s584_s27 }
  0x96   : > { %s589_s5 = sshll.u32 %s587_s13, 4  ;;  %s4010_s13 = scalar_lea.hbm %s5942_s9, 2  ;;  %s590_s5 = int_to_ptr.hbm [resolvable:$true] %s589_s5 }
  0x97   : > { %s4003_s15 = sshra.s32 %s590_s5, 4  ;;  %s4004_s15 = int_to_ptr.hbm [resolvable:$true] %s4003_s15 }
  0x98   : > { %s4005_s3 = scalar_lea.hbm %s4004_s15, 1  ;;  %p4011_p4 = scmp.lt.s32.totalorder %s4004_s15, %s5942_s9 }
  0x99   : > { %p4006_p13 = scmp.ne.s32.totalorder %s4004_s15, %s4005_s3  ;;  %p4012_p0 = scmp.lt.s32.totalorder %s4010_s13, %s4005_s3 }
  0x9b   : > { %p4008_p7 = pnand %p4007_p8, %p4006_p13  ;;  %p4013_p1 = por %p4012_p0, %p4011_p4 }
  0x9d   : > { %p4009_p12 = pneg %p4008_p7 }
  0x9f   : > { %p4014_p9 = pnand %p4013_p1, %p4009_p12 }
  0xa1   : > { %4017 = shalt.err (!%p4014_p9)
}
  0xa2   : > { %3636 = dma.hbm_to_vmem [thread:$0]  (!%p4803_p3), %s590_s5, 16, %s592_s20, %s5857_s28  }
  0xa3   : > { %p5945_p13 = scmp.ne.s32.totalorder %s4407_s1, %s4403_s6  ;;  %p5946_p1 = scmp.eq.s32.totalorder %s4625_s17, 0 }
  0xa4   : > { %s5948_s15 = sld [smem:[#allocation58_spill]]  ;;  %s456_s3 = sand.u32 1, %s4411_s11  }
  0xa5   : > { %p4841_p9 = por %p5946_p1, %p5945_p13  ;;  %s80_s22 = ssub.s32 %s78_s2, %s79_s0 }
  0xa6   : > { %p81_p8 = scmp.eq.s32.totalorder %s80_s22, 0  ;;  %s3350_s27 = sshll.u32 %s456_s3, 8 }
  0xa7   : > { %p5949_p7 = scmp.lt.s32.totalorder %s4415_s10, 8  ;;  %s5950_s13 = sld [smem:[#allocation57_spill]] }
  0xa8   : > { %s4855_s5 = scalar_select %p81_p8, %s4411_s11, %s83_s14  }
  0xa9   : > { %p4850_p12 = pnand %p5949_p7, %p4819_p5  ;;  %s5953_s6 = sld [smem:[#allocation56_spill]] }
  0xaa   : > { %5952 = sst [smem:[#allocation69_spill]] %s4855_s5  ;;  %p5954_p3 = pmov %p5949_p7 }
  0xab   : > { %s3574_s20 = scalar_select %p4819_p5, [#allocation5], [#allocation19] }
  0xac   : > { %s3575_s12 = scalar_select %p4819_p5, %s4415_s10, 0 }
  0xad   : > { %s6082_s20 = smov (!%p5954_p3, %s3574_s20), [#allocation27]  ;;  %p5955_p4 = pmov %p5954_p3 }
  0xae   : > { %s460_s2 = scalar_lea.vmem [#allocation6], %s3350_s27  ;;  %s4870_s14 = sld [smem:[#allocation5 + %s4415_s10]] }
  0xaf   : > { %s6084_s12 = smov (!%p5955_p4, %s3575_s12), 0  ;;  %s4866_s0 = sshll.u32 %s460_s2, 4  ;;  %s470_s0 = int_to_ptr.vmem [resolvable:$true] %s4866_s0 }
  0xb0   : > { %s461_s22 = sld [smem:[%s6082_s20 + %s6084_s12]]  ;;  %s139_s28 = sadd.s32 1, %s5948_s15 }
  0xb1   : > { %s135_s5 = sld [smem:[#allocation5 + %s5912_s7]]  ;;  %p146_p5 = scmp.ne.s32.totalorder %s5948_s15, %s5950_s13 }
  0xb2   : > { %s5956_s21 = sld [smem:[#allocation74_spill]]  ;;  %p5958_p13 = scmp.eq.s32.totalorder %s4415_s10, 0 }
  0xb3   : > { %s457_s20 = scalar_lea.sflag [#allocation7], %s456_s3  ;;  %p4037_p7 = pneg %p4850_p12 }
  0xb4   : > { %p4883_p1 = por %p146_p5, %p5958_p13 }
  0xb6   : > { %s3569_s9 = sshll.u32 %s461_s22, 8 }
  0xb8   : > { %s5957_s4 = smov %s5956_s21  ;;  %s466_s30 = scalar_lea.hbm %s5956_s21, %s3569_s9 }
  0xb9   : > { %s467_s26 = sshll.u32 %s466_s30, 4  ;;  %s4040_s30 = scalar_lea.hbm %s5957_s4, 512  ;;  %s468_s26 = int_to_ptr.hbm [resolvable:$true] %s467_s26 }
  0xba   : > { %s4033_s12 = sshra.s32 %s468_s26, 4  ;;  %s4034_s12 = int_to_ptr.hbm [resolvable:$true] %s4033_s12 }
  0xbb   : > { %s4035_s2 = scalar_lea.hbm %s4034_s12, 256  ;;  %p4041_p5 = scmp.lt.s32.totalorder %s4034_s12, %s5957_s4 }
  0xbc   : > { %p4036_p8 = scmp.ne.s32.totalorder %s4034_s12, %s4035_s2  ;;  %p4042_p13 = scmp.lt.s32.totalorder %s4040_s30, %s4035_s2 }
  0xbe   : > { %p4038_p3 = pnand %p4037_p7, %p4036_p8  ;;  %p4043_p0 = por %p4042_p13, %p4041_p5 }
  0xc0   : > { %p4039_p4 = pneg %p4038_p3 }
  0xc2   : > { %p4044_p10 = pnand %p4043_p0, %p4039_p4 }
  0xc4   : > { %4047 = shalt.err (!%p4044_p10)
}
  0xc5   : > { %s5863_s3 = smov 128   ;;  %s5865_s8 = smov 8  }
  0xc6   : > { %3611 = dma.hbm_to_vmem [thread:$0]  (!%p4850_p12), %s468_s26, 4096, %s470_s0, %s457_s20, %s5863_s3, %s5863_s3, %s5865_s8  }
  0xc7   : > { %p5960_p10 = scmp.eq.s32.totalorder %s4625_s17, 0  ;;  %p5961_p0 = scmp.ne.s32.totalorder %s5950_s13, %s5953_s6 }
  0xc8   : > { %s503_s2 = sand.u32 1, %s5948_s15   ;;  %s5963_s11 = sld [smem:[#allocation54_spill]] }
  0xc9   : > { %p4907_p8 = por %p5961_p0, %p5960_p10  ;;  %s136_s9 = ssub.s32 %s4870_s14, %s135_s5 }
  0xca   : > { %s3355_s30 = sshll.u32 %s503_s2, 5  ;;  %s5964_s21 = sld [smem:[#allocation53_spill]] }
  0xcb   : > { %s5962_s12 = scalar_select %p4907_p8, 1, 0 }
  0xcc   : > { %p137_p7 = scmp.eq.s32.totalorder %s136_s9, 0  ;;  %s5965_s22 = sld [smem:[#allocation52_spill]] }
  0xcd   : > { %s3580_s18 = scalar_select %p4883_p1, [#allocation5], [#allocation21] }
  0xce   : > { %s6086_s15 = smov (!%p137_p7, %s5948_s15), %s139_s28  ;;  %p5967_p12 = scmp.lt.s32.totalorder %s4415_s10, 8 }
  0xcf   : > { %5966 = sst [smem:[#allocation70_spill]] %s6086_s15  ;;  %s505_s13 = scalar_lea.vmem [#allocation10], %s3355_s30 }
  0xd0   : > { %s3581_s26 = scalar_select %p4883_p1, %s4415_s10, 0 }
  0xd1   : > { %s6088_s18 = smov (!%p5967_p12, %s3580_s18), [#allocation29]  ;;  %p5968_p3 = pmov %p5967_p12 }
  0xd2   : > { %s4927_s5 = sshll.u32 %s505_s13, 4  ;;  %s4939_s0 = sld [smem:[#allocation5 + %s4415_s10]] }
  0xd3   : > { %s6090_s26 = smov (!%p5968_p3, %s3581_s26), 0  ;;  %5969 = sst [smem:[#allocation56_spill]] %s4927_s5 }
  0xd4   : > { %p5970_p4 = pmov %p5968_p3  ;;  %s506_s28 = sld [smem:[%s6088_s18 + %s6090_s26]] }
  0xd5   : > { %s219_s14 = sld [smem:[#allocation5 + %s5912_s7]]  ;;  %s223_s20 = sadd.s32 1, %s5963_s11 }
  0xd6   : > { %p4933_p5 = pnand %p5970_p4, %p4883_p1  ;;  %p230_p13 = scmp.ne.s32.totalorder %s5963_s11, %s5964_s21 }
  0xd7   : > { %s5972_s13 = sld [smem:[#allocation76_spill]]  ;;  %p236_p10 = scmp.ne.s32.totalorder %s5964_s21, %s5965_s22 }
  0xd8   : > { %p5974_p0 = scmp.eq.s32.totalorder %s4415_s10, 0  ;;  %p5976_p7 = scmp.eq.s32.totalorder %s4625_s17, 0 }
  0xd9   : > { %p4067_p4 = pneg %p4933_p5 }
  0xda   : > { %s3570_s2 = sshll.u32 %s506_s28, 5  ;;  %p4952_p1 = por %p230_p13, %p5974_p0 }
  0xdb   : > { %p4958_p12 = por %p236_p10, %p5976_p7 }
  0xdd   : > { %s5973_s3 = smov %s5972_s13  ;;  %s511_s8 = scalar_lea.hbm %s5972_s13, %s3570_s2 }
  0xde   : > { %s512_s27 = sshll.u32 %s511_s8, 4  ;;  %s4070_s22 = scalar_lea.hbm %s5973_s3, 64  ;;  %s513_s27 = int_to_ptr.hbm [resolvable:$true] %s512_s27 }
  0xdf   : > { %s4063_s26 = sshra.s32 %s513_s27, 4  ;;  %s4064_s26 = int_to_ptr.hbm [resolvable:$true] %s4063_s26 }
  0xe0   : > { %s4065_s28 = scalar_lea.hbm %s4064_s26, 32  ;;  %p4071_p13 = scmp.lt.s32.totalorder %s4064_s26, %s5973_s3 }
  0xe1   : > { %p4066_p3 = scmp.ne.s32.totalorder %s4064_s26, %s4065_s28  ;;  %p4072_p10 = scmp.lt.s32.totalorder %s4070_s22, %s4065_s28 }
  0xe3   : > { %p4068_p2 = pnand %p4067_p4, %p4066_p3  ;;  %p4073_p0 = por %p4072_p10, %p4071_p13 }
  0xe5   : > { %p4069_p8 = pneg %p4068_p2 }
  0xe7   : > { %p4074_p7 = pnand %p4073_p0, %p4069_p8 }
  0xe9   : > { %4077 = shalt.err (!%p4074_p7)
}
  0xea   : > { %s5978_s30 = smov 8   ;;  %s5979_s13 = smov 128  }
  0xeb   : > { %s5980_s5 = sld [smem:[#allocation63_spill]]  ;;  %s220_s26 = ssub.s32 %s4939_s0, %s219_s14 }
  0xec   : > { %s5982_s24 = sld [smem:[#allocation56_spill]]  ;;  %s554_s28 = sand.u32 1, %s5963_s11  }
  0xed   : > { %s5984_s6 = sld [smem:[#allocation49_spill]]  ;;  %p221_p2 = scmp.eq.s32.totalorder %s220_s26, 0 }
  0xee   : > { %s5985_s8 = sld [smem:[#allocation48_spill]]  ;;  %p5988_p8 = scmp.lt.s32.totalorder %s4415_s10, 8 }
  0xef   : > { %s5986_s21 = sld [smem:[#allocation47_spill]]  ;;  %s6092_s11 = smov (!%p221_p2, %s5963_s11), %s223_s20 }
  0xf0   : > { %5987 = sst [smem:[#allocation71_spill]] %s6092_s11  ;;  %p5989_p3 = pmov %p5988_p8 }
  0xf1   : > { %s5981_s15 = scalar_lea.sflag [#allocation9], %s5980_s5  ;;  %s302_s20 = sld [smem:[#allocation5 + %s4415_s10]] }
  0xf2   : > { %s5983_s19 = int_to_ptr.vmem [resolvable:$true] %s5982_s24  ;;  %s5992_s3 = sld [smem:[#allocation79_spill]] }
  0xf3   : > { %3621 = dma.hbm_to_vmem [thread:$0]  (!%p4933_p5), %s513_s27, 512, %s5983_s19, %s5981_s15, %s5979_s13, %s5979_s13, %s5978_s30  }
  0xf4   : > { %s3586_s24 = scalar_select %p4952_p1, [#allocation5], [#allocation23] }
  0xf5   : > { %s3587_s22 = scalar_select %p4952_p1, %s4415_s10, 0 }
  0xf6   : > { %s6094_s24 = smov (!%p5988_p8, %s3586_s24), [#allocation31]  ;;  %s555_s19 = scalar_lea.vmem [#allocation13], %s554_s28 }
  0xf7   : > { %s6096_s22 = smov (!%p5989_p3, %s3587_s22), 0  ;;  %s563_s15 = sshll.u32 %s555_s19, 4  ;;  %s564_s15 = int_to_ptr.vmem [resolvable:$true] %s563_s15 }
  0xf8   : > { %p5990_p5 = pmov %p5989_p3  ;;  %s556_s14 = sld [smem:[%s6094_s24 + %s6096_s22]] }
  0xf9   : > { %s303_s27 = sld [smem:[#allocation5 + %s5912_s7]]  ;;  %s307_s2 = sadd.s32 1, %s5984_s6 }
  0xfa   : > { %p4997_p4 = pnand %p5990_p5, %p4952_p1  ;;  %p314_p13 = scmp.ne.s32.totalorder %s5984_s6, %s5985_s8 }
  0xfb   : > { %p5993_p0 = scmp.eq.s32.totalorder %s4415_s10, 0 }
  0xfc   : > { %p4097_p2 = pneg %p4997_p4 }
  0xfd   : > { %p5013_p7 = por %p314_p13, %p5993_p0 }
  0xfe   : > { %s559_s11 = scalar_lea.hbm %s5992_s3, %s556_s14  ;;  %s4100_s14 = scalar_lea.hbm %s5992_s3, 2 }
  0xff   : > { %s561_s23 = sshll.u32 %s559_s11, 4  ;;  %s562_s23 = int_to_ptr.hbm [resolvable:$true] %s561_s23 }
 0x100   : > { %s4093_s28 = sshra.s32 %s562_s23, 4  ;;  %s4094_s28 = int_to_ptr.hbm [resolvable:$true] %s4093_s28 }
 0x101   : > { %s4095_s24 = scalar_lea.hbm %s4094_s28, 1  ;;  %p4101_p5 = scmp.lt.s32.totalorder %s4094_s28, %s5992_s3 }
 0x102   : > { %p4096_p1 = scmp.ne.s32.totalorder %s4094_s28, %s4095_s24  ;;  %p4102_p13 = scmp.lt.s32.totalorder %s4100_s14, %s4095_s24 }
 0x104   : > { %p4098_p8 = pnand %p4097_p2, %p4096_p1  ;;  %p4103_p0 = por %p4102_p13, %p4101_p5 }
 0x106   : > { %p4099_p3 = pneg %p4098_p8 }
 0x108   : > { %p4104_p10 = pnand %p4103_p0, %p4099_p3 }
 0x10a   : > { %4107 = shalt.err (!%p4104_p10)
}
 0x10b   : > { %s5995_s26 = scalar_lea.sflag [#allocation12], %s5980_s5  ;;  %p5996_p1 = scmp.eq.s32.totalorder %s4625_s17, 0 }
 0x10c   : > { %3631 = dma.hbm_to_vmem [thread:$0]  (!%p4997_p4), %s562_s23, 16, %s564_s15, %s5995_s26  }
 0x10d   : > { %p5997_p10 = scmp.ne.s32.totalorder %s5985_s8, %s5986_s21  ;;  %s600_s28 = sand.u32 1, %s5984_s6  }
 0x10e   : > { %s304_s24 = ssub.s32 %s302_s20, %s303_s27  ;;  %s6000_s22 = sld [smem:[#allocation45_spill]] }
 0x10f   : > { %p5034_p2 = por %p5997_p10, %p5996_p1  ;;  %s6001_s19 = sld [smem:[#allocation46_spill]] }
 0x110   : > { %s3358_s14 = sshll.u32 %s600_s28, 5  ;;  %p305_p8 = scmp.eq.s32.totalorder %s304_s24, 0 }
 0x111   : > { %s5998_s0 = scalar_select %p5034_p2, 1, 0 }
 0x112   : > { %s6002_s11 = sld [smem:[#allocation44_spill]]  ;;  %s6098_s6 = smov (!%p305_p8, %s5984_s6), %s307_s2 }
 0x113   : > { %5999 = sst [smem:[#allocation52_spill]] %s5998_s0  ;;  %p6004_p4 = scmp.lt.s32.totalorder %s4415_s10, 8 }
 0x114   : > { %s3592_s9 = scalar_select %p5013_p7, [#allocation5], [#allocation25] }
 0x115   : > { %6003 = sst [smem:[#allocation72_spill]] %s6098_s6  ;;  %p6005_p3 = pmov %p6004_p4 }
 0x116   : > { %s3593_s23 = scalar_select %p5013_p7, %s4415_s10, 0 }
 0x117   : > { %s6100_s9 = smov (!%p6004_p4, %s3592_s9), [#allocation33]  ;;  %p6006_p5 = pmov %p6005_p3 }
 0x118   : > { %s6102_s23 = smov (!%p6005_p3, %s3593_s23), 0  ;;  %s602_s15 = scalar_lea.vmem [#allocation16], %s3358_s14 }
 0x119   : > { %p5055_p13 = pnand %p6006_p5, %p5013_p7  ;;  %s603_s21 = sld [smem:[%s6100_s9 + %s6102_s23]] }
 0x11a   : > { %s5059_s20 = sshll.u32 %s602_s15, 4  ;;  %s5062_s27 = sld [smem:[#allocation5 + %s4415_s10]]  ;;  %s612_s20 = int_to_ptr.vmem [resolvable:$true] %s5059_s20 }
 0x11b   : > { %s331_s2 = sld [smem:[#allocation5 + %s5912_s7]]  ;;  %p348_p7 = scmp.ne.s32.totalorder %s6000_s22, %s6002_s11 }
 0x11c   : > { %s6008_s4 = sld [smem:[#allocation82_spill]]  ;;  %s335_s0 = sadd.s32 1, %s6001_s19 }
 0x11d   : > { %p5076_p10 = por %p348_p7, %p5996_p1  ;;  %p4127_p4 = pneg %p5055_p13 }
 0x11f   : > { %s3571_s26 = sshll.u32 %s603_s21, 5 }
 0x122   : > { %s608_s3 = scalar_lea.hbm %s6008_s4, %s3571_s26  ;;  %s4130_s11 = scalar_lea.hbm %s6008_s4, 64 }
 0x123   : > { %s609_s6 = sshll.u32 %s608_s3, 4  ;;  %s610_s6 = int_to_ptr.hbm [resolvable:$true] %s609_s6 }
 0x124   : > { %s4123_s9 = sshra.s32 %s610_s6, 4  ;;  %s4124_s9 = int_to_ptr.hbm [resolvable:$true] %s4123_s9 }
 0x125   : > { %s4125_s23 = scalar_lea.hbm %s4124_s9, 32  ;;  %p4131_p0 = scmp.lt.s32.totalorder %s4124_s9, %s6008_s4 }
 0x126   : > { %p4126_p8 = scmp.ne.s32.totalorder %s4124_s9, %s4125_s23  ;;  %p4132_p7 = scmp.lt.s32.totalorder %s4130_s11, %s4125_s23 }
 0x128   : > { %p4128_p3 = pnand %p4127_p4, %p4126_p8  ;;  %p4133_p1 = por %p4132_p7, %p4131_p0 }
 0x12a   : > { %p4129_p5 = pneg %p4128_p3 }
 0x12c   : > { %p4134_p2 = pnand %p4133_p1, %p4129_p5 }
 0x12e   : > { %4137 = shalt.err (!%p4134_p2)
}
 0x12f   : > { %s6010_s28 = scalar_lea.sflag [#allocation15], %s5980_s5  ;;  %s332_s24 = ssub.s32 %s5062_s27, %s331_s2 }
 0x130   : > { %3641 = dma.hbm_to_vmem [thread:$0]  (!%p5055_p13), %s610_s6, 512, %s612_s20, %s6010_s28, %s5979_s13, %s5979_s13, %s5978_s30  }
 0x131   : > { %p6011_p2 = scmp.eq.s32.totalorder %s4415_s10, 0  ;;  %p6012_p0 = scmp.ne.s32.totalorder %s6001_s19, %s6000_s22 }
 0x132   : > { %p333_p4 = scmp.eq.s32.totalorder %s332_s24, 0  ;;  %s621_s8 = sand.u32 1, %s6001_s19  }
 0x133   : > { %p344_p8 = por %p6012_p0, %p6011_p2  ;;  %p6013_p3 = scmp.lt.s32.totalorder %s4415_s10, 8 }
 0x134   : > { %s6104_s19 = smov (!%p333_p4, %s6001_s19), %s335_s0  ;;  %s624_s13 = scalar_lea.vmem [#allocation17], %s621_s8 }
 0x135   : > { %p5104_p5 = pnand %p6013_p3, %p344_p8  ;;  %p6015_p7 = pmov %p6013_p3 }
 0x136   : > { %s3595_s9 = scalar_select %p344_p8, [#allocation5], [#allocation26] }
 0x137   : > { %s3596_s23 = scalar_select %p344_p8, %s4415_s10, 0 }
 0x138   : > { %s6106_s9 = smov (!%p6015_p7, %s3595_s9), [#allocation34]  ;;  %p6016_p1 = pmov %p6013_p3 }
 0x139   : > { %s632_s6 = sshll.u32 %s624_s13, 4  ;;  %s6017_s27 = sld [smem:[#allocation83_spill]]  ;;  %s633_s6 = int_to_ptr.vmem [resolvable:$true] %s632_s6 }
 0x13a   : > { %s6108_s23 = smov (!%p6016_p1, %s3596_s23), 0  ;;  %s622_s11 = scalar_lea.sflag [#allocation18], %s621_s8 }
 0x13b   : > { %s625_s30 = sld [smem:[%s6106_s9 + %s6108_s23]]  ;;  %p4157_p2 = pneg %p5104_p5 }
 0x13f   : > { %s6018_s2 = smov %s6017_s27 }
 0x140   : > { %s4160_s28 = scalar_lea.hbm %s6018_s2, 2 }
 0x141   : > { %s628_s21 = scalar_lea.hbm %s6017_s27, %s625_s30 }
 0x142   : > { %s630_s15 = sshll.u32 %s628_s21, 4  ;;  %s631_s15 = int_to_ptr.hbm [resolvable:$true] %s630_s15 }
 0x143   : > { %s4153_s0 = sshra.s32 %s631_s15, 4  ;;  %s4154_s0 = int_to_ptr.hbm [resolvable:$true] %s4153_s0 }
 0x144   : > { %s4155_s3 = scalar_lea.hbm %s4154_s0, 1  ;;  %p4161_p4 = scmp.lt.s32.totalorder %s4154_s0, %s6018_s2 }
 0x145   : > { %p4156_p13 = scmp.ne.s32.totalorder %s4154_s0, %s4155_s3  ;;  %p4162_p3 = scmp.lt.s32.totalorder %s4160_s28, %s4155_s3 }
 0x147   : > { %p4158_p0 = pnand %p4157_p2, %p4156_p13  ;;  %p4163_p7 = por %p4162_p3, %p4161_p4 }
 0x149   : > { %p4159_p8 = pneg %p4158_p0 }
 0x14b   : > { %p4164_p1 = pnand %p4163_p7, %p4159_p8 }
 0x14d   : > { %4167 = shalt.err (!%p4164_p1)
}
 0x14e   : > { %3646 = dma.hbm_to_vmem [thread:$0]  (!%p5104_p5), %s631_s15, 16, %s633_s6, %s622_s11  }
 0x14f   : > { %641 = sbr.rel (%p4680_p11) target bundleno = 11626 (0x2d6a), region = 64  ;;  %s643_s23 = sand.u32 (!%p4680_p11), 1, %s4407_s1  }
 0x150   : > { %s3362_s30 = sshll.u32 (!%p4680_p11), %s643_s23, 8  ;;  %s644_s13 = scalar_lea.sflag (!%p4680_p11), [#allocation7], %s643_s23 }
 0x151   : > { %s5132_s22 = scalar_lea.vmem (!%p4680_p11), [#allocation6], %s3362_s30 }
 0x154   : > { %4286 = dma.done.wait (%p4841_p9), %s644_s13, 4096  }
 0x155   : > { %4288 = vsyncadd (%p4841_p9), %s644_s13, 4294963200  ;;  %s6020_s20 = sld [smem:[#allocation59_spill]]  ;;  %s653_s5 = sand.u32 1, %s4625_s17  }
 0x156   : > { %s654_s15 = scalar_lea.sflag [#allocation9], %s653_s5 }
 0x15b   : > { %s655_s6 = sand.u32 1, %s6020_s20  }
 0x15c   : > { %s3363_s21 = sshll.u32 %s655_s6, 3 }
 0x15d   : > { %s5140_s11 = scalar_lea.vmem [#allocation8], %s3363_s21 }
 0x15e   : > { %4290 = dma.done.wait (%p4647_p6), %s654_s15, 128  }
 0x15f   : > { %4292 = vsyncadd (%p4647_p6), %s654_s15, 4294967168  ;;  %s6022_s0 = sld [smem:[#allocation57_spill]]  ;;  %p6023_p11 = scmp.ne.s32.totalorder %s5962_s12, 0 }
 0x165   : > { %s665_s3 = sand.u32 1, %s6022_s0  }
 0x166   : > { %s3364_s10 = sshll.u32 %s665_s3, 5 }
 0x167   : > { %s5147_s16 = scalar_lea.vmem [#allocation10], %s3364_s10 }
 0x168   : > { %4294 = dma.done.wait (%p6023_p11), %s654_s15, 512  }
 0x169   : > { %4296 = vsyncadd (%p6023_p11), %s654_s15, 4294966784  ;;  %s675_s26 = sand.u32 1, %s4371_s29   ;;  %s674_s28 = scalar_lea.sflag [#allocation12], %s653_s5 }
 0x16a   : > { %s5154_s24 = scalar_lea.vmem [#allocation11], %s675_s26  ;;  %p6024_p9 = scmp.ne.s32.totalorder %s5926_s25, 0 }
 0x16c   : > { %4298 = dma.done.wait (%p6024_p9), %s674_s28, 16  }
 0x16d   : > { %4300 = vsyncadd (%p6024_p9), %s674_s28, 4294967280  ;;  %s6025_s9 = sld [smem:[#allocation53_spill]] }
 0x173   : > { %s684_s8 = sand.u32 1, %s6025_s9  }
 0x174   : > { %s5161_s23 = scalar_lea.vmem [#allocation13], %s684_s8 }
 0x175   : > { %4302 = dma.done.wait (%p4958_p12), %s674_s28, 16  }
 0x176   : > { %4304 = vsyncadd (%p4958_p12), %s674_s28, 4294967280  ;;  %s6026_s12 = sld [smem:[#allocation50_spill]]  ;;  %s692_s20 = scalar_lea.sflag [#allocation15], %s653_s5 }
 0x177   : > { %s6027_s30 = sld [smem:[#allocation64_spill]] }
 0x17c   : > { %s693_s13 = sand.u32 1, %s6026_s12  }
 0x17d   : > { %s5168_s27 = scalar_lea.vmem [#allocation14], %s693_s13  ;;  %p6028_p6 = scmp.ne.s32.totalorder %s6027_s30, 0 }
 0x17f   : > { %4306 = dma.done.wait (%p6028_p6), %s692_s20, 16  }
 0x180   : > { %4308 = vsyncadd (%p6028_p6), %s692_s20, 4294967280  ;;  %s6029_s25 = sld [smem:[#allocation48_spill]] }
 0x181   : > { %s6030_s6 = sld [smem:[#allocation52_spill]] }
 0x186   : > { %s702_s21 = sand.u32 1, %s6029_s25  }
 0x187   : > { %s3365_s15 = sshll.u32 %s702_s21, 5  ;;  %p6031_p5 = scmp.ne.s32.totalorder %s6030_s6, 0 }
 0x188   : > { %s5175_s0 = scalar_lea.vmem [#allocation16], %s3365_s15 }
 0x189   : > { %4310 = dma.done.wait (%p6031_p5), %s692_s20, 512  }
 0x18a   : > { %4312 = vsyncadd (%p6031_p5), %s692_s20, 4294966784  ;;  %s6032_s18 = sld [smem:[#allocation45_spill]] }
 0x190   : > { %s710_s5 = sand.u32 1, %s6032_s18  }
 0x191   : > { %s711_s3 = scalar_lea.sflag [#allocation18], %s710_s5  ;;  %s5182_s10 = scalar_lea.vmem [#allocation17], %s710_s5 }
 0x192   : > { %4314 = dma.done.wait (%p5076_p10), %s711_s3, 16  }
 0x193   : > { %4316 = vsyncadd (%p5076_p10), %s711_s3, 4294967280  ;;  %p810_p12 = scmp.lt.s32.totalorder %s4625_s17, 7  ;;  %s6033_s8 = sld [smem:[#allocation73_spill]]  ;;  %vm849_vm0 = vcmask 253952   ;;  %v5198_v3 = vld [vmem:[%s5132_s22 + $0x18] sm:$0xff]  ;;  %v5201_v4 = vld [vmem:[%s5132_s22 + $0x10] sm:$0xff] }
 0x194   : > { %902 = vmatpush.msra.mxu0 %v5198_v3  ;;  %v5205_v5 = vld [vmem:[%s5132_s22 + $0x8] sm:$0xff]  ;;  %v5209_v6 = vld [vmem:[%s5132_s22] sm:$0xff]  ;;  %v5214_v11 = vld [vmem:[%s5132_s22 + $0x38] sm:$0xff]  ;;  %vm886_vm7 = vcmask 261120   ;;  %s817_s14 = sld [smem:[#allocation5 + %s4625_s17]] }
 0x195   : > { %s5190_s26 = scalar_select %p810_p12, %s4625_s17, 7  ;;  %935 = vmatpush.msra.mxu1 %v5214_v11  ;;  %v5219_v31 = vld [vmem:[%s5132_s22 + $0x30] sm:$0xff]  ;;  %v5223_v32 = vld [vmem:[%s5132_s22 + $0x28] sm:$0xff]  ;;  %v5227_v33 = vld [vmem:[%s5132_s22 + $0x20] sm:$0xff] }
 0x196   : > { %903 = vmatpush.msra.mxu0 %v5201_v4  ;;  %v5231_v34 = vld [vmem:[%s5147_s16 + $0x18] sm:$0xff]  ;;  %v5237_v40 = vld [vmem:[%s5147_s16 + $0x10] sm:$0xff]  ;;  %v5241_v41 = vld [vmem:[%s5147_s16 + $0x8] sm:$0xff]  ;;  %s6034_s25 = sld [smem:[#allocation78_spill]] }
 0x197   : > { %936 = vmatpush.msra.mxu1 %v5219_v31  ;;  %966 = vmatpush.msra.mxu2 %v5231_v34  ;;  %v885_v35 = vld [vmem:[%s5140_s11] sm:$0x1]  ;;  %v5245_v42 = vld [vmem:[%s5147_s16] sm:$0xff]  ;;  %v3378_v43 = vld [vmem:[%s5140_s11 + $0x1] sm:$0x1]  ;;  %s6035_s21 = sld [smem:[#allocation84_spill]] }
 0x198   : > { %904 = vmatpush.msra.mxu0 %v5205_v5  ;;  %v950_v48 = vld [vmem:[%s5154_s24] sm:$0x1]  ;;  %v5257_v53 = vld [vmem:[%s5132_s22 + $0x58] sm:$0xff]  ;;  %v5264_v55 = vld [vmem:[%s5132_s22 + $0x48] sm:$0xff]  ;;  %s825_s18 = sld [smem:[#allocation5 + %s4625_s17]] }
 0x199   : > { %s812_s12 = scalar_lea.vmem %s6033_s8, %s5190_s26  ;;  %937 = vmatpush.msra.mxu1 %v5223_v32  ;;  %967 = vmatpush.msra.mxu2 %v5237_v40  ;;  %v5260_v54 = vld [vmem:[%s5132_s22 + $0x50] sm:$0xff]  ;;  %v5268_v56 = vld [vmem:[%s5132_s22 + $0x40] sm:$0xff]  ;;  %v5277_v61 = vld [vmem:[%s5132_s22 + $0x78] sm:$0xff]  ;;  %s6037_s9 = sld [smem:[#allocation85_spill]] }
 0x19a   : > { %v847_v0 = vld [vmem:[%s812_s12] sm:$0x1]  ;;  %905 = vmatpush.msra.mxu0 %v5209_v6  ;;  %1028 = vmatpush.msra.mxu3 %v5257_v53  ;;  %p818_p10 = scmp.lt.s32.totalorder %s817_s14, 1 }
 0x19b   : > { %v848_v1 = vmul.f32 %v847_v0, %v847_v0  ;;  %938 = vmatpush.msra.mxu1 %v5227_v33  ;;  %968 = vmatpush.msra.mxu2 %v5241_v41 }
 0x19c   : > { %1029 = vmatpush.msra.mxu3 %v5260_v54  ;;  %1061 = vmatpush.msrb.mxu0 %v5277_v61  ;;  %s6110_s14 = smov (!%p818_p10, %s817_s14), 1 }
 0x19d   : > { %v850_v2 = vsel %vm849_vm0, %v848_v1, 0.0  ;;  %969 = vmatpush.msra.mxu2 %v5245_v42  ;;  %s3572_s30 = sshll.u32 %s6110_s14, 5  ;;  %s6038_s14 = sld [smem:[#allocation86_spill]] }
 0x19e   : > { %851 = vadd.xlane.f32.xlu0 %v850_v2  ;;  %1030 = vmatpush.msra.mxu3 %v5264_v55  ;;  %s5301_s6 = scalar_lea.vmem %s6034_s25, %s3572_s30  ;;  %p826_p13 = scmp.lt.s32.totalorder %s825_s18, 1 }
 0x19f   : > { %1153 = vmatpush.msrb.mxu2 %v5198_v3 }
 0x1a0   : > { %1031 = vmatpush.msra.mxu3 %v5268_v56  ;;  %s6112_s18 = smov (!%p826_p13, %s825_s18), 1 }
 0x1a1   : > { %1154 = vmatpush.msrb.mxu2 %v5201_v4  ;;  %s3573_s5 = sshll.u32 %s6112_s18, 5 }
 0x1a2   : > { %1184 = vmatpush.msrb.mxu3 %v5214_v11 }
 0x1a3   : > { %1155 = vmatpush.msrb.mxu2 %v5205_v5 }
 0x1a4   : > { %1185 = vmatpush.msrb.mxu3 %v5219_v31 }
 0x1a5   : > { %1156 = vmatpush.msrb.mxu2 %v5209_v6 }
 0x1a6   : > { %1186 = vmatpush.msrb.mxu3 %v5223_v32 }
 0x1a8   : > { %1187 = vmatpush.msrb.mxu3 %v5227_v33 }
 0x211   : > { %v852_v7 = vpop.xlane.xlu0 %851 }
 0x212   : > { %3863 = vrsqrt.f32 %v852_v7  ;;  %vm860_vm1 = vcmp.eq.f32.partialorder %v852_v7, inf  ;;  %v863_v16 = vand.u32 2147483648, %v852_v7  ;;  %vm862_vm2 = vcmp.eq.f32.partialorder %v852_v7, 0.0 }
 0x218   : > { %v3864_v8 = vpop.eup %3863 }
 0x219   : > { %v854_v9 = vmul.f32 %v3864_v8, %v852_v7 }
 0x21b   : > { %v855_v10 = vmul.f32 %v3864_v8, %v854_v9 }
 0x21d   : > { %v856_v12 = vmul.f32 0.5, %v855_v10 }
 0x21f   : > { %v857_v13 = vsub.f32 1.5, %v856_v12 }
 0x221   : > { %v858_v14 = vmul.f32 %v3864_v8, %v857_v13 }
 0x223   : > { %v859_v15 = vmul.f32 %v858_v14, %v852_v7 }
 0x225   : > { %v861_v17 = vsel %vm860_vm1, %v852_v7, %v859_v15 }
 0x226   : > { %v864_v18 = vsel %vm862_vm2, %v863_v16, %v861_v17 }
 0x227   : > { %v865_v19 = vadd.f32 1e-08, %v864_v18 }
 0x229   : > { %3865 = vrcp.f32 %v865_v19  ;;  %v877_v23 = vand.u32 2147483648, %v865_v19  ;;  %v875_v25 = vand.u32 2147483647, %v865_v19  ;;  %vm871_vm4 = vweird.f32 %v865_v19 }
 0x22b   : > { %v878_v27 = vor.u32 1.1754944e-38, %v877_v23  ;;  %vm876_vm6 = vcmp.eq.f32.partialorder %v875_v25, 8.507059e+37  ;;  %v5292_v23 = vld [vmem:[%s5132_s22 + $0x68] sm:$0xff] }
 0x22c   : > { %v5307_v25 = vld [vmem:[%s5301_s6 + $0x18] sm:$0xff] }
 0x22d   : > { %1092 = vmatpush.msrb.mxu1 %v5307_v25 }
 0x22f   : > { %v3866_v20 = vpop.eup %3865 }
 0x230   : > { %v867_v21 = vmul.f32 %v3866_v20, %v865_v19  ;;  %vm872_vm3 = vweird.f32 %v3866_v20 }
 0x231   : > { %vm873_vm5 = vmor %vm871_vm4, %vm872_vm3  ;;  %vm1100_vm3 = vcmask 8192  }
 0x232   : > { %v868_v22 = vsub.f32 1.0, %v867_v21 }
 0x234   : > { %v869_v24 = vmul.f32 %v3866_v20, %v868_v22  ;;  %v5287_v22 = vld [vmem:[%s5132_s22 + $0x70] sm:$0xff] }
 0x235   : > { %1062 = vmatpush.msrb.mxu0 %v5287_v22 }
 0x236   : > { %v870_v26 = vadd.f32 %v3866_v20, %v869_v24  ;;  %v5296_v24 = vld [vmem:[%s5132_s22 + $0x60] sm:$0xff] }
 0x237   : > { %1063 = vmatpush.msrb.mxu0 %v5292_v23 }
 0x238   : > { %v874_v28 = vsel %vm873_vm5, %v3866_v20, %v870_v26  ;;  %v3385_v26 = vld [vmem:[%s5140_s11 + $0x2] sm:$0x1] }
 0x239   : > { %v879_v29 = vsel %vm876_vm6, %v878_v27, %v874_v28  ;;  %1064 = vmatpush.msrb.mxu0 %v5296_v24 }
 0x23a   : > { %v880_v30 = vmul.f32 %v879_v29, %v847_v0 }
 0x23c   : > { %3373 = vmatmul.msk.f32.vlgmr.msra.gmra.mxu0 %vm886_vm7, %v880_v30 }
 0x23d   : > { %1215 = vmatpush.msra.mxu0 %v5231_v34 }
 0x23f   : > { %1216 = vmatpush.msra.mxu0 %v5237_v40 }
 0x241   : > { %1217 = vmatpush.msra.mxu0 %v5241_v41 }
 0x243   : > { %1218 = vmatpush.msra.mxu0 %v5245_v42 }
 0x2b9   : > { %v907_v36 = vpop.f32.mrf.mxu0 }
 0x2ba   : > { %v908_v37 = vadd.f32 %v907_v36, %v885_v35  ;;  %v5322_v35 = vld [vmem:[%s5301_s6 + $0x10] sm:$0xff]  ;;  %v5327_v36 = vld [vmem:[%s5301_s6 + $0x8] sm:$0xff] }
 0x2bb   : > { %1093 = vmatpush.msrb.mxu1 %v5322_v35 }
 0x2bc   : > { %v911_v38 = vmul.f32 0.2, %v908_v37  ;;  %vm910_vm8 = vcmp.ge.f32.partialorder %v908_v37, 0.0 }
 0x2bd   : > { %1094 = vmatpush.msrb.mxu1 %v5327_v36 }
 0x2be   : > { %v912_v39 = vsel %vm910_vm8, %v908_v37, %v911_v38  ;;  %v5331_v37 = vld [vmem:[%s5301_s6] sm:$0xff]  ;;  %v3391_v38 = vld [vmem:[%s5140_s11 + $0x3] sm:$0x1] }
 0x2bf   : > { %3379 = vmatmul.msk.f32.vlgmr.msra.gmra.mxu1 %vm886_vm7, %v912_v39 }
 0x2c0   : > { %1095 = vmatpush.msrb.mxu1 %v5331_v37 }
 0x2c2   : > { %1275 = vmatpush.msra.mxu1 %v5257_v53 }
 0x2c4   : > { %1276 = vmatpush.msra.mxu1 %v5260_v54 }
 0x2c6   : > { %1277 = vmatpush.msra.mxu1 %v5264_v55 }
 0x2c8   : > { %1278 = vmatpush.msra.mxu1 %v5268_v56 }
 0x33c   : > { %v940_v44 = vpop.f32.mrf.mxu1 }
 0x33d   : > { %v941_v45 = vadd.f32 %v3378_v43, %v940_v44 }
 0x33f   : > { %v944_v46 = vmul.f32 0.2, %v941_v45  ;;  %vm943_vm9 = vcmp.ge.f32.partialorder %v941_v45, 0.0 }
 0x341   : > { %v945_v47 = vsel %vm943_vm9, %v941_v45, %v944_v46  ;;  %v1076_v46 = vld [vmem:[%s5161_s23] sm:$0x1] }
 0x342   : > { %3380 = vmatmul.msk.f32.vlgmr.msra.gmra.mxu2 %vm886_vm7, %v945_v47 }
 0x343   : > { %1306 = vmatpush.msra.mxu2 %v5277_v61 }
 0x345   : > { %1307 = vmatpush.msra.mxu2 %v5287_v22 }
 0x347   : > { %1308 = vmatpush.msra.mxu2 %v5292_v23 }
 0x349   : > { %1309 = vmatpush.msra.mxu2 %v5296_v24 }
 0x3c5   : > { %v971_v49 = vpop.f32.mrf.mxu2 }
 0x3c6   : > { %v972_v50 = vadd.f32 %v971_v49, %v950_v48 }
 0x3c8   : > { %v974_v51 = vmul.f32 %v972_v50, %v972_v50 }
 0x3ca   : > { %v975_v52 = vsel %vm849_vm0, %v974_v51, 0.0 }
 0x3cb   : > { %976 = vadd.xlane.f32.xlu0 %v975_v52 }
 0x43e   : > { %v977_v57 = vpop.xlane.xlu0 %976 }
 0x43f   : > { %3867 = vrsqrt.f32 %v977_v57  ;;  %vm985_vm10 = vcmp.eq.f32.partialorder %v977_v57, inf  ;;  %v988_v2 = vand.u32 2147483648, %v977_v57  ;;  %vm987_vm11 = vcmp.eq.f32.partialorder %v977_v57, 0.0 }
 0x445   : > { %v3868_v58 = vpop.eup %3867 }
 0x446   : > { %v979_v59 = vmul.f32 %v3868_v58, %v977_v57 }
 0x448   : > { %v980_v60 = vmul.f32 %v3868_v58, %v979_v59  ;;  %v4422_v59 = vmov 0  }
 0x449   : > { %3854 = vset.pattern.permute.xlu2 %v4422_v59  ;;  %3855 = vset.pattern.permute.xlu0 %v4422_v59 }
 0x44a   : > { %v981_v62 = vmul.f32 0.5, %v980_v60  ;;  %3856 = vset.pattern.permute.xlu1 %v4422_v59 }
 0x44c   : > { %v982_v63 = vsub.f32 1.5, %v981_v62 }
 0x44e   : > { %v983_v0 = vmul.f32 %v3868_v58, %v982_v63 }
 0x450   : > { %v984_v1 = vmul.f32 %v983_v0, %v977_v57 }
 0x452   : > { %v986_v7 = vsel %vm985_vm10, %v977_v57, %v984_v1 }
 0x453   : > { %v989_v8 = vsel %vm987_vm11, %v988_v2, %v986_v7 }
 0x454   : > { %v990_v9 = vadd.f32 1e-08, %v989_v8 }
 0x456   : > { %3869 = vrcp.f32 %v990_v9  ;;  %v1002_v14 = vand.u32 2147483648, %v990_v9  ;;  %v1000_v16 = vand.u32 2147483647, %v990_v9  ;;  %vm996_vm13 = vweird.f32 %v990_v9 }
 0x458   : > { %v1003_v18 = vor.u32 1.1754944e-38, %v1002_v14  ;;  %vm1001_vm15 = vcmp.eq.f32.partialorder %v1000_v16, 8.507059e+37  ;;  %v1137_v16 = vld [vmem:[%s5140_s11] sm:$0x1] }
 0x45c   : > { %v3870_v10 = vpop.eup %3869 }
 0x45d   : > { %v992_v12 = vmul.f32 %v3870_v10, %v990_v9  ;;  %vm997_vm12 = vweird.f32 %v3870_v10 }
 0x45e   : > { %vm998_vm14 = vmor %vm996_vm13, %vm997_vm12 }
 0x45f   : > { %v993_v13 = vsub.f32 1.0, %v992_v12 }
 0x461   : > { %v994_v15 = vmul.f32 %v3870_v10, %v993_v13 }
 0x463   : > { %v995_v17 = vadd.f32 %v3870_v10, %v994_v15 }
 0x465   : > { %v999_v19 = vsel %vm998_vm14, %v3870_v10, %v995_v17 }
 0x466   : > { %v1004_v20 = vsel %vm1001_vm15, %v1003_v18, %v999_v19 }
 0x467   : > { %v5281_v21 = vmul.f32 %v1004_v20, %v972_v50 }
 0x469   : > { %3386 = vmatmul.msk.f32.vlgmr.msra.gmra.mxu3 %vm886_vm7, %v5281_v21 }
 0x46a   : > { %1337 = vmatpush.msra.mxu3 %v5307_v25 }
 0x46c   : > { %1338 = vmatpush.msra.mxu3 %v5322_v35 }
 0x46e   : > { %1339 = vmatpush.msra.mxu3 %v5327_v36 }
 0x470   : > { %1340 = vmatpush.msra.mxu3 %v5331_v37 }
 0x4ec   : > { %v1033_v27 = vpop.f32.mrf.mxu3 }
 0x4ed   : > { %v1034_v28 = vadd.f32 %v3385_v26, %v1033_v27 }
 0x4ef   : > { %vm1036_vm1 = vcmp.ge.f32.partialorder %v1034_v28, 0.0  ;;  %v1037_v29 = vmul.f32 0.2, %v1034_v28 }
 0x4f1   : > { %v1038_v30 = vsel %vm1036_vm1, %v1034_v28, %v1037_v29 }
 0x4f2   : > { %3392 = vmatmul.msk.f32.vlgmr.msrb.gmra.mxu0 %vm886_vm7, %v1038_v30  ;;  %v1199_v30 = vld [vmem:[%s5154_s24] sm:$0x1] }
 0x4f3   : > { %1397 = vmatpush.msrb.mxu0 %v5198_v3 }
 0x4f5   : > { %1398 = vmatpush.msrb.mxu0 %v5201_v4 }
 0x4f7   : > { %1399 = vmatpush.msrb.mxu0 %v5205_v5 }
 0x4f9   : > { %1400 = vmatpush.msrb.mxu0 %v5209_v6 }
 0x56f   : > { %v1066_v39 = vpop.f32.mrf.mxu0 }
 0x570   : > { %v1067_v43 = vadd.f32 %v3391_v38, %v1066_v39 }
 0x572   : > { %vm1069_vm2 = vcmp.ge.f32.partialorder %v1067_v43, 0.0  ;;  %v1070_v44 = vmul.f32 0.2, %v1067_v43 }
 0x574   : > { %v1071_v45 = vsel %vm1069_vm2, %v1067_v43, %v1070_v44 }
 0x575   : > { %3393 = vmatmul.msk.f32.vlgmr.msrb.gmra.mxu1 %vm886_vm7, %v1071_v45 }
 0x576   : > { %1428 = vmatpush.msrb.mxu1 %v5214_v11 }
 0x578   : > { %1429 = vmatpush.msrb.mxu1 %v5219_v31 }
 0x57a   : > { %1430 = vmatpush.msrb.mxu1 %v5223_v32 }
 0x57c   : > { %1431 = vmatpush.msrb.mxu1 %v5227_v33 }
 0x5f2   : > { %v1097_v47 = vpop.f32.mrf.mxu1 }
 0x5f3   : > { %v1098_v48 = vadd.f32 %v1097_v47, %v1076_v46 }
 0x5f5   : > { %v1101_v49 = vsel %vm1100_vm3, %v1098_v48, -inf }
 0x5f6   : > { %1102 = vmax.xlane.f32.xlu1 %v1101_v49 }
 0x669   : > { %v1103_v50 = vpop.xlane.xlu1 %1102 }
 0x66a   : > { %v1104_v51 = vsub.f32 %v1098_v48, %v1103_v50 }
 0x66c   : > { %v1105_v52 = vmul.f32 1.442695, %v1104_v51 }
 0x66e   : > { %3871 = vpow2.f32 %v1105_v52 }
 0x674   : > { %v3872_v57 = vpop.eup %3871 }
 0x675   : > { %v1107_v58 = vsel %vm1100_vm3, %v3872_v57, 0.0 }
 0x676   : > { %1108 = vadd.xlane.f32.xlu1 %v1107_v58 }
 0x6e9   : > { %v1109_v60 = vpop.xlane.xlu1 %1108 }
 0x6ea   : > { %3873 = vrcp.f32 %v1109_v60  ;;  %v1121_v1 = vand.u32 2147483648, %v1109_v60  ;;  %v1119_v7 = vand.u32 2147483647, %v1109_v60  ;;  %vm1115_vm5 = vweird.f32 %v1109_v60 }
 0x6ec   : > { %v1122_v9 = vor.u32 1.1754944e-38, %v1121_v1  ;;  %vm1120_vm8 = vcmp.eq.f32.partialorder %v1119_v7, 8.507059e+37 }
 0x6f0   : > { %v3874_v62 = vpop.eup %3873 }
 0x6f1   : > { %v1111_v63 = vmul.f32 %v3874_v62, %v1109_v60  ;;  %vm1116_vm4 = vweird.f32 %v3874_v62 }
 0x6f2   : > { %vm1117_vm6 = vmor %vm1115_vm5, %vm1116_vm4 }
 0x6f3   : > { %v1112_v0 = vsub.f32 1.0, %v1111_v63 }
 0x6f5   : > { %v1113_v2 = vmul.f32 %v3874_v62, %v1112_v0 }
 0x6f7   : > { %v1114_v8 = vadd.f32 %v3874_v62, %v1113_v2 }
 0x6f9   : > { %v1118_v10 = vsel %vm1117_vm6, %v3874_v62, %v1114_v8 }
 0x6fa   : > { %v1123_v12 = vsel %vm1120_vm8, %v1122_v9, %v1118_v10 }
 0x6fb   : > { %v1124_v13 = vmul.f32 %v3872_v57, %v1123_v12 }
 0x6fd   : > { %1127 = vperm.xlu2 %3854, %v1124_v13   ;;  %1132 = vst.msk [vmem:[#allocation3] sm:$0x1] %vm1100_vm3, %v1124_v13 }
 0x757   : > { %v1128_v14 = vpop.permute.xlu2 %1127 }
 0x758   : > { %v1130_v15 = vmul.f32 %v1128_v14, %v5281_v21  ;;  %v3399_v21 = vld [vmem:[%s5140_s11 + $0x1] sm:$0x1]  ;;  %v3406_v14 = vld [vmem:[%s5140_s11 + $0x2] sm:$0x1] }
 0x75a   : > { %1131 = vst.msk [vmem:[#allocation2] sm:$0x1] %vm849_vm0, %v1130_v15  ;;  %3394 = vmatmul.msk.f32.vlgmr.msrb.gmra.mxu2 %vm886_vm7, %v1130_v15 }
 0x75b   : > { %1459 = vmatpush.msrb.mxu2 %v5231_v34 }
 0x75d   : > { %1460 = vmatpush.msrb.mxu2 %v5237_v40 }
 0x75f   : > { %1461 = vmatpush.msrb.mxu2 %v5241_v41 }
 0x761   : > { %1462 = vmatpush.msrb.mxu2 %v5245_v42 }
 0x7dd   : > { %v1158_v17 = vpop.f32.mrf.mxu2 }
 0x7de   : > { %v1159_v18 = vadd.f32 %v1158_v17, %v1137_v16 }
 0x7e0   : > { %vm1161_vm9 = vcmp.ge.f32.partialorder %v1159_v18, 0.0  ;;  %v1162_v19 = vmul.f32 0.2, %v1159_v18 }
 0x7e2   : > { %v1163_v20 = vsel %vm1161_vm9, %v1159_v18, %v1162_v19  ;;  %v3412_v19 = vld [vmem:[%s5140_s11 + $0x3] sm:$0x1] }
 0x7e3   : > { %3400 = vmatmul.msk.f32.vlgmr.msrb.gmra.mxu3 %vm886_vm7, %v1163_v20 }
 0x7e4   : > { %1519 = vmatpush.msrb.mxu3 %v5257_v53 }
 0x7e6   : > { %1520 = vmatpush.msrb.mxu3 %v5260_v54 }
 0x7e8   : > { %1521 = vmatpush.msrb.mxu3 %v5264_v55 }
 0x7ea   : > { %1522 = vmatpush.msrb.mxu3 %v5268_v56 }
 0x866   : > { %v1189_v26 = vpop.f32.mrf.mxu3 }
 0x867   : > { %v1190_v27 = vadd.f32 %v3399_v21, %v1189_v26 }
 0x869   : > { %vm1192_vm10 = vcmp.ge.f32.partialorder %v1190_v27, 0.0  ;;  %v1193_v28 = vmul.f32 0.2, %v1190_v27 }
 0x86b   : > { %v1194_v29 = vsel %vm1192_vm10, %v1190_v27, %v1193_v28 }
 0x86c   : > { %3401 = vmatmul.msk.f32.vlgmr.msra.gmra.mxu0 %vm886_vm7, %v1194_v29 }
 0x86d   : > { %1550 = vmatpush.msra.mxu0 %v5277_v61 }
 0x86f   : > { %1551 = vmatpush.msra.mxu0 %v5287_v22 }
 0x871   : > { %1552 = vmatpush.msra.mxu0 %v5292_v23 }
 0x873   : > { %1553 = vmatpush.msra.mxu0 %v5296_v24 }
 0x8e9   : > { %v1220_v38 = vpop.f32.mrf.mxu0 }
 0x8ea   : > { %v1221_v39 = vadd.f32 %v1220_v38, %v1199_v30 }
 0x8ec   : > { %v1223_v43 = vmul.f32 %v1221_v39, %v1221_v39 }
 0x8ee   : > { %v1224_v44 = vsel %vm849_vm0, %v1223_v43, 0.0 }
 0x8ef   : > { %1225 = vadd.xlane.f32.xlu2 %v1224_v44 }
 0x962   : > { %v1226_v45 = vpop.xlane.xlu2 %1225 }
 0x963   : > { %3875 = vrsqrt.f32 %v1226_v45  ;;  %vm1234_vm11 = vcmp.eq.f32.partialorder %v1226_v45, inf  ;;  %v1237_v57 = vand.u32 2147483648, %v1226_v45  ;;  %vm1236_vm12 = vcmp.eq.f32.partialorder %v1226_v45, 0.0 }
 0x969   : > { %v3876_v46 = vpop.eup %3875 }
 0x96a   : > { %v1228_v47 = vmul.f32 %v3876_v46, %v1226_v45 }
 0x96c   : > { %v1229_v48 = vmul.f32 %v3876_v46, %v1228_v47 }
 0x96e   : > { %v1230_v49 = vmul.f32 0.5, %v1229_v48 }
 0x970   : > { %v1231_v50 = vsub.f32 1.5, %v1230_v49 }
 0x972   : > { %v1232_v51 = vmul.f32 %v3876_v46, %v1231_v50 }
 0x974   : > { %v1233_v52 = vmul.f32 %v1232_v51, %v1226_v45 }
 0x976   : > { %v1235_v58 = vsel %vm1234_vm11, %v1226_v45, %v1233_v52 }
 0x977   : > { %v1238_v59 = vsel %vm1236_vm12, %v1237_v57, %v1235_v58  ;;  %v1381_v57 = vld [vmem:[%s5140_s11] sm:$0x1] }
 0x978   : > { %v1239_v60 = vadd.f32 1e-08, %v1238_v59 }
 0x97a   : > { %3877 = vrcp.f32 %v1239_v60  ;;  %v1251_v1 = vand.u32 2147483648, %v1239_v60  ;;  %v1249_v7 = vand.u32 2147483647, %v1239_v60  ;;  %vm1245_vm14 = vweird.f32 %v1239_v60 }
 0x97c   : > { %v1252_v9 = vor.u32 1.1754944e-38, %v1251_v1  ;;  %vm1250_vm1 = vcmp.eq.f32.partialorder %v1249_v7, 8.507059e+37 }
 0x980   : > { %v3878_v62 = vpop.eup %3877 }
 0x981   : > { %v1241_v63 = vmul.f32 %v3878_v62, %v1239_v60  ;;  %vm1246_vm13 = vweird.f32 %v3878_v62 }
 0x982   : > { %vm1247_vm15 = vmor %vm1245_vm14, %vm1246_vm13 }
 0x983   : > { %v1242_v0 = vsub.f32 1.0, %v1241_v63 }
 0x985   : > { %v1243_v2 = vmul.f32 %v3878_v62, %v1242_v0 }
 0x987   : > { %v1244_v8 = vadd.f32 %v3878_v62, %v1243_v2 }
 0x989   : > { %v1248_v10 = vsel %vm1247_vm15, %v3878_v62, %v1244_v8 }
 0x98a   : > { %v1253_v12 = vsel %vm1250_vm1, %v1252_v9, %v1248_v10 }
 0x98b   : > { %v1254_v13 = vmul.f32 %v1253_v12, %v1221_v39 }
 0x98d   : > { %3407 = vmatmul.msk.f32.vlgmr.msra.gmra.mxu1 %vm886_vm7, %v1254_v13 }
 0x98e   : > { %1581 = vmatpush.msra.mxu1 %v5307_v25 }
 0x990   : > { %1582 = vmatpush.msra.mxu1 %v5322_v35 }
 0x992   : > { %1583 = vmatpush.msra.mxu1 %v5327_v36 }
 0x994   : > { %1584 = vmatpush.msra.mxu1 %v5331_v37 }
 0xa0a   : > { %v1280_v15 = vpop.f32.mrf.mxu1 }
 0xa0b   : > { %v1281_v16 = vadd.f32 %v3406_v14, %v1280_v15 }
 0xa0d   : > { %vm1283_vm2 = vcmp.ge.f32.partialorder %v1281_v16, 0.0  ;;  %v1284_v17 = vmul.f32 0.2, %v1281_v16 }
 0xa0f   : > { %v1285_v18 = vsel %vm1283_vm2, %v1281_v16, %v1284_v17 }
 0xa10   : > { %3413 = vmatmul.msk.f32.vlgmr.msra.gmra.mxu2 %vm886_vm7, %v1285_v18 }
 0xa11   : > { %1641 = vmatpush.msra.mxu2 %v5198_v3  ;;  %v1321_v3 = vld [vmem:[%s5161_s23] sm:$0x1] }
 0xa13   : > { %1642 = vmatpush.msra.mxu2 %v5201_v4 }
 0xa15   : > { %1643 = vmatpush.msra.mxu2 %v5205_v5 }
 0xa17   : > { %1644 = vmatpush.msra.mxu2 %v5209_v6 }
 0xa93   : > { %v1311_v20 = vpop.f32.mrf.mxu2 }
 0xa94   : > { %v1312_v21 = vadd.f32 %v3412_v19, %v1311_v20 }
 0xa96   : > { %vm1314_vm4 = vcmp.ge.f32.partialorder %v1312_v21, 0.0  ;;  %v1315_v26 = vmul.f32 0.2, %v1312_v21 }
 0xa98   : > { %v1316_v27 = vsel %vm1314_vm4, %v1312_v21, %v1315_v26 }
 0xa99   : > { %3414 = vmatmul.msk.f32.vlgmr.msra.gmra.mxu3 %vm886_vm7, %v1316_v27 }
 0xa9a   : > { %1672 = vmatpush.msra.mxu3 %v5214_v11 }
 0xa9c   : > { %1673 = vmatpush.msra.mxu3 %v5219_v31 }
 0xa9e   : > { %1674 = vmatpush.msra.mxu3 %v5223_v32 }
 0xaa0   : > { %1675 = vmatpush.msra.mxu3 %v5227_v33 }
 0xb1c   : > { %v1342_v4 = vpop.f32.mrf.mxu3 }
 0xb1d   : > { %v1343_v5 = vadd.f32 %v1342_v4, %v1321_v3  ;;  %v3427_v4 = vld [vmem:[%s5140_s11 + $0x2] sm:$0x1] }
 0xb1f   : > { %v1345_v6 = vsel %vm1100_vm3, %v1343_v5, -inf }
 0xb20   : > { %1346 = vmax.xlane.f32.xlu0 %v1345_v6 }
 0xb93   : > { %v1347_v28 = vpop.xlane.xlu0 %1346 }
 0xb94   : > { %v1348_v29 = vsub.f32 %v1343_v5, %v1347_v28 }
 0xb96   : > { %v1349_v30 = vmul.f32 1.442695, %v1348_v29 }
 0xb98   : > { %3879 = vpow2.f32 %v1349_v30  ;;  %v3433_v30 = vld [vmem:[%s5140_s11 + $0x3] sm:$0x1] }
 0xb9e   : > { %v3880_v38 = vpop.eup %3879 }
 0xb9f   : > { %v1351_v39 = vsel %vm1100_vm3, %v3880_v38, 0.0 }
 0xba0   : > { %1352 = vadd.xlane.f32.xlu1 %v1351_v39 }
 0xc13   : > { %v1353_v11 = vpop.xlane.xlu1 %1352 }
 0xc14   : > { %3881 = vrcp.f32 %v1353_v11  ;;  %v1365_v33 = vand.u32 2147483648, %v1353_v11  ;;  %v1363_v45 = vand.u32 2147483647, %v1353_v11  ;;  %vm1359_vm6 = vweird.f32 %v1353_v11 }
 0xc16   : > { %v1366_v47 = vor.u32 1.1754944e-38, %v1365_v33  ;;  %vm1364_vm9 = vcmp.eq.f32.partialorder %v1363_v45, 8.507059e+37 }
 0xc1a   : > { %v3882_v31 = vpop.eup %3881 }
 0xc1b   : > { %v1355_v32 = vmul.f32 %v3882_v31, %v1353_v11  ;;  %vm1360_vm5 = vweird.f32 %v3882_v31 }
 0xc1c   : > { %vm1361_vm8 = vmor %vm1359_vm6, %vm1360_vm5 }
 0xc1d   : > { %v1356_v43 = vsub.f32 1.0, %v1355_v32 }
 0xc1f   : > { %v1357_v44 = vmul.f32 %v3882_v31, %v1356_v43 }
 0xc21   : > { %v1358_v46 = vadd.f32 %v3882_v31, %v1357_v44 }
 0xc23   : > { %v1362_v48 = vsel %vm1361_vm8, %v3882_v31, %v1358_v46 }
 0xc24   : > { %v1367_v49 = vsel %vm1364_vm9, %v1366_v47, %v1362_v48 }
 0xc25   : > { %v1368_v50 = vmul.f32 %v3880_v38, %v1367_v49 }
 0xc27   : > { %1371 = vperm.xlu0 %3855, %v1368_v50   ;;  %1376 = vst.msk [vmem:[#allocation3 + $0x1] sm:$0x1] %vm1100_vm3, %v1368_v50 }
 0xc99   : > { %v1372_v51 = vpop.permute.xlu0 %1371 }
 0xc9a   : > { %v1374_v52 = vmul.f32 %v1372_v51, %v1254_v13 }
 0xc9c   : > { %1375 = vst.msk [vmem:[#allocation2 + $0x1] sm:$0x1] %vm849_vm0, %v1374_v52  ;;  %3415 = vmatmul.msk.f32.vlgmr.msrb.gmra.mxu0 %vm886_vm7, %v1374_v52 }
 0xc9d   : > { %1703 = vmatpush.msrb.mxu0 %v5231_v34  ;;  %v3420_v34 = vld [vmem:[%s5140_s11 + $0x1] sm:$0x1] }
 0xc9f   : > { %1704 = vmatpush.msrb.mxu0 %v5237_v40 }
 0xca1   : > { %1705 = vmatpush.msrb.mxu0 %v5241_v41 }
 0xca3   : > { %1706 = vmatpush.msrb.mxu0 %v5245_v42 }
 0xd19   : > { %v1402_v58 = vpop.f32.mrf.mxu0 }
 0xd1a   : > { %v1403_v59 = vadd.f32 %v1402_v58, %v1381_v57 }
 0xd1c   : > { %vm1405_vm10 = vcmp.ge.f32.partialorder %v1403_v59, 0.0  ;;  %v1406_v60 = vmul.f32 0.2, %v1403_v59 }
 0xd1e   : > { %v1407_v62 = vsel %vm1405_vm10, %v1403_v59, %v1406_v60 }
 0xd1f   : > { %3421 = vmatmul.msk.f32.vlgmr.msrb.gmra.mxu1 %vm886_vm7, %v1407_v62 }
 0xd20   : > { %1763 = vmatpush.msrb.mxu1 %v5257_v53  ;;  %v1443_v53 = vld [vmem:[%s5154_s24] sm:$0x1] }
 0xd22   : > { %1764 = vmatpush.msrb.mxu1 %v5260_v54 }
 0xd24   : > { %1765 = vmatpush.msrb.mxu1 %v5264_v55 }
 0xd26   : > { %1766 = vmatpush.msrb.mxu1 %v5268_v56 }
 0xd9c   : > { %v1433_v40 = vpop.f32.mrf.mxu1 }
 0xd9d   : > { %v1434_v41 = vadd.f32 %v3420_v34, %v1433_v40 }
 0xd9f   : > { %vm1436_vm11 = vcmp.ge.f32.partialorder %v1434_v41, 0.0  ;;  %v1437_v42 = vmul.f32 0.2, %v1434_v41 }
 0xda1   : > { %v1438_v63 = vsel %vm1436_vm11, %v1434_v41, %v1437_v42  ;;  %v1625_v41 = vld [vmem:[%s5140_s11] sm:$0x1] }
 0xda2   : > { %3422 = vmatmul.msk.f32.vlgmr.msrb.gmra.mxu2 %vm886_vm7, %v1438_v63 }
 0xda3   : > { %1794 = vmatpush.msrb.mxu2 %v5277_v61 }
 0xda5   : > { %1795 = vmatpush.msrb.mxu2 %v5287_v22 }
 0xda7   : > { %1796 = vmatpush.msrb.mxu2 %v5292_v23 }
 0xda9   : > { %1797 = vmatpush.msrb.mxu2 %v5296_v24 }
 0xe25   : > { %v1464_v54 = vpop.f32.mrf.mxu2 }
 0xe26   : > { %v1465_v55 = vadd.f32 %v1464_v54, %v1443_v53 }
 0xe28   : > { %v1467_v56 = vmul.f32 %v1465_v55, %v1465_v55 }
 0xe2a   : > { %v1468_v0 = vsel %vm849_vm0, %v1467_v56, 0.0 }
 0xe2b   : > { %1469 = vadd.xlane.f32.xlu1 %v1468_v0 }
 0xe9e   : > { %v1470_v1 = vpop.xlane.xlu1 %1469 }
 0xe9f   : > { %3883 = vrsqrt.f32 %v1470_v1  ;;  %vm1478_vm12 = vcmp.eq.f32.partialorder %v1470_v1, inf  ;;  %v1481_v23 = vand.u32 2147483648, %v1470_v1  ;;  %vm1480_vm13 = vcmp.eq.f32.partialorder %v1470_v1, 0.0 }
 0xea5   : > { %v3884_v2 = vpop.eup %3883 }
 0xea6   : > { %v1472_v7 = vmul.f32 %v3884_v2, %v1470_v1 }
 0xea8   : > { %v1473_v8 = vmul.f32 %v3884_v2, %v1472_v7  ;;  %v1687_v7 = vld [vmem:[%s5154_s24] sm:$0x1] }
 0xeaa   : > { %v1474_v9 = vmul.f32 0.5, %v1473_v8 }
 0xeac   : > { %v1475_v61 = vsub.f32 1.5, %v1474_v9 }
 0xeae   : > { %v1476_v10 = vmul.f32 %v3884_v2, %v1475_v61 }
 0xeb0   : > { %v1477_v22 = vmul.f32 %v1476_v10, %v1470_v1 }
 0xeb2   : > { %v1479_v12 = vsel %vm1478_vm12, %v1470_v1, %v1477_v22 }
 0xeb3   : > { %v1482_v24 = vsel %vm1480_vm13, %v1481_v23, %v1479_v12 }
 0xeb4   : > { %v1483_v13 = vadd.f32 1e-08, %v1482_v24 }
 0xeb6   : > { %3885 = vrcp.f32 %v1483_v13  ;;  %v1495_v17 = vand.u32 2147483648, %v1483_v13  ;;  %v1493_v19 = vand.u32 2147483647, %v1483_v13  ;;  %vm1489_vm15 = vweird.f32 %v1483_v13 }
 0xeb8   : > { %v1496_v21 = vor.u32 1.1754944e-38, %v1495_v17  ;;  %vm1494_vm2 = vcmp.eq.f32.partialorder %v1493_v19, 8.507059e+37 }
 0xebc   : > { %v3886_v14 = vpop.eup %3885 }
 0xebd   : > { %v1485_v15 = vmul.f32 %v3886_v14, %v1483_v13  ;;  %vm1490_vm14 = vweird.f32 %v3886_v14 }
 0xebe   : > { %vm1491_vm1 = vmor %vm1489_vm15, %vm1490_vm14 }
 0xebf   : > { %v1486_v16 = vsub.f32 1.0, %v1485_v15 }
 0xec1   : > { %v1487_v18 = vmul.f32 %v3886_v14, %v1486_v16 }
 0xec3   : > { %v1488_v20 = vadd.f32 %v3886_v14, %v1487_v18 }
 0xec5   : > { %v1492_v26 = vsel %vm1491_vm1, %v3886_v14, %v1488_v20 }
 0xec6   : > { %v1497_v27 = vsel %vm1494_vm2, %v1496_v21, %v1492_v26 }
 0xec7   : > { %v1498_v3 = vmul.f32 %v1497_v27, %v1465_v55  ;;  %v3441_v55 = vld [vmem:[%s5140_s11 + $0x1] sm:$0x1] }
 0xec9   : > { %3428 = vmatmul.msk.f32.vlgmr.msrb.gmra.mxu3 %vm886_vm7, %v1498_v3 }
 0xeca   : > { %1825 = vmatpush.msrb.mxu3 %v5307_v25 }
 0xecc   : > { %1826 = vmatpush.msrb.mxu3 %v5322_v35  ;;  %v1565_v35 = vld [vmem:[%s5161_s23] sm:$0x1] }
 0xece   : > { %1827 = vmatpush.msrb.mxu3 %v5327_v36 }
 0xed0   : > { %1828 = vmatpush.msrb.mxu3 %v5331_v37 }
 0xf4c   : > { %v1524_v5 = vpop.f32.mrf.mxu3 }
 0xf4d   : > { %v1525_v6 = vadd.f32 %v3427_v4, %v1524_v5 }
 0xf4f   : > { %vm1527_vm4 = vcmp.ge.f32.partialorder %v1525_v6, 0.0  ;;  %v1528_v28 = vmul.f32 0.2, %v1525_v6 }
 0xf51   : > { %v1529_v29 = vsel %vm1527_vm4, %v1525_v6, %v1528_v28 }
 0xf52   : > { %3434 = vmatmul.msk.f32.vlgmr.msra.gmra.mxu0 %vm886_vm7, %v1529_v29 }
 0xfcf   : > { %v1555_v38 = vpop.f32.mrf.mxu0 }
 0xfd0   : > { %v1556_v39 = vadd.f32 %v3433_v30, %v1555_v38 }
 0xfd2   : > { %vm1558_vm5 = vcmp.ge.f32.partialorder %v1556_v39, 0.0  ;;  %v1559_v25 = vmul.f32 0.2, %v1556_v39 }
 0xfd4   : > { %v1560_v11 = vsel %vm1558_vm5, %v1556_v39, %v1559_v25  ;;  %v3448_v39 = vld [vmem:[%s5140_s11 + $0x2] sm:$0x1] }
 0xfd5   : > { %3435 = vmatmul.msk.f32.vlgmr.msra.gmra.mxu1 %vm886_vm7, %v1560_v11 }
0x1052   : > { %v1586_v36 = vpop.f32.mrf.mxu1 }
0x1053   : > { %v1587_v31 = vadd.f32 %v1586_v36, %v1565_v35 }
0x1055   : > { %v1589_v37 = vsel %vm1100_vm3, %v1587_v31, -inf }
0x1056   : > { %1590 = vmax.xlane.f32.xlu1 %v1589_v37 }
0x10c9   : > { %v1591_v32 = vpop.xlane.xlu1 %1590 }
0x10ca   : > { %v1592_v43 = vsub.f32 %v1587_v31, %v1591_v32  ;;  %v3454_v31 = vld [vmem:[%s5140_s11 + $0x3] sm:$0x1] }
0x10cc   : > { %v1593_v33 = vmul.f32 1.442695, %v1592_v43 }
0x10ce   : > { %3887 = vpow2.f32 %v1593_v33 }
0x10d4   : > { %v3888_v44 = vpop.eup %3887 }
0x10d5   : > { %v1595_v45 = vsel %vm1100_vm3, %v3888_v44, 0.0 }
0x10d6   : > { %1596 = vadd.xlane.f32.xlu1 %v1595_v45 }
0x1149   : > { %v1597_v46 = vpop.xlane.xlu1 %1596 }
0x114a   : > { %3889 = vrcp.f32 %v1597_v46  ;;  %v1609_v50 = vand.u32 2147483648, %v1597_v46  ;;  %v1607_v52 = vand.u32 2147483647, %v1597_v46  ;;  %vm1603_vm8 = vweird.f32 %v1597_v46 }
0x114c   : > { %v1610_v58 = vor.u32 1.1754944e-38, %v1609_v50  ;;  %vm1608_vm10 = vcmp.eq.f32.partialorder %v1607_v52, 8.507059e+37 }
0x1150   : > { %v3890_v47 = vpop.eup %3889 }
0x1151   : > { %v1599_v48 = vmul.f32 %v3890_v47, %v1597_v46  ;;  %vm1604_vm6 = vweird.f32 %v3890_v47 }
0x1152   : > { %vm1605_vm9 = vmor %vm1603_vm8, %vm1604_vm6 }
0x1153   : > { %v1600_v49 = vsub.f32 1.0, %v1599_v48 }
0x1155   : > { %v1601_v51 = vmul.f32 %v3890_v47, %v1600_v49 }
0x1157   : > { %v1602_v57 = vadd.f32 %v3890_v47, %v1601_v51 }
0x1159   : > { %v1606_v59 = vsel %vm1605_vm9, %v3890_v47, %v1602_v57  ;;  %v5442_v57 = vld [vmem:[%s5132_s22 + $0x18] sm:$0xff] }
0x115a   : > { %v1611_v60 = vsel %vm1608_vm10, %v1610_v58, %v1606_v59  ;;  %v5445_v58 = vld [vmem:[%s5132_s22 + $0x10] sm:$0xff]  ;;  %1885 = vmatpush.msra.mxu0 %v5442_v57  ;;  %v5449_v59 = vld [vmem:[%s5132_s22 + $0x8] sm:$0xff] }
0x115b   : > { %v1612_v62 = vmul.f32 %v3888_v44, %v1611_v60  ;;  %v1809_v44 = vld [vmem:[%s5161_s23] sm:$0x1] }
0x115c   : > { %1886 = vmatpush.msra.mxu0 %v5445_v58 }
0x115d   : > { %1615 = vperm.xlu1 %3856, %v1612_v62   ;;  %1620 = vst.msk [vmem:[#allocation3 + $0x2] sm:$0x1] %vm1100_vm3, %v1612_v62 }
0x115e   : > { %1887 = vmatpush.msra.mxu0 %v5449_v59 }
0x11cf   : > { %v1616_v34 = vpop.permute.xlu1 %1615 }
0x11d0   : > { %v1618_v40 = vmul.f32 %v1616_v34, %v1498_v3 }
0x11d2   : > { %1619 = vst.msk [vmem:[#allocation2 + $0x2] sm:$0x1] %vm849_vm0, %v1618_v40  ;;  %3436 = vmatmul.msk.f32.vlgmr.msra.gmra.mxu2 %vm886_vm7, %v1618_v40 }
0x1255   : > { %v1646_v42 = vpop.f32.mrf.mxu2 }
0x1256   : > { %v1647_v63 = vadd.f32 %v1646_v42, %v1625_v41 }
0x1258   : > { %vm1649_vm11 = vcmp.ge.f32.partialorder %v1647_v63, 0.0  ;;  %v1650_v53 = vmul.f32 0.2, %v1647_v63 }
0x125a   : > { %v1651_v54 = vsel %vm1649_vm11, %v1647_v63, %v1650_v53 }
0x125b   : > { %3442 = vmatmul.msk.f32.vlgmr.msra.gmra.mxu3 %vm886_vm7, %v1651_v54 }
0x12de   : > { %v1677_v56 = vpop.f32.mrf.mxu3 }
0x12df   : > { %v1678_v0 = vadd.f32 %v3441_v55, %v1677_v56 }
0x12e1   : > { %vm1680_vm12 = vcmp.ge.f32.partialorder %v1678_v0, 0.0  ;;  %v1681_v1 = vmul.f32 0.2, %v1678_v0 }
0x12e3   : > { %v1682_v2 = vsel %vm1680_vm12, %v1678_v0, %v1681_v1  ;;  %v5455_v1 = vld [vmem:[%s5132_s22] sm:$0xff] }
0x12e4   : > { %3443 = vmatmul.msk.f32.vlgmr.msrb.gmra.mxu0 %vm886_vm7, %v1682_v2  ;;  %v5459_v2 = vld [vmem:[%s5132_s22 + $0x38] sm:$0xff] }
0x12e5   : > { %1888 = vmatpush.msra.mxu0 %v5455_v1  ;;  %1916 = vmatpush.msra.mxu1 %v5459_v2 }
0x1361   : > { %v1708_v8 = vpop.f32.mrf.mxu0 }
0x1362   : > { %v1709_v9 = vadd.f32 %v1708_v8, %v1687_v7 }
0x1364   : > { %v1711_v61 = vmul.f32 %v1709_v9, %v1709_v9 }
0x1366   : > { %v1712_v10 = vsel %vm849_vm0, %v1711_v61, 0.0  ;;  %v5469_v61 = vld [vmem:[%s5132_s22 + $0x28] sm:$0xff] }
0x1367   : > { %1713 = vadd.xlane.f32.xlu2 %v1712_v10  ;;  %v5473_v10 = vld [vmem:[%s5132_s22 + $0x20] sm:$0xff] }
0x13da   : > { %v1714_v22 = vpop.xlane.xlu2 %1713 }
0x13db   : > { %3891 = vrsqrt.f32 %v1714_v22  ;;  %vm1722_vm13 = vcmp.eq.f32.partialorder %v1714_v22, inf  ;;  %v1725_v17 = vand.u32 2147483648, %v1714_v22  ;;  %vm1724_vm14 = vcmp.eq.f32.partialorder %v1714_v22, 0.0 }
0x13e1   : > { %v3892_v23 = vpop.eup %3891 }
0x13e2   : > { %v1716_v12 = vmul.f32 %v3892_v23, %v1714_v22 }
0x13e4   : > { %v1717_v24 = vmul.f32 %v3892_v23, %v1716_v12 }
0x13e6   : > { %v1718_v13 = vmul.f32 0.5, %v1717_v24 }
0x13e8   : > { %v1719_v14 = vsub.f32 1.5, %v1718_v13 }
0x13ea   : > { %v1720_v15 = vmul.f32 %v3892_v23, %v1719_v14  ;;  %v1869_v23 = vld [vmem:[%s5140_s11] sm:$0x1] }
0x13ec   : > { %v1721_v16 = vmul.f32 %v1720_v15, %v1714_v22  ;;  %v5483_v15 = vld [vmem:[%s5147_s16 + $0x10] sm:$0xff] }
0x13ee   : > { %v1723_v18 = vsel %vm1722_vm13, %v1714_v22, %v1721_v16  ;;  %v5477_v22 = vld [vmem:[%s5147_s16 + $0x18] sm:$0xff]  ;;  %v5487_v16 = vld [vmem:[%s5147_s16 + $0x8] sm:$0xff] }
0x13ef   : > { %v1726_v19 = vsel %vm1724_vm14, %v1725_v17, %v1723_v18  ;;  %1947 = vmatpush.msra.mxu2 %v5477_v22  ;;  %v5491_v17 = vld [vmem:[%s5147_s16] sm:$0xff]  ;;  %v3462_v18 = vld [vmem:[%s5140_s11 + $0x1] sm:$0x1]  ;;  %s5686_s16 = sshll.u32 %s5190_s26, 3  ;;  %s6036_s26 = sld [smem:[#allocation80_spill]] }
0x13f0   : > { %v1727_v20 = vadd.f32 1e-08, %v1726_v19  ;;  %s838_s15 = scalar_lea.vmem %s6035_s21, %s5686_s16  ;;  %s842_s8 = scalar_lea.vmem %s6037_s9, %s5686_s16 }
0x13f1   : > { %1948 = vmatpush.msra.mxu2 %v5483_v15  ;;  %s846_s30 = scalar_lea.vmem %s6038_s14, %s5686_s16 }
0x13f2   : > { %3893 = vrcp.f32 %v1727_v20  ;;  %v1739_v3 = vand.u32 2147483648, %v1727_v20  ;;  %v1737_v5 = vand.u32 2147483647, %v1727_v20  ;;  %vm1733_vm1 = vweird.f32 %v1727_v20 }
0x13f3   : > { %1949 = vmatpush.msra.mxu2 %v5487_v16 }
0x13f4   : > { %v1740_v28 = vor.u32 1.1754944e-38, %v1739_v3  ;;  %vm1738_vm4 = vcmp.eq.f32.partialorder %v1737_v5, 8.507059e+37 }
0x13f5   : > { %1950 = vmatpush.msra.mxu2 %v5491_v17  ;;  %s830_s28 = scalar_lea.vmem %s6036_s26, %s3573_s5 }
0x13f8   : > { %v3894_v21 = vpop.eup %3893 }
0x13f9   : > { %v1729_v26 = vmul.f32 %v3894_v21, %v1727_v20  ;;  %vm1734_vm15 = vweird.f32 %v3894_v21 }
0x13fa   : > { %vm1735_vm2 = vmor %vm1733_vm1, %vm1734_vm15 }
0x13fb   : > { %v1730_v27 = vsub.f32 1.0, %v1729_v26 }
0x13fd   : > { %v1731_v4 = vmul.f32 %v3894_v21, %v1730_v27  ;;  %v1931_v27 = vld [vmem:[%s5154_s24] sm:$0x1] }
0x13ff   : > { %v1732_v6 = vadd.f32 %v3894_v21, %v1731_v4 }
0x1401   : > { %v1736_v29 = vsel %vm1735_vm2, %v3894_v21, %v1732_v6 }
0x1402   : > { %v1741_v30 = vsel %vm1738_vm4, %v1740_v28, %v1736_v29  ;;  %v5503_v28 = vld [vmem:[%s5132_s22 + $0x58] sm:$0xff]  ;;  %v5506_v29 = vld [vmem:[%s5132_s22 + $0x50] sm:$0xff] }
0x1403   : > { %v1742_v38 = vmul.f32 %v1741_v30, %v1709_v9  ;;  %v5465_v9 = vld [vmem:[%s5132_s22 + $0x30] sm:$0xff]  ;;  %2007 = vmatpush.msra.mxu3 %v5503_v28  ;;  %v5510_v30 = vld [vmem:[%s5132_s22 + $0x48] sm:$0xff] }
0x1404   : > { %1917 = vmatpush.msra.mxu1 %v5465_v9 }
0x1405   : > { %3449 = vmatmul.msk.f32.vlgmr.msrb.gmra.mxu1 %vm886_vm7, %v1742_v38  ;;  %2008 = vmatpush.msra.mxu3 %v5506_v29 }
0x1406   : > { %1918 = vmatpush.msra.mxu1 %v5469_v61 }
0x1407   : > { %2009 = vmatpush.msra.mxu3 %v5510_v30 }
0x1408   : > { %1919 = vmatpush.msra.mxu1 %v5473_v10 }
0x1482   : > { %v1768_v25 = vpop.f32.mrf.mxu1 }
0x1483   : > { %v1769_v11 = vadd.f32 %v3448_v39, %v1768_v25 }
0x1485   : > { %vm1771_vm5 = vcmp.ge.f32.partialorder %v1769_v11, 0.0  ;;  %v1772_v35 = vmul.f32 0.2, %v1769_v11 }
0x1487   : > { %v1773_v36 = vsel %vm1771_vm5, %v1769_v11, %v1772_v35 }
0x1488   : > { %3455 = vmatmul.msk.f32.vlgmr.msrb.gmra.mxu2 %vm886_vm7, %v1773_v36  ;;  %v5523_v36 = vld [vmem:[%s5132_s22 + $0x78] sm:$0xff] }
0x1489   : > { %2129 = vmatpush.msrb.mxu2 %v5442_v57  ;;  %2038 = vmatpush.msrb.mxu0 %v5523_v36 }
0x148b   : > { %2130 = vmatpush.msrb.mxu2 %v5445_v58 }
0x148d   : > { %2131 = vmatpush.msrb.mxu2 %v5449_v59 }
0x148f   : > { %2132 = vmatpush.msrb.mxu2 %v5455_v1 }
0x150b   : > { %v1799_v37 = vpop.f32.mrf.mxu2 }
0x150c   : > { %v1800_v32 = vadd.f32 %v3454_v31, %v1799_v37 }
0x150e   : > { %vm1802_vm6 = vcmp.ge.f32.partialorder %v1800_v32, 0.0  ;;  %v1803_v43 = vmul.f32 0.2, %v1800_v32 }
0x1510   : > { %v1804_v33 = vsel %vm1802_vm6, %v1800_v32, %v1803_v43 }
0x1511   : > { %3456 = vmatmul.msk.f32.vlgmr.msrb.gmra.mxu3 %vm886_vm7, %v1804_v33 }
0x1594   : > { %v1830_v45 = vpop.f32.mrf.mxu3 }
0x1595   : > { %v1831_v46 = vadd.f32 %v1830_v45, %v1809_v44 }
0x1597   : > { %v1833_v47 = vsel %vm1100_vm3, %v1831_v46, -inf }
0x1598   : > { %1834 = vmax.xlane.f32.xlu2 %v1833_v47 }
0x160b   : > { %v1835_v48 = vpop.xlane.xlu2 %1834 }
0x160c   : > { %v1836_v49 = vsub.f32 %v1831_v46, %v1835_v48 }
0x160e   : > { %v1837_v50 = vmul.f32 1.442695, %v1836_v49 }
0x1610   : > { %3895 = vpow2.f32 %v1837_v50 }
0x1616   : > { %v3896_v51 = vpop.eup %3895 }
0x1617   : > { %v1839_v52 = vsel %vm1100_vm3, %v3896_v51, 0.0 }
0x1618   : > { %1840 = vadd.xlane.f32.xlu0 %v1839_v52 }
0x168b   : > { %v1841_v60 = vpop.xlane.xlu0 %1840 }
0x168c   : > { %3897 = vrcp.f32 %v1841_v60  ;;  %v1853_v41 = vand.u32 2147483648, %v1841_v60  ;;  %v1851_v63 = vand.u32 2147483647, %v1841_v60  ;;  %vm1847_vm9 = vweird.f32 %v1841_v60 }
0x168e   : > { %v1854_v54 = vor.u32 1.1754944e-38, %v1853_v41  ;;  %vm1852_vm11 = vcmp.eq.f32.partialorder %v1851_v63, 8.507059e+37  ;;  %v5537_v63 = vld [vmem:[%s5132_s22 + $0x68] sm:$0xff] }
0x1692   : > { %v3898_v62 = vpop.eup %3897 }
0x1693   : > { %v1843_v34 = vmul.f32 %v3898_v62, %v1841_v60  ;;  %vm1848_vm8 = vweird.f32 %v3898_v62 }
0x1694   : > { %vm1849_vm10 = vmor %vm1847_vm9, %vm1848_vm8 }
0x1695   : > { %v1844_v40 = vsub.f32 1.0, %v1843_v34 }
0x1697   : > { %v1845_v42 = vmul.f32 %v3898_v62, %v1844_v40 }
0x1699   : > { %v1846_v53 = vadd.f32 %v3898_v62, %v1845_v42  ;;  %v5532_v42 = vld [vmem:[%s5132_s22 + $0x70] sm:$0xff] }
0x169a   : > { %2039 = vmatpush.msrb.mxu0 %v5532_v42 }
0x169b   : > { %v1850_v55 = vsel %vm1849_vm10, %v3898_v62, %v1846_v53  ;;  %v5542_v53 = vld [vmem:[%s5132_s22 + $0x60] sm:$0xff] }
0x169c   : > { %v1855_v56 = vsel %vm1852_vm11, %v1854_v54, %v1850_v55  ;;  %2040 = vmatpush.msrb.mxu0 %v5537_v63  ;;  %v5547_v54 = vld [vmem:[%s5301_s6 + $0x18] sm:$0xff] }
0x169d   : > { %v1856_v0 = vmul.f32 %v3896_v51, %v1855_v56  ;;  %2069 = vmatpush.msrb.mxu1 %v5547_v54  ;;  %v3469_v55 = vld [vmem:[%s5140_s11 + $0x2] sm:$0x1] }
0x169e   : > { %2041 = vmatpush.msrb.mxu0 %v5542_v53 }
0x169f   : > { %1859 = vperm.xlu2 %3854, %v1856_v0   ;;  %1864 = vst.msk [vmem:[#allocation3 + $0x3] sm:$0x1] %vm1100_vm3, %v1856_v0 }
0x16f9   : > { %v1860_v7 = vpop.permute.xlu2 %1859 }
0x16fa   : > { %v1862_v8 = vmul.f32 %v1860_v7, %v1742_v38  ;;  %v5514_v38 = vld [vmem:[%s5132_s22 + $0x40] sm:$0xff] }
0x16fb   : > { %2010 = vmatpush.msra.mxu3 %v5514_v38 }
0x16fc   : > { %1863 = vst.msk [vmem:[#allocation2 + $0x3] sm:$0x1] %vm849_vm0, %v1862_v8  ;;  %3457 = vmatmul.msk.f32.vlgmr.msra.gmra.mxu0 %vm886_vm7, %v1862_v8 }
0x16fd   : > { %2160 = vmatpush.msrb.mxu3 %v5459_v2  ;;  %2191 = vmatpush.msra.mxu0 %v5477_v22 }
0x16ff   : > { %2161 = vmatpush.msrb.mxu3 %v5465_v9  ;;  %2192 = vmatpush.msra.mxu0 %v5483_v15 }
0x1701   : > { %2162 = vmatpush.msrb.mxu3 %v5469_v61  ;;  %2193 = vmatpush.msra.mxu0 %v5487_v16 }
0x1703   : > { %2163 = vmatpush.msrb.mxu3 %v5473_v10  ;;  %2194 = vmatpush.msra.mxu0 %v5491_v17 }
0x1779   : > { %v1890_v12 = vpop.f32.mrf.mxu0 }
0x177a   : > { %v1891_v24 = vadd.f32 %v1890_v12, %v1869_v23  ;;  %v5562_v23 = vld [vmem:[%s5301_s6 + $0x10] sm:$0xff]  ;;  %v5567_v12 = vld [vmem:[%s5301_s6 + $0x8] sm:$0xff] }
0x177b   : > { %2070 = vmatpush.msrb.mxu1 %v5562_v23 }
0x177c   : > { %vm1893_vm12 = vcmp.ge.f32.partialorder %v1891_v24, 0.0  ;;  %v1894_v13 = vmul.f32 0.2, %v1891_v24 }
0x177d   : > { %2071 = vmatpush.msrb.mxu1 %v5567_v12 }
0x177e   : > { %v1895_v14 = vsel %vm1893_vm12, %v1891_v24, %v1894_v13  ;;  %v5572_v24 = vld [vmem:[%s5301_s6] sm:$0xff]  ;;  %v3475_v13 = vld [vmem:[%s5140_s11 + $0x3] sm:$0x1] }
0x177f   : > { %3463 = vmatmul.msk.f32.vlgmr.msra.gmra.mxu1 %vm886_vm7, %v1895_v14 }
0x1780   : > { %2072 = vmatpush.msrb.mxu1 %v5572_v24 }
0x1782   : > { %2251 = vmatpush.msra.mxu1 %v5503_v28 }
0x1784   : > { %2252 = vmatpush.msra.mxu1 %v5506_v29 }
0x1786   : > { %2253 = vmatpush.msra.mxu1 %v5510_v30 }
0x1788   : > { %2254 = vmatpush.msra.mxu1 %v5514_v38 }
0x17fc   : > { %v1921_v19 = vpop.f32.mrf.mxu1 }
0x17fd   : > { %v1922_v20 = vadd.f32 %v3462_v18, %v1921_v19 }
0x17ff   : > { %vm1924_vm13 = vcmp.ge.f32.partialorder %v1922_v20, 0.0  ;;  %v1925_v21 = vmul.f32 0.2, %v1922_v20 }
0x1801   : > { %v1926_v26 = vsel %vm1924_vm13, %v1922_v20, %v1925_v21  ;;  %v2053_v21 = vld [vmem:[%s5161_s23] sm:$0x1] }
0x1802   : > { %3464 = vmatmul.msk.f32.vlgmr.msra.gmra.mxu2 %vm886_vm7, %v1926_v26 }
0x1803   : > { %2282 = vmatpush.msra.mxu2 %v5523_v36 }
0x1805   : > { %2283 = vmatpush.msra.mxu2 %v5532_v42 }
0x1807   : > { %2284 = vmatpush.msra.mxu2 %v5537_v63 }
0x1809   : > { %2285 = vmatpush.msra.mxu2 %v5542_v53 }
0x1885   : > { %v1952_v3 = vpop.f32.mrf.mxu2 }
0x1886   : > { %v1953_v4 = vadd.f32 %v1952_v3, %v1931_v27 }
0x1888   : > { %v1955_v5 = vmul.f32 %v1953_v4, %v1953_v4 }
0x188a   : > { %v1956_v6 = vsel %vm849_vm0, %v1955_v5, 0.0 }
0x188b   : > { %1957 = vadd.xlane.f32.xlu1 %v1956_v6 }
0x18fe   : > { %v1958_v39 = vpop.xlane.xlu1 %1957 }
0x18ff   : > { %3899 = vrsqrt.f32 %v1958_v39  ;;  %vm1966_vm14 = vcmp.eq.f32.partialorder %v1958_v39, inf  ;;  %v1969_v33 = vand.u32 2147483648, %v1958_v39  ;;  %vm1968_vm15 = vcmp.eq.f32.partialorder %v1958_v39, 0.0 }
0x1905   : > { %v3900_v25 = vpop.eup %3899 }
0x1906   : > { %v1960_v11 = vmul.f32 %v3900_v25, %v1958_v39 }
0x1908   : > { %v1961_v35 = vmul.f32 %v3900_v25, %v1960_v11 }
0x190a   : > { %v1962_v31 = vmul.f32 0.5, %v1961_v35 }
0x190c   : > { %v1963_v37 = vsub.f32 1.5, %v1962_v31 }
0x190e   : > { %v1964_v32 = vmul.f32 %v3900_v25, %v1963_v37 }
0x1910   : > { %v1965_v43 = vmul.f32 %v1964_v32, %v1958_v39 }
0x1912   : > { %v1967_v44 = vsel %vm1966_vm14, %v1958_v39, %v1965_v43 }
0x1913   : > { %v1970_v45 = vsel %vm1968_vm15, %v1969_v33, %v1967_v44 }
0x1914   : > { %v1971_v46 = vadd.f32 1e-08, %v1970_v45 }
0x1916   : > { %3901 = vrcp.f32 %v1971_v46  ;;  %v1983_v50 = vand.u32 2147483648, %v1971_v46  ;;  %v1981_v52 = vand.u32 2147483647, %v1971_v46  ;;  %vm1977_vm2 = vweird.f32 %v1971_v46 }
0x1918   : > { %v1984_v62 = vor.u32 1.1754944e-38, %v1983_v50  ;;  %vm1982_vm5 = vcmp.eq.f32.partialorder %v1981_v52, 8.507059e+37 }
0x191c   : > { %v3902_v47 = vpop.eup %3901 }
0x191d   : > { %v1973_v48 = vmul.f32 %v3902_v47, %v1971_v46  ;;  %vm1978_vm1 = vweird.f32 %v3902_v47 }
0x191e   : > { %vm1979_vm4 = vmor %vm1977_vm2, %vm1978_vm1 }
0x191f   : > { %v1974_v49 = vsub.f32 1.0, %v1973_v48 }
0x1921   : > { %v1975_v51 = vmul.f32 %v3902_v47, %v1974_v49 }
0x1923   : > { %v1976_v60 = vadd.f32 %v3902_v47, %v1975_v51  ;;  %v2113_v51 = vld [vmem:[%s5140_s11] sm:$0x1] }
0x1925   : > { %v1980_v34 = vsel %vm1979_vm4, %v3902_v47, %v1976_v60 }
0x1926   : > { %v1985_v40 = vsel %vm1982_vm5, %v1984_v62, %v1980_v34 }
0x1927   : > { %v5527_v41 = vmul.f32 %v1985_v40, %v1953_v4  ;;  %v3483_v40 = vld [vmem:[%s5140_s11 + $0x1] sm:$0x1] }
0x1929   : > { %3470 = vmatmul.msk.f32.vlgmr.msra.gmra.mxu3 %vm886_vm7, %v5527_v41 }
0x192a   : > { %2313 = vmatpush.msra.mxu3 %v5547_v54 }
0x192c   : > { %2314 = vmatpush.msra.mxu3 %v5562_v23 }
0x192e   : > { %2315 = vmatpush.msra.mxu3 %v5567_v12 }
0x1930   : > { %2316 = vmatpush.msra.mxu3 %v5572_v24 }
0x19ac   : > { %v2012_v56 = vpop.f32.mrf.mxu3 }
0x19ad   : > { %v2013_v0 = vadd.f32 %v3469_v55, %v2012_v56 }
0x19af   : > { %vm2015_vm6 = vcmp.ge.f32.partialorder %v2013_v0, 0.0  ;;  %v2016_v7 = vmul.f32 0.2, %v2013_v0 }
0x19b1   : > { %v2017_v8 = vsel %vm2015_vm6, %v2013_v0, %v2016_v7  ;;  %v2175_v7 = vld [vmem:[%s5154_s24] sm:$0x1] }
0x19b2   : > { %3476 = vmatmul.msk.f32.vlgmr.msrb.gmra.mxu0 %vm886_vm7, %v2017_v8 }
0x19b3   : > { %2373 = vmatpush.msrb.mxu0 %v5442_v57 }
0x19b5   : > { %2374 = vmatpush.msrb.mxu0 %v5445_v58 }
0x19b7   : > { %2375 = vmatpush.msrb.mxu0 %v5449_v59 }
0x19b9   : > { %2376 = vmatpush.msrb.mxu0 %v5455_v1 }
0x1a2f   : > { %v2043_v14 = vpop.f32.mrf.mxu0 }
0x1a30   : > { %v2044_v18 = vadd.f32 %v3475_v13, %v2043_v14 }
0x1a32   : > { %vm2046_vm8 = vcmp.ge.f32.partialorder %v2044_v18, 0.0  ;;  %v2047_v19 = vmul.f32 0.2, %v2044_v18 }
0x1a34   : > { %v2048_v20 = vsel %vm2046_vm8, %v2044_v18, %v2047_v19 }
0x1a35   : > { %3477 = vmatmul.msk.f32.vlgmr.msrb.gmra.mxu1 %vm886_vm7, %v2048_v20 }
0x1a36   : > { %2404 = vmatpush.msrb.mxu1 %v5459_v2 }
0x1a38   : > { %2405 = vmatpush.msrb.mxu1 %v5465_v9 }
0x1a3a   : > { %2406 = vmatpush.msrb.mxu1 %v5469_v61 }
0x1a3c   : > { %2407 = vmatpush.msrb.mxu1 %v5473_v10 }
0x1ab2   : > { %v2074_v26 = vpop.f32.mrf.mxu1 }
0x1ab3   : > { %v2075_v27 = vadd.f32 %v2074_v26, %v2053_v21 }
0x1ab5   : > { %v2077_v3 = vsel %vm1100_vm3, %v2075_v27, -inf }
0x1ab6   : > { %2078 = vmax.xlane.f32.xlu2 %v2077_v3 }
0x1b29   : > { %v2079_v4 = vpop.xlane.xlu2 %2078 }
0x1b2a   : > { %v2080_v5 = vsub.f32 %v2075_v27, %v2079_v4 }
0x1b2c   : > { %v2081_v6 = vmul.f32 1.442695, %v2080_v5 }
0x1b2e   : > { %3903 = vpow2.f32 %v2081_v6 }
0x1b34   : > { %v3904_v39 = vpop.eup %3903 }
0x1b35   : > { %v2083_v25 = vsel %vm1100_vm3, %v3904_v39, 0.0 }
0x1b36   : > { %2084 = vadd.xlane.f32.xlu0 %v2083_v25 }
0x1ba9   : > { %v2085_v11 = vpop.xlane.xlu0 %2084 }
0x1baa   : > { %3905 = vrcp.f32 %v2085_v11  ;;  %v2097_v32 = vand.u32 2147483648, %v2085_v11  ;;  %v2095_v33 = vand.u32 2147483647, %v2085_v11  ;;  %vm2091_vm10 = vweird.f32 %v2085_v11 }
0x1bac   : > { %v2098_v45 = vor.u32 1.1754944e-38, %v2097_v32  ;;  %vm2096_vm12 = vcmp.eq.f32.partialorder %v2095_v33, 8.507059e+37 }
0x1bb0   : > { %v3906_v35 = vpop.eup %3905 }
0x1bb1   : > { %v2087_v31 = vmul.f32 %v3906_v35, %v2085_v11  ;;  %vm2092_vm9 = vweird.f32 %v3906_v35 }
0x1bb2   : > { %vm2093_vm11 = vmor %vm2091_vm10, %vm2092_vm9 }
0x1bb3   : > { %v2088_v37 = vsub.f32 1.0, %v2087_v31 }
0x1bb5   : > { %v2089_v43 = vmul.f32 %v3906_v35, %v2088_v37 }
0x1bb7   : > { %v2090_v44 = vadd.f32 %v3906_v35, %v2089_v43 }
0x1bb9   : > { %v2094_v46 = vsel %vm2093_vm11, %v3906_v35, %v2090_v44 }
0x1bba   : > { %v2099_v47 = vsel %vm2096_vm12, %v2098_v45, %v2094_v46 }
0x1bbb   : > { %v2100_v48 = vmul.f32 %v3904_v39, %v2099_v47 }
0x1bbd   : > { %2103 = vperm.xlu0 %3855, %v2100_v48   ;;  %2108 = vst.msk [vmem:[#allocation3 + $0x4] sm:$0x1] %vm1100_vm3, %v2100_v48 }
0x1c2f   : > { %v2104_v49 = vpop.permute.xlu0 %2103 }
0x1c30   : > { %v2106_v50 = vmul.f32 %v2104_v49, %v5527_v41  ;;  %v3490_v49 = vld [vmem:[%s5140_s11 + $0x2] sm:$0x1] }
0x1c32   : > { %2107 = vst.msk [vmem:[#allocation2 + $0x4] sm:$0x1] %vm849_vm0, %v2106_v50  ;;  %3478 = vmatmul.msk.f32.vlgmr.msrb.gmra.mxu2 %vm886_vm7, %v2106_v50 }
0x1c33   : > { %2435 = vmatpush.msrb.mxu2 %v5477_v22 }
0x1c35   : > { %2436 = vmatpush.msrb.mxu2 %v5483_v15 }
0x1c37   : > { %2437 = vmatpush.msrb.mxu2 %v5487_v16 }
0x1c39   : > { %2438 = vmatpush.msrb.mxu2 %v5491_v17 }
0x1cb5   : > { %v2134_v52 = vpop.f32.mrf.mxu2 }
0x1cb6   : > { %v2135_v60 = vadd.f32 %v2134_v52, %v2113_v51 }
0x1cb8   : > { %vm2137_vm13 = vcmp.ge.f32.partialorder %v2135_v60, 0.0  ;;  %v2138_v62 = vmul.f32 0.2, %v2135_v60 }
0x1cba   : > { %v2139_v34 = vsel %vm2137_vm13, %v2135_v60, %v2138_v62  ;;  %v3496_v62 = vld [vmem:[%s5140_s11 + $0x3] sm:$0x1] }
0x1cbb   : > { %3484 = vmatmul.msk.f32.vlgmr.msrb.gmra.mxu3 %vm886_vm7, %v2139_v34 }
0x1cbc   : > { %2495 = vmatpush.msrb.mxu3 %v5503_v28 }
0x1cbe   : > { %2496 = vmatpush.msrb.mxu3 %v5506_v29 }
0x1cc0   : > { %2497 = vmatpush.msrb.mxu3 %v5510_v30 }
0x1cc2   : > { %2498 = vmatpush.msrb.mxu3 %v5514_v38 }
0x1d3e   : > { %v2165_v41 = vpop.f32.mrf.mxu3 }
0x1d3f   : > { %v2166_v55 = vadd.f32 %v3483_v40, %v2165_v41 }
0x1d41   : > { %vm2168_vm14 = vcmp.ge.f32.partialorder %v2166_v55, 0.0  ;;  %v2169_v56 = vmul.f32 0.2, %v2166_v55 }
0x1d43   : > { %v2170_v0 = vsel %vm2168_vm14, %v2166_v55, %v2169_v56 }
0x1d44   : > { %3485 = vmatmul.msk.f32.vlgmr.msra.gmra.mxu0 %vm886_vm7, %v2170_v0 }
0x1d45   : > { %2526 = vmatpush.msra.mxu0 %v5523_v36 }
0x1d47   : > { %2527 = vmatpush.msra.mxu0 %v5532_v42 }
0x1d49   : > { %2528 = vmatpush.msra.mxu0 %v5537_v63 }
0x1d4b   : > { %2529 = vmatpush.msra.mxu0 %v5542_v53 }
0x1dc1   : > { %v2196_v8 = vpop.f32.mrf.mxu0 }
0x1dc2   : > { %v2197_v13 = vadd.f32 %v2196_v8, %v2175_v7 }
0x1dc4   : > { %v2199_v14 = vmul.f32 %v2197_v13, %v2197_v13 }
0x1dc6   : > { %v2200_v18 = vsel %vm849_vm0, %v2199_v14, 0.0 }
0x1dc7   : > { %2201 = vadd.xlane.f32.xlu1 %v2200_v18 }
0x1e3a   : > { %v2202_v19 = vpop.xlane.xlu1 %2201 }
0x1e3b   : > { %3907 = vrsqrt.f32 %v2202_v19  ;;  %vm2210_vm15 = vcmp.eq.f32.partialorder %v2202_v19, inf  ;;  %v2213_v6 = vand.u32 2147483648, %v2202_v19  ;;  %vm2212_vm1 = vcmp.eq.f32.partialorder %v2202_v19, 0.0 }
0x1e41   : > { %v3908_v20 = vpop.eup %3907 }
0x1e42   : > { %v2204_v21 = vmul.f32 %v3908_v20, %v2202_v19 }
0x1e44   : > { %v2205_v26 = vmul.f32 %v3908_v20, %v2204_v21 }
0x1e46   : > { %v2206_v27 = vmul.f32 0.5, %v2205_v26 }
0x1e48   : > { %v2207_v3 = vsub.f32 1.5, %v2206_v27 }
0x1e4a   : > { %v2208_v4 = vmul.f32 %v3908_v20, %v2207_v3 }
0x1e4c   : > { %v2209_v5 = vmul.f32 %v2208_v4, %v2202_v19 }
0x1e4e   : > { %v2211_v39 = vsel %vm2210_vm15, %v2202_v19, %v2209_v5 }
0x1e4f   : > { %v2214_v25 = vsel %vm2212_vm1, %v2213_v6, %v2211_v39  ;;  %v2357_v6 = vld [vmem:[%s5140_s11] sm:$0x1] }
0x1e50   : > { %v2215_v11 = vadd.f32 1e-08, %v2214_v25 }
0x1e52   : > { %3909 = vrcp.f32 %v2215_v11  ;;  %v2227_v32 = vand.u32 2147483648, %v2215_v11  ;;  %v2225_v33 = vand.u32 2147483647, %v2215_v11  ;;  %vm2221_vm4 = vweird.f32 %v2215_v11 }
0x1e54   : > { %v2228_v45 = vor.u32 1.1754944e-38, %v2227_v32  ;;  %vm2226_vm6 = vcmp.eq.f32.partialorder %v2225_v33, 8.507059e+37 }
0x1e58   : > { %v3910_v35 = vpop.eup %3909 }
0x1e59   : > { %v2217_v31 = vmul.f32 %v3910_v35, %v2215_v11  ;;  %vm2222_vm2 = vweird.f32 %v3910_v35 }
0x1e5a   : > { %vm2223_vm5 = vmor %vm2221_vm4, %vm2222_vm2 }
0x1e5b   : > { %v2218_v37 = vsub.f32 1.0, %v2217_v31 }
0x1e5d   : > { %v2219_v43 = vmul.f32 %v3910_v35, %v2218_v37 }
0x1e5f   : > { %v2220_v44 = vadd.f32 %v3910_v35, %v2219_v43 }
0x1e61   : > { %v2224_v46 = vsel %vm2223_vm5, %v3910_v35, %v2220_v44 }
0x1e62   : > { %v2229_v47 = vsel %vm2226_vm6, %v2228_v45, %v2224_v46 }
0x1e63   : > { %v2230_v48 = vmul.f32 %v2229_v47, %v2197_v13 }
0x1e65   : > { %3491 = vmatmul.msk.f32.vlgmr.msra.gmra.mxu1 %vm886_vm7, %v2230_v48 }
0x1e66   : > { %2557 = vmatpush.msra.mxu1 %v5547_v54 }
0x1e68   : > { %2558 = vmatpush.msra.mxu1 %v5562_v23 }
0x1e6a   : > { %2559 = vmatpush.msra.mxu1 %v5567_v12 }
0x1e6c   : > { %2560 = vmatpush.msra.mxu1 %v5572_v24 }
0x1ee2   : > { %v2256_v50 = vpop.f32.mrf.mxu1 }
0x1ee3   : > { %v2257_v51 = vadd.f32 %v3490_v49, %v2256_v50 }
0x1ee5   : > { %vm2259_vm8 = vcmp.ge.f32.partialorder %v2257_v51, 0.0  ;;  %v2260_v52 = vmul.f32 0.2, %v2257_v51 }
0x1ee7   : > { %v2261_v60 = vsel %vm2259_vm8, %v2257_v51, %v2260_v52 }
0x1ee8   : > { %3497 = vmatmul.msk.f32.vlgmr.msra.gmra.mxu2 %vm886_vm7, %v2261_v60 }
0x1ee9   : > { %2617 = vmatpush.msra.mxu2 %v5442_v57  ;;  %v2297_v57 = vld [vmem:[%s5161_s23] sm:$0x1] }
0x1eeb   : > { %2618 = vmatpush.msra.mxu2 %v5445_v58 }
0x1eed   : > { %2619 = vmatpush.msra.mxu2 %v5449_v59 }
0x1eef   : > { %2620 = vmatpush.msra.mxu2 %v5455_v1 }
0x1f6b   : > { %v2287_v34 = vpop.f32.mrf.mxu2 }
0x1f6c   : > { %v2288_v40 = vadd.f32 %v3496_v62, %v2287_v34 }
0x1f6e   : > { %vm2290_vm9 = vcmp.ge.f32.partialorder %v2288_v40, 0.0  ;;  %v2291_v41 = vmul.f32 0.2, %v2288_v40 }
0x1f70   : > { %v2292_v55 = vsel %vm2290_vm9, %v2288_v40, %v2291_v41 }
0x1f71   : > { %3498 = vmatmul.msk.f32.vlgmr.msra.gmra.mxu3 %vm886_vm7, %v2292_v55 }
0x1f72   : > { %2648 = vmatpush.msra.mxu3 %v5459_v2 }
0x1f74   : > { %2649 = vmatpush.msra.mxu3 %v5465_v9 }
0x1f76   : > { %2650 = vmatpush.msra.mxu3 %v5469_v61 }
0x1f78   : > { %2651 = vmatpush.msra.mxu3 %v5473_v10 }
0x1ff4   : > { %v2318_v58 = vpop.f32.mrf.mxu3 }
0x1ff5   : > { %v2319_v59 = vadd.f32 %v2318_v58, %v2297_v57  ;;  %v3511_v58 = vld [vmem:[%s5140_s11 + $0x2] sm:$0x1] }
0x1ff7   : > { %v2321_v1 = vsel %vm1100_vm3, %v2319_v59, -inf }
0x1ff8   : > { %2322 = vmax.xlane.f32.xlu1 %v2321_v1 }
0x206b   : > { %v2323_v56 = vpop.xlane.xlu1 %2322 }
0x206c   : > { %v2324_v0 = vsub.f32 %v2319_v59, %v2323_v56 }
0x206e   : > { %v2325_v7 = vmul.f32 1.442695, %v2324_v0 }
0x2070   : > { %3911 = vpow2.f32 %v2325_v7  ;;  %v3517_v7 = vld [vmem:[%s5140_s11 + $0x3] sm:$0x1] }
0x2076   : > { %v3912_v8 = vpop.eup %3911 }
0x2077   : > { %v2327_v13 = vsel %vm1100_vm3, %v3912_v8, 0.0 }
0x2078   : > { %2328 = vadd.xlane.f32.xlu2 %v2327_v13 }
0x20eb   : > { %v2329_v2 = vpop.xlane.xlu2 %2328 }
0x20ec   : > { %3913 = vrcp.f32 %v2329_v2  ;;  %v2341_v10 = vand.u32 2147483648, %v2329_v2  ;;  %v2339_v19 = vand.u32 2147483647, %v2329_v2  ;;  %vm2335_vm11 = vweird.f32 %v2329_v2 }
0x20ee   : > { %v2342_v21 = vor.u32 1.1754944e-38, %v2341_v10  ;;  %vm2340_vm13 = vcmp.eq.f32.partialorder %v2339_v19, 8.507059e+37 }
0x20f2   : > { %v3914_v9 = vpop.eup %3913 }
0x20f3   : > { %v2331_v61 = vmul.f32 %v3914_v9, %v2329_v2  ;;  %vm2336_vm10 = vweird.f32 %v3914_v9 }
0x20f4   : > { %vm2337_vm12 = vmor %vm2335_vm11, %vm2336_vm10 }
0x20f5   : > { %v2332_v14 = vsub.f32 1.0, %v2331_v61 }
0x20f7   : > { %v2333_v18 = vmul.f32 %v3914_v9, %v2332_v14 }
0x20f9   : > { %v2334_v20 = vadd.f32 %v3914_v9, %v2333_v18 }
0x20fb   : > { %v2338_v26 = vsel %vm2337_vm12, %v3914_v9, %v2334_v20 }
0x20fc   : > { %v2343_v27 = vsel %vm2340_vm13, %v2342_v21, %v2338_v26 }
0x20fd   : > { %v2344_v3 = vmul.f32 %v3912_v8, %v2343_v27 }
0x20ff   : > { %2347 = vperm.xlu1 %3856, %v2344_v3   ;;  %2352 = vst.msk [vmem:[#allocation3 + $0x5] sm:$0x1] %vm1100_vm3, %v2344_v3 }
0x2171   : > { %v2348_v4 = vpop.permute.xlu1 %2347 }
0x2172   : > { %v2350_v5 = vmul.f32 %v2348_v4, %v2230_v48 }
0x2174   : > { %2351 = vst.msk [vmem:[#allocation2 + $0x5] sm:$0x1] %vm849_vm0, %v2350_v5  ;;  %3499 = vmatmul.msk.f32.vlgmr.msrb.gmra.mxu0 %vm886_vm7, %v2350_v5 }
0x2175   : > { %2679 = vmatpush.msrb.mxu0 %v5477_v22  ;;  %v3504_v22 = vld [vmem:[%s5140_s11 + $0x1] sm:$0x1] }
0x2177   : > { %2680 = vmatpush.msrb.mxu0 %v5483_v15 }
0x2179   : > { %2681 = vmatpush.msrb.mxu0 %v5487_v16 }
0x217b   : > { %2682 = vmatpush.msrb.mxu0 %v5491_v17 }
0x21f1   : > { %v2378_v39 = vpop.f32.mrf.mxu0 }
0x21f2   : > { %v2379_v25 = vadd.f32 %v2378_v39, %v2357_v6 }
0x21f4   : > { %vm2381_vm14 = vcmp.ge.f32.partialorder %v2379_v25, 0.0  ;;  %v2382_v11 = vmul.f32 0.2, %v2379_v25 }
0x21f6   : > { %v2383_v35 = vsel %vm2381_vm14, %v2379_v25, %v2382_v11 }
0x21f7   : > { %3505 = vmatmul.msk.f32.vlgmr.msrb.gmra.mxu1 %vm886_vm7, %v2383_v35 }
0x21f8   : > { %2739 = vmatpush.msrb.mxu1 %v5503_v28  ;;  %v2419_v28 = vld [vmem:[%s5154_s24] sm:$0x1] }
0x21fa   : > { %2740 = vmatpush.msrb.mxu1 %v5506_v29 }
0x21fc   : > { %2741 = vmatpush.msrb.mxu1 %v5510_v30 }
0x21fe   : > { %2742 = vmatpush.msrb.mxu1 %v5514_v38 }
0x2274   : > { %v2409_v15 = vpop.f32.mrf.mxu1 }
0x2275   : > { %v2410_v16 = vadd.f32 %v3504_v22, %v2409_v15 }
0x2277   : > { %vm2412_vm15 = vcmp.ge.f32.partialorder %v2410_v16, 0.0  ;;  %v2413_v17 = vmul.f32 0.2, %v2410_v16 }
0x2279   : > { %v2414_v31 = vsel %vm2412_vm15, %v2410_v16, %v2413_v17  ;;  %v2601_v16 = vld [vmem:[%s5140_s11] sm:$0x1] }
0x227a   : > { %3506 = vmatmul.msk.f32.vlgmr.msrb.gmra.mxu2 %vm886_vm7, %v2414_v31 }
0x227b   : > { %2770 = vmatpush.msrb.mxu2 %v5523_v36 }
0x227d   : > { %2771 = vmatpush.msrb.mxu2 %v5532_v42 }
0x227f   : > { %2772 = vmatpush.msrb.mxu2 %v5537_v63 }
0x2281   : > { %2773 = vmatpush.msrb.mxu2 %v5542_v53 }
0x22fd   : > { %v2440_v29 = vpop.f32.mrf.mxu2 }
0x22fe   : > { %v2441_v30 = vadd.f32 %v2440_v29, %v2419_v28 }
0x2300   : > { %v2443_v38 = vmul.f32 %v2441_v30, %v2441_v30 }
0x2302   : > { %v2444_v37 = vsel %vm849_vm0, %v2443_v38, 0.0 }
0x2303   : > { %2445 = vadd.xlane.f32.xlu0 %v2444_v37 }
0x2376   : > { %v2446_v32 = vpop.xlane.xlu0 %2445 }
0x2377   : > { %3915 = vrsqrt.f32 %v2446_v32  ;;  %vm2454_vm1 = vcmp.eq.f32.partialorder %v2446_v32, inf  ;;  %v2457_v63 = vand.u32 2147483648, %v2446_v32  ;;  %vm2456_vm2 = vcmp.eq.f32.partialorder %v2446_v32, 0.0 }
0x237d   : > { %v3916_v43 = vpop.eup %3915 }
0x237e   : > { %v2448_v33 = vmul.f32 %v3916_v43, %v2446_v32 }
0x2380   : > { %v2449_v44 = vmul.f32 %v3916_v43, %v2448_v33  ;;  %v2663_v33 = vld [vmem:[%s5154_s24] sm:$0x1] }
0x2382   : > { %v2450_v45 = vmul.f32 0.5, %v2449_v44 }
0x2384   : > { %v2451_v36 = vsub.f32 1.5, %v2450_v45 }
0x2386   : > { %v2452_v46 = vmul.f32 %v3916_v43, %v2451_v36 }
0x2388   : > { %v2453_v42 = vmul.f32 %v2452_v46, %v2446_v32 }
0x238a   : > { %v2455_v47 = vsel %vm2454_vm1, %v2446_v32, %v2453_v42 }
0x238b   : > { %v2458_v53 = vsel %vm2456_vm2, %v2457_v63, %v2455_v47 }
0x238c   : > { %v2459_v48 = vadd.f32 1e-08, %v2458_v53 }
0x238e   : > { %3917 = vrcp.f32 %v2459_v48  ;;  %v2471_v52 = vand.u32 2147483648, %v2459_v48  ;;  %v2469_v62 = vand.u32 2147483647, %v2459_v48  ;;  %vm2465_vm5 = vweird.f32 %v2459_v48 }
0x2390   : > { %v2472_v40 = vor.u32 1.1754944e-38, %v2471_v52  ;;  %vm2470_vm8 = vcmp.eq.f32.partialorder %v2469_v62, 8.507059e+37 }
0x2394   : > { %v3918_v49 = vpop.eup %3917 }
0x2395   : > { %v2461_v50 = vmul.f32 %v3918_v49, %v2459_v48  ;;  %vm2466_vm4 = vweird.f32 %v3918_v49 }
0x2396   : > { %vm2467_vm6 = vmor %vm2465_vm5, %vm2466_vm4 }
0x2397   : > { %v2462_v51 = vsub.f32 1.0, %v2461_v50 }
0x2399   : > { %v2463_v60 = vmul.f32 %v3918_v49, %v2462_v51 }
0x239b   : > { %v2464_v34 = vadd.f32 %v3918_v49, %v2463_v60 }
0x239d   : > { %v2468_v41 = vsel %vm2467_vm6, %v3918_v49, %v2464_v34 }
0x239e   : > { %v2473_v55 = vsel %vm2470_vm8, %v2472_v40, %v2468_v41 }
0x239f   : > { %v2474_v57 = vmul.f32 %v2473_v55, %v2441_v30  ;;  %v3525_v30 = vld [vmem:[%s5140_s11 + $0x1] sm:$0x1] }
0x23a1   : > { %3512 = vmatmul.msk.f32.vlgmr.msrb.gmra.mxu3 %vm886_vm7, %v2474_v57 }
0x23a2   : > { %2801 = vmatpush.msrb.mxu3 %v5547_v54 }
0x23a4   : > { %2802 = vmatpush.msrb.mxu3 %v5562_v23  ;;  %v2541_v23 = vld [vmem:[%s5161_s23] sm:$0x1] }
0x23a6   : > { %2803 = vmatpush.msrb.mxu3 %v5567_v12 }
0x23a8   : > { %2804 = vmatpush.msrb.mxu3 %v5572_v24 }
0x2424   : > { %v2500_v59 = vpop.f32.mrf.mxu3 }
0x2425   : > { %v2501_v1 = vadd.f32 %v3511_v58, %v2500_v59 }
0x2427   : > { %vm2503_vm9 = vcmp.ge.f32.partialorder %v2501_v1, 0.0  ;;  %v2504_v56 = vmul.f32 0.2, %v2501_v1 }
0x2429   : > { %v2505_v0 = vsel %vm2503_vm9, %v2501_v1, %v2504_v56 }
0x242a   : > { %3518 = vmatmul.msk.f32.vlgmr.msra.gmra.mxu0 %vm886_vm7, %v2505_v0 }
0x24a7   : > { %v2531_v8 = vpop.f32.mrf.mxu0 }
0x24a8   : > { %v2532_v13 = vadd.f32 %v3517_v7, %v2531_v8 }
0x24aa   : > { %vm2534_vm10 = vcmp.ge.f32.partialorder %v2532_v13, 0.0  ;;  %v2535_v54 = vmul.f32 0.2, %v2532_v13 }
0x24ac   : > { %v2536_v2 = vsel %vm2534_vm10, %v2532_v13, %v2535_v54  ;;  %v3532_v13 = vld [vmem:[%s5140_s11 + $0x2] sm:$0x1] }
0x24ad   : > { %3519 = vmatmul.msk.f32.vlgmr.msra.gmra.mxu1 %vm886_vm7, %v2536_v2 }
0x252a   : > { %v2562_v12 = vpop.f32.mrf.mxu1 }
0x252b   : > { %v2563_v9 = vadd.f32 %v2562_v12, %v2541_v23 }
0x252d   : > { %v2565_v24 = vsel %vm1100_vm3, %v2563_v9, -inf }
0x252e   : > { %2566 = vmax.xlane.f32.xlu2 %v2565_v24 }
0x25a1   : > { %v2567_v61 = vpop.xlane.xlu2 %2566 }
0x25a2   : > { %v2568_v14 = vsub.f32 %v2563_v9, %v2567_v61  ;;  %v3538_v9 = vld [vmem:[%s5140_s11 + $0x3] sm:$0x1] }
0x25a4   : > { %v2569_v10 = vmul.f32 1.442695, %v2568_v14 }
0x25a6   : > { %3919 = vpow2.f32 %v2569_v10 }
0x25ac   : > { %v3920_v18 = vpop.eup %3919 }
0x25ad   : > { %v2571_v19 = vsel %vm1100_vm3, %v3920_v18, 0.0 }
0x25ae   : > { %2572 = vadd.xlane.f32.xlu2 %v2571_v19 }
0x2621   : > { %v2573_v20 = vpop.xlane.xlu2 %2572 }
0x2622   : > { %3921 = vrcp.f32 %v2573_v20  ;;  %v2585_v3 = vand.u32 2147483648, %v2573_v20  ;;  %v2583_v5 = vand.u32 2147483647, %v2573_v20  ;;  %vm2579_vm12 = vweird.f32 %v2573_v20 }
0x2624   : > { %v2586_v39 = vor.u32 1.1754944e-38, %v2585_v3  ;;  %vm2584_vm14 = vcmp.eq.f32.partialorder %v2583_v5, 8.507059e+37 }
0x2628   : > { %v3922_v21 = vpop.eup %3921 }
0x2629   : > { %v2575_v26 = vmul.f32 %v3922_v21, %v2573_v20  ;;  %vm2580_vm11 = vweird.f32 %v3922_v21 }
0x262a   : > { %vm2581_vm13 = vmor %vm2579_vm12, %vm2580_vm11 }
0x262b   : > { %v2576_v27 = vsub.f32 1.0, %v2575_v26 }
0x262d   : > { %v2577_v4 = vmul.f32 %v3922_v21, %v2576_v27 }
0x262f   : > { %v2578_v6 = vadd.f32 %v3922_v21, %v2577_v4 }
0x2631   : > { %v2582_v25 = vsel %vm2581_vm13, %v3922_v21, %v2578_v6 }
0x2632   : > { %v2587_v11 = vsel %vm2584_vm14, %v2586_v39, %v2582_v25 }
0x2633   : > { %v2588_v35 = vmul.f32 %v3920_v18, %v2587_v11  ;;  %v2785_v18 = vld [vmem:[%s5161_s23] sm:$0x1] }
0x2635   : > { %2591 = vperm.xlu2 %3854, %v2588_v35   ;;  %2596 = vst.msk [vmem:[#allocation3 + $0x6] sm:$0x1] %vm1100_vm3, %v2588_v35 }
0x268f   : > { %v2592_v22 = vpop.permute.xlu2 %2591 }
0x2690   : > { %v2594_v15 = vmul.f32 %v2592_v22, %v2474_v57 }
0x2692   : > { %2595 = vst.msk [vmem:[#allocation2 + $0x6] sm:$0x1] %vm849_vm0, %v2594_v15  ;;  %3520 = vmatmul.msk.f32.vlgmr.msra.gmra.mxu2 %vm886_vm7, %v2594_v15 }
0x2715   : > { %v2622_v17 = vpop.f32.mrf.mxu2 }
0x2716   : > { %v2623_v31 = vadd.f32 %v2622_v17, %v2601_v16 }
0x2718   : > { %vm2625_vm15 = vcmp.ge.f32.partialorder %v2623_v31, 0.0  ;;  %v2626_v28 = vmul.f32 0.2, %v2623_v31 }
0x271a   : > { %v2627_v29 = vsel %vm2625_vm15, %v2623_v31, %v2626_v28 }
0x271b   : > { %3526 = vmatmul.msk.f32.vlgmr.msra.gmra.mxu3 %vm886_vm7, %v2627_v29 }
0x279e   : > { %v2653_v38 = vpop.f32.mrf.mxu3 }
0x279f   : > { %v2654_v37 = vadd.f32 %v3525_v30, %v2653_v38  ;;  %v3544_v38 = vld [vmem:[%s5132_s22 + $0x98] sm:$0xff] }
0x27a0   : > { %2870 = vmatpush.msra.mxu0 %v3544_v38 }
0x27a1   : > { %vm2656_vm1 = vcmp.ge.f32.partialorder %v2654_v37, 0.0  ;;  %v2657_v32 = vmul.f32 0.2, %v2654_v37 }
0x27a3   : > { %v2658_v43 = vsel %vm2656_vm1, %v2654_v37, %v2657_v32  ;;  %vm2843_vm1 = vcmask 15360   ;;  %v3557_v37 = vld [vmem:[%s5132_s22 + $0xd8] sm:$0xff]  ;;  %v3543_v32 = vld [vmem:[%s5132_s22 + $0x90] sm:$0xff] }
0x27a4   : > { %3527 = vmatmul.msk.f32.vlgmr.msrb.gmra.mxu0 %vm886_vm7, %v2658_v43  ;;  %2972 = vmatpush.msra.mxu3 %v3557_v37  ;;  %v3556_v43 = vld [vmem:[%s5132_s22 + $0xd0] sm:$0xff] }
0x27a5   : > { %2871 = vmatpush.msra.mxu0 %v3543_v32 }
0x27a6   : > { %2973 = vmatpush.msra.mxu3 %v3556_v43 }
0x2821   : > { %v2684_v44 = vpop.f32.mrf.mxu0 }
0x2822   : > { %v2685_v45 = vadd.f32 %v2684_v44, %v2663_v33  ;;  %v3542_v33 = vld [vmem:[%s5132_s22 + $0x88] sm:$0xff] }
0x2823   : > { %v3555_v44 = vld [vmem:[%s5132_s22 + $0xc8] sm:$0xff]  ;;  %2872 = vmatpush.msra.mxu0 %v3542_v33 }
0x2824   : > { %v2687_v36 = vmul.f32 %v2685_v45, %v2685_v45  ;;  %2974 = vmatpush.msra.mxu3 %v3555_v44 }
0x2826   : > { %v2688_v46 = vsel %vm849_vm0, %v2687_v36, 0.0  ;;  %v3554_v36 = vld [vmem:[%s5132_s22 + $0xc0] sm:$0xff] }
0x2827   : > { %2689 = vadd.xlane.f32.xlu1 %v2688_v46  ;;  %2975 = vmatpush.msra.mxu3 %v3554_v36  ;;  %v3550_v46 = vld [vmem:[%s5132_s22 + $0xb8] sm:$0xff] }
0x2828   : > { %2906 = vmatpush.msra.mxu1 %v3550_v46 }
0x289a   : > { %v2690_v42 = vpop.xlane.xlu1 %2689 }
0x289b   : > { %3923 = vrsqrt.f32 %v2690_v42  ;;  %vm2698_vm2 = vcmp.eq.f32.partialorder %v2690_v42, inf  ;;  %v2701_v52 = vand.u32 2147483648, %v2690_v42  ;;  %vm2700_vm4 = vcmp.eq.f32.partialorder %v2690_v42, 0.0 }
0x28a1   : > { %v3924_v63 = vpop.eup %3923 }
0x28a2   : > { %v2692_v47 = vmul.f32 %v3924_v63, %v2690_v42 }
0x28a4   : > { %v2693_v53 = vmul.f32 %v3924_v63, %v2692_v47 }
0x28a6   : > { %v2694_v48 = vmul.f32 0.5, %v2693_v53  ;;  %v3549_v53 = vld [vmem:[%s5132_s22 + $0xb0] sm:$0xff] }
0x28a7   : > { %2907 = vmatpush.msra.mxu1 %v3549_v53 }
0x28a8   : > { %v2695_v49 = vsub.f32 1.5, %v2694_v48  ;;  %v3548_v48 = vld [vmem:[%s5132_s22 + $0xa8] sm:$0xff] }
0x28a9   : > { %2908 = vmatpush.msra.mxu1 %v3548_v48 }
0x28aa   : > { %v2696_v50 = vmul.f32 %v3924_v63, %v2695_v49  ;;  %v3547_v49 = vld [vmem:[%s5132_s22 + $0xa0] sm:$0xff] }
0x28ab   : > { %2909 = vmatpush.msra.mxu1 %v3547_v49 }
0x28ac   : > { %v2697_v51 = vmul.f32 %v2696_v50, %v2690_v42  ;;  %v3563_v50 = vld [vmem:[%s5132_s22 + $0xf8] sm:$0xff] }
0x28ae   : > { %v2699_v60 = vsel %vm2698_vm2, %v2690_v42, %v2697_v51  ;;  %v3562_v51 = vld [vmem:[%s5132_s22 + $0xf0] sm:$0xff] }
0x28af   : > { %v2702_v62 = vsel %vm2700_vm4, %v2701_v52, %v2699_v60  ;;  %v3561_v52 = vld [vmem:[%s5132_s22 + $0xe8] sm:$0xff]  ;;  %v3560_v60 = vld [vmem:[%s5132_s22 + $0xe0] sm:$0xff] }
0x28b0   : > { %v2703_v34 = vadd.f32 1e-08, %v2702_v62  ;;  %v2920_v62 = vld [vmem:[%s830_s28 + $0x18] sm:$0xff] }
0x28b1   : > { %2940 = vmatpush.msra.mxu2 %v2920_v62 }
0x28b2   : > { %3925 = vrcp.f32 %v2703_v34  ;;  %v2715_v57 = vand.u32 2147483648, %v2703_v34  ;;  %v2713_v59 = vand.u32 2147483647, %v2703_v34  ;;  %vm2709_vm6 = vweird.f32 %v2703_v34 }
0x28b4   : > { %v2716_v56 = vor.u32 1.1754944e-38, %v2715_v57  ;;  %vm2714_vm9 = vcmp.eq.f32.partialorder %v2713_v59, 8.507059e+37  ;;  %v3858_v57 = vld [vmem:[%s5140_s11 + $0x6] ss:$0 sm:$0xff] }
0x28b8   : > { %v3926_v40 = vpop.eup %3925 }
0x28b9   : > { %v2705_v41 = vmul.f32 %v3926_v40, %v2703_v34  ;;  %vm2710_vm5 = vweird.f32 %v3926_v40  ;;  %v3857_v34 = vld [vmem:[%s5140_s11 + $0x4] ss:$0 sm:$0xff] }
0x28ba   : > { %vm2711_vm8 = vmor %vm2709_vm6, %vm2710_vm5  ;;  %vm2948_vm5 = vcmask 138240  }
0x28bb   : > { %v2706_v55 = vsub.f32 1.0, %v2705_v41 }
0x28bd   : > { %v2707_v58 = vmul.f32 %v3926_v40, %v2706_v55 }
0x28bf   : > { %v2708_v1 = vadd.f32 %v3926_v40, %v2707_v58 }
0x28c1   : > { %v2712_v0 = vsel %vm2711_vm8, %v3926_v40, %v2708_v1 }
0x28c2   : > { %v2717_v7 = vsel %vm2714_vm9, %v2716_v56, %v2712_v0 }
0x28c3   : > { %v5673_v8 = vmul.f32 %v2717_v7, %v2685_v45  ;;  %v3541_v45 = vld [vmem:[%s5132_s22 + $0x80] sm:$0xff] }
0x28c4   : > { %2873 = vmatpush.msra.mxu0 %v3541_v45  ;;  %v2919_v7 = vld [vmem:[%s830_s28 + $0x10] sm:$0xff] }
0x28c5   : > { %3533 = vmatmul.msk.f32.vlgmr.msrb.gmra.mxu1 %vm886_vm7, %v5673_v8  ;;  %2941 = vmatpush.msra.mxu2 %v2919_v7 }
0x28c6   : > { %3008 = vmatpush.msrb.mxu0 %v3563_v50 }
0x28c8   : > { %3009 = vmatpush.msrb.mxu0 %v3562_v51 }
0x28ca   : > { %3010 = vmatpush.msrb.mxu0 %v3561_v52 }
0x28cc   : > { %3011 = vmatpush.msrb.mxu0 %v3560_v60 }
0x2942   : > { %v2744_v54 = vpop.f32.mrf.mxu1 }
0x2943   : > { %v2745_v2 = vadd.f32 %v3532_v13, %v2744_v54  ;;  %v2917_v13 = vld [vmem:[%s830_s28] sm:$0xff] }
0x2944   : > { %v3022_v54 = vld [vmem:[%s5175_s0 + $0x18] sm:$0xff] }
0x2945   : > { %vm2747_vm10 = vcmp.ge.f32.partialorder %v2745_v2, 0.0  ;;  %v2748_v23 = vmul.f32 0.2, %v2745_v2  ;;  %3042 = vmatpush.msrb.mxu1 %v3022_v54 }
0x2947   : > { %v2749_v12 = vsel %vm2747_vm10, %v2745_v2, %v2748_v23  ;;  %v3021_v2 = vld [vmem:[%s5175_s0 + $0x10] sm:$0xff]  ;;  %v3020_v23 = vld [vmem:[%s5175_s0 + $0x8] sm:$0xff] }
0x2948   : > { %3539 = vmatmul.msk.f32.vlgmr.msrb.gmra.mxu2 %vm886_vm7, %v2749_v12  ;;  %3043 = vmatpush.msrb.mxu1 %v3021_v2  ;;  %v3019_v12 = vld [vmem:[%s5175_s0] sm:$0xff] }
0x294a   : > { %3044 = vmatpush.msrb.mxu1 %v3020_v23 }
0x294c   : > { %3045 = vmatpush.msrb.mxu1 %v3019_v12 }
0x29cb   : > { %v2775_v24 = vpop.f32.mrf.mxu2 }
0x29cc   : > { %v2776_v61 = vadd.f32 %v3538_v9, %v2775_v24  ;;  %v3859_v9 = vld [vmem:[%s5140_s11 + $0x5] ss:$0 sm:$0xff] }
0x29ce   : > { %vm2778_vm11 = vcmp.ge.f32.partialorder %v2776_v61, 0.0  ;;  %v2779_v14 = vmul.f32 0.2, %v2776_v61 }
0x29d0   : > { %v2780_v10 = vsel %vm2778_vm11, %v2776_v61, %v2779_v14 }
0x29d1   : > { %3540 = vmatmul.msk.f32.vlgmr.msrb.gmra.mxu3 %vm886_vm7, %v2780_v10  ;;  %v3860_v10 = vld [vmem:[%s5140_s11 + $0x7] ss:$0 sm:$0xff] }
0x2a54   : > { %v2806_v19 = vpop.f32.mrf.mxu3 }
0x2a55   : > { %v2807_v20 = vadd.f32 %v2806_v19, %v2785_v18 }
0x2a57   : > { %v2809_v21 = vsel %vm1100_vm3, %v2807_v20, -inf }
0x2a58   : > { %2810 = vmax.xlane.f32.xlu0 %v2809_v21 }
0x2acb   : > { %v2811_v26 = vpop.xlane.xlu0 %2810 }
0x2acc   : > { %v2812_v27 = vsub.f32 %v2807_v20, %v2811_v26 }
0x2ace   : > { %v2813_v3 = vmul.f32 1.442695, %v2812_v27  ;;  %v3861_v27 = vld [vmem:[%s5168_s27] ss:$0 sm:$0xff] }
0x2ad0   : > { %3927 = vpow2.f32 %v2813_v3  ;;  %v3862_v3 = vld [vmem:[%s5182_s10] ss:$0 sm:$0xff] }
0x2ad6   : > { %v3928_v4 = vpop.eup %3927 }
0x2ad7   : > { %v2815_v5 = vsel %vm1100_vm3, %v3928_v4, 0.0 }
0x2ad8   : > { %2816 = vadd.xlane.f32.xlu2 %v2815_v5 }
0x2b4b   : > { %v2817_v6 = vpop.xlane.xlu2 %2816 }
0x2b4c   : > { %3929 = vrcp.f32 %v2817_v6  ;;  %v2829_v35 = vand.u32 2147483648, %v2817_v6  ;;  %v2827_v15 = vand.u32 2147483647, %v2817_v6  ;;  %vm2823_vm13 = vweird.f32 %v2817_v6 }
0x2b4e   : > { %v2830_v17 = vor.u32 1.1754944e-38, %v2829_v35  ;;  %vm2828_vm15 = vcmp.eq.f32.partialorder %v2827_v15, 8.507059e+37 }
0x2b52   : > { %v3930_v39 = vpop.eup %3929 }
0x2b53   : > { %v2819_v25 = vmul.f32 %v3930_v39, %v2817_v6  ;;  %vm2824_vm12 = vweird.f32 %v3930_v39 }
0x2b54   : > { %vm2825_vm14 = vmor %vm2823_vm13, %vm2824_vm12 }
0x2b55   : > { %v2820_v11 = vsub.f32 1.0, %v2819_v25 }
0x2b57   : > { %v2821_v22 = vmul.f32 %v3930_v39, %v2820_v11 }
0x2b59   : > { %v2822_v16 = vadd.f32 %v3930_v39, %v2821_v22 }
0x2b5b   : > { %v2826_v31 = vsel %vm2825_vm14, %v3930_v39, %v2822_v16 }
0x2b5c   : > { %v2831_v28 = vsel %vm2828_vm15, %v2830_v17, %v2826_v31 }
0x2b5d   : > { %v2832_v29 = vmul.f32 %v3928_v4, %v2831_v28 }
0x2b5f   : > { %2835 = vperm.xlu0 %3855, %v2832_v29   ;;  %2840 = vst.msk [vmem:[#allocation3 + $0x7] sm:$0x1] %vm1100_vm3, %v2832_v29 }
0x2b66   : > { %v2842_v30 = vld [vmem:[#allocation3] sm:$0xff] }
0x2b67   : > { %2844 = vst.msk [vmem:[%s838_s15] sm:$0xff] %vm2843_vm1, %v2842_v30 }
0x2bd1   : > { %v2836_v42 = vpop.permute.xlu0 %2835 }
0x2bd2   : > { %v2838_v63 = vmul.f32 %v2836_v42, %v5673_v8  ;;  %v2918_v8 = vld [vmem:[%s830_s28 + $0x8] sm:$0xff] }
0x2bd3   : > { %2942 = vmatpush.msra.mxu2 %v2918_v8 }
0x2bd4   : > { %2839 = vst.msk [vmem:[#allocation2 + $0x7] sm:$0x1] %vm849_vm0, %v2838_v63 }
0x2bd5   : > { %2943 = vmatpush.msra.mxu2 %v2917_v13 }
0x2bdb   : > { %v2841_v47 = vld [vmem:[#allocation2] sm:$0xff] }
0x2bdc   : > { %3546 = vmatmul.msk.f32.vlgmr.msra.gmra.mxu0 %vm886_vm7, %v2841_v47  ;;  %3559 = vmatmul.msk.f32.vlgmr.msra.gmra.mxu3 %vm886_vm7, %v2841_v47 }
0x2c59   : > { %v2875_v40 = vpop.f32.mrf.mxu0 }
0x2c5a   : > { %v2876_v41 = vadd.f32 %v3857_v34, %v2875_v40 }
0x2c5c   : > { %vm2878_vm0 = vcmp.ge.f32.partialorder %v2876_v41, 0.0  ;;  %v2879_v55 = vmul.f32 0.2, %v2876_v41 }
0x2c5e   : > { %v2880_v58 = vsel %vm2878_vm0, %v2876_v41, %v2879_v55 }
0x2c5f   : > { %3552 = vmatmul.msk.f32.vlgmr.msra.gmra.mxu1 %vm886_vm7, %v2880_v58  ;;  %v2977_v59 = vpop.f32.mrf.mxu3 }
0x2c60   : > { %v2978_v1 = vadd.f32 %v3858_v57, %v2977_v59 }
0x2c62   : > { %vm2980_vm3 = vcmp.ge.f32.partialorder %v2978_v1, 0.0  ;;  %v2981_v56 = vmul.f32 0.2, %v2978_v1 }
0x2c64   : > { %v2982_v0 = vsel %vm2980_vm3, %v2978_v1, %v2981_v56 }
0x2c65   : > { %3565 = vmatmul.msk.f32.vlgmr.msrb.gmra.mxu0 %vm886_vm7, %v2982_v0 }
0x2cdc   : > { %v2911_v24 = vpop.f32.mrf.mxu1 }
0x2cdd   : > { %v2912_v61 = vadd.f32 %v3859_v9, %v2911_v24 }
0x2cdf   : > { %vm2914_vm2 = vcmp.ge.f32.partialorder %v2912_v61, 0.0  ;;  %v2915_v14 = vmul.f32 0.2, %v2912_v61 }
0x2ce1   : > { %v2916_v18 = vsel %vm2914_vm2, %v2912_v61, %v2915_v14 }
0x2ce2   : > { %3553 = vmatmul.msk.f32.vlgmr.msra.gmra.mxu2 %vm886_vm7, %v2916_v18  ;;  %v3013_v19 = vpop.f32.mrf.mxu0 }
0x2ce3   : > { %v3014_v20 = vadd.f32 %v3860_v10, %v3013_v19 }
0x2ce5   : > { %vm3016_vm4 = vcmp.ge.f32.partialorder %v3014_v20, 0.0  ;;  %v3017_v21 = vmul.f32 0.2, %v3014_v20 }
0x2ce7   : > { %v3018_v26 = vsel %vm3016_vm4, %v3014_v20, %v3017_v21 }
0x2ce8   : > { %3566 = vmatmul.msk.f32.vlgmr.msrb.gmra.mxu1 %vm886_vm7, %v3018_v26 }
0x2d65   : > { %v2945_v4 = vpop.f32.mrf.mxu2  ;;  %v3047_v5 = vpop.f32.mrf.mxu1 }
0x2d66   : > { %v2946_v6 = vadd.f32 %v3861_v27, %v2945_v4  ;;  %v3048_v39 = vadd.f32 %v3862_v3, %v3047_v5 }
0x2d68   : > { %2949 = vst.msk [vmem:[%s842_s8] sm:$0xff] %vm2948_vm5, %v2946_v6 }
0x2d69   : > { %3050 = vst [vmem:[%s846_s30] sm:$0xff] %v3048_v39 }
0x2d6a PF: > { %s6039_s17 = sld [smem:[#allocation45_spill]]  ;;  %p45_p2 = scmp.ge.s32.totalorder %s5912_s7, 10  }
0x2d6b   : > { %s6040_s18 = sld [smem:[#allocation46_spill]]  ;;  %s6055_s0 = smov %s6104_s19 }
0x2d6c   : > { %s6041_s27 = sld [smem:[#allocation48_spill]]  ;;  %s6063_s28 = smov %s4371_s29 }
0x2d6d   : > { %s6042_s20 = sld [smem:[#allocation49_spill]] }
0x2d6e   : > { %s6043_s21 = sld [smem:[#allocation72_spill]] }
0x2d6f   : > { %s6044_s22 = sld [smem:[#allocation50_spill]] }
0x2d70   : > { %s6045_s23 = sld [smem:[#allocation51_spill]] }
0x2d71   : > { %s6046_s24 = sld [smem:[#allocation68_spill]] }
0x2d72   : > { %s6047_s25 = sld [smem:[#allocation53_spill]]  ;;  %s6057_s19 = smov %s6041_s27 }
0x2d73   : > { %s6048_s26 = sld [smem:[#allocation54_spill]] }
0x2d74   : > { %s6049_s10 = sld [smem:[#allocation71_spill]] }
0x2d75   : > { %s6050_s13 = sld [smem:[#allocation55_spill]] }
0x2d76   : > { %s6051_s30 = sld [smem:[#allocation67_spill]] }
0x2d77   : > { %s6052_s15 = sld [smem:[#allocation57_spill]] }
0x2d78   : > { %s6053_s16 = sld [smem:[#allocation58_spill]] }
0x2d79   : > { %s6054_s14 = sld [smem:[#allocation70_spill]] }
0x2d7a   : > { %s6056_s6 = sld [smem:[#allocation59_spill]]  ;;  %s6062_s27 = smov %s6049_s10 }
0x2d7b   : > { %s6058_s8 = sld [smem:[#allocation60_spill]]  ;;  %s6064_s29 = smov %s6050_s13 }
0x2d7c   : > { %s6059_s12 = sld [smem:[#allocation65_spill]]  ;;  %s6068_s10 = smov %s5912_s7 }
0x2d7d   : > { %s6060_s5 = sld [smem:[#allocation61_spill]] }
0x2d7e   : > { %s6061_s11 = sld [smem:[#allocation69_spill]] }
0x2d7f   :  { %47 = sbr.rel (!%p45_p2) target bundleno = 41 (0x29), region = 236 }
0x2d80   : > { %s6065_s13 = smov %s6056_s6  ;;  %s6066_s6 = smov %s4407_s1 }
0x2d83   : > { %s6067_s1 = smov %s6060_s5 }
0x2d84   :  { %3098 = vsyncpa [#allocation7], 1 }
0x2d85   :  { %3100 = vsyncpa [#allocation7 + $0x1], 1 }
0x2d86   :  { %3101 = vsyncpa [#allocation9], 1 }
0x2d87   :  { %3103 = vsyncpa [#allocation9 + $0x1], 1 }
0x2d88   :  { %3104 = vsyncpa [#allocation12], 1 }
0x2d89   :  { %3106 = vsyncpa [#allocation12 + $0x1], 1 }
0x2d8a   :  { %3107 = vsyncpa [#allocation15], 1 }
0x2d8b   :  { %3109 = vsyncpa [#allocation15 + $0x1], 1 }
0x2d8c   :  { %3110 = vsyncpa [#allocation18], 1 }
0x2d8d   :  { %3112 = vsyncpa [#allocation18 + $0x1], 1 }

// kernel: reverse.1
= control target key start
LH: loop header
LB: loop body
LE: loop exit
PB: predicated region body
PF: predicated region fallthrough
CT: control target
= control target key end

     0   :  { %v2_v0 = vlaneseq  ;;  %s109_s0 = inlined_call_operand.vmem [shape: f32[1,127], index: 0, kind: input, shape index: {}]   ;;  %s110_s1 = inlined_call_operand.vmem [shape: f32[1,127], index: 1, kind: output, shape index: {}]  }
   0x2   :  { %v3_v1 = vsub.s32 126, %v2_v0 }
   0x4   :  { %4 = vset.pattern.permute.xlu0 %v3_v1 }
   0x5   :  { %v21_v2 = vld [vmem:[%s109_s0] sm:$0x1] }
   0x6   :  { %22 = vst [vmem:[#allocation1] sm:$0x1] %v21_v2 }
   0xd   :  { %v40_v3 = vld [vmem:[#allocation1] sm:$0x1] }
   0xe   :  { %41 = vst [vmem:[#allocation0] sm:$0x1] %v40_v3 }
  0x15   :  { %v42_v4 = vld [vmem:[#allocation0] sm:$0xff] }
  0x16   :  { %43 = vperm.xlu0 %4, %v42_v4  }
  0x88   :  { %v44_v5 = vpop.permute.xlu0 %43 }
  0x89   :  { %45 = vst [vmem:[#allocation2] sm:$0xff] %v44_v5 }
  0x90   :  { %v48_v6 = vld [vmem:[#allocation2] sm:$0x1] }
  0x91   :  { %51 = vst [vmem:[#allocation3] sm:$0x1] %v48_v6 }
  0x98   :  { %v68_v7 = vld [vmem:[#allocation3] sm:$0x1] }
  0x99   :  { %69 = vst [vmem:[%s110_s1] sm:$0x1] %v68_v7 }

// kernel: conductor_forward.5
= control target key start
LH: loop header
LB: loop body
LE: loop exit
PB: predicated region body
PF: predicated region fallthrough
CT: control target
= control target key end

     0   :  { %s1886_s15 = smov 0   ;;  %s3229_s0 = inlined_call_operand.vmem [shape: f32[8,64,8], index: 0, kind: input, shape index: {}]   ;;  %s3230_s1 = inlined_call_operand.vmem [shape: f32[8,64,8], index: 1, kind: input, shape index: {}]   ;;  %s3231_s2 = inlined_call_operand.vmem [shape: f32[8,128], index: 2, kind: input, shape index: {}]   ;;  %s3232_s3 = inlined_call_operand.vmem [shape: f32[128,128], index: 3, kind: input, shape index: {}]   ;;  %s3233_s4 = inlined_call_operand.vmem [shape: f32[8,1,128], index: 4, kind: output, shape index: {}]  }
   0x1 LB: > { %s1759_s16 = sadd.s32 4294967295, %s1851_s15   ;;  %p1763_p0 = scmp.ge.s32.totalorder %s1851_s15, 1  ;;  %s1851_s15 = sphi %s1886_s15, %s14_s15  }
   0x2   : > { %p172_p1 = scmp.lt.s32.totalorder %s1851_s15, 9 }
   0x4   : > { %p173_p2 = pnand %p1763_p0, %p172_p1 }
   0x6   : > { %176 = sbr.rel (%p173_p2) target bundleno = 726 (0x2d6), region = 36 }
   0xb   : > { %v214_v0 = vld [vmem:[%s3231_s2] sm:$0xff]  ;;  %p201_p3 = scmp.lt.s32.totalorder %s1759_s16, 7  ;;  %vm223_vm0 = vcmask 64512   ;;  %v385_v5 = vld [vmem:[%s3232_s3 + $0x78] sm:$0xff]  ;;  %v384_v6 = vld [vmem:[%s3232_s3 + $0x70] sm:$0xff] }
   0xc   : > { %336 = vmatpush.msra.mxu1 %v214_v0  ;;  %263 = vmatpush.msra.mxu0 %v214_v0  ;;  %v383_v7 = vld [vmem:[%s3232_s3 + $0x68] sm:$0xff]  ;;  %v382_v8 = vld [vmem:[%s3232_s3 + $0x60] sm:$0xff]  ;;  %v381_v10 = vld [vmem:[%s3232_s3 + $0x58] sm:$0xff] }
   0xd   : > { %s3292_s16 = smov (!%p201_p3, %s1759_s16), 7  ;;  %386 = vmatpush.msra.mxu2 %v385_v5  ;;  %1813 = vmatpush.msra.mxu3 %v385_v5  ;;  %v380_v11 = vld [vmem:[%s3232_s3 + $0x50] sm:$0xff]  ;;  %v379_v12 = vld [vmem:[%s3232_s3 + $0x48] sm:$0xff]  ;;  %v378_v13 = vld [vmem:[%s3232_s3 + $0x40] sm:$0xff] }
   0xe   : > { %s1811_s19 = sshll.u32 %s3292_s16, 6  ;;  %v377_v15 = vld [vmem:[%s3232_s3 + $0x38] sm:$0xff]  ;;  %v376_v16 = vld [vmem:[%s3232_s3 + $0x30] sm:$0xff]  ;;  %v375_v17 = vld [vmem:[%s3232_s3 + $0x28] sm:$0xff]  ;;  %s213_s10 = scalar_lea.vmem %s3233_s4, %s3292_s16 }
   0xf   : > { %s1905_s22 = scalar_lea.vmem %s3230_s1, %s1811_s19  ;;  %387 = vmatpush.msra.mxu2 %v384_v6  ;;  %1814 = vmatpush.msra.mxu3 %v384_v6  ;;  %v374_v18 = vld [vmem:[%s3232_s3 + $0x20] sm:$0xff]  ;;  %v373_v20 = vld [vmem:[%s3232_s3 + $0x18] sm:$0xff]  ;;  %v372_v21 = vld [vmem:[%s3232_s3 + $0x10] sm:$0xff]  ;;  %s1976_s8 = scalar_lea.vmem %s3229_s0, %s1811_s19 }
  0x10   : > { %v289_v1 = vld [vmem:[%s1905_s22] sm:$0xff]  ;;  %v290_v2 = vld [vmem:[%s1905_s22 + $0x8] sm:$0xff]  ;;  %v291_v3 = vld [vmem:[%s1905_s22 + $0x10] sm:$0xff] }
  0x11   : > { %1776 = vmatmul.msk.f32.vlgmr.msra.gmra.mxu1 %vm223_vm0, %v289_v1  ;;  %v292_v4 = vld [vmem:[%s1905_s22 + $0x18] sm:$0xff]  ;;  %v293_v9 = vld [vmem:[%s1905_s22 + $0x20] sm:$0xff]  ;;  %388 = vmatpush.msra.mxu2 %v383_v7  ;;  %v294_v14 = vld [vmem:[%s1905_s22 + $0x28] sm:$0xff] }
  0x12   : > { %1815 = vmatpush.msra.mxu3 %v383_v7  ;;  %v295_v19 = vld [vmem:[%s1905_s22 + $0x30] sm:$0xff]  ;;  %v296_v22 = vld [vmem:[%s1905_s22 + $0x38] sm:$0xff]  ;;  %v371_v23 = vld [vmem:[%s3232_s3 + $0x8] sm:$0xff] }
  0x13   : > { %389 = vmatpush.msra.mxu2 %v382_v8  ;;  %v370_v24 = vld [vmem:[%s3232_s3] sm:$0xff]  ;;  %v216_v36 = vld [vmem:[%s1976_s8 + $0x8] sm:$0xff]  ;;  %v217_v39 = vld [vmem:[%s1976_s8 + $0x10] sm:$0xff] }
  0x14   : > { %1816 = vmatpush.msra.mxu3 %v382_v8  ;;  %v215_v33 = vld [vmem:[%s1976_s8] sm:$0xff]  ;;  %v218_v42 = vld [vmem:[%s1976_s8 + $0x18] sm:$0xff]  ;;  %v220_v46 = vld [vmem:[%s1976_s8 + $0x28] sm:$0xff]  ;;  %v3246_v8 = vmov 2131351028  }
  0x15   : > { %390 = vmatpush.msra.mxu2 %v381_v10  ;;  %1768 = vmatmul.msk.f32.vlgmr.msra.gmra.mxu0 %vm223_vm0, %v215_v33  ;;  %v219_v45 = vld [vmem:[%s1976_s8 + $0x20] sm:$0xff] }
  0x16   : > { %1817 = vmatpush.msra.mxu3 %v381_v10 }
  0x17   : > { %391 = vmatpush.msra.mxu2 %v380_v11 }
  0x18   : > { %1818 = vmatpush.msra.mxu3 %v380_v11  ;;  %v3244_v11 = vmov 2102212464  }
  0x19   : > { %1777 = vmatmul.msk.f32.gmra.mxu1 %vm223_vm0, %v290_v2  ;;  %392 = vmatpush.msra.mxu2 %v379_v12  ;;  %v3250_v2 = vmov 683565275  }
  0x1a   : > { %1819 = vmatpush.msra.mxu3 %v379_v12 }
  0x1b   : > { %393 = vmatpush.msra.mxu2 %v378_v13 }
  0x1c   : > { %1820 = vmatpush.msra.mxu3 %v378_v13 }
  0x1d   : > { %394 = vmatpush.msra.mxu2 %v377_v15  ;;  %1769 = vmatmul.msk.f32.gmra.mxu0 %vm223_vm0, %v216_v36 }
  0x1e   : > { %1821 = vmatpush.msra.mxu3 %v377_v15 }
  0x1f   : > { %395 = vmatpush.msra.mxu2 %v376_v16 }
  0x20   : > { %1822 = vmatpush.msra.mxu3 %v376_v16 }
  0x21   : > { %1778 = vmatmul.msk.f32.gmra.mxu1 %vm223_vm0, %v291_v3  ;;  %396 = vmatpush.msra.mxu2 %v375_v17 }
  0x22   : > { %1823 = vmatpush.msra.mxu3 %v375_v17  ;;  %v3239_v17 = vmov 1326507024  }
  0x23   : > { %397 = vmatpush.msra.mxu2 %v374_v18 }
  0x24   : > { %1824 = vmatpush.msra.mxu3 %v374_v18 }
  0x25   : > { %398 = vmatpush.msra.mxu2 %v373_v20  ;;  %1770 = vmatmul.msk.f32.gmra.mxu0 %vm223_vm0, %v217_v39 }
  0x26   : > { %1825 = vmatpush.msra.mxu3 %v373_v20 }
  0x27   : > { %399 = vmatpush.msra.mxu2 %v372_v21 }
  0x28   : > { %1826 = vmatpush.msra.mxu3 %v372_v21 }
  0x29   : > { %1779 = vmatmul.msk.f32.gmra.mxu1 %vm223_vm0, %v292_v4  ;;  %400 = vmatpush.msra.mxu2 %v371_v23  ;;  %v3248_v4 = vmov 2475754826  }
  0x2a   : > { %1827 = vmatpush.msra.mxu3 %v371_v23 }
  0x2b   : > { %401 = vmatpush.msra.mxu2 %v370_v24 }
  0x2c   : > { %1828 = vmatpush.msra.mxu3 %v370_v24 }
  0x2d   : > { %1771 = vmatmul.msk.f32.gmra.mxu0 %vm223_vm0, %v218_v42 }
  0x31   : > { %1780 = vmatmul.msk.f32.gmra.mxu1 %vm223_vm0, %v293_v9 }
  0x35   : > { %1772 = vmatmul.msk.f32.gmra.mxu0 %vm223_vm0, %v219_v45 }
  0x39   : > { %1781 = vmatmul.msk.f32.gmra.mxu1 %vm223_vm0, %v294_v14  ;;  %v3241_v14 = vmov 920167782  }
  0x3d   : > { %1773 = vmatmul.msk.f32.gmra.mxu0 %vm223_vm0, %v220_v46 }
  0x41   : > { %1782 = vmatmul.msk.f32.gmra.mxu1 %vm223_vm0, %v295_v19 }
  0x49   : > { %1783 = vmatmul.msk.f32.gmra.mxu1 %vm223_vm0, %v296_v22 }
  0x8e   : > { %v338_v25 = vpop.f32.mrf.mxu1 }
  0x8f   : > { %v362_v26 = vmul.f32 3.1415927, %v338_v25 }
  0x91   : > { %402 = vmatmul.f32.vlgmr.msra.gmra.mxu2 %v362_v26 }
  0x96   : > { %v341_v27 = vpop.f32.mrf.mxu1 }
  0x97   : > { %v363_v28 = vmul.f32 3.1415927, %v341_v27 }
  0x99   : > { %405 = vmatmul.f32.gmra.mxu2 %v363_v28 }
  0x9e   : > { %v344_v29 = vpop.f32.mrf.mxu1 }
  0x9f   : > { %v364_v30 = vmul.f32 3.1415927, %v344_v29 }
  0xa1   : > { %408 = vmatmul.f32.gmra.mxu2 %v364_v30 }
  0xa6   : > { %v347_v31 = vpop.f32.mrf.mxu1 }
  0xa7   : > { %v365_v32 = vmul.f32 3.1415927, %v347_v31 }
  0xa9   : > { %411 = vmatmul.f32.gmra.mxu2 %v365_v32 }
  0xae   : > { %v350_v34 = vpop.f32.mrf.mxu1 }
  0xaf   : > { %v366_v35 = vmul.f32 3.1415927, %v350_v34 }
  0xb1   : > { %414 = vmatmul.f32.gmra.mxu2 %v366_v35 }
  0xb6   : > { %v353_v37 = vpop.f32.mrf.mxu1 }
  0xb7   : > { %v367_v38 = vmul.f32 3.1415927, %v353_v37 }
  0xb9   : > { %417 = vmatmul.f32.vlgmr.msra.gmra.mxu3 %v367_v38 }
  0xbe   : > { %v356_v40 = vpop.f32.mrf.mxu1 }
  0xbf   : > { %v368_v41 = vmul.f32 3.1415927, %v356_v40 }
  0xc1   : > { %420 = vmatmul.f32.gmra.mxu3 %v368_v41 }
  0xc6   : > { %v359_v43 = vpop.f32.mrf.mxu1 }
  0xc7   : > { %v369_v44 = vmul.f32 3.1415927, %v359_v43 }
  0xc9   : > { %423 = vmatmul.f32.gmra.mxu3 %v369_v44 }
 0x114   : > { %v1990_v47 = vpop.f32.mrf.mxu2 }
 0x115   : > { %v427_v48 = vand.u32 2147483647, %v1990_v47  ;;  %v430_v49 = vand.u32 2139095040, %v1990_v47 }
 0x117   : > { %v431_v50 = vshrl.u32 %v430_v49, 23  ;;  %v434_v51 = vand.u32 8388607, %v427_v48 }
 0x119   : > { %v1784_v52 = vadd.s32 4294967169, %v431_v50  ;;  %v435_v53 = vor.u32 8388608, %v434_v51 }
 0x11b   : > { %v437_v54 = vadd.s32 1, %v1784_v52  ;;  %v1998_v56 = vshll.u32 %v435_v53, 8 }
 0x11c   : > { %v1996_v55 = vpop.f32.mrf.mxu2 }
 0x11d   : > { %vm438_vm1 = vcmp.gt.s32.totalorder %v437_v54, 0  ;;  %v3237_v58 = vand.u32 2147483647, %v1996_v55  ;;  %v585_v59 = vand.u32 2139095040, %v1996_v55  ;;  %v476_v62 = vand.u32 65535, %v1998_v56 }
 0x11e   : > { %v439_v57 = vsel %vm438_vm1, %v437_v54, 0  ;;  %v477_v63 = vshrl.u32 %v1998_v56, 16 }
 0x11f   : > { %v441_v60 = vand.u32 31, %v439_v57  ;;  %v586_v0 = vshrl.u32 %v585_v59, 23  ;;  %v440_v1 = vshrl.u32 %v439_v57, 5  ;;  %v2008_v6 = vand.u32 8388607, %v3237_v58 }
 0x121   : > { %v442_v61 = vsub.s32 32, %v441_v60  ;;  %v444_v3 = vshll.u32 %v3250_v2, %v441_v60  ;;  %v447_v5 = vshll.u32 %v3248_v4, %v441_v60  ;;  %v450_v10 = vshll.u32 %v3246_v8, %v441_v60 }
 0x122   : > { %v453_v13 = vshll.u32 %v3244_v11, %v441_v60  ;;  %v456_v16 = vshll.u32 %v3241_v14, %v441_v60  ;;  %v1787_v22 = vadd.s32 4294967169, %v586_v0  ;;  %vm459_vm2 = vcmp.lt.s32.totalorder %v440_v1, 1 }
 0x123   : > { %v445_v7 = vshrl.u32 %v3248_v4, %v442_v61  ;;  %v448_v9 = vshrl.u32 %v3246_v8, %v442_v61  ;;  %v451_v12 = vshrl.u32 %v3244_v11, %v442_v61  ;;  %v454_v15 = vshrl.u32 %v3241_v14, %v442_v61 }
 0x124   : > { %v457_v18 = vshrl.u32 %v3239_v17, %v442_v61  ;;  %vm462_vm3 = vcmp.lt.s32.totalorder %v440_v1, 4  ;;  %v443_v25 = vshrl.u32 %v3250_v2, %v442_v61  ;;  %vm461_vm4 = vcmp.lt.s32.totalorder %v440_v1, 3 }
 0x125   : > { %v446_v19 = vor.u32 %v445_v7, %v444_v3  ;;  %v449_v20 = vor.u32 %v448_v9, %v447_v5  ;;  %v452_v21 = vor.u32 %v451_v12, %v450_v10  ;;  %v455_v23 = vor.u32 %v454_v15, %v453_v13  ;;  %v221_v15 = vld [vmem:[%s1976_s8 + $0x30] sm:$0xff] }
 0x126   : > { %v458_v24 = vor.u32 %v457_v18, %v456_v16  ;;  %v592_v31 = vadd.s32 1, %v1787_v22  ;;  %vm460_vm5 = vcmp.lt.s32.totalorder %v440_v1, 2  ;;  %v590_v42 = vor.u32 8388608, %v2008_v6  ;;  %1774 = vmatmul.msk.f32.gmra.mxu0 %vm223_vm0, %v221_v15 }
 0x127   : > { %v464_v26 = vsel %vm462_vm3, %v452_v21, 2102212464  ;;  %v467_v27 = vsel %vm459_vm2, %v446_v19, %v449_v20  ;;  %v471_v28 = vsel %vm459_vm2, %v449_v20, %v452_v21  ;;  %v468_v29 = vsel %vm462_vm3, %v455_v23, 920167782 }
 0x128   : > { %v472_v30 = vsel %vm462_vm3, %v458_v24, 1326507024  ;;  %v463_v32 = vsel %vm459_vm2, %v443_v25, %v446_v19  ;;  %v469_v33 = vsel %vm461_vm4, %v452_v21, %v468_v29  ;;  %v465_v35 = vsel %vm461_vm4, %v449_v20, %v464_v26 }
 0x129   : > { %v473_v34 = vsel %vm461_vm4, %v455_v23, %v472_v30  ;;  %v470_v36 = vsel %vm460_vm5, %v467_v27, %v469_v33  ;;  %vm593_vm6 = vcmp.gt.s32.totalorder %v592_v31, 0  ;;  %v2020_v43 = vsel %vm460_vm5, %v463_v32, %v465_v35 }
 0x12a   : > { %v474_v37 = vsel %vm460_vm5, %v471_v28, %v473_v34  ;;  %v500_v40 = vand.u32 65535, %v470_v36  ;;  %v501_v41 = vshrl.u32 %v470_v36, 16  ;;  %v594_v46 = vsel %vm593_vm6, %v592_v31, 0 }
 0x12b   : > { %v478_v38 = vand.u32 65535, %v474_v37  ;;  %v479_v39 = vshrl.u32 %v474_v37, 16  ;;  %v596_v6 = vand.u32 31, %v594_v46  ;;  %v1859_v7 = vmov 0  }
 0x12c   : > { %v503_v51 = vmul.u32 %v501_v41, %v476_v62  ;;  %v504_v52 = vmul.u32 %v500_v40, %v477_v63  ;;  %v502_v57 = vmul.u32 %v500_v40, %v476_v62  ;;  %v505_v59 = vmul.u32 %v501_v41, %v477_v63 }
 0x12d   : > { %v481_v44 = vmul.u32 %v479_v39, %v476_v62  ;;  %v482_v45 = vmul.u32 %v478_v38, %v477_v63  ;;  %v480_v49 = vmul.u32 %v478_v38, %v476_v62  ;;  %v483_v50 = vmul.u32 %v479_v39, %v477_v63 }
 0x12e   : > { %v506_v0 = vshll.u32 %v503_v51, 16  ;;  %v507_v1 = vshrl.u32 %v503_v51, 16  ;;  %v508_v5 = vshll.u32 %v504_v52, 16  ;;  %v509_v10 = vshrl.u32 %v504_v52, 16 }
 0x12f   : > { %v484_v53 = vshll.u32 %v481_v44, 16  ;;  %v485_v54 = vshrl.u32 %v481_v44, 16  ;;  %v486_v60 = vshll.u32 %v482_v45, 16  ;;  %v487_v61 = vshrl.u32 %v482_v45, 16 }
 0x130   : > { %vm510_vm8 = vc.u32 %v502_v57, %v506_v0  ;;  %v512_v12 = vadd.s32 %v506_v0, %v502_v57  ;;  %v2024_v63 = vsub.s32 32, %v596_v6  ;;  %v2028_v19 = vshrl.u32 %v594_v46, 5 }
 0x131   : > { %vm488_vm7 = vc.u32 %v480_v49, %v484_v53  ;;  %v490_v3 = vadd.s32 %v484_v53, %v480_v49  ;;  %v511_v62 = vsel %vm510_vm8, 1, %v1859_v7  ;;  %v599_v23 = vshll.u32 %v3250_v2, %v596_v6 }
 0x132   : > { %v489_v9 = vsel %vm488_vm7, 1, %v1859_v7  ;;  %v513_v18 = vadd.s32 %v511_v62, %v505_v59  ;;  %vm514_vm10 = vc.u32 %v512_v12, %v508_v5  ;;  %v2032_v22 = vadd.s32 %v512_v12, %v508_v5 }
 0x133   : > { %v491_v13 = vadd.s32 %v489_v9, %v483_v50  ;;  %vm492_vm9 = vc.u32 %v490_v3, %v486_v60  ;;  %v515_v21 = vsel %vm514_vm10, 1, %v1859_v7  ;;  %v600_v25 = vshrl.u32 %v3248_v4, %v2024_v63 }
 0x134   : > { %v493_v16 = vsel %vm492_vm9, 1, %v1859_v7  ;;  %v517_v24 = vadd.s32 %v515_v21, %v513_v18  ;;  %v602_v26 = vshll.u32 %v3248_v4, %v596_v6  ;;  %v603_v27 = vshrl.u32 %v3246_v8, %v2024_v63 }
 0x135   : > { %v495_v20 = vadd.s32 %v493_v16, %v491_v13  ;;  %v605_v29 = vshll.u32 %v3246_v8, %v596_v6  ;;  %v606_v30 = vshrl.u32 %v3244_v11, %v2024_v63  ;;  %v608_v31 = vshll.u32 %v3244_v11, %v596_v6  ;;  %v2090_v16 = vpop.f32.mrf.mxu2 }
 0x136   : > { %v518_v32 = vadd.s32 %v517_v24, %v507_v1  ;;  %v2044_v33 = vor.u32 %v600_v25, %v599_v23  ;;  %v2046_v34 = vor.u32 %v603_v27, %v602_v26  ;;  %v609_v35 = vshrl.u32 %v3241_v14, %v2024_v63 }
 0x137   : > { %v496_v28 = vadd.s32 %v495_v20, %v485_v54  ;;  %v2052_v37 = vor.u32 %v606_v30, %v605_v29  ;;  %v611_v38 = vshll.u32 %v3241_v14, %v596_v6  ;;  %v612_v39 = vshrl.u32 %v3239_v17, %v2024_v63 }
 0x138   : > { %v519_v40 = vadd.s32 %v518_v32, %v509_v10  ;;  %v610_v41 = vor.u32 %v609_v35, %v608_v31  ;;  %vm614_vm12 = vcmp.lt.s32.totalorder %v2028_v19, 1  ;;  %v2060_v45 = vshll.u32 %v590_v42, 8 }
 0x139   : > { %v2050_v36 = vadd.s32 %v496_v28, %v487_v61  ;;  %v613_v44 = vor.u32 %v612_v39, %v611_v38  ;;  %v520_v46 = vmul.u32 %v1998_v56, %v2020_v43  ;;  %vm617_vm13 = vcmp.lt.s32.totalorder %v2028_v19, 4 }
 0x13a   : > { %v523_v49 = vadd.s32 1, %v519_v40  ;;  %v622_v50 = vsel %vm614_vm12, %v2044_v33, %v2046_v34  ;;  %vm616_vm14 = vcmp.lt.s32.totalorder %v2028_v19, 3  ;;  %v623_v51 = vsel %vm617_vm13, %v610_v41, 920167782 }
 0x13b   : > { %vm522_vm11 = vc.u32 %v2050_v36, %v2032_v22  ;;  %v626_v42 = vsel %vm614_vm12, %v2046_v34, %v2052_v37  ;;  %v627_v56 = vsel %vm617_vm13, %v613_v44, 1326507024  ;;  %vm615_vm15 = vcmp.lt.s32.totalorder %v2028_v19, 2 }
 0x13c   : > { %v524_v43 = vsel %vm522_vm11, %v523_v49, %v519_v40  ;;  %v624_v52 = vsel %vm616_vm14, %v2052_v37, %v623_v51  ;;  %v628_v53 = vsel %vm616_vm14, %v610_v41, %v627_v56  ;;  %v631_v60 = vand.u32 65535, %v2060_v45  ;;  %v222_v51 = vld [vmem:[%s1976_s8 + $0x38] sm:$0xff] }
 0x13d   : > { %v525_v54 = vadd.s32 %v524_v43, %v520_v46  ;;  %v625_v57 = vsel %vm615_vm15, %v622_v50, %v624_v52  ;;  %v629_v59 = vsel %vm615_vm15, %v626_v42, %v628_v53  ;;  %v632_v6 = vshrl.u32 %v2060_v45, 16  ;;  %1775 = vmatmul.msk.f32.gmra.mxu0 %vm223_vm0, %v222_v51 }
 0x13e   : > { %v633_v61 = vand.u32 65535, %v629_v59  ;;  %v634_v0 = vshrl.u32 %v629_v59, 16  ;;  %v655_v1 = vand.u32 65535, %v625_v57  ;;  %v656_v3 = vshrl.u32 %v625_v57, 16 }
 0x13f   : > { %v526_v5 = vadd.s32 536870912, %v525_v54  ;;  %v740_v26 = vand.u32 2139095040, %v2090_v16  ;;  %v619_v43 = vsel %vm617_vm13, %v2052_v37, 2102212464  ;;  %v3236_v53 = vand.u32 2147483647, %v2090_v16 }
 0x140   : > { %v636_v9 = vmul.u32 %v634_v0, %v631_v60  ;;  %v637_v10 = vmul.u32 %v633_v61, %v632_v6  ;;  %v658_v12 = vmul.u32 %v656_v3, %v631_v60  ;;  %v635_v13 = vmul.u32 %v633_v61, %v631_v60 }
 0x141   : > { %v659_v15 = vmul.u32 %v655_v1, %v632_v6  ;;  %v2092_v18 = vshrl.u32 %v526_v5, 30  ;;  %v657_v23 = vmul.u32 %v655_v1, %v631_v60  ;;  %v660_v25 = vmul.u32 %v656_v3, %v632_v6 }
 0x142   : > { %v639_v62 = vshll.u32 %v636_v9, 16  ;;  %v661_v20 = vshll.u32 %v658_v12, 16  ;;  %v641_v24 = vshll.u32 %v637_v10, 16  ;;  %v638_v31 = vmul.u32 %v634_v0, %v632_v6 }
 0x143   : > { %v663_v28 = vshll.u32 %v659_v15, 16  ;;  %v528_v30 = vshll.u32 %v2092_v18, 30  ;;  %v741_v40 = vshrl.u32 %v740_v26, 23  ;;  %v662_v50 = vshrl.u32 %v658_v12, 16 }
 0x144   : > { %vm643_vm1 = vc.u32 %v635_v13, %v639_v62  ;;  %v645_v21 = vadd.s32 %v639_v62, %v635_v13  ;;  %vm665_vm2 = vc.u32 %v657_v23, %v661_v20  ;;  %v667_v29 = vadd.s32 %v661_v20, %v657_v23 }
 0x145   : > { %v644_v27 = vsel %vm643_vm1, 1, %v1859_v7  ;;  %v666_v32 = vsel %vm665_vm2, 1, %v1859_v7  ;;  %v2100_v46 = vsub.s32 %v525_v54, %v528_v30  ;;  %v1790_v49 = vadd.s32 4294967169, %v741_v40 }
 0x146   : > { %vm647_vm3 = vc.u32 %v645_v21, %v641_v24  ;;  %v668_v35 = vadd.s32 %v666_v32, %v660_v25  ;;  %vm669_vm4 = vc.u32 %v667_v29, %v663_v28  ;;  %v646_v38 = vadd.s32 %v644_v27, %v638_v31 }
 0x147   : > { %v670_v39 = vsel %vm669_vm4, 1, %v1859_v7  ;;  %v648_v41 = vsel %vm647_vm3, 1, %v1859_v7  ;;  %v747_v56 = vadd.s32 1, %v1790_v49  ;;  %v531_v57 = vsub.s32 0, %v2100_v46 }
 0x148   : > { %v672_v44 = vadd.s32 %v670_v39, %v668_v35  ;;  %v650_v42 = vadd.s32 %v648_v41, %v646_v38  ;;  %v598_v54 = vshrl.u32 %v3250_v2, %v2024_v63  ;;  %v640_v59 = vshrl.u32 %v636_v9, 16  ;;  %v2120_v63 = vpop.f32.mrf.mxu2 }
 0x149   : > { %vm748_vm5 = vcmp.gt.s32.totalorder %v747_v56, 0  ;;  %vm530_vm6 = vcmp.lt.s32.totalorder %v2100_v46, 0  ;;  %v664_v60 = vshrl.u32 %v659_v15, 16  ;;  %v620_v37 = vsel %vm616_vm14, %v2046_v34, %v619_v43 }
 0x14a   : > { %v673_v52 = vadd.s32 %v672_v44, %v662_v50  ;;  %v618_v61 = vsel %vm614_vm12, %v598_v54, %v2044_v33  ;;  %v651_v0 = vadd.s32 %v650_v42, %v640_v59  ;;  %v749_v1 = vsel %vm748_vm5, %v747_v56, 0 }
 0x14b   : > { %v744_v5 = vand.u32 8388607, %v3236_v53  ;;  %v532_v6 = vsel %vm530_vm6, %v531_v57, %v2100_v46  ;;  %v642_v9 = vshrl.u32 %v637_v10, 16  ;;  %v751_v12 = vand.u32 31, %v749_v1 }
 0x14c   : > { %v674_v3 = vadd.s32 %v673_v52, %v664_v60  ;;  %v621_v13 = vsel %vm615_vm15, %v618_v61, %v620_v37  ;;  %v2127_v62 = vadd.s32 %v667_v29, %v663_v28  ;;  %v895_v15 = vand.u32 2139095040, %v2120_v63 }
 0x14d   : > { %v2125_v33 = vadd.s32 %v651_v0, %v642_v9  ;;  %v2129_v34 = vsub.s32 32, %v751_v12  ;;  %v533_v20 = vclz %v532_v6  ;;  %v745_v23 = vor.u32 8388608, %v744_v5 }
 0x14e   : > { %v678_v21 = vadd.s32 1, %v674_v3  ;;  %v2132_v24 = vshrl.u32 %v749_v1, 5  ;;  %v754_v25 = vshll.u32 %v3250_v2, %v751_v12  ;;  %v757_v19 = vshll.u32 %v3248_v4, %v751_v12 }
 0x14f   : > { %v755_v10 = vshrl.u32 %v3248_v4, %v2129_v34  ;;  %v758_v26 = vshrl.u32 %v3246_v8, %v2129_v34  ;;  %v760_v27 = vshll.u32 %v3246_v8, %v751_v12  ;;  %v761_v28 = vshrl.u32 %v3244_v11, %v2129_v34 }
 0x150   : > { %v763_v29 = vshll.u32 %v3244_v11, %v751_v12  ;;  %v764_v30 = vshrl.u32 %v3241_v14, %v2129_v34  ;;  %vm677_vm0 = vc.u32 %v2125_v33, %v2127_v62  ;;  %v896_v35 = vshrl.u32 %v895_v15, 23 }
 0x151   : > { %v2148_v31 = vor.u32 %v755_v10, %v754_v25  ;;  %v2150_v32 = vor.u32 %v758_v26, %v757_v19  ;;  %v2152_v38 = vor.u32 %v761_v28, %v760_v27  ;;  %v766_v40 = vshll.u32 %v3241_v14, %v751_v12 }
 0x152   : > { %v765_v39 = vor.u32 %v764_v30, %v763_v29  ;;  %v767_v41 = vshrl.u32 %v3239_v17, %v2129_v34  ;;  %v675_v44 = vmul.u32 %v2060_v45, %v621_v13  ;;  %v679_v49 = vsel %vm677_vm0, %v678_v21, %v674_v3 }
 0x153   : > { %vm769_vm7 = vcmp.lt.s32.totalorder %v2132_v24, 1  ;;  %v1785_v51 = vadd.s32 4294967294, %v533_v20  ;;  %vm772_vm8 = vcmp.lt.s32.totalorder %v2132_v24, 4  ;;  %v2164_v56 = vshll.u32 %v745_v23, 8 }
 0x154   : > { %v768_v50 = vor.u32 %v767_v41, %v766_v40  ;;  %v777_v42 = vsel %vm769_vm7, %v2148_v31, %v2150_v32  ;;  %vm771_vm9 = vcmp.lt.s32.totalorder %v2132_v24, 3  ;;  %v778_v43 = vsel %vm772_vm8, %v765_v39, 920167782 }
 0x155   : > { %v781_v45 = vsel %vm769_vm7, %v2150_v32, %v2152_v38  ;;  %v1793_v52 = vadd.s32 4294967169, %v896_v35  ;;  %v680_v57 = vadd.s32 %v679_v49, %v675_v44  ;;  %vm770_vm10 = vcmp.lt.s32.totalorder %v2132_v24, 2 }
 0x156   : > { %v779_v54 = vsel %vm771_vm9, %v2152_v38, %v778_v43  ;;  %v782_v59 = vsel %vm772_vm8, %v768_v50, 1326507024  ;;  %v786_v0 = vand.u32 65535, %v2164_v56  ;;  %vm1786_vm11 = vcmp.lt.s32.totalorder %v1785_v51, 0 }
 0x157   : > { %v780_v60 = vsel %vm770_vm10, %v777_v42, %v779_v54  ;;  %v783_v61 = vsel %vm771_vm9, %v765_v39, %v782_v59  ;;  %v681_v9 = vadd.s32 536870912, %v680_v57  ;;  %v3234_v13 = vand.u32 2147483647, %v2120_v63 }
 0x158   : > { %v784_v37 = vsel %vm770_vm10, %v781_v45, %v783_v61  ;;  %v811_v1 = vshrl.u32 %v780_v60, 16  ;;  %v810_v6 = vand.u32 65535, %v780_v60  ;;  %v902_v15 = vadd.s32 1, %v1793_v52 }
 0x159   : > { %v788_v3 = vand.u32 65535, %v784_v37  ;;  %v789_v5 = vshrl.u32 %v784_v37, 16  ;;  %v787_v20 = vshrl.u32 %v2164_v56, 16  ;;  %v2190_v23 = vsel %vm1786_vm11, 0, %v1785_v51 }
 0x15a   : > { %v2186_v12 = vmul.u32 %v811_v1, %v786_v0  ;;  %v2197_v28 = vshrl.u32 %v681_v9, 30  ;;  %v812_v29 = vmul.u32 %v810_v6, %v786_v0  ;;  %v899_v30 = vand.u32 8388607, %v3234_v13 }
 0x15b   : > { %v791_v21 = vmul.u32 %v789_v5, %v786_v0  ;;  %v790_v10 = vmul.u32 %v788_v3, %v786_v0  ;;  %v2193_v19 = vmul.u32 %v788_v3, %v787_v20  ;;  %v2195_v27 = vmul.u32 %v810_v6, %v787_v20 }
 0x15c   : > { %v816_v25 = vshll.u32 %v2186_v12, 16  ;;  %vm903_vm12 = vcmp.gt.s32.totalorder %v902_v15, 0  ;;  %v541_v40 = vsub.s32 4294967266, %v2190_v23  ;;  %v683_v50 = vshll.u32 %v2197_v28, 30 }
 0x15d   : > { %v794_v26 = vshll.u32 %v791_v21, 16  ;;  %v796_v41 = vshll.u32 %v2193_v19, 16  ;;  %v818_v44 = vshll.u32 %v2195_v27, 16  ;;  %v904_v49 = vsel %vm903_vm12, %v902_v15, 0 }
 0x15e   : > { %vm820_vm14 = vc.u32 %v812_v29, %v816_v25  ;;  %v2201_v39 = vadd.s32 %v816_v25, %v812_v29  ;;  %v900_v43 = vor.u32 8388608, %v899_v30  ;;  %v793_v45 = vmul.u32 %v789_v5, %v787_v20 }
 0x15f   : > { %vm798_vm13 = vc.u32 %v790_v10, %v794_v26  ;;  %v800_v35 = vadd.s32 %v794_v26, %v790_v10  ;;  %v821_v42 = vsel %vm820_vm14, 1, %v1859_v7  ;;  %v815_v52 = vmul.u32 %v811_v1, %v787_v20 }
 0x160   : > { %v799_v51 = vsel %vm798_vm13, 1, %v1859_v7  ;;  %vm824_vm1 = vc.u32 %v2201_v39, %v818_v44  ;;  %v906_v54 = vand.u32 31, %v904_v49  ;;  %v2216_v3 = vadd.s32 127, %v541_v40 }
 0x161   : > { %vm802_vm15 = vc.u32 %v800_v35, %v796_v41  ;;  %v801_v59 = vadd.s32 %v799_v51, %v793_v45  ;;  %v823_v60 = vadd.s32 %v821_v42, %v815_v52  ;;  %v825_v37 = vsel %vm824_vm1, 1, %v1859_v7 }
 0x162   : > { %v803_v61 = vsel %vm802_vm15, 1, %v1859_v7  ;;  %v2214_v0 = vsub.s32 32, %v906_v54  ;;  %v2218_v6 = vsub.s32 %v680_v57, %v683_v50  ;;  %v909_v5 = vshll.u32 %v3250_v2, %v906_v54 }
 0x163   : > { %v2221_v1 = vshll.u32 %v900_v43, 8  ;;  %v912_v15 = vshll.u32 %v3248_v4, %v906_v54  ;;  %v805_v10 = vadd.s32 %v803_v61, %v801_v59  ;;  %v827_v26 = vadd.s32 %v825_v37, %v823_v60 }
 0x164   : > { %v910_v9 = vshrl.u32 %v3248_v4, %v2214_v0  ;;  %v913_v20 = vshrl.u32 %v3246_v8, %v2214_v0  ;;  %v916_v25 = vshrl.u32 %v3244_v11, %v2214_v0  ;;  %v2230_v29 = vshrl.u32 %v904_v49, 5 }
 0x165   : > { %v915_v57 = vshll.u32 %v3246_v8, %v906_v54  ;;  %v918_v40 = vshll.u32 %v3244_v11, %v906_v54  ;;  %v919_v41 = vshrl.u32 %v3241_v14, %v2214_v0  ;;  %v817_v50 = vshrl.u32 %v2186_v12, 16 }
 0x166   : > { %v2233_v30 = vor.u32 %v910_v9, %v909_v5  ;;  %v2235_v35 = vor.u32 %v913_v20, %v912_v15  ;;  %v921_v42 = vshll.u32 %v3241_v14, %v906_v54  ;;  %v922_v49 = vshrl.u32 %v3239_v17, %v2214_v0 }
 0x167   : > { %v2241_v51 = vor.u32 %v916_v25, %v915_v57  ;;  %vm685_vm2 = vcmp.lt.s32.totalorder %v2218_v6, 0  ;;  %v753_v43 = vshrl.u32 %v3250_v2, %v2129_v34  ;;  %v795_v45 = vshrl.u32 %v791_v21, 16 }
 0x168   : > { %v920_v52 = vor.u32 %v919_v41, %v918_v40  ;;  %v686_v59 = vsub.s32 0, %v2218_v6  ;;  %v828_v60 = vadd.s32 %v827_v26, %v817_v50  ;;  %v923_v61 = vor.u32 %v922_v49, %v921_v42 }
 0x169   : > { %vm924_vm3 = vcmp.lt.s32.totalorder %v2230_v29, 1  ;;  %v806_v12 = vadd.s32 %v805_v10, %v795_v45  ;;  %v819_v37 = vshrl.u32 %v2195_v27, 16  ;;  %vm927_vm4 = vcmp.lt.s32.totalorder %v2230_v29, 4 }
 0x16a   : > { %v932_v54 = vsel %vm924_vm3, %v2233_v30, %v2235_v35  ;;  %vm926_vm5 = vcmp.lt.s32.totalorder %v2230_v29, 3  ;;  %v933_v34 = vsel %vm927_vm4, %v920_v52, 920167782  ;;  %v936_v21 = vsel %vm924_vm3, %v2235_v35, %v2241_v51 }
 0x16b   : > { %v937_v5 = vsel %vm927_vm4, %v923_v61, 1326507024  ;;  %v797_v9 = vshrl.u32 %v2193_v19, 16  ;;  %vm925_vm6 = vcmp.lt.s32.totalorder %v2230_v29, 2  ;;  %v934_v15 = vsel %vm926_vm5, %v2241_v51, %v933_v34 }
 0x16c   : > { %v938_v20 = vsel %vm926_vm5, %v920_v52, %v937_v5  ;;  %v774_v25 = vsel %vm772_vm8, %v2152_v38, 2102212464  ;;  %v829_v10 = vadd.s32 %v828_v60, %v819_v37  ;;  %v935_v26 = vsel %vm925_vm6, %v932_v54, %v934_v15 }
 0x16d   : > { %v939_v19 = vsel %vm925_vm6, %v936_v21, %v938_v20  ;;  %v537_v57 = vsub.s32 32, %v2190_v23  ;;  %v2281_v40 = vadd.s32 %v806_v12, %v797_v9  ;;  %v941_v41 = vand.u32 65535, %v2221_v1  ;;  %v2315_v20 = vpop.f32.mrf.mxu2 }
 0x16e   : > { %v944_v50 = vshrl.u32 %v939_v19, 16  ;;  %v687_v42 = vsel %vm685_vm2, %v686_v59, %v2218_v6  ;;  %v773_v38 = vsel %vm769_vm7, %v753_v43, %v2148_v31  ;;  %v965_v49 = vand.u32 65535, %v935_v26 }
 0x16f   : > { %v966_v45 = vshrl.u32 %v935_v26, 16  ;;  %v775_v52 = vsel %vm771_vm9, %v2150_v32, %v774_v25  ;;  %v2296_v60 = vadd.s32 %v2201_v39, %v818_v44  ;;  %v943_v61 = vand.u32 65535, %v939_v19 }
 0x170   : > { %v2298_v12 = vmul.u32 %v944_v50, %v941_v41  ;;  %v543_v59 = vshll.u32 %v2216_v3, 23  ;;  %v833_v37 = vadd.s32 1, %v829_v10  ;;  %v942_v54 = vshrl.u32 %v2221_v1, 16 }
 0x171   : > { %v968_v31 = vmul.u32 %v966_v45, %v941_v41  ;;  %v521_v43 = vadd.s32 %v2032_v22, %v2050_v36  ;;  %v688_v34 = vclz %v687_v42  ;;  %vm832_vm0 = vc.u32 %v2281_v40, %v2296_v60 }
 0x172   : > { %v949_v32 = vshll.u32 %v2298_v12, 16  ;;  %v776_v27 = vsel %vm770_vm10, %v773_v38, %v775_v52  ;;  %v2309_v39 = vmul.u32 %v965_v49, %v942_v54  ;;  %v538_v44 = vshll.u32 %v2100_v46, %v2190_v23 }
 0x173   : > { %v539_v3 = vshrl.u32 %v521_v43, %v537_v57  ;;  %v945_v21 = vmul.u32 %v943_v61, %v941_v41  ;;  %v2313_v5 = vmul.u32 %v943_v61, %v942_v54  ;;  %v544_v9 = vor.u32 4788187, %v543_v59 }
 0x174   : > { %v834_v22 = vsel %vm832_vm0, %v833_v37, %v829_v10  ;;  %v967_v36 = vmul.u32 %v965_v49, %v941_v41  ;;  %v971_v15 = vshll.u32 %v968_v31, 16  ;;  %v1788_v25 = vadd.s32 4294967294, %v688_v34 }
 0x175   : > { %v830_v26 = vmul.u32 %v2164_v56, %v776_v27  ;;  %vm953_vm7 = vc.u32 %v945_v21, %v949_v32  ;;  %v955_v24 = vadd.s32 %v949_v32, %v945_v21  ;;  %v970_v19 = vmul.u32 %v966_v45, %v942_v54 }
 0x176   : > { %v973_v42 = vshll.u32 %v2309_v39, 16  ;;  %vm975_vm8 = vc.u32 %v967_v36, %v971_v15  ;;  %v2319_v46 = vadd.s32 %v971_v15, %v967_v36  ;;  %v951_v57 = vshll.u32 %v2313_v5, 16 }
 0x177   : > { %v2321_v23 = vadd.s32 %v834_v22, %v830_v26  ;;  %v976_v10 = vsel %vm975_vm8, 1, %v1859_v7  ;;  %v1050_v41 = vand.u32 2139095040, %v2315_v20  ;;  %v540_v38 = vor.u32 %v539_v3, %v538_v44 }
 0x178   : > { %v954_v49 = vsel %vm953_vm7, 1, %v1859_v7  ;;  %v978_v56 = vadd.s32 %v976_v10, %v970_v19  ;;  %vm979_vm9 = vc.u32 %v2319_v46, %v973_v42  ;;  %v948_v45 = vmul.u32 %v944_v50, %v942_v54 }
 0x179   : > { %vm957_vm10 = vc.u32 %v955_v24, %v951_v57  ;;  %v980_v52 = vsel %vm979_vm9, 1, %v1859_v7  ;;  %v1051_v61 = vshrl.u32 %v1050_v41, 23  ;;  %v545_v59 = vand.u32 2147483647, %v544_v9  ;;  %v2353_v41 = vpop.f32.mrf.mxu3 }
 0x17a   : > { %vm1789_vm11 = vcmp.lt.s32.totalorder %v1788_v25, 0  ;;  %v836_v37 = vadd.s32 536870912, %v2321_v23  ;;  %v956_v43 = vadd.s32 %v954_v49, %v948_v45  ;;  %v547_v32 = vcvt.s32.f32 %v540_v38 }
 0x17b   : > { %v1796_v34 = vadd.s32 4294967169, %v1051_v61  ;;  %v958_v27 = vsel %vm957_vm10, 1, %v1859_v7  ;;  %v982_v44 = vadd.s32 %v980_v52, %v978_v56  ;;  %v3238_v3 = vand.u32 2147483647, %v2315_v20 }
 0x17c   : > { %v2334_v22 = vmul.f32 %v547_v32, %v545_v59  ;;  %v676_v50 = vadd.s32 %v2127_v62, %v2125_v33  ;;  %v2338_v54 = vsel %vm1789_vm11, 0, %v1788_v25  ;;  %v972_v9 = vshrl.u32 %v968_v31, 16 }
 0x17d   : > { %v1057_v21 = vadd.s32 1, %v1796_v34  ;;  %v2340_v36 = vshrl.u32 %v836_v37, 30  ;;  %v929_v15 = vsel %vm927_vm4, %v2241_v51, 2102212464  ;;  %v960_v26 = vadd.s32 %v958_v27, %v956_v43 }
 0x17e   : > { %v908_v24 = vshrl.u32 %v3250_v2, %v2214_v0  ;;  %v983_v19 = vadd.s32 %v982_v44, %v972_v9  ;;  %v1054_v57 = vand.u32 8388607, %v3238_v3  ;;  %v692_v33 = vsub.s32 32, %v2338_v54 }
 0x17f   : > { %vm1058_vm12 = vcmp.gt.s32.totalorder %v1057_v21, 0  ;;  %v693_v62 = vshll.u32 %v2218_v6, %v2338_v54  ;;  %v950_v31 = vshrl.u32 %v2298_v12, 16  ;;  %v696_v51 = vsub.s32 4294967266, %v2338_v54 }
 0x180   : > { %v1059_v10 = vsel %vm1058_vm12, %v1057_v21, 0  ;;  %v928_v0 = vsel %vm924_vm3, %v908_v24, %v2233_v30  ;;  %v930_v38 = vsel %vm926_vm5, %v2235_v35, %v929_v15  ;;  %v974_v49 = vshrl.u32 %v2309_v39, 16 }
 0x181   : > { %v1061_v25 = vand.u32 31, %v1059_v10  ;;  %v838_v56 = vshll.u32 %v2340_v36, 30  ;;  %v952_v45 = vshrl.u32 %v2313_v5, 16  ;;  %v961_v12 = vadd.s32 %v960_v26, %v950_v31  ;;  %v2565_v58 = vpop.f32.mrf.mxu3 }
 0x182   : > { %v984_v61 = vadd.s32 %v983_v19, %v974_v49  ;;  %v1055_v59 = vor.u32 8388608, %v1054_v57  ;;  %v2367_v37 = vshrl.u32 %v1059_v10, 5  ;;  %v1205_v43 = vand.u32 2139095040, %v2353_v41 }
 0x183   : > { %v2365_v52 = vsub.s32 32, %v1061_v25  ;;  %v1064_v30 = vshll.u32 %v3250_v2, %v1061_v25  ;;  %v1067_v34 = vshll.u32 %v3248_v4, %v1061_v25  ;;  %v1073_v27 = vshll.u32 %v3244_v11, %v1061_v25 }
 0x184   : > { %v2383_v9 = vadd.s32 %v961_v12, %v952_v45  ;;  %v1070_v24 = vshll.u32 %v3246_v8, %v1061_v25  ;;  %v694_v19 = vshrl.u32 %v676_v50, %v692_v33  ;;  %v697_v57 = vadd.s32 127, %v696_v51 }
 0x185   : > { %v1065_v35 = vshrl.u32 %v3248_v4, %v2365_v52  ;;  %v1068_v32 = vshrl.u32 %v3246_v8, %v2365_v52  ;;  %v1071_v5 = vshrl.u32 %v3244_v11, %v2365_v52  ;;  %v1074_v44 = vshrl.u32 %v3241_v14, %v2365_v52 }
 0x186   : > { %v1077_v21 = vshrl.u32 %v3239_v17, %v2365_v52  ;;  %v1076_v31 = vshll.u32 %v3241_v14, %v1061_v25  ;;  %v2392_v49 = vsub.s32 %v2321_v23, %v838_v56  ;;  %v931_v13 = vsel %vm925_vm6, %v928_v0, %v930_v38 }
 0x187   : > { %v2385_v15 = vor.u32 %v1065_v35, %v1064_v30  ;;  %v2387_v26 = vor.u32 %v1068_v32, %v1067_v34  ;;  %v1075_v10 = vor.u32 %v1074_v44, %v1073_v27  ;;  %v2399_v45 = vadd.s32 %v2319_v46, %v973_v42 }
 0x188   : > { %v1072_v12 = vor.u32 %v1071_v5, %v1070_v24  ;;  %v988_v30 = vadd.s32 1, %v984_v61  ;;  %v1078_v35 = vor.u32 %v1077_v21, %v1076_v31  ;;  %vm1079_vm13 = vcmp.lt.s32.totalorder %v2367_v37, 1 }
 0x189   : > { %v1206_v50 = vshrl.u32 %v1205_v43, 23  ;;  %vm987_vm14 = vc.u32 %v2383_v9, %v2399_v45  ;;  %vm1082_vm15 = vcmp.lt.s32.totalorder %v2367_v37, 4  ;;  %v1087_v29 = vsel %vm1079_vm13, %v2385_v15, %v2387_v26 }
 0x18a   : > { %v2409_v39 = vshll.u32 %v1055_v59, 8  ;;  %v698_v42 = vshll.u32 %v697_v57, 23  ;;  %v985_v46 = vmul.u32 %v2221_v1, %v931_v13  ;;  %vm1081_vm1 = vcmp.lt.s32.totalorder %v2367_v37, 3 }
 0x18b   : > { %v1088_v23 = vsel %vm1082_vm15, %v1075_v10, 920167782  ;;  %vm840_vm2 = vcmp.lt.s32.totalorder %v2392_v49, 0  ;;  %vm1080_vm3 = vcmp.lt.s32.totalorder %v2367_v37, 2  ;;  %v1091_v25 = vsel %vm1079_vm13, %v2387_v26, %v1072_v12 }
 0x18c   : > { %v1089_v33 = vsel %vm1081_vm1, %v1072_v12, %v1088_v23  ;;  %v989_v51 = vsel %vm987_vm14, %v988_v30, %v984_v61  ;;  %v1092_v1 = vsel %vm1082_vm15, %v1078_v35, 1326507024  ;;  %v1799_v0 = vadd.s32 4294967169, %v1206_v50 }
 0x18d   : > { %v1090_v13 = vsel %vm1080_vm3, %v1087_v29, %v1089_v33  ;;  %v841_v38 = vsub.s32 0, %v2392_v49  ;;  %v1093_v56 = vsel %vm1081_vm1, %v1075_v10, %v1092_v1  ;;  %v1096_v59 = vand.u32 65535, %v2409_v39 }
 0x18e   : > { %v1121_v43 = vshrl.u32 %v1090_v13, 16  ;;  %v1094_v34 = vsel %vm1080_vm3, %v1091_v25, %v1093_v56  ;;  %v1097_v61 = vshrl.u32 %v2409_v39, 16  ;;  %v1120_v32 = vand.u32 65535, %v1090_v13 }
 0x18f   : > { %v3235_v5 = vand.u32 2147483647, %v2353_v41  ;;  %v2434_v27 = vadd.s32 %v989_v51, %v985_v46  ;;  %v1098_v44 = vand.u32 65535, %v1094_v34  ;;  %v1099_v21 = vshrl.u32 %v1094_v34, 16 }
 0x190   : > { %v1123_v24 = vmul.u32 %v1121_v43, %v1096_v59  ;;  %v549_v57 = vxor.u32 2147483648, %v2334_v22  ;;  %v1212_v31 = vadd.s32 1, %v1799_v0  ;;  %v2440_v10 = vor.u32 %v694_v19, %v693_v62 }
 0x191   : > { %v2442_v30 = vor.u32 4788187, %v698_v42  ;;  %v1101_v35 = vmul.u32 %v1099_v21, %v1096_v59  ;;  %v1102_v50 = vmul.u32 %v1098_v44, %v1097_v61  ;;  %v2447_v29 = vsel %vm840_vm2, %v841_v38, %v2392_v49 }
 0x192   : > { %v1124_v46 = vmul.u32 %v1120_v32, %v1097_v61  ;;  %v1126_v23 = vshll.u32 %v1123_v24, 16  ;;  %v2451_v33 = vand.u32 8388607, %v3235_v5  ;;  %v991_v25 = vadd.s32 536870912, %v2434_v27 }
 0x193   : > { %v1100_v6 = vmul.u32 %v1098_v44, %v1096_v59  ;;  %v1104_v54 = vshll.u32 %v1101_v35, 16  ;;  %v1122_v62 = vmul.u32 %v1120_v32, %v1096_v59  ;;  %v1063_v19 = vshrl.u32 %v3250_v2, %v2365_v52 }
 0x194   : > { %v1103_v42 = vmul.u32 %v1099_v21, %v1097_v61  ;;  %v1125_v51 = vmul.u32 %v1121_v43, %v1097_v61  ;;  %vm1213_vm4 = vcmp.gt.s32.totalorder %v1212_v31, 0  ;;  %v1106_v13 = vshll.u32 %v1102_v50, 16 }
 0x195   : > { %vm1108_vm5 = vc.u32 %v1100_v6, %v1104_v54  ;;  %v1110_v1 = vadd.s32 %v1104_v54, %v1100_v6  ;;  %vm1130_vm6 = vc.u32 %v1122_v62, %v1126_v23  ;;  %v1084_v0 = vsel %vm1082_vm15, %v1072_v12, 2102212464 }
 0x196   : > { %v1109_v38 = vsel %vm1108_vm5, 1, %v1859_v7  ;;  %v1128_v56 = vshll.u32 %v1124_v46, 16  ;;  %v1131_v34 = vsel %vm1130_vm6, 1, %v1859_v7  ;;  %v1132_v59 = vadd.s32 %v1126_v23, %v1122_v62 }
 0x197   : > { %v1111_v44 = vadd.s32 %v1109_v38, %v1103_v42  ;;  %vm1112_vm0 = vc.u32 %v1110_v1, %v1106_v13  ;;  %v1133_v32 = vadd.s32 %v1131_v34, %v1125_v51  ;;  %v2460_v52 = vshrl.u32 %v991_v25, 30 }
 0x198   : > { %v1083_v43 = vsel %vm1079_vm13, %v1063_v19, %v2385_v15  ;;  %v1113_v61 = vsel %vm1112_vm0, 1, %v1859_v7  ;;  %v1214_v21 = vsel %vm1213_vm4, %v1212_v31, 0  ;;  %v1085_v12 = vsel %vm1081_vm1, %v2387_v26, %v1084_v0 }
 0x199   : > { %v1105_v6 = vshrl.u32 %v1101_v35, 16  ;;  %v1115_v54 = vadd.s32 %v1113_v61, %v1111_v44  ;;  %vm1134_vm7 = vc.u32 %v1132_v59, %v1128_v56  ;;  %v843_v23 = vclz %v2447_v29 }
 0x19a   : > { %v1135_v25 = vsel %vm1134_vm7, 1, %v1859_v7  ;;  %v1210_v62 = vor.u32 8388608, %v2451_v33  ;;  %v1216_v42 = vand.u32 31, %v1214_v21  ;;  %v1107_v51 = vshrl.u32 %v1102_v50, 16 }
 0x19b   : > { %v1116_v15 = vadd.s32 %v1115_v54, %v1105_v6  ;;  %v1127_v19 = vshrl.u32 %v1123_v24, 16  ;;  %v1137_v13 = vadd.s32 %v1135_v25, %v1133_v32  ;;  %v993_v31 = vshll.u32 %v2460_v52, 30 }
 0x19c   : > { %v1086_v1 = vsel %vm1080_vm3, %v1083_v43, %v1085_v12  ;;  %v1129_v26 = vshrl.u32 %v1124_v46, 16  ;;  %v2476_v35 = vsub.s32 32, %v1216_v42  ;;  %v2480_v29 = vadd.s32 %v1132_v59, %v1128_v56 }
 0x19d   : > { %v2478_v0 = vadd.s32 %v1116_v15, %v1107_v51  ;;  %v1138_v38 = vadd.s32 %v1137_v13, %v1127_v19  ;;  %v2482_v34 = vshrl.u32 %v1214_v21, 5  ;;  %v1219_v50 = vshll.u32 %v3250_v2, %v1216_v42 }
 0x19e   : > { %v1220_v24 = vshrl.u32 %v3248_v4, %v2476_v35  ;;  %v1222_v33 = vshll.u32 %v3248_v4, %v1216_v42  ;;  %v1223_v37 = vshrl.u32 %v3246_v8, %v2476_v35  ;;  %v1225_v44 = vshll.u32 %v3246_v8, %v1216_v42 }
 0x19f   : > { %v1139_v46 = vadd.s32 %v1138_v38, %v1129_v26  ;;  %v1226_v56 = vshrl.u32 %v3244_v11, %v2476_v35  ;;  %v1228_v59 = vshll.u32 %v3244_v11, %v1216_v42  ;;  %vm1142_vm8 = vc.u32 %v2478_v0, %v2480_v29 }
 0x1a0   : > { %v2496_v32 = vor.u32 %v1220_v24, %v1219_v50  ;;  %v2498_v43 = vor.u32 %v1223_v37, %v1222_v33  ;;  %v1229_v61 = vshrl.u32 %v3241_v14, %v2476_v35  ;;  %v1231_v6 = vshll.u32 %v3241_v14, %v1216_v42 }
 0x1a1   : > { %v1143_v21 = vadd.s32 1, %v1139_v46  ;;  %v2502_v12 = vor.u32 %v1226_v56, %v1225_v44  ;;  %v1232_v54 = vshrl.u32 %v3239_v17, %v2476_v35  ;;  %vm429_vm9 = vcmp.lt.s32.totalorder %v1990_v47, 0 }
 0x1a2   : > { %v702_v25 = vcvt.s32.f32 %v2440_v10  ;;  %v1791_v51 = vadd.s32 4294967294, %v843_v23  ;;  %v1140_v15 = vmul.u32 %v2409_v39, %v1086_v1  ;;  %v1230_v19 = vor.u32 %v1229_v61, %v1228_v59 }
 0x1a3   : > { %v2511_v13 = vsub.s32 %v2434_v27, %v993_v31  ;;  %v1144_v26 = vsel %vm1142_vm8, %v1143_v21, %v1139_v46  ;;  %v1233_v38 = vor.u32 %v1232_v54, %v1231_v6  ;;  %vm1234_vm10 = vcmp.lt.s32.totalorder %v2482_v34, 1 }
 0x1a4   : > { %v1145_v50 = vadd.s32 %v1144_v26, %v1140_v15  ;;  %vm1237_vm11 = vcmp.lt.s32.totalorder %v2482_v34, 4  ;;  %v1242_v42 = vsel %vm1234_vm10, %v2496_v32, %v2498_v43  ;;  %v2519_v10 = vshll.u32 %v1210_v62, 8 }
 0x1a5   : > { %vm1236_vm12 = vcmp.lt.s32.totalorder %v2482_v34, 3  ;;  %v1243_v39 = vsel %vm1237_vm11, %v1230_v19, 920167782  ;;  %v1246_v27 = vsel %vm1234_vm10, %v2498_v43, %v2502_v12  ;;  %v1247_v23 = vsel %vm1237_vm11, %v1233_v38, 1326507024 }
 0x1a6   : > { %v1146_v31 = vadd.s32 536870912, %v1145_v50  ;;  %vm1235_vm13 = vcmp.lt.s32.totalorder %v2482_v34, 2  ;;  %v1244_v62 = vsel %vm1236_vm12, %v2502_v12, %v1243_v39  ;;  %v1248_v1 = vsel %vm1236_vm12, %v1230_v19, %v1247_v23 }
 0x1a7   : > { %v700_v24 = vand.u32 2147483647, %v2442_v30  ;;  %vm1792_vm14 = vcmp.lt.s32.totalorder %v1791_v51, 0  ;;  %v1245_v33 = vsel %vm1235_vm13, %v1242_v42, %v1244_v62  ;;  %v1249_v37 = vsel %vm1235_vm13, %v1246_v27, %v1248_v1 }
 0x1a8   : > { %v2541_v46 = vshrl.u32 %v1146_v31, 30  ;;  %v1251_v44 = vand.u32 65535, %v2519_v10  ;;  %v1253_v56 = vand.u32 65535, %v1249_v37  ;;  %v1254_v59 = vshrl.u32 %v1249_v37, 16 }
 0x1a9   : > { %v996_v61 = vsub.s32 0, %v2511_v13  ;;  %v1252_v21 = vshrl.u32 %v2519_v10, 16  ;;  %v1275_v6 = vand.u32 65535, %v1245_v33  ;;  %v1276_v54 = vshrl.u32 %v1245_v33, 16 }
 0x1aa   : > { %v2546_v30 = vsel %vm1792_vm14, 0, %v1791_v51  ;;  %vm995_vm15 = vcmp.lt.s32.totalorder %v2511_v13, 0  ;;  %v1148_v15 = vshll.u32 %v2541_v46, 30  ;;  %v1256_v19 = vmul.u32 %v1254_v59, %v1251_v44 }
 0x1ab   : > { %v550_v26 = vsel %vm429_vm9, %v549_v57, %v2334_v22  ;;  %v1257_v38 = vmul.u32 %v1253_v56, %v1252_v21  ;;  %v1278_v42 = vmul.u32 %v1276_v54, %v1251_v44  ;;  %v2555_v39 = vmul.f32 %v702_v25, %v700_v24 }
 0x1ac   : > { %v2557_v27 = vsub.s32 %v1145_v50, %v1148_v15  ;;  %v1255_v23 = vmul.u32 %v1253_v56, %v1251_v44  ;;  %v1259_v51 = vshll.u32 %v1256_v19, 16  ;;  %v851_v31 = vsub.s32 4294967266, %v2546_v30 }
 0x1ad   : > { %v997_v62 = vsel %vm995_vm15, %v996_v61, %v2511_v13  ;;  %v1258_v1 = vmul.u32 %v1254_v59, %v1252_v21  ;;  %v1277_v33 = vmul.u32 %v1275_v6, %v1251_v44  ;;  %v1279_v22 = vmul.u32 %v1275_v6, %v1252_v21 }
 0x1ae   : > { %vm1150_vm1 = vcmp.lt.s32.totalorder %v2557_v27, 0  ;;  %v1151_v37 = vsub.s32 0, %v2557_v27  ;;  %vm1263_vm2 = vc.u32 %v1255_v23, %v1259_v51  ;;  %v1261_v57 = vshll.u32 %v1257_v38, 16 }
 0x1af   : > { %v1264_v25 = vsel %vm1263_vm2, 1, %v1859_v7  ;;  %v1265_v24 = vadd.s32 %v1259_v51, %v1255_v23  ;;  %v1281_v50 = vshll.u32 %v1278_v42, 16  ;;  %v998_v15 = vclz %v997_v62 }
 0x1b0   : > { %v1152_v56 = vsel %vm1150_vm1, %v1151_v37, %v2557_v27  ;;  %v1260_v5 = vshrl.u32 %v1256_v19, 16  ;;  %v1266_v53 = vadd.s32 %v1264_v25, %v1258_v1  ;;  %v1280_v44 = vmul.u32 %v1276_v54, %v1252_v21 }
 0x1b1   : > { %v1153_v59 = vclz %v1152_v56  ;;  %vm1267_vm3 = vc.u32 %v1265_v24, %v1261_v57  ;;  %vm1285_vm4 = vc.u32 %v1277_v33, %v1281_v50  ;;  %v1283_v3 = vshll.u32 %v1279_v22, 16 }
 0x1b2   : > { %v1268_v61 = vsel %vm1267_vm3, 1, %v1859_v7  ;;  %v1286_v6 = vsel %vm1285_vm4, 1, %v1859_v7  ;;  %v1287_v17 = vadd.s32 %v1281_v50, %v1277_v33  ;;  %v1360_v62 = vand.u32 2139095040, %v2565_v58 }
 0x1b3   : > { %v1797_v14 = vadd.s32 4294967294, %v1153_v59  ;;  %v1270_v23 = vadd.s32 %v1268_v61, %v1266_v53  ;;  %v1288_v51 = vadd.s32 %v1286_v6, %v1280_v44  ;;  %v1218_v19 = vshrl.u32 %v3250_v2, %v2476_v35 }
 0x1b4   : > { %v1239_v1 = vsel %vm1237_vm11, %v2502_v12, 2102212464  ;;  %v1262_v21 = vshrl.u32 %v1257_v38, 16  ;;  %vm1289_vm5 = vc.u32 %v1287_v17, %v1283_v3  ;;  %v1361_v57 = vshrl.u32 %v1360_v62, 23 }
 0x1b5   : > { %vm1798_vm6 = vcmp.lt.s32.totalorder %v1797_v14, 0  ;;  %v1271_v54 = vadd.s32 %v1270_v23, %v1260_v5  ;;  %v1290_v37 = vsel %vm1289_vm5, 1, %v1859_v7  ;;  %v1794_v33 = vadd.s32 4294967294, %v998_v15 }
 0x1b6   : > { %v1156_v25 = vsel %vm1798_vm6, 0, %v1797_v14  ;;  %v1282_v53 = vshrl.u32 %v1278_v42, 16  ;;  %v1292_v24 = vadd.s32 %v1290_v37, %v1288_v51  ;;  %v1238_v35 = vsel %vm1234_vm10, %v1218_v19, %v2496_v32 }
 0x1b7   : > { %v1161_v50 = vsub.s32 4294967266, %v1156_v25  ;;  %v1240_v12 = vsel %vm1236_vm12, %v2498_v43, %v1239_v1  ;;  %v2582_v38 = vadd.s32 %v1271_v54, %v1262_v21  ;;  %vm2586_vm0 = vcmp.le.f32.partialorder %v427_v48, 0.7853982 }
 0x1b8   : > { %v1284_v14 = vshrl.u32 %v1279_v22, 16  ;;  %v1293_v42 = vadd.s32 %v1292_v24, %v1282_v53  ;;  %v1802_v15 = vadd.s32 4294967169, %v1361_v57  ;;  %v2594_v32 = vsel %vm2586_vm0, %v1990_v47, %v550_v26 }
 0x1b9   : > { %v1162_v59 = vadd.s32 127, %v1161_v50  ;;  %v2596_v43 = vadd.s32 %v1287_v17, %v1283_v3  ;;  %v1241_v48 = vsel %vm1235_vm13, %v1238_v35, %v1240_v12  ;;  %v847_v22 = vsub.s32 32, %v2546_v30 }
 0x1ba   : > { %v1294_v61 = vadd.s32 %v1293_v42, %v1284_v14  ;;  %v1367_v6 = vadd.s32 1, %v1802_v15  ;;  %v852_v23 = vadd.s32 127, %v851_v31  ;;  %vm1795_vm7 = vcmp.lt.s32.totalorder %v1794_v33, 0 }
 0x1bb   : > { %vm1297_vm8 = vc.u32 %v2582_v38, %v2596_v43  ;;  %v1157_v51 = vsub.s32 32, %v1156_v25  ;;  %v3243_v62 = vand.u32 2147483647, %v2565_v58  ;;  %v831_v17 = vadd.s32 %v2296_v60, %v2281_v40 }
 0x1bc   : > { %v1298_v26 = vadd.s32 1, %v1294_v61  ;;  %vm1368_vm10 = vcmp.gt.s32.totalorder %v1367_v6, 0  ;;  %v1163_v3 = vshll.u32 %v1162_v59, 23  ;;  %v1295_v34 = vmul.u32 %v2519_v10, %v1241_v48 }
 0x1bd   : > { %v1369_v19 = vsel %vm1368_vm10, %v1367_v6, 0  ;;  %v848_v1 = vshll.u32 %v2392_v49, %v2546_v30  ;;  %v1141_v31 = vadd.s32 %v2480_v29, %v2478_v0  ;;  %v849_v37 = vshrl.u32 %v831_v17, %v847_v22 }
 0x1be   : > { %v1299_v21 = vsel %vm1297_vm8, %v1298_v26, %v1294_v61  ;;  %v1371_v54 = vand.u32 31, %v1369_v19  ;;  %v853_v57 = vshll.u32 %v852_v23, 23  ;;  %v2613_v53 = vsel %vm1795_vm7, 0, %v1794_v33 }
 0x1bf   : > { %v1300_v24 = vadd.s32 %v1299_v21, %v1295_v34  ;;  %v1158_v40 = vshll.u32 %v2557_v27, %v1156_v25  ;;  %v1159_v60 = vshrl.u32 %v1141_v31, %v1157_v51  ;;  %v1364_v10 = vand.u32 8388607, %v3243_v62 }
 0x1c0   : > { %v2618_v50 = vsub.s32 32, %v1371_v54  ;;  %v1164_v49 = vor.u32 4788187, %v1163_v3  ;;  %v2620_v35 = vshrl.u32 %v1369_v19, 5  ;;  %v1374_v0 = vshll.u32 %v3250_v2, %v1371_v54 }
 0x1c1   : > { %v1301_v30 = vadd.s32 536870912, %v1300_v24  ;;  %v1377_v33 = vshll.u32 %v3248_v4, %v1371_v54  ;;  %v1383_v14 = vshll.u32 %v3244_v11, %v1371_v54  ;;  %v3257_v42 = vmov 920167782  }
 0x1c2   : > { %v1375_v29 = vshrl.u32 %v3248_v4, %v2618_v50  ;;  %v1378_v27 = vshrl.u32 %v3246_v8, %v2618_v50  ;;  %v1381_v25 = vshrl.u32 %v3244_v11, %v2618_v50  ;;  %v1384_v15 = vshrl.u32 %v3257_v42, %v2618_v50 }
 0x1c3   : > { %v2630_v12 = vshrl.u32 %v1301_v30, 30  ;;  %v3258_v59 = vmov 1326507024   ;;  %v1380_v22 = vshll.u32 %v3246_v8, %v1371_v54  ;;  %v1386_v23 = vshll.u32 %v3257_v42, %v1371_v54 }
 0x1c4   : > { %v1387_v48 = vshrl.u32 %v3258_v59, %v2618_v50  ;;  %v2637_v61 = vor.u32 %v1375_v29, %v1374_v0  ;;  %v2639_v6 = vor.u32 %v1378_v27, %v1377_v33  ;;  %v1160_v51 = vor.u32 %v1159_v60, %v1158_v40 }
 0x1c5   : > { %v1303_v26 = vshll.u32 %v2630_v12, 30  ;;  %v1365_v17 = vor.u32 8388608, %v1364_v10  ;;  %v1385_v3 = vor.u32 %v1384_v15, %v1383_v14  ;;  %v2644_v34 = vor.u32 %v849_v37, %v848_v1 }
 0x1c6   : > { %v986_v19 = vadd.s32 %v2399_v45, %v2383_v9  ;;  %v1382_v31 = vor.u32 %v1381_v25, %v1380_v22  ;;  %v1388_v21 = vor.u32 %v1387_v48, %v1386_v23  ;;  %v2648_v30 = vor.u32 4788187, %v853_v57  ;;  %v2661_v45 = vpop.f32.mrf.mxu3 }
 0x1c7   : > { %v2650_v0 = vsub.s32 %v1300_v24, %v1303_v26  ;;  %vm1389_vm11 = vcmp.lt.s32.totalorder %v2620_v35, 1  ;;  %vm1392_vm12 = vcmp.lt.s32.totalorder %v2620_v35, 4  ;;  %v1002_v54 = vsub.s32 32, %v2613_v53  ;;  %3259 = vst [vmem:[#allocation2_spill] sm:$0xff] %v2661_v45 }
 0x1c8   : > { %v1165_v40 = vand.u32 2147483647, %v1164_v49  ;;  %v1397_v1 = vsel %vm1389_vm11, %v2637_v61, %v2639_v6  ;;  %v1398_v9 = vsel %vm1392_vm12, %v1385_v3, 920167782  ;;  %v1006_v37 = vsub.s32 4294967266, %v2613_v53 }
 0x1c9   : > { %v1167_v57 = vcvt.s32.f32 %v1160_v51  ;;  %vm1391_vm13 = vcmp.lt.s32.totalorder %v2620_v35, 3  ;;  %v2665_v24 = vshll.u32 %v1365_v17, 8  ;;  %vm1390_vm14 = vcmp.lt.s32.totalorder %v2620_v35, 2 }
 0x1ca   : > { %v1399_v60 = vsel %vm1391_vm13, %v1382_v31, %v1398_v9  ;;  %v1401_v10 = vsel %vm1389_vm11, %v2639_v6, %v1382_v31  ;;  %v1402_v49 = vsel %vm1392_vm12, %v1388_v21, 1326507024  ;;  %vm1049_vm15 = vcmp.lt.s32.totalorder %v2315_v20, 0 }
 0x1cb   : > { %v1306_v29 = vsub.s32 0, %v2650_v0  ;;  %v1400_v33 = vsel %vm1390_vm14, %v1397_v1, %v1399_v60  ;;  %v1403_v27 = vsel %vm1391_vm13, %v1385_v3, %v1402_v49  ;;  %v1515_v25 = vand.u32 2139095040, %v2661_v45 }
 0x1cc   : > { %v1168_v14 = vmul.f32 %v1167_v57, %v1165_v40  ;;  %vm1305_vm1 = vcmp.lt.s32.totalorder %v2650_v0, 0  ;;  %v1404_v15 = vsel %vm1390_vm14, %v1401_v10, %v1403_v27  ;;  %v1431_v48 = vshrl.u32 %v1400_v33, 16 }
 0x1cd   : > { %v1406_v22 = vand.u32 65535, %v2665_v24  ;;  %v1407_v23 = vshrl.u32 %v2665_v24, 16  ;;  %v1408_v51 = vand.u32 65535, %v1404_v15  ;;  %v1409_v26 = vshrl.u32 %v1404_v15, 16 }
 0x1ce   : > { %v855_v17 = vand.u32 2147483647, %v2648_v30  ;;  %v857_v21 = vcvt.s32.f32 %v2644_v34  ;;  %v1003_v3 = vshll.u32 %v2511_v13, %v2613_v53  ;;  %v1430_v40 = vand.u32 65535, %v1400_v33 }
 0x1cf   : > { %v3260_v1 = vand.u32 2147483647, %v2315_v20  ;;  %v1307_v57 = vsel %vm1305_vm1, %v1306_v29, %v2650_v0  ;;  %v1411_v60 = vmul.u32 %v1409_v26, %v1406_v22  ;;  %v1412_v10 = vmul.u32 %v1408_v51, %v1407_v23 }
 0x1d0   : > { %v1433_v49 = vmul.u32 %v1431_v48, %v1406_v22  ;;  %v1004_v27 = vshrl.u32 %v986_v19, %v1002_v54  ;;  %v2698_v15 = vadd.s32 127, %v1006_v37  ;;  %v1169_v30 = vxor.u32 2147483648, %v1168_v14 }
 0x1d1   : > { %vm2693_vm2 = vcmp.le.f32.partialorder %v3260_v1, 0.7853982  ;;  %v1516_v34 = vshrl.u32 %v1515_v25, 23  ;;  %v1373_v13 = vshrl.u32 %v3250_v2, %v2618_v50  ;;  %v1410_v53 = vmul.u32 %v1408_v51, %v1406_v22 }
 0x1d2   : > { %v1414_v33 = vshll.u32 %v1411_v60, 16  ;;  %v3252_v1 = vand.u32 2147483647, %v2661_v45  ;;  %v1308_v62 = vclz %v1307_v57  ;;  %v1394_v44 = vsel %vm1392_vm12, %v1382_v31, 2102212464 }
 0x1d3   : > { %v1413_v29 = vmul.u32 %v1409_v26, %v1407_v23  ;;  %v1434_v56 = vmul.u32 %v1430_v40, %v1407_v23  ;;  %v1416_v11 = vshll.u32 %v1412_v10, 16  ;;  %v1436_v54 = vshll.u32 %v1433_v49, 16 }
 0x1d4   : > { %vm1418_vm3 = vc.u32 %v1410_v53, %v1414_v33  ;;  %v1420_v19 = vadd.s32 %v1414_v33, %v1410_v53  ;;  %v1170_v37 = vsel %vm1049_vm15, %v1169_v30, %v1168_v14  ;;  %v1393_v50 = vsel %vm1389_vm11, %v1373_v13, %v2637_v61 }
 0x1d5   : > { %v1419_v25 = vsel %vm1418_vm3, 1, %v1859_v7  ;;  %v1805_v51 = vadd.s32 4294967169, %v1516_v34  ;;  %v1395_v31 = vsel %vm1391_vm13, %v2639_v6, %v1394_v44  ;;  %v1432_v57 = vmul.u32 %v1430_v40, %v1406_v22 }
 0x1d6   : > { %v1421_v26 = vadd.s32 %v1419_v25, %v1413_v29  ;;  %vm1422_vm4 = vc.u32 %v1420_v19, %v1416_v11  ;;  %v1800_v8 = vadd.s32 4294967294, %v1308_v62  ;;  %v1415_v53 = vshrl.u32 %v1411_v60, 16 }
 0x1d7   : > { %v1423_v33 = vsel %vm1422_vm4, 1, %v1859_v7  ;;  %v1435_v4 = vmul.u32 %v1431_v48, %v1407_v23  ;;  %v1438_v30 = vshll.u32 %v1434_v56, 16  ;;  %vm1440_vm5 = vc.u32 %v1432_v57, %v1436_v54 }
 0x1d8   : > { %v1425_v14 = vadd.s32 %v1423_v33, %v1421_v26  ;;  %v1442_v2 = vadd.s32 %v1436_v54, %v1432_v57  ;;  %v2718_v61 = vsel %vm2693_vm2, %v2315_v20, %v1170_v37  ;;  %v1441_v34 = vsel %vm1440_vm5, 1, %v1859_v7 }
 0x1d9   : > { %v1519_v11 = vand.u32 8388607, %v3252_v1  ;;  %v1522_v44 = vadd.s32 1, %v1805_v51  ;;  %v1417_v62 = vshrl.u32 %v1412_v10, 16  ;;  %v1443_v22 = vadd.s32 %v1441_v34, %v1435_v4 }
 0x1da   : > { %v1426_v6 = vadd.s32 %v1425_v14, %v1415_v53  ;;  %vm1444_vm6 = vc.u32 %v1442_v2, %v1438_v30  ;;  %vm1801_vm7 = vcmp.lt.s32.totalorder %v1800_v8, 0  ;;  %v1396_v48 = vsel %vm1390_vm14, %v1393_v50, %v1395_v31 }
 0x1db   : > { %v1445_v23 = vsel %vm1444_vm6, 1, %v1859_v7  ;;  %vm1523_vm8 = vcmp.gt.s32.totalorder %v1522_v44, 0  ;;  %v1437_v60 = vshrl.u32 %v1433_v49, 16  ;;  %v2728_v19 = vmul.f32 %v857_v21, %v855_v17 }
 0x1dc   : > { %v2726_v40 = vadd.s32 %v1426_v6, %v1417_v62  ;;  %v1447_v13 = vadd.s32 %v1445_v23, %v1443_v22  ;;  %v1524_v29 = vsel %vm1523_vm8, %v1522_v44, 0  ;;  %v2730_v54 = vor.u32 %v1004_v27, %v1003_v3 }
 0x1dd   : > { %v1008_v10 = vshll.u32 %v2698_v15, 23  ;;  %v1526_v4 = vand.u32 31, %v1524_v29  ;;  %v1439_v37 = vshrl.u32 %v1434_v56, 16  ;;  %v2733_v25 = vadd.s32 %v1442_v2, %v1438_v30 }
 0x1de   : > { %v1448_v35 = vadd.s32 %v1447_v13, %v1437_v60  ;;  %v1520_v50 = vor.u32 8388608, %v1519_v11  ;;  %v2737_v51 = vmul.f32 %v2718_v61, %v2718_v61  ;;  %v2740_v49 = vsel %vm1801_vm7, 0, %v1800_v8 }
 0x1df   : > { %v1450_v17 = vmul.u32 %v2665_v24, %v1396_v48  ;;  %v2743_v21 = vsub.s32 32, %v1526_v4  ;;  %vm1452_vm10 = vc.u32 %v2726_v40, %v2733_v25  ;;  %v2747_v56 = vshrl.u32 %v1524_v29, 5 }
 0x1e0   : > { %v1449_v3 = vadd.s32 %v1448_v35, %v1439_v37  ;;  %v3263_v2 = vmov 683565275   ;;  %v3264_v15 = vmov 2475754826   ;;  %v3265_v8 = vmov 2131351028  }
 0x1e1   : > { %v1529_v27 = vshll.u32 %v3263_v2, %v1526_v4  ;;  %v1530_v31 = vshrl.u32 %v3264_v15, %v2743_v21  ;;  %v1532_v26 = vshll.u32 %v3264_v15, %v1526_v4  ;;  %v1533_v57 = vshrl.u32 %v3265_v8, %v2743_v21 }
 0x1e2   : > { %v1535_v24 = vshll.u32 %v3265_v8, %v1526_v4  ;;  %v1453_v53 = vadd.s32 1, %v1449_v3  ;;  %v3266_v33 = vmov 2102212464   ;;  %v1539_v34 = vshrl.u32 %v3257_v42, %v2743_v21 }
 0x1e3   : > { %v1536_v14 = vshrl.u32 %v3266_v33, %v2743_v21  ;;  %v1538_v30 = vshll.u32 %v3266_v33, %v1526_v4  ;;  %v2761_v11 = vor.u32 %v1530_v31, %v1529_v27  ;;  %v2763_v44 = vor.u32 %v1533_v57, %v1532_v26 }
 0x1e4   : > { %v1541_v62 = vshll.u32 %v3257_v42, %v1526_v4  ;;  %v1542_v6 = vshrl.u32 %v3258_v59, %v2743_v21  ;;  %v1316_v22 = vsub.s32 4294967266, %v2740_v49  ;;  %v1454_v48 = vsel %vm1452_vm10, %v1453_v53, %v1449_v3 }
 0x1e5   : > { %v2772_v23 = vor.u32 %v1536_v14, %v1535_v24  ;;  %v1540_v60 = vor.u32 %v1539_v34, %v1538_v30  ;;  %v1455_v13 = vadd.s32 %v1454_v48, %v1450_v17  ;;  %vm1544_vm11 = vcmp.lt.s32.totalorder %v2747_v56, 1 }
 0x1e6   : > { %v1543_v29 = vor.u32 %v1542_v6, %v1541_v62  ;;  %v2775_v37 = vshll.u32 %v1520_v50, 8  ;;  %v2777_v35 = vor.u32 4788187, %v1008_v10  ;;  %v1183_v42 = vmul.f32 -0.00019511016, %v2737_v51 }
 0x1e7   : > { %vm1547_vm12 = vcmp.lt.s32.totalorder %v2747_v56, 4  ;;  %v1552_v59 = vsel %vm1544_vm11, %v2761_v11, %v2763_v44  ;;  %v1456_v4 = vadd.s32 536870912, %v1455_v13  ;;  %vm1546_vm13 = vcmp.lt.s32.totalorder %v2747_v56, 3 }
 0x1e8   : > { %v1553_v17 = vsel %vm1547_vm12, %v1540_v60, 920167782  ;;  %v1556_v10 = vsel %vm1544_vm11, %v2763_v44, %v2772_v23  ;;  %v2792_v50 = vadd.s32 127, %v1316_v22  ;;  %vm1545_vm14 = vcmp.lt.s32.totalorder %v2747_v56, 2 }
 0x1e9   : > { %v1554_v3 = vsel %vm1546_vm13, %v2772_v23, %v1553_v17  ;;  %v1557_v27 = vsel %vm1547_vm12, %v1543_v29, 1326507024  ;;  %v2800_v15 = vshrl.u32 %v1456_v4, 30  ;;  %v1561_v8 = vand.u32 65535, %v2775_v37 }
 0x1ea   : > { %v1555_v31 = vsel %vm1545_vm14, %v1552_v59, %v1554_v3  ;;  %v1558_v26 = vsel %vm1546_vm13, %v1540_v60, %v1557_v27  ;;  %v1562_v24 = vshrl.u32 %v2775_v37, 16  ;;  %v1012_v14 = vcvt.s32.f32 %v2730_v54 }
 0x1eb   : > { %v1559_v57 = vsel %vm1545_vm14, %v1556_v10, %v1558_v26  ;;  %v1585_v53 = vand.u32 65535, %v1555_v31  ;;  %v1586_v33 = vshrl.u32 %v1555_v31, 16  ;;  %v1458_v30 = vshll.u32 %v2800_v15, 30 }
 0x1ec   : > { %v1563_v34 = vand.u32 65535, %v1559_v57  ;;  %v1564_v62 = vshrl.u32 %v1559_v57, 16  ;;  %v1010_v6 = vand.u32 2147483647, %v2777_v35  ;;  %v1296_v22 = vadd.s32 %v2596_v43, %v2582_v38 }
 0x1ed   : > { %v1588_v48 = vmul.u32 %v1586_v33, %v1561_v8  ;;  %v1589_v60 = vmul.u32 %v1585_v53, %v1562_v24  ;;  %v1184_v29 = vadd.f32 0.008332121, %v1183_v42  ;;  %v1312_v59 = vsub.s32 32, %v2740_v49 }
 0x1ee   : > { %v2816_v4 = vsub.s32 %v1455_v13, %v1458_v30  ;;  %v1566_v17 = vmul.u32 %v1564_v62, %v1561_v8  ;;  %v1318_v10 = vshll.u32 %v2792_v50, 23  ;;  %v1567_v54 = vmul.u32 %v1563_v34, %v1562_v24 }
 0x1ef   : > { %v1587_v3 = vmul.u32 %v1585_v53, %v1561_v8  ;;  %v1591_v27 = vshll.u32 %v1588_v48, 16  ;;  %v1565_v31 = vmul.u32 %v1563_v34, %v1561_v8  ;;  %v1568_v38 = vmul.u32 %v1564_v62, %v1562_v24 }
 0x1f0   : > { %vm1460_vm1 = vcmp.lt.s32.totalorder %v2816_v4, 0  ;;  %v1461_v35 = vsub.s32 0, %v2816_v4  ;;  %v1569_v26 = vshll.u32 %v1566_v17, 16  ;;  %v1571_v43 = vshll.u32 %v1567_v54, 16 }
 0x1f1   : > { %v1590_v57 = vmul.u32 %v1586_v33, %v1562_v24  ;;  %v1593_v42 = vshll.u32 %v1589_v60, 16  ;;  %vm1595_vm4 = vc.u32 %v1587_v3, %v1591_v27  ;;  %v1597_v45 = vadd.s32 %v1591_v27, %v1587_v3 }
 0x1f2   : > { %v1462_v1 = vsel %vm1460_vm1, %v1461_v35, %v2816_v4  ;;  %vm1573_vm3 = vc.u32 %v1565_v31, %v1569_v26  ;;  %v1575_v13 = vadd.s32 %v1569_v26, %v1565_v31  ;;  %v1596_v53 = vsel %vm1595_vm4, 1, %v1859_v7 }
 0x1f3   : > { %v1463_v30 = vclz %v1462_v1  ;;  %v1574_v50 = vsel %vm1573_vm3, 1, %v1859_v7  ;;  %vm584_vm5 = vcmp.lt.s32.totalorder %v1996_v55, 0  ;;  %v1528_v8 = vshrl.u32 %v3263_v2, %v2743_v21 }
 0x1f4   : > { %v1576_v34 = vadd.s32 %v1574_v50, %v1568_v38  ;;  %vm1577_vm6 = vc.u32 %v1575_v13, %v1571_v43  ;;  %v1598_v24 = vadd.s32 %v1596_v53, %v1590_v57  ;;  %v1549_v62 = vsel %vm1547_vm12, %v2772_v23, 2102212464  ;;  %v2848_v50 = vpop.f32.mrf.mxu0 }
 0x1f5   : > { %v1803_v33 = vadd.s32 4294967294, %v1463_v30  ;;  %v1578_v1 = vsel %vm1577_vm6, 1, %v1859_v7  ;;  %vm1599_vm7 = vc.u32 %v1597_v45, %v1593_v42  ;;  %v1314_v35 = vshrl.u32 %v1296_v22, %v1312_v59 }
 0x1f6   : > { %v1570_v31 = vshrl.u32 %v1566_v17, 16  ;;  %v1580_v26 = vadd.s32 %v1578_v1, %v1576_v34  ;;  %v1600_v3 = vsel %vm1599_vm7, 1, %v1859_v7  ;;  %v3267_v27 = vand.u32 2147483647, %v1996_v55 }
 0x1f7   : > { %vm1804_vm10 = vcmp.lt.s32.totalorder %v1803_v33, 0  ;;  %v1548_v2 = vsel %vm1544_vm11, %v1528_v8, %v2761_v11  ;;  %v1592_v23 = vshrl.u32 %v1588_v48, 16  ;;  %v1602_v38 = vadd.s32 %v1600_v3, %v1598_v24 }
 0x1f8   : > { %vm2834_vm8 = vcmp.le.f32.partialorder %v3267_v27, 0.7853982  ;;  %v2841_v43 = vsel %vm1804_vm10, 0, %v1803_v33  ;;  %v1550_v22 = vsel %vm1546_vm13, %v2763_v44, %v1549_v62  ;;  %v1572_v7 = vshrl.u32 %v1567_v54, 16 }
 0x1f9   : > { %v1581_v59 = vadd.s32 %v1580_v26, %v1570_v31  ;;  %v1313_v17 = vshll.u32 %v2650_v0, %v2740_v49  ;;  %v1319_v57 = vor.u32 4788187, %v1318_v10  ;;  %v1594_v13 = vshrl.u32 %v1589_v60, 16 }
 0x1fa   : > { %v1603_v30 = vadd.s32 %v1602_v38, %v1592_v23  ;;  %v1013_v53 = vmul.f32 %v1012_v14, %v1010_v6  ;;  %v1471_v11 = vsub.s32 4294967266, %v2841_v43  ;;  %v2853_v8 = vadd.s32 %v1597_v45, %v1593_v42 }
 0x1fb   : > { %v2851_v48 = vadd.s32 %v1581_v59, %v1572_v7  ;;  %v1185_v34 = vmul.f32 %v1184_v29, %v2737_v51  ;;  %v1315_v44 = vor.u32 %v1314_v35, %v1313_v17  ;;  %v1551_v54 = vsel %vm1545_vm14, %v1548_v2, %v1550_v22 }
 0x1fc   : > { %v1604_v24 = vadd.s32 %v1603_v30, %v1594_v13  ;;  %v3270_v0 = vsub.s32 4, %v2092_v18  ;;  %v3271_v14 = vand.u32 2147483647, %v2090_v16  ;;  %vm739_vm12 = vcmp.lt.s32.totalorder %v2090_v16, 0 }
 0x1fd   : > { %vm1607_vm13 = vc.u32 %v2851_v48, %v2853_v8  ;;  %v3274_v45 = vxor.u32 2147483648, %v2555_v39  ;;  %v1320_v60 = vand.u32 2147483647, %v1319_v57  ;;  %v2882_v10 = vmul.f32 %v2594_v32, %v2594_v32 }
 0x1fe   : > { %v2863_v49 = vsel %vm429_vm9, %v3270_v0, %v2092_v18  ;;  %vm2867_vm11 = vcmp.le.f32.partialorder %v3271_v14, 0.7853982  ;;  %v706_v18 = vsub.s32 4, %v2197_v28  ;;  %v1608_v29 = vadd.s32 1, %v1604_v24 }
 0x1ff   : > { %v705_v56 = vsel %vm584_vm5, %v3274_v45, %v2555_v39  ;;  %v859_v42 = vxor.u32 2147483648, %v2728_v19  ;;  %v1472_v33 = vadd.s32 127, %v1471_v11  ;;  %v1605_v62 = vmul.u32 %v2775_v37, %v1551_v54 }
 0x200   : > { %v1014_v1 = vxor.u32 2147483648, %v1013_v53  ;;  %v1186_v35 = vadd.f32 -0.16666654, %v1185_v34  ;;  %v1322_v31 = vcvt.s32.f32 %v1315_v44  ;;  %v1609_v26 = vsel %vm1607_vm13, %v1608_v29, %v1604_v24  ;;  %v2918_v34 = vpop.f32.mrf.mxu0 }
 0x201   : > { %v2889_v39 = vsel %vm2834_vm8, %v1996_v55, %v705_v56  ;;  %vm894_vm9 = vcmp.lt.s32.totalorder %v2120_v63, 0  ;;  %v1467_v3 = vsub.s32 32, %v2841_v43  ;;  %v1610_v27 = vadd.s32 %v1609_v26, %v1605_v62 }
 0x202   : > { %v2896_v2 = vsel %vm584_vm5, %v706_v18, %v2197_v28  ;;  %v861_v37 = vsub.s32 4, %v2340_v36  ;;  %v3275_v23 = vand.u32 2147483647, %v2120_v63  ;;  %v1323_v22 = vmul.f32 %v1322_v31, %v1320_v60 }
 0x203   : > { %v860_v7 = vsel %vm739_vm12, %v859_v42, %v2728_v19  ;;  %v1451_v59 = vadd.s32 %v2733_v25, %v2726_v40  ;;  %v1473_v17 = vshll.u32 %v1472_v33, 23  ;;  %v1611_v57 = vadd.s32 536870912, %v1610_v27 }
 0x204   : > { %vm2901_vm14 = vcmp.le.f32.partialorder %v3275_v23, 0.7853982  ;;  %v2912_v28 = vmul.f32 %v2889_v39, %v2889_v39  ;;  %v1015_v13 = vsel %vm894_vm9, %v1014_v1, %v1013_v53  ;;  %v1187_v30 = vmul.f32 %v1186_v35, %v2737_v51 }
 0x205   : > { %v556_v11 = vmul.f32 -0.001358992, %v2882_v10  ;;  %v1171_v19 = vsub.s32 4, %v2541_v46  ;;  %v1469_v44 = vshrl.u32 %v1451_v59, %v1467_v3  ;;  %v2921_v54 = vshrl.u32 %v1611_v57, 30 }
 0x206   : > { %v563_v40 = vmul.f32 -0.00019511016, %v2882_v10  ;;  %v2927_v25 = vsel %vm739_vm12, %v861_v37, %v2340_v36  ;;  %v2932_v53 = vsel %vm2867_vm11, %v2090_v16, %v860_v7  ;;  %v1016_v24 = vsub.s32 4, %v2460_v52 }
 0x207   : > { %v1324_v0 = vxor.u32 2147483648, %v1323_v22  ;;  %v2938_v14 = vsel %vm2901_vm14, %v2120_v63, %v1015_v13  ;;  %v1468_v45 = vshll.u32 %v2816_v4, %v2841_v43  ;;  %v1474_v56 = vor.u32 4788187, %v1473_v17 }
 0x208   : > { %v1613_v36 = vshll.u32 %v2921_v54, 30  ;;  %v1188_v18 = vadd.f32 1.0, %v1187_v30  ;;  %v3278_v60 = vand.u32 2147483647, %v2353_v41  ;;  %vm1204_vm3 = vcmp.lt.s32.totalorder %v2353_v41, 0  ;;  %v2980_v59 = vpop.f32.mrf.mxu0 }
 0x209   : > { %v557_v42 = vadd.f32 0.041655596, %v556_v11  ;;  %v1172_v33 = vsel %vm1049_vm15, %v1171_v19, %v2541_v46  ;;  %v1470_v62 = vor.u32 %v1469_v44, %v1468_v45  ;;  %v564_v4 = vadd.f32 0.008332121, %v563_v40 }
 0x20a   : > { %vm2945_vm1 = vcmp.le.f32.partialorder %v3278_v60, 0.7853982  ;;  %v2953_v1 = vsub.s32 %v1610_v27, %v1613_v36  ;;  %v2957_v43 = vmul.f32 %v2932_v53, %v2932_v53  ;;  %v2962_v35 = vsel %vm894_vm9, %v1016_v24, %v2460_v52 }
 0x20b   : > { %v2966_v31 = vmul.f32 %v2938_v14, %v2938_v14  ;;  %v1325_v46 = vsel %vm1204_vm3, %v1324_v0, %v1323_v22  ;;  %v1475_v26 = vand.u32 2147483647, %v1474_v56  ;;  %v718_v27 = vmul.f32 -0.00019511016, %v2912_v28 }
 0x20c   : > { %vm1615_vm15 = vcmp.lt.s32.totalorder %v2953_v1, 0  ;;  %v1616_v3 = vsub.s32 0, %v2953_v1  ;;  %v1174_v37 = vsel %vm2693_vm2, 0, %v1172_v33  ;;  %v2976_v52 = vmul.f32 %v1188_v18, %v2718_v61 }
 0x20d   : > { %v1326_v23 = vsub.s32 4, %v2630_v12  ;;  %v558_v7 = vmul.f32 %v557_v42, %v2882_v10  ;;  %v1477_v22 = vcvt.s32.f32 %v1470_v62  ;;  %v565_v57 = vmul.f32 %v564_v4, %v2882_v10 }
 0x20e   : > { %v1617_v17 = vsel %vm1615_vm15, %v1616_v3, %v2953_v1  ;;  %v711_v13 = vmul.f32 -0.001358992, %v2912_v28  ;;  %v2988_v9 = vsel %vm2945_vm1, %v2353_v41, %v1325_v46  ;;  %vm1359_vm2 = vcmp.lt.s32.totalorder %v2565_v58, 0 }
 0x20f   : > { %v1618_v61 = vclz %v1617_v17  ;;  %v873_v30 = vmul.f32 -0.00019511016, %v2957_v43  ;;  %v1478_v11 = vmul.f32 %v1477_v22, %v1475_v26  ;;  %v554_v19 = vsel %vm2586_vm0, 0, %v2863_v49 }
 0x210   : > { %v719_v44 = vadd.f32 0.008332121, %v718_v27  ;;  %v866_v40 = vmul.f32 -0.001358992, %v2957_v43  ;;  %v2996_v24 = vadd.s32 3, %v1174_v37  ;;  %v3001_v0 = vsel %vm1204_vm3, %v1326_v23, %v2630_v12  ;;  %v3019_v22 = vpop.f32.mrf.mxu0 }
 0x211   : > { %v1806_v45 = vadd.s32 4294967294, %v1618_v61  ;;  %v559_v56 = vadd.f32 -0.4999988, %v558_v7  ;;  %v1195_v36 = vxor.u32 2147483648, %v2976_v52  ;;  %v3006_v18 = vmul.f32 %v2988_v9, %v2988_v9 }
 0x212   : > { %v3281_v5 = vand.u32 2147483647, %v2565_v58  ;;  %v566_v60 = vadd.f32 -0.16666654, %v565_v57  ;;  %v712_v42 = vadd.f32 0.041655596, %v711_v13  ;;  %v720_v26 = vmul.f32 %v719_v44, %v2912_v28 }
 0x213   : > { %v1481_v33 = vsub.s32 4, %v2800_v15  ;;  %vm1807_vm4 = vcmp.lt.s32.totalorder %v1806_v45, 0  ;;  %v571_v12 = vadd.s32 3, %v554_v19  ;;  %v874_v62 = vadd.f32 0.008332121, %v873_v30 }
 0x214   : > { %vm3010_vm0 = vcmp.le.f32.partialorder %v3281_v5, 0.7853982  ;;  %v1479_v4 = vxor.u32 2147483648, %v1478_v11  ;;  %v1621_v46 = vsel %vm1807_vm4, 0, %v1806_v45  ;;  %v867_v3 = vadd.f32 0.041655596, %v866_v40 }
 0x215   : > { %v1606_v27 = vadd.s32 %v2853_v8, %v2851_v48  ;;  %v1622_v37 = vsub.s32 32, %v1621_v46  ;;  %v1626_v23 = vsub.s32 4294967266, %v1621_v46  ;;  %v560_v7 = vmul.f32 %v559_v56, %v2882_v10  ;;  %v3284_v5 = vld [vmem:[#allocation2_spill] sm:$0xff] }
 0x216   : > { %v567_v17 = vmul.f32 %v566_v60, %v2882_v10  ;;  %v709_v57 = vsel %vm2834_vm8, 0, %v2896_v2  ;;  %v713_v13 = vmul.f32 %v712_v42, %v2912_v28  ;;  %v1021_v61 = vmul.f32 -0.001358992, %v2966_v31 }
 0x217   : > { %v1623_v30 = vshll.u32 %v2953_v1, %v1621_v46  ;;  %v1624_v19 = vshrl.u32 %v1606_v27, %v1622_v37  ;;  %v1627_v48 = vadd.s32 127, %v1626_v23  ;;  %v875_v8 = vmul.f32 %v874_v62, %v2957_v43 }
 0x218   : > { %v1480_v44 = vsel %vm1359_vm2, %v1479_v4, %v1478_v11  ;;  %v721_v40 = vadd.f32 -0.16666654, %v720_v26  ;;  %v868_v10 = vmul.f32 %v867_v3, %v2957_v43  ;;  %v1028_v45 = vmul.f32 -0.00019511016, %v2966_v31 }
 0x219   : > { %v3036_v21 = vsel %vm1359_vm2, %v1481_v33, %v2800_v15  ;;  %v1625_v2 = vor.u32 %v1624_v19, %v1623_v30  ;;  %v1628_v56 = vshll.u32 %v1627_v48, 23  ;;  %v3038_v1 = vadd.f32 1.0, %v560_v7 }
 0x21a   : > { %vm1514_vm5 = vcmp.lt.s32.totalorder %v3284_v5, 0  ;;  %v3041_v60 = vand.u32 3, %v571_v12  ;;  %v714_v42 = vadd.f32 -0.4999988, %v713_v13  ;;  %v726_v11 = vadd.s32 3, %v709_v57 }
 0x21b   : > { %v1022_v62 = vadd.f32 0.041655596, %v1021_v61  ;;  %v3046_v4 = vsel %vm3010_vm0, %v2565_v58, %v1480_v44  ;;  %v3285_v46 = vand.u32 2147483647, %v3284_v5  ;;  %v1629_v33 = vor.u32 4788187, %v1628_v56  ;;  %v3059_v61 = vpop.f32.mrf.mxu0 }
 0x21c   : > { %v864_v12 = vsel %vm2867_vm11, 0, %v2927_v25  ;;  %v876_v26 = vadd.f32 -0.16666654, %v875_v8  ;;  %v568_v3 = vadd.f32 1.0, %v567_v17  ;;  %v722_v27 = vmul.f32 %v721_v40, %v2912_v28 }
 0x21d   : > { %vm3050_vm6 = vcmp.le.f32.partialorder %v3285_v46, 0.7853982  ;;  %v869_v37 = vadd.f32 -0.4999988, %v868_v10  ;;  %v1029_v23 = vadd.f32 0.008332121, %v1028_v45  ;;  %v1632_v57 = vcvt.s32.f32 %v1625_v2 }
 0x21e   : > { %v1630_v7 = vand.u32 2147483647, %v1629_v33  ;;  %v1176_v30 = vmul.f32 -0.001358992, %v2737_v51  ;;  %v3064_v19 = vmul.f32 %v3046_v4, %v3046_v4  ;;  %v715_v6 = vmul.f32 %v714_v42, %v2912_v28 }
 0x21f   : > { %v3067_v25 = vand.u32 3, %v726_v11  ;;  %v1023_v17 = vmul.f32 %v1022_v62, %v2966_v31  ;;  %v877_v8 = vmul.f32 %v876_v26, %v2957_v43  ;;  %v1331_v44 = vmul.f32 -0.001358992, %v3006_v18 }
 0x220   : > { %v1633_v48 = vmul.f32 %v1632_v57, %v1630_v7  ;;  %v1338_v40 = vmul.f32 -0.00019511016, %v3006_v18  ;;  %v3074_v10 = vmul.f32 %v568_v3, %v2594_v32  ;;  %v723_v45 = vadd.f32 1.0, %v722_v27 }
 0x221   : > { %v870_v2 = vmul.f32 %v869_v37, %v2957_v43  ;;  %v1030_v56 = vmul.f32 %v1029_v23, %v2966_v31  ;;  %v881_v42 = vadd.s32 3, %v864_v12  ;;  %v1177_v11 = vadd.f32 0.041655596, %v1176_v30 }
 0x222   : > { %v1634_v28 = vxor.u32 2147483648, %v1633_v48  ;;  %v1339_v46 = vadd.f32 0.008332121, %v1338_v40  ;;  %v3078_v62 = vadd.f32 1.0, %v715_v6  ;;  %v1019_v33 = vsel %vm2901_vm14, 0, %v2962_v35 }
 0x223   : > { %v1332_v26 = vadd.f32 0.041655596, %v1331_v44  ;;  %v1486_v7 = vmul.f32 -0.001358992, %v3064_v19  ;;  %v878_v3 = vadd.f32 1.0, %v877_v8  ;;  %v3093_v37 = vmul.f32 %v723_v45, %v2889_v39 }
 0x224   : > { %v1635_v32 = vsel %vm1514_vm5, %v1634_v28, %v1633_v48  ;;  %v1024_v43 = vadd.f32 -0.4999988, %v1023_v17  ;;  %v1340_v27 = vmul.f32 %v1339_v46, %v3006_v18  ;;  %v3095_v38 = vadd.f32 1.0, %v870_v2 }
 0x225   : > { %v3090_v12 = vsel %vm3050_vm6, %v3284_v5, %v1635_v32  ;;  %v1031_v35 = vadd.f32 -0.16666654, %v1030_v56  ;;  %v1636_v23 = vsub.s32 4, %v2921_v54  ;;  %v1036_v57 = vadd.s32 3, %v1019_v33  ;;  %v3109_v56 = vpop.f32.mrf.mxu0 }
 0x226   : > { %v1178_v30 = vmul.f32 %v1177_v11, %v2737_v51  ;;  %v1341_v6 = vadd.f32 -0.16666654, %v1340_v27  ;;  %v1640_v17 = vmul.f32 %v3090_v12, %v3090_v12  ;;  %v1333_v48 = vmul.f32 %v1332_v26, %v3006_v18 }
 0x227   : > { %v1487_v8 = vadd.f32 0.041655596, %v1486_v7  ;;  %v1493_v44 = vmul.f32 -0.00019511016, %v3064_v19  ;;  %v3106_v45 = vmul.f32 %v878_v3, %v2932_v53  ;;  %v1025_v2 = vmul.f32 %v1024_v43, %v2966_v31 }
 0x228   : > { %v730_v28 = vxor.u32 2147483648, %v3093_v37  ;;  %v3112_v11 = vand.u32 3, %v881_v42  ;;  %v888_v46 = vxor.u32 2147483648, %v3095_v38  ;;  %v1032_v33 = vmul.f32 %v1031_v35, %v2966_v31 }
 0x229   : > { %v3116_v26 = vand.u32 3, %v1036_v57  ;;  %v1179_v7 = vadd.f32 -0.4999988, %v1178_v30  ;;  %v1342_v32 = vmul.f32 %v1341_v6, %v3006_v18  ;;  %v1488_v53 = vmul.f32 %v1487_v8, %v3064_v19 }
 0x22a   : > { %v1637_v3 = vsel %vm1514_vm5, %v1636_v23, %v2921_v54  ;;  %v1334_v43 = vadd.f32 -0.4999988, %v1333_v48  ;;  %v1494_v27 = vadd.f32 0.008332121, %v1493_v44  ;;  %v1641_v13 = vmul.f32 -0.001358992, %v1640_v17 }
 0x22b   : > { %v885_v42 = vxor.u32 2147483648, %v3106_v45  ;;  %v3124_v40 = vadd.f32 1.0, %v1025_v2  ;;  %v1489_v39 = vadd.f32 -0.4999988, %v1488_v53  ;;  %v1648_v31 = vmul.f32 -0.00019511016, %v1640_v17 }
 0x22c   : > { %v1033_v35 = vadd.f32 1.0, %v1032_v33  ;;  %v1484_v57 = vsel %vm3010_vm0, 0, %v3036_v21  ;;  %v1495_v30 = vmul.f32 %v1494_v27, %v3064_v19  ;;  %v1642_v6 = vadd.f32 0.041655596, %v1641_v13 }
 0x22d   : > { %v1329_v54 = vsel %vm2945_vm1, 0, %v3001_v0  ;;  %v1343_v23 = vadd.f32 1.0, %v1342_v32  ;;  %v1490_v48 = vmul.f32 %v1489_v39, %v3064_v19  ;;  %v1649_v8 = vadd.f32 0.008332121, %v1648_v31 }
 0x22e   : > { %v1180_v44 = vmul.f32 %v1179_v7, %v2737_v51  ;;  %v3136_v2 = vand.u32 3, %v2996_v24  ;;  %v1335_v33 = vmul.f32 %v1334_v43, %v3006_v18  ;;  %v1496_v49 = vadd.f32 -0.16666654, %v1495_v30  ;;  %v3147_v7 = vpop.f32.mrf.mxu0 }
 0x22f   : > { %v1501_v21 = vadd.s32 3, %v1484_v57  ;;  %v1639_v13 = vsel %vm3050_vm6, 0, %v1637_v3  ;;  %v1643_v53 = vmul.f32 %v1642_v6, %v1640_v17  ;;  %v1650_v27 = vmul.f32 %v1649_v8, %v1640_v17 }
 0x230   : > { %v3142_v29 = vmul.f32 %v1033_v35, %v2938_v14  ;;  %v1043_v0 = vxor.u32 2147483648, %v3124_v40  ;;  %v1346_v39 = vadd.s32 3, %v1329_v54  ;;  %v1497_v51 = vmul.f32 %v1496_v49, %v3064_v19 }
 0x231   : > { %v1344_v24 = vmul.f32 %v1343_v23, %v2988_v9  ;;  %v1491_v18 = vadd.f32 1.0, %v1490_v48  ;;  %v1644_v32 = vadd.f32 -0.4999988, %v1643_v53  ;;  %v1651_v43 = vadd.f32 -0.16666654, %v1650_v27 }
 0x232   : > { %v1181_v31 = vadd.f32 1.0, %v1180_v44  ;;  %vm1194_vm7 = vcmp.eq.s32.totalorder %v3136_v2, 0  ;;  %v1498_v15 = vadd.f32 1.0, %v1497_v51  ;;  %v1656_v3 = vadd.s32 3, %v1639_v13 }
 0x233   : > { %v1336_v57 = vadd.f32 1.0, %v1335_v33  ;;  %v1502_v14 = vand.u32 3, %v1501_v21  ;;  %v1645_v35 = vmul.f32 %v1644_v32, %v1640_v17  ;;  %v1652_v30 = vmul.f32 %v1651_v43, %v1640_v17 }
 0x234   : > { %vm1039_vm8 = vcmp.eq.s32.totalorder %v3116_v26, 0  ;;  %v1040_v19 = vxor.u32 2147483648, %v3142_v29  ;;  %vm1197_vm10 = vcmp.eq.s32.totalorder %v3136_v2, 2  ;;  %v1347_v9 = vand.u32 3, %v1346_v39 }
 0x235   : > { %v1499_v6 = vmul.f32 %v1498_v15, %v3046_v4  ;;  %vm1193_vm11 = vcmp.lt.s32.totalorder %v3136_v2, 2  ;;  %v1350_v54 = vxor.u32 2147483648, %v1344_v24  ;;  %v1508_v23 = vxor.u32 2147483648, %v1491_v18 }
 0x236   : > { %v1646_v48 = vadd.f32 1.0, %v1645_v35  ;;  %v1653_v8 = vadd.f32 1.0, %v1652_v30  ;;  %vm884_vm12 = vcmp.eq.s32.totalorder %v3112_v11, 0  ;;  %v1196_v17 = vsel %vm1194_vm7, %v1181_v31, %v1195_v36  ;;  %v286_v43 = vpop.f32.mrf.mxu0 }
 0x237   : > { %v1198_v44 = vxor.u32 2147483648, %v1181_v31  ;;  %v1505_v33 = vxor.u32 2147483648, %v1499_v6  ;;  %v1657_v49 = vand.u32 3, %v1656_v3  ;;  %v1353_v21 = vxor.u32 2147483648, %v1336_v57 }
 0x238   : > { %vm1504_vm13 = vcmp.eq.s32.totalorder %v1502_v14, 0  ;;  %v1654_v4 = vmul.f32 %v1653_v8, %v3090_v12  ;;  %v1663_v13 = vxor.u32 2147483648, %v1646_v48  ;;  %vm729_vm9 = vcmp.eq.s32.totalorder %v3067_v25, 0 }
 0x239   : > { %vm1348_vm14 = vcmp.lt.s32.totalorder %v1347_v9, 2  ;;  %vm1349_vm1 = vcmp.eq.s32.totalorder %v1347_v9, 0  ;;  %v1506_v53 = vsel %vm1504_vm13, %v1491_v18, %v1505_v33  ;;  %vm1507_vm3 = vcmp.eq.s32.totalorder %v1502_v14, 2 }
 0x23a   : > { %v1351_v27 = vsel %vm1349_vm1, %v1336_v57, %v1350_v54  ;;  %vm1503_vm15 = vcmp.lt.s32.totalorder %v1502_v14, 2  ;;  %v1509_v39 = vsel %vm1507_vm3, %v1508_v23, %v1499_v6  ;;  %v1660_v51 = vxor.u32 2147483648, %v1654_v4 }
 0x23b   : > { %vm574_vm2 = vcmp.eq.s32.totalorder %v3041_v60, 0  ;;  %vm1352_vm0 = vcmp.eq.s32.totalorder %v1347_v9, 2  ;;  %v1510_v36 = vsel %vm1503_vm15, %v1506_v53, %v1509_v39  ;;  %vm1659_vm4 = vcmp.eq.s32.totalorder %v1657_v49, 0 }
 0x23c   : > { %vm1662_vm5 = vcmp.eq.s32.totalorder %v1657_v49, 2  ;;  %v1354_v32 = vsel %vm1352_vm0, %v1353_v21, %v1344_v24  ;;  %vm1658_vm6 = vcmp.lt.s32.totalorder %v1657_v49, 2  ;;  %v1661_v12 = vsel %vm1659_vm4, %v1646_v48, %v1660_v51 }
 0x23d   : > { %v1664_v31 = vsel %vm1662_vm5, %v1663_v13, %v1654_v4  ;;  %v1355_v15 = vsel %vm1348_vm14, %v1351_v27, %v1354_v32  ;;  %vm1500_vm7 = vweird.f32 %v2565_v58  ;;  %vm1655_vm13 = vweird.f32 %v3284_v5 }
 0x23e   : > { %v1665_v18 = vsel %vm1658_vm6, %v1661_v12, %v1664_v31  ;;  %v1041_v3 = vsel %vm1039_vm8, %v3124_v40, %v1040_v19  ;;  %v1199_v57 = vsel %vm1197_vm10, %v1198_v44, %v2976_v52  ;;  %v1511_v24 = vsel %vm1500_vm7, nan, %v1510_v36 }
 0x23f   : > { %v1666_v14 = vsel %vm1655_vm13, nan, %v1665_v18  ;;  %vm1042_vm1 = vcmp.eq.s32.totalorder %v3116_v26, 2  ;;  %v1200_v35 = vsel %vm1193_vm11, %v1196_v17, %v1199_v57  ;;  %vm1345_vm14 = vweird.f32 %v2353_v41 }
 0x240   : > { %v1674_v58 = vmul.f32 %v1666_v14, %v286_v43  ;;  %v886_v5 = vsel %vm884_vm12, %v3095_v38, %v885_v42  ;;  %vm1038_vm8 = vcmp.lt.s32.totalorder %v3116_v26, 2  ;;  %v1044_v52 = vsel %vm1042_vm1, %v1043_v0, %v3142_v29 }
 0x241   : > { %v1356_v30 = vsel %vm1345_vm14, nan, %v1355_v15  ;;  %vm887_vm10 = vcmp.eq.s32.totalorder %v3112_v11, 2  ;;  %v1045_v2 = vsel %vm1038_vm8, %v1041_v3, %v1044_v52  ;;  %vm1190_vm11 = vweird.f32 %v2315_v20 }
 0x242   : > { %v1673_v41 = vmul.f32 %v1511_v24, %v3147_v7  ;;  %1687 = vmatpush.msrb.mxu3 %v1674_v58  ;;  %v731_v42 = vsel %vm729_vm9, %v3078_v62, %v730_v28  ;;  %vm883_vm12 = vcmp.lt.s32.totalorder %v3112_v11, 2  ;;  %v889_v40 = vsel %vm887_vm10, %v888_v46, %v3106_v45 }
 0x243   : > { %v1201_v26 = vsel %vm1190_vm11, nan, %v1200_v35  ;;  %vm732_vm3 = vcmp.eq.s32.totalorder %v3067_v25, 2  ;;  %v890_v29 = vsel %vm883_vm12, %v886_v5, %v889_v40  ;;  %vm1035_vm15 = vweird.f32 %v2120_v63 }
 0x244   : > { %v1672_v20 = vmul.f32 %v1356_v30, %v3109_v56  ;;  %1688 = vmatpush.msrb.mxu3 %v1673_v41  ;;  %v3288_v0 = vxor.u32 2147483648, %v3074_v10  ;;  %vm728_vm9 = vcmp.lt.s32.totalorder %v3067_v25, 2  ;;  %v3289_v38 = vxor.u32 2147483648, %v3078_v62 }
 0x245   : > { %v1046_v11 = vsel %vm1035_vm15, nan, %v1045_v2  ;;  %vm577_vm0 = vcmp.eq.s32.totalorder %v3041_v60, 2  ;;  %vm880_vm4 = vweird.f32 %v2090_v16  ;;  %v1671_v63 = vmul.f32 %v1201_v26, %v3059_v61 }
 0x246   : > { %v576_v28 = vsel %vm574_vm2, %v3038_v1, %v3288_v0  ;;  %v734_v45 = vsel %vm732_vm3, %v3289_v38, %v3093_v37  ;;  %1689 = vmatpush.msrb.mxu3 %v1672_v20  ;;  %vm573_vm5 = vcmp.lt.s32.totalorder %v3041_v60, 2  ;;  %v3290_v56 = vxor.u32 2147483648, %v3038_v1 }
 0x247   : > { %v735_v46 = vsel %vm728_vm9, %v731_v42, %v734_v45  ;;  %v891_v25 = vsel %vm880_vm4, nan, %v890_v29  ;;  %vm725_vm2 = vweird.f32 %v1996_v55  ;;  %v1670_v62 = vmul.f32 %v1046_v11, %v3019_v22 }
 0x248   : > { %v579_v7 = vsel %vm577_vm0, %v3290_v56, %v3074_v10  ;;  %1690 = vmatpush.msrb.mxu3 %v1671_v63  ;;  %v736_v37 = vsel %vm725_vm2, nan, %v735_v46  ;;  %vm570_vm6 = vweird.f32 %v1990_v47  ;;  %v1669_v16 = vmul.f32 %v891_v25, %v2980_v59 }
 0x249   : > { %v580_v19 = vsel %vm573_vm5, %v576_v28, %v579_v7  ;;  %v1668_v60 = vmul.f32 %v736_v37, %v2918_v34  ;;  %vm1675_vm7 = vcmask 523264   ;;  %v1860_v55 = vmov 1.0  }
 0x24a   : > { %1691 = vmatpush.msrb.mxu3 %v1670_v62  ;;  %v581_v61 = vsel %vm570_vm6, nan, %v580_v19 }
 0x24b   : > { %v1667_v1 = vmul.f32 %v581_v61, %v2848_v50 }
 0x24c   : > { %1692 = vmatpush.msrb.mxu3 %v1669_v16 }
 0x24e   : > { %1693 = vmatpush.msrb.mxu3 %v1668_v60 }
 0x250   : > { %1694 = vmatpush.msrb.mxu3 %v1667_v1 }
 0x251   : > { %1808 = vmatmul.msk.f32.vlgmr.msrb.gmra.mxu3 %vm1675_vm7, %v1860_v55 }
 0x2d4   : > { %v1696_v22 = vpop.f32.mrf.mxu3 }
 0x2d5   : > { %1699 = vst [vmem:[%s213_s10] sm:$0x1] %v1696_v22 }
 0x2d6 PF: > { %s14_s15 = sadd.s32 1, %s1851_s15  }
 0x2d7   : > { %p11_p4 = scmp.ge.s32.totalorder %s14_s15, 10  }
 0x2d9   :  { %13 = sbr.rel (!%p11_p4) target bundleno = 1 (0x1), region = 69 }

</bundles_post_ra>
